<compile_context>
chip_gen: v5e
topology: v5e:2x2
jax: 0.10.0
libtpu: 0.0.40
codegen_flags: <defaults>
</compile_context>

<pallas_src>
import jax
import jax.numpy as jnp
from jax import lax
from jax.experimental import pallas as pl
from jax.experimental.pallas import tpu as pltpu
import numpy as np

FORECAST_LEN = 24


def lstm_forecaster_kernel(x_ref, h0_ref, c0_ref, wih_ref, whh_ref, b_ref,
                           whhf_ref, bf_ref, wfc_ref, bfc_ref, out_ref):
    B, H = h0_ref.shape
    warmup_steps = x_ref.shape[0]
    F = out_ref.shape[1]

    wih = wih_ref[...]          # (1, 4H)  i/f/o columns pre-scaled by 0.5
    whh = whh_ref[...]          # (H, 4H)  warmup recurrent weights (pre-scaled)
    b = b_ref[...]              # (1, 4H)  combined bias (pre-scaled)
    whh_f = whhf_ref[...]       # (H, 4H)  forecast weights (fc1 folded, pre-scaled)
    b_f = bf_ref[...]           # (1, 4H)
    wfc = wfc_ref[...]          # (1, H)   fc1 weights (NOT pre-scaled)
    bfc = bfc_ref[...]          # (1, 1)

    def cell(gates, c):
        # One EUP push over the whole (B, 4H) vreg.  Because the i/f/o weight
        # columns were pre-scaled by 0.5, sigmoid(z) == 0.5*tanh(z/2) + 0.5 is
        # a single full-width VPU fma on the activated value; g is the raw
        # tanh slice (its columns were left unscaled).
        t = jnp.tanh(gates)
        act = 0.5 * t + 0.5
        i = act[:, 0 * H:1 * H]
        f = act[:, 1 * H:2 * H]
        o = act[:, 3 * H:4 * H]
        g = t[:, 2 * H:3 * H]
        c_new = f * c + i * g
        h_new = o * jnp.tanh(c_new)
        return h_new, c_new

    # ---- warmup: x . W_ih^T + b has no h/c dependence -> hoisted out of the
    # recurrence as one vectorized off-chain op (bias included, so only one
    # dependent VPU add remains inside the loop).  The trailing size-1 lane
    # dim of x is lane-sparse but entirely off the serial chain at this size.
    x_ih_b = x_ref[...] * wih[None, :, :] + b[None, :, :]   # (warmup, B, 4H)

    h = h0_ref[...]
    c = c0_ref[...]
    for t in range(warmup_steps):                 # static unroll (scheduler-visible)
        gates = jnp.dot(h, whh, preferred_element_type=jnp.float32) + x_ih_b[t]
        h, c = cell(gates, c)

    # ---- forecast: gates depend on h only (fc1 folded into whh_f / b_f);
    # y = fc1(h) is computed purely to fill the output, off the serial chain.
    lane = lax.broadcasted_iota(jnp.int32, (B, F), 1)
    y_all = jnp.zeros((B, F), jnp.float32)
    for t in range(F):                            # static unroll, ~15 live vregs: no spills
        gates = jnp.dot(h, whh_f, preferred_element_type=jnp.float32) + b_f
        h, c = cell(gates, c)
        y = jnp.sum(h * wfc, axis=-1, keepdims=True) + bfc   # (B, 1), off-chain XLU reduce
        y_all = jnp.where(lane == t, y, y_all)               # place at output lane t
    out_ref[...] = y_all                          # single lane-dense store (B, 24)


@jax.jit
def lstm_forecaster(x, h0, c0, w_ih, w_hh, b_ih, b_hh, fc_w, fc_b):
    B, S = x.shape
    H = h0.shape[1]
    assert S > FORECAST_LEN, "seq_len must exceed the 24-step forecast horizon"
    warmup = S - FORECAST_LEN

    # Only the warmup slice of x is read by forward(); obs_dim == 1 kept as an
    # explicit trailing axis (time-major), matching x.T.unsqueeze(2) in PyTorch.
    x_warm = jnp.transpose(x[:, :warmup])[:, :, None]        # (warmup, B, 1)

    # Pre-scale the i/f/o gate columns by 0.5 so one tanh over the whole
    # (B, 4H) gates vreg activates every gate (sigmoid(z) = 0.5*tanh(z/2)+0.5);
    # the g columns stay unscaled.  Gate order of torch LSTMCell: i, f, g, o.
    scale = jnp.concatenate([jnp.full((H,), 0.5, jnp.float32),
                             jnp.full((H,), 0.5, jnp.float32),
                             jnp.ones((H,), jnp.float32),
                             jnp.full((H,), 0.5, jnp.float32)])
    wih = jnp.transpose(w_ih) * scale[None, :]                # (1, 4H)
    whh = jnp.transpose(w_hh) * scale[None, :]                # (H, 4H)
    b = ((b_ih + b_hh) * scale)[None, :]                      # (1, 4H)

    # Fold fc1 into the recurrent weights for the forecast phase (exact; the
    # column-wise 0.5 scaling commutes with the fold):
    #   y = h @ fc_w^T + fc_b  =>  y * W_ih^T = h @ (fc_w^T * W_ih^T) + fc_b * W_ih^T
    whh_f = whh + jnp.transpose(fc_w) * wih                   # (H, 4H)
    b_f = b + fc_b.reshape(1, 1) * wih                        # (1, 4H)

    wfc = fc_w.reshape(1, H)                                  # fc1 itself, unscaled
    bfc = fc_b.reshape(1, 1)

    # Tiny, strictly serial problem: everything stays resident in VMEM,
    # no grid / no BlockSpec tiling / no pipelining (per review).
    vmem = pl.BlockSpec(memory_space=pltpu.MemorySpace.VMEM)
    return pl.pallas_call(
        lstm_forecaster_kernel,
        out_shape=jax.ShapeDtypeStruct((B, FORECAST_LEN), jnp.float32),
        in_specs=[vmem] * 10,
        out_specs=vmem,
    )(x_warm, h0, c0, wih, whh, b, whh_f, b_f, wfc, bfc)


def reference(x, h0, c0, w_ih, w_hh, b_ih, b_hh, fc_w, fc_b):
    # Pure-JAX reference mirroring the PyTorch forward() semantics.
    B, S = x.shape
    x_seq = x.T                                               # (S, B)

    def cell(x_t, h, c):
        gates = x_t @ w_ih.T + h @ w_hh.T + b_ih + b_hh
        i, f, g, o = jnp.split(gates, 4, axis=1)
        c = jax.nn.sigmoid(f) * c + jax.nn.sigmoid(i) * jnp.tanh(g)
        h = jax.nn.sigmoid(o) * jnp.tanh(c)
        return h, c

    h, c = h0, c0
    for t in range(S - FORECAST_LEN):
        h, c = cell(x_seq[t][:, None], h, c)
    ys = []
    y = h @ fc_w.T + fc_b
    for _ in range(FORECAST_LEN):
        h, c = cell(y, h, c)
        y = h @ fc_w.T + fc_b
        ys.append(y)
    return jnp.stack(ys, axis=0)[:, :, 0].T                   # (B, 24)


if __name__ == "__main__":
    # obs_dim = act_dim = 1 (implied by forward()); batch matches train()'s 32.
    B, S, H = 32, 32, 32
    key = jax.random.PRNGKey(0)
    ks = jax.random.split(key, 9)

    x = jax.random.normal(ks[0], (B, S), jnp.float32)
    # PyTorch draws hx, cx with torch.randn inside forward_warmup; here they are
    # drawn deterministically and passed in explicitly.
    h0 = jax.random.normal(ks[1], (B, H), jnp.float32)
    c0 = jax.random.normal(ks[2], (B, H), jnp.float32)

    sc = 1.0 / float(np.sqrt(H))
    w_ih = jax.random.uniform(ks[3], (4 * H, 1), jnp.float32, -sc, sc)
    w_hh = jax.random.uniform(ks[4], (4 * H, H), jnp.float32, -sc, sc)
    b_ih = jax.random.uniform(ks[5], (4 * H,), jnp.float32, -sc, sc)
    b_hh = jax.random.uniform(ks[6], (4 * H,), jnp.float32, -sc, sc)
    fc_w = jax.random.uniform(ks[7], (1, H), jnp.float32, -sc, sc)
    fc_b = jax.random.uniform(ks[8], (1,), jnp.float32, -sc, sc)

    out = lstm_forecaster(x, h0, c0, w_ih, w_hh, b_ih, b_hh, fc_w, fc_b)
    jax.block_until_ready(out)

    ref = reference(x, h0, c0, w_ih, w_hh, b_ih, b_hh, fc_w, fc_b)
    # fc1 fold + tanh-identity sigmoid change f32 rounding order slightly.
    np.testing.assert_allclose(np.asarray(out), np.asarray(ref), rtol=5e-4, atol=5e-4)
    assert out.shape == (B, FORECAST_LEN)
    print("KERNEL_OK")
</pallas_src>

<mosaic_0001>
module attributes {stable_mosaic.version = 11 : i64} {
  func.func @lstm_forecaster_kernel(%arg0: memref<8x32x1xf32, #tpu.memory_space<vmem>>, %arg1: memref<32x32xf32, #tpu.memory_space<vmem>>, %arg2: memref<32x32xf32, #tpu.memory_space<vmem>>, %arg3: memref<1x128xf32, #tpu.memory_space<vmem>>, %arg4: memref<32x128xf32, #tpu.memory_space<vmem>>, %arg5: memref<1x128xf32, #tpu.memory_space<vmem>>, %arg6: memref<32x128xf32, #tpu.memory_space<vmem>>, %arg7: memref<1x128xf32, #tpu.memory_space<vmem>>, %arg8: memref<1x32xf32, #tpu.memory_space<vmem>>, %arg9: memref<1x1xf32, #tpu.memory_space<vmem>>, %arg10: memref<32x24xf32, #tpu.memory_space<vmem>>) attributes {dimension_semantics = [], scalar_prefetch = 0 : i64, scratch_operands = 0 : i64, tpu.core_type = #tpu.core_type<tc>} {
    %c0 = arith.constant 0 : index
    %c0_0 = arith.constant 0 : index
    %0 = vector.load %arg3[%c0, %c0_0] : memref<1x128xf32, #tpu.memory_space<vmem>>, vector<1x128xf32>
    %c0_1 = arith.constant 0 : index
    %c0_2 = arith.constant 0 : index
    %1 = vector.load %arg4[%c0_1, %c0_2] : memref<32x128xf32, #tpu.memory_space<vmem>>, vector<32x128xf32>
    %c0_3 = arith.constant 0 : index
    %c0_4 = arith.constant 0 : index
    %2 = vector.load %arg5[%c0_3, %c0_4] : memref<1x128xf32, #tpu.memory_space<vmem>>, vector<1x128xf32>
    %c0_5 = arith.constant 0 : index
    %c0_6 = arith.constant 0 : index
    %3 = vector.load %arg6[%c0_5, %c0_6] : memref<32x128xf32, #tpu.memory_space<vmem>>, vector<32x128xf32>
    %c0_7 = arith.constant 0 : index
    %c0_8 = arith.constant 0 : index
    %4 = vector.load %arg7[%c0_7, %c0_8] : memref<1x128xf32, #tpu.memory_space<vmem>>, vector<1x128xf32>
    %c0_9 = arith.constant 0 : index
    %c0_10 = arith.constant 0 : index
    %5 = vector.load %arg8[%c0_9, %c0_10] : memref<1x32xf32, #tpu.memory_space<vmem>>, vector<1x32xf32>
    %c0_11 = arith.constant 0 : index
    %c0_12 = arith.constant 0 : index
    %6 = vector.load %arg9[%c0_11, %c0_12] : memref<1x1xf32, #tpu.memory_space<vmem>>, vector<1x1xf32>
    %c0_13 = arith.constant 0 : index
    %c0_14 = arith.constant 0 : index
    %c0_15 = arith.constant 0 : index
    %7 = vector.load %arg0[%c0_13, %c0_14, %c0_15] : memref<8x32x1xf32, #tpu.memory_space<vmem>>, vector<8x32x1xf32>
    %8 = vector.shape_cast %0 : vector<1x128xf32> to vector<1x1x128xf32>
    %9 = vector.broadcast %7 : vector<8x32x1xf32> to vector<8x32x128xf32>
    %10 = vector.broadcast %8 : vector<1x1x128xf32> to vector<8x32x128xf32>
    %11 = arith.mulf %9, %10 : vector<8x32x128xf32>
    %12 = vector.shape_cast %2 : vector<1x128xf32> to vector<1x1x128xf32>
    %13 = vector.broadcast %12 : vector<1x1x128xf32> to vector<8x32x128xf32>
    %14 = arith.addf %11, %13 : vector<8x32x128xf32>
    %c0_16 = arith.constant 0 : index
    %c0_17 = arith.constant 0 : index
    %15 = vector.load %arg1[%c0_16, %c0_17] : memref<32x32xf32, #tpu.memory_space<vmem>>, vector<32x32xf32>
    %c0_18 = arith.constant 0 : index
    %c0_19 = arith.constant 0 : index
    %16 = vector.load %arg2[%c0_18, %c0_19] : memref<32x32xf32, #tpu.memory_space<vmem>>, vector<32x32xf32>
    %cst = arith.constant dense<0.000000e+00> : vector<32x128xf32>
    %17 = tpu.matmul %15, %1, %cst {dimension_numbers = #tpu.dot_dimension_numbers<[1], [0], [0], [1], [0, 0, 1, 1], [], []>} : vector<32x32xf32>, vector<32x128xf32>, vector<32x128xf32> -> vector<32x128xf32>
    %18 = vector.extract_strided_slice %14 {offsets = [0, 0, 0], sizes = [1, 32, 128], strides = [1, 1, 1]} : vector<8x32x128xf32> to vector<1x32x128xf32>
    %19 = vector.shape_cast %18 : vector<1x32x128xf32> to vector<32x128xf32>
    %20 = arith.addf %17, %19 : vector<32x128xf32>
    %21 = math.tanh %20 : vector<32x128xf32>
    %cst_20 = arith.constant 5.000000e-01 : f32
    %22 = vector.broadcast %cst_20 : f32 to vector<32x128xf32>
    %23 = arith.mulf %22, %21 : vector<32x128xf32>
    %cst_21 = arith.constant 5.000000e-01 : f32
    %24 = vector.broadcast %cst_21 : f32 to vector<32x128xf32>
    %25 = arith.addf %23, %24 : vector<32x128xf32>
    %26 = vector.extract_strided_slice %25 {offsets = [0, 0], sizes = [32, 32], strides = [1, 1]} : vector<32x128xf32> to vector<32x32xf32>
    %27 = vector.extract_strided_slice %25 {offsets = [0, 32], sizes = [32, 32], strides = [1, 1]} : vector<32x128xf32> to vector<32x32xf32>
    %28 = vector.extract_strided_slice %25 {offsets = [0, 96], sizes = [32, 32], strides = [1, 1]} : vector<32x128xf32> to vector<32x32xf32>
    %29 = vector.extract_strided_slice %21 {offsets = [0, 64], sizes = [32, 32], strides = [1, 1]} : vector<32x128xf32> to vector<32x32xf32>
    %30 = arith.mulf %27, %16 : vector<32x32xf32>
    %31 = arith.mulf %26, %29 : vector<32x32xf32>
    %32 = arith.addf %30, %31 : vector<32x32xf32>
    %33 = math.tanh %32 : vector<32x32xf32>
    %34 = arith.mulf %28, %33 : vector<32x32xf32>
    %cst_22 = arith.constant dense<0.000000e+00> : vector<32x128xf32>
    %35 = tpu.matmul %34, %1, %cst_22 {dimension_numbers = #tpu.dot_dimension_numbers<[1], [0], [0], [1], [0, 0, 1, 1], [], []>} : vector<32x32xf32>, vector<32x128xf32>, vector<32x128xf32> -> vector<32x128xf32>
    %36 = vector.extract_strided_slice %14 {offsets = [1, 0, 0], sizes = [1, 32, 128], strides = [1, 1, 1]} : vector<8x32x128xf32> to vector<1x32x128xf32>
    %37 = vector.shape_cast %36 : vector<1x32x128xf32> to vector<32x128xf32>
    %38 = arith.addf %35, %37 : vector<32x128xf32>
    %39 = math.tanh %38 : vector<32x128xf32>
    %cst_23 = arith.constant 5.000000e-01 : f32
    %40 = vector.broadcast %cst_23 : f32 to vector<32x128xf32>
    %41 = arith.mulf %40, %39 : vector<32x128xf32>
    %cst_24 = arith.constant 5.000000e-01 : f32
    %42 = vector.broadcast %cst_24 : f32 to vector<32x128xf32>
    %43 = arith.addf %41, %42 : vector<32x128xf32>
    %44 = vector.extract_strided_slice %43 {offsets = [0, 0], sizes = [32, 32], strides = [1, 1]} : vector<32x128xf32> to vector<32x32xf32>
    %45 = vector.extract_strided_slice %43 {offsets = [0, 32], sizes = [32, 32], strides = [1, 1]} : vector<32x128xf32> to vector<32x32xf32>
    %46 = vector.extract_strided_slice %43 {offsets = [0, 96], sizes = [32, 32], strides = [1, 1]} : vector<32x128xf32> to vector<32x32xf32>
    %47 = vector.extract_strided_slice %39 {offsets = [0, 64], sizes = [32, 32], strides = [1, 1]} : vector<32x128xf32> to vector<32x32xf32>
    %48 = arith.mulf %45, %32 : vector<32x32xf32>
    %49 = arith.mulf %44, %47 : vector<32x32xf32>
    %50 = arith.addf %48, %49 : vector<32x32xf32>
    %51 = math.tanh %50 : vector<32x32xf32>
    %52 = arith.mulf %46, %51 : vector<32x32xf32>
    %cst_25 = arith.constant dense<0.000000e+00> : vector<32x128xf32>
    %53 = tpu.matmul %52, %1, %cst_25 {dimension_numbers = #tpu.dot_dimension_numbers<[1], [0], [0], [1], [0, 0, 1, 1], [], []>} : vector<32x32xf32>, vector<32x128xf32>, vector<32x128xf32> -> vector<32x128xf32>
    %54 = vector.extract_strided_slice %14 {offsets = [2, 0, 0], sizes = [1, 32, 128], strides = [1, 1, 1]} : vector<8x32x128xf32> to vector<1x32x128xf32>
    %55 = vector.shape_cast %54 : vector<1x32x128xf32> to vector<32x128xf32>
    %56 = arith.addf %53, %55 : vector<32x128xf32>
    %57 = math.tanh %56 : vector<32x128xf32>
    %cst_26 = arith.constant 5.000000e-01 : f32
    %58 = vector.broadcast %cst_26 : f32 to vector<32x128xf32>
    %59 = arith.mulf %58, %57 : vector<32x128xf32>
    %cst_27 = arith.constant 5.000000e-01 : f32
    %60 = vector.broadcast %cst_27 : f32 to vector<32x128xf32>
    %61 = arith.addf %59, %60 : vector<32x128xf32>
    %62 = vector.extract_strided_slice %61 {offsets = [0, 0], sizes = [32, 32], strides = [1, 1]} : vector<32x128xf32> to vector<32x32xf32>
    %63 = vector.extract_strided_slice %61 {offsets = [0, 32], sizes = [32, 32], strides = [1, 1]} : vector<32x128xf32> to vector<32x32xf32>
    %64 = vector.extract_strided_slice %61 {offsets = [0, 96], sizes = [32, 32], strides = [1, 1]} : vector<32x128xf32> to vector<32x32xf32>
    %65 = vector.extract_strided_slice %57 {offsets = [0, 64], sizes = [32, 32], strides = [1, 1]} : vector<32x128xf32> to vector<32x32xf32>
    %66 = arith.mulf %63, %50 : vector<32x32xf32>
    %67 = arith.mulf %62, %65 : vector<32x32xf32>
    %68 = arith.addf %66, %67 : vector<32x32xf32>
    %69 = math.tanh %68 : vector<32x32xf32>
    %70 = arith.mulf %64, %69 : vector<32x32xf32>
    %cst_28 = arith.constant dense<0.000000e+00> : vector<32x128xf32>
    %71 = tpu.matmul %70, %1, %cst_28 {dimension_numbers = #tpu.dot_dimension_numbers<[1], [0], [0], [1], [0, 0, 1, 1], [], []>} : vector<32x32xf32>, vector<32x128xf32>, vector<32x128xf32> -> vector<32x128xf32>
    %72 = vector.extract_strided_slice %14 {offsets = [3, 0, 0], sizes = [1, 32, 128], strides = [1, 1, 1]} : vector<8x32x128xf32> to vector<1x32x128xf32>
    %73 = vector.shape_cast %72 : vector<1x32x128xf32> to vector<32x128xf32>
    %74 = arith.addf %71, %73 : vector<32x128xf32>
    %75 = math.tanh %74 : vector<32x128xf32>
    %cst_29 = arith.constant 5.000000e-01 : f32
    %76 = vector.broadcast %cst_29 : f32 to vector<32x128xf32>
    %77 = arith.mulf %76, %75 : vector<32x128xf32>
    %cst_30 = arith.constant 5.000000e-01 : f32
    %78 = vector.broadcast %cst_30 : f32 to vector<32x128xf32>
    %79 = arith.addf %77, %78 : vector<32x128xf32>
    %80 = vector.extract_strided_slice %79 {offsets = [0, 0], sizes = [32, 32], strides = [1, 1]} : vector<32x128xf32> to vector<32x32xf32>
    %81 = vector.extract_strided_slice %79 {offsets = [0, 32], sizes = [32, 32], strides = [1, 1]} : vector<32x128xf32> to vector<32x32xf32>
    %82 = vector.extract_strided_slice %79 {offsets = [0, 96], sizes = [32, 32], strides = [1, 1]} : vector<32x128xf32> to vector<32x32xf32>
    %83 = vector.extract_strided_slice %75 {offsets = [0, 64], sizes = [32, 32], strides = [1, 1]} : vector<32x128xf32> to vector<32x32xf32>
    %84 = arith.mulf %81, %68 : vector<32x32xf32>
    %85 = arith.mulf %80, %83 : vector<32x32xf32>
    %86 = arith.addf %84, %85 : vector<32x32xf32>
    %87 = math.tanh %86 : vector<32x32xf32>
    %88 = arith.mulf %82, %87 : vector<32x32xf32>
    %cst_31 = arith.constant dense<0.000000e+00> : vector<32x128xf32>
    %89 = tpu.matmul %88, %1, %cst_31 {dimension_numbers = #tpu.dot_dimension_numbers<[1], [0], [0], [1], [0, 0, 1, 1], [], []>} : vector<32x32xf32>, vector<32x128xf32>, vector<32x128xf32> -> vector<32x128xf32>
    %90 = vector.extract_strided_slice %14 {offsets = [4, 0, 0], sizes = [1, 32, 128], strides = [1, 1, 1]} : vector<8x32x128xf32> to vector<1x32x128xf32>
    %91 = vector.shape_cast %90 : vector<1x32x128xf32> to vector<32x128xf32>
    %92 = arith.addf %89, %91 : vector<32x128xf32>
    %93 = math.tanh %92 : vector<32x128xf32>
    %cst_32 = arith.constant 5.000000e-01 : f32
    %94 = vector.broadcast %cst_32 : f32 to vector<32x128xf32>
    %95 = arith.mulf %94, %93 : vector<32x128xf32>
    %cst_33 = arith.constant 5.000000e-01 : f32
    %96 = vector.broadcast %cst_33 : f32 to vector<32x128xf32>
    %97 = arith.addf %95, %96 : vector<32x128xf32>
    %98 = vector.extract_strided_slice %97 {offsets = [0, 0], sizes = [32, 32], strides = [1, 1]} : vector<32x128xf32> to vector<32x32xf32>
    %99 = vector.extract_strided_slice %97 {offsets = [0, 32], sizes = [32, 32], strides = [1, 1]} : vector<32x128xf32> to vector<32x32xf32>
    %100 = vector.extract_strided_slice %97 {offsets = [0, 96], sizes = [32, 32], strides = [1, 1]} : vector<32x128xf32> to vector<32x32xf32>
    %101 = vector.extract_strided_slice %93 {offsets = [0, 64], sizes = [32, 32], strides = [1, 1]} : vector<32x128xf32> to vector<32x32xf32>
    %102 = arith.mulf %99, %86 : vector<32x32xf32>
    %103 = arith.mulf %98, %101 : vector<32x32xf32>
    %104 = arith.addf %102, %103 : vector<32x32xf32>
    %105 = math.tanh %104 : vector<32x32xf32>
    %106 = arith.mulf %100, %105 : vector<32x32xf32>
    %cst_34 = arith.constant dense<0.000000e+00> : vector<32x128xf32>
    %107 = tpu.matmul %106, %1, %cst_34 {dimension_numbers = #tpu.dot_dimension_numbers<[1], [0], [0], [1], [0, 0, 1, 1], [], []>} : vector<32x32xf32>, vector<32x128xf32>, vector<32x128xf32> -> vector<32x128xf32>
    %108 = vector.extract_strided_slice %14 {offsets = [5, 0, 0], sizes = [1, 32, 128], strides = [1, 1, 1]} : vector<8x32x128xf32> to vector<1x32x128xf32>
    %109 = vector.shape_cast %108 : vector<1x32x128xf32> to vector<32x128xf32>
    %110 = arith.addf %107, %109 : vector<32x128xf32>
    %111 = math.tanh %110 : vector<32x128xf32>
    %cst_35 = arith.constant 5.000000e-01 : f32
    %112 = vector.broadcast %cst_35 : f32 to vector<32x128xf32>
    %113 = arith.mulf %112, %111 : vector<32x128xf32>
    %cst_36 = arith.constant 5.000000e-01 : f32
    %114 = vector.broadcast %cst_36 : f32 to vector<32x128xf32>
    %115 = arith.addf %113, %114 : vector<32x128xf32>
    %116 = vector.extract_strided_slice %115 {offsets = [0, 0], sizes = [32, 32], strides = [1, 1]} : vector<32x128xf32> to vector<32x32xf32>
    %117 = vector.extract_strided_slice %115 {offsets = [0, 32], sizes = [32, 32], strides = [1, 1]} : vector<32x128xf32> to vector<32x32xf32>
    %118 = vector.extract_strided_slice %115 {offsets = [0, 96], sizes = [32, 32], strides = [1, 1]} : vector<32x128xf32> to vector<32x32xf32>
    %119 = vector.extract_strided_slice %111 {offsets = [0, 64], sizes = [32, 32], strides = [1, 1]} : vector<32x128xf32> to vector<32x32xf32>
    %120 = arith.mulf %117, %104 : vector<32x32xf32>
    %121 = arith.mulf %116, %119 : vector<32x32xf32>
    %122 = arith.addf %120, %121 : vector<32x32xf32>
    %123 = math.tanh %122 : vector<32x32xf32>
    %124 = arith.mulf %118, %123 : vector<32x32xf32>
    %cst_37 = arith.constant dense<0.000000e+00> : vector<32x128xf32>
    %125 = tpu.matmul %124, %1, %cst_37 {dimension_numbers = #tpu.dot_dimension_numbers<[1], [0], [0], [1], [0, 0, 1, 1], [], []>} : vector<32x32xf32>, vector<32x128xf32>, vector<32x128xf32> -> vector<32x128xf32>
    %126 = vector.extract_strided_slice %14 {offsets = [6, 0, 0], sizes = [1, 32, 128], strides = [1, 1, 1]} : vector<8x32x128xf32> to vector<1x32x128xf32>
    %127 = vector.shape_cast %126 : vector<1x32x128xf32> to vector<32x128xf32>
    %128 = arith.addf %125, %127 : vector<32x128xf32>
    %129 = math.tanh %128 : vector<32x128xf32>
    %cst_38 = arith.constant 5.000000e-01 : f32
    %130 = vector.broadcast %cst_38 : f32 to vector<32x128xf32>
    %131 = arith.mulf %130, %129 : vector<32x128xf32>
    %cst_39 = arith.constant 5.000000e-01 : f32
    %132 = vector.broadcast %cst_39 : f32 to vector<32x128xf32>
    %133 = arith.addf %131, %132 : vector<32x128xf32>
    %134 = vector.extract_strided_slice %133 {offsets = [0, 0], sizes = [32, 32], strides = [1, 1]} : vector<32x128xf32> to vector<32x32xf32>
    %135 = vector.extract_strided_slice %133 {offsets = [0, 32], sizes = [32, 32], strides = [1, 1]} : vector<32x128xf32> to vector<32x32xf32>
    %136 = vector.extract_strided_slice %133 {offsets = [0, 96], sizes = [32, 32], strides = [1, 1]} : vector<32x128xf32> to vector<32x32xf32>
    %137 = vector.extract_strided_slice %129 {offsets = [0, 64], sizes = [32, 32], strides = [1, 1]} : vector<32x128xf32> to vector<32x32xf32>
    %138 = arith.mulf %135, %122 : vector<32x32xf32>
    %139 = arith.mulf %134, %137 : vector<32x32xf32>
    %140 = arith.addf %138, %139 : vector<32x32xf32>
    %141 = math.tanh %140 : vector<32x32xf32>
    %142 = arith.mulf %136, %141 : vector<32x32xf32>
    %cst_40 = arith.constant dense<0.000000e+00> : vector<32x128xf32>
    %143 = tpu.matmul %142, %1, %cst_40 {dimension_numbers = #tpu.dot_dimension_numbers<[1], [0], [0], [1], [0, 0, 1, 1], [], []>} : vector<32x32xf32>, vector<32x128xf32>, vector<32x128xf32> -> vector<32x128xf32>
    %144 = vector.extract_strided_slice %14 {offsets = [7, 0, 0], sizes = [1, 32, 128], strides = [1, 1, 1]} : vector<8x32x128xf32> to vector<1x32x128xf32>
    %145 = vector.shape_cast %144 : vector<1x32x128xf32> to vector<32x128xf32>
    %146 = arith.addf %143, %145 : vector<32x128xf32>
    %147 = math.tanh %146 : vector<32x128xf32>
    %cst_41 = arith.constant 5.000000e-01 : f32
    %148 = vector.broadcast %cst_41 : f32 to vector<32x128xf32>
    %149 = arith.mulf %148, %147 : vector<32x128xf32>
    %cst_42 = arith.constant 5.000000e-01 : f32
    %150 = vector.broadcast %cst_42 : f32 to vector<32x128xf32>
    %151 = arith.addf %149, %150 : vector<32x128xf32>
    %152 = vector.extract_strided_slice %151 {offsets = [0, 0], sizes = [32, 32], strides = [1, 1]} : vector<32x128xf32> to vector<32x32xf32>
    %153 = vector.extract_strided_slice %151 {offsets = [0, 32], sizes = [32, 32], strides = [1, 1]} : vector<32x128xf32> to vector<32x32xf32>
    %154 = vector.extract_strided_slice %151 {offsets = [0, 96], sizes = [32, 32], strides = [1, 1]} : vector<32x128xf32> to vector<32x32xf32>
    %155 = vector.extract_strided_slice %147 {offsets = [0, 64], sizes = [32, 32], strides = [1, 1]} : vector<32x128xf32> to vector<32x32xf32>
    %156 = arith.mulf %153, %140 : vector<32x32xf32>
    %157 = arith.mulf %152, %155 : vector<32x32xf32>
    %158 = arith.addf %156, %157 : vector<32x32xf32>
    %159 = math.tanh %158 : vector<32x32xf32>
    %160 = arith.mulf %154, %159 : vector<32x32xf32>
    %161 = tpu.iota {dimensions = array<i32: 1>} : vector<32x24xi32>
    %cst_43 = arith.constant 0.000000e+00 : f32
    %162 = vector.broadcast %cst_43 : f32 to vector<32x24xf32>
    %cst_44 = arith.constant dense<0.000000e+00> : vector<32x128xf32>
    %163 = tpu.matmul %160, %3, %cst_44 {dimension_numbers = #tpu.dot_dimension_numbers<[1], [0], [0], [1], [0, 0, 1, 1], [], []>} : vector<32x32xf32>, vector<32x128xf32>, vector<32x128xf32> -> vector<32x128xf32>
    %164 = vector.broadcast %4 : vector<1x128xf32> to vector<32x128xf32>
    %165 = arith.addf %163, %164 : vector<32x128xf32>
    %166 = math.tanh %165 : vector<32x128xf32>
    %cst_45 = arith.constant 5.000000e-01 : f32
    %167 = vector.broadcast %cst_45 : f32 to vector<32x128xf32>
    %168 = arith.mulf %167, %166 : vector<32x128xf32>
    %cst_46 = arith.constant 5.000000e-01 : f32
    %169 = vector.broadcast %cst_46 : f32 to vector<32x128xf32>
    %170 = arith.addf %168, %169 : vector<32x128xf32>
    %171 = vector.extract_strided_slice %170 {offsets = [0, 0], sizes = [32, 32], strides = [1, 1]} : vector<32x128xf32> to vector<32x32xf32>
    %172 = vector.extract_strided_slice %170 {offsets = [0, 32], sizes = [32, 32], strides = [1, 1]} : vector<32x128xf32> to vector<32x32xf32>
    %173 = vector.extract_strided_slice %170 {offsets = [0, 96], sizes = [32, 32], strides = [1, 1]} : vector<32x128xf32> to vector<32x32xf32>
    %174 = vector.extract_strided_slice %166 {offsets = [0, 64], sizes = [32, 32], strides = [1, 1]} : vector<32x128xf32> to vector<32x32xf32>
    %175 = arith.mulf %172, %158 : vector<32x32xf32>
    %176 = arith.mulf %171, %174 : vector<32x32xf32>
    %177 = arith.addf %175, %176 : vector<32x32xf32>
    %178 = math.tanh %177 : vector<32x32xf32>
    %179 = arith.mulf %173, %178 : vector<32x32xf32>
    %180 = vector.broadcast %5 : vector<1x32xf32> to vector<32x32xf32>
    %181 = arith.mulf %179, %180 : vector<32x32xf32>
    %cst_47 = arith.constant dense<0.000000e+00> : vector<32xf32>
    %182 = vector.multi_reduction <add>, %181, %cst_47 [1] : vector<32x32xf32> to vector<32xf32>
    %183 = vector.shape_cast %182 : vector<32xf32> to vector<32x1xf32>
    %184 = vector.broadcast %6 : vector<1x1xf32> to vector<32x1xf32>
    %185 = arith.addf %183, %184 : vector<32x1xf32>
    %c0_i32 = arith.constant 0 : i32
    %186 = vector.broadcast %c0_i32 : i32 to vector<32x24xi32>
    %187 = arith.cmpi eq, %161, %186 : vector<32x24xi32>
    %188 = vector.shape_cast %185 : vector<32x1xf32> to vector<32x1xf32>
    %189 = vector.broadcast %188 : vector<32x1xf32> to vector<32x24xf32>
    %190 = arith.select %187, %189, %162 : vector<32x24xi1>, vector<32x24xf32>
    %cst_48 = arith.constant dense<0.000000e+00> : vector<32x128xf32>
    %191 = tpu.matmul %179, %3, %cst_48 {dimension_numbers = #tpu.dot_dimension_numbers<[1], [0], [0], [1], [0, 0, 1, 1], [], []>} : vector<32x32xf32>, vector<32x128xf32>, vector<32x128xf32> -> vector<32x128xf32>
    %192 = vector.broadcast %4 : vector<1x128xf32> to vector<32x128xf32>
    %193 = arith.addf %191, %192 : vector<32x128xf32>
    %194 = math.tanh %193 : vector<32x128xf32>
    %cst_49 = arith.constant 5.000000e-01 : f32
    %195 = vector.broadcast %cst_49 : f32 to vector<32x128xf32>
    %196 = arith.mulf %195, %194 : vector<32x128xf32>
    %cst_50 = arith.constant 5.000000e-01 : f32
    %197 = vector.broadcast %cst_50 : f32 to vector<32x128xf32>
    %198 = arith.addf %196, %197 : vector<32x128xf32>
    %199 = vector.extract_strided_slice %198 {offsets = [0, 0], sizes = [32, 32], strides = [1, 1]} : vector<32x128xf32> to vector<32x32xf32>
    %200 = vector.extract_strided_slice %198 {offsets = [0, 32], sizes = [32, 32], strides = [1, 1]} : vector<32x128xf32> to vector<32x32xf32>
    %201 = vector.extract_strided_slice %198 {offsets = [0, 96], sizes = [32, 32], strides = [1, 1]} : vector<32x128xf32> to vector<32x32xf32>
    %202 = vector.extract_strided_slice %194 {offsets = [0, 64], sizes = [32, 32], strides = [1, 1]} : vector<32x128xf32> to vector<32x32xf32>
    %203 = arith.mulf %200, %177 : vector<32x32xf32>
    %204 = arith.mulf %199, %202 : vector<32x32xf32>
    %205 = arith.addf %203, %204 : vector<32x32xf32>
    %206 = math.tanh %205 : vector<32x32xf32>
    %207 = arith.mulf %201, %206 : vector<32x32xf32>
    %208 = vector.broadcast %5 : vector<1x32xf32> to vector<32x32xf32>
    %209 = arith.mulf %207, %208 : vector<32x32xf32>
    %cst_51 = arith.constant dense<0.000000e+00> : vector<32xf32>
    %210 = vector.multi_reduction <add>, %209, %cst_51 [1] : vector<32x32xf32> to vector<32xf32>
    %211 = vector.shape_cast %210 : vector<32xf32> to vector<32x1xf32>
    %212 = vector.broadcast %6 : vector<1x1xf32> to vector<32x1xf32>
    %213 = arith.addf %211, %212 : vector<32x1xf32>
    %c1_i32 = arith.constant 1 : i32
    %214 = vector.broadcast %c1_i32 : i32 to vector<32x24xi32>
    %215 = arith.cmpi eq, %161, %214 : vector<32x24xi32>
    %216 = vector.shape_cast %213 : vector<32x1xf32> to vector<32x1xf32>
    %217 = vector.broadcast %216 : vector<32x1xf32> to vector<32x24xf32>
    %218 = arith.select %215, %217, %190 : vector<32x24xi1>, vector<32x24xf32>
    %cst_52 = arith.constant dense<0.000000e+00> : vector<32x128xf32>
    %219 = tpu.matmul %207, %3, %cst_52 {dimension_numbers = #tpu.dot_dimension_numbers<[1], [0], [0], [1], [0, 0, 1, 1], [], []>} : vector<32x32xf32>, vector<32x128xf32>, vector<32x128xf32> -> vector<32x128xf32>
    %220 = vector.broadcast %4 : vector<1x128xf32> to vector<32x128xf32>
    %221 = arith.addf %219, %220 : vector<32x128xf32>
    %222 = math.tanh %221 : vector<32x128xf32>
    %cst_53 = arith.constant 5.000000e-01 : f32
    %223 = vector.broadcast %cst_53 : f32 to vector<32x128xf32>
    %224 = arith.mulf %223, %222 : vector<32x128xf32>
    %cst_54 = arith.constant 5.000000e-01 : f32
    %225 = vector.broadcast %cst_54 : f32 to vector<32x128xf32>
    %226 = arith.addf %224, %225 : vector<32x128xf32>
    %227 = vector.extract_strided_slice %226 {offsets = [0, 0], sizes = [32, 32], strides = [1, 1]} : vector<32x128xf32> to vector<32x32xf32>
    %228 = vector.extract_strided_slice %226 {offsets = [0, 32], sizes = [32, 32], strides = [1, 1]} : vector<32x128xf32> to vector<32x32xf32>
    %229 = vector.extract_strided_slice %226 {offsets = [0, 96], sizes = [32, 32], strides = [1, 1]} : vector<32x128xf32> to vector<32x32xf32>
    %230 = vector.extract_strided_slice %222 {offsets = [0, 64], sizes = [32, 32], strides = [1, 1]} : vector<32x128xf32> to vector<32x32xf32>
    %231 = arith.mulf %228, %205 : vector<32x32xf32>
    %232 = arith.mulf %227, %230 : vector<32x32xf32>
    %233 = arith.addf %231, %232 : vector<32x32xf32>
    %234 = math.tanh %233 : vector<32x32xf32>
    %235 = arith.mulf %229, %234 : vector<32x32xf32>
    %236 = vector.broadcast %5 : vector<1x32xf32> to vector<32x32xf32>
    %237 = arith.mulf %235, %236 : vector<32x32xf32>
    %cst_55 = arith.constant dense<0.000000e+00> : vector<32xf32>
    %238 = vector.multi_reduction <add>, %237, %cst_55 [1] : vector<32x32xf32> to vector<32xf32>
    %239 = vector.shape_cast %238 : vector<32xf32> to vector<32x1xf32>
    %240 = vector.broadcast %6 : vector<1x1xf32> to vector<32x1xf32>
    %241 = arith.addf %239, %240 : vector<32x1xf32>
    %c2_i32 = arith.constant 2 : i32
    %242 = vector.broadcast %c2_i32 : i32 to vector<32x24xi32>
    %243 = arith.cmpi eq, %161, %242 : vector<32x24xi32>
    %244 = vector.shape_cast %241 : vector<32x1xf32> to vector<32x1xf32>
    %245 = vector.broadcast %244 : vector<32x1xf32> to vector<32x24xf32>
    %246 = arith.select %243, %245, %218 : vector<32x24xi1>, vector<32x24xf32>
    %cst_56 = arith.constant dense<0.000000e+00> : vector<32x128xf32>
    %247 = tpu.matmul %235, %3, %cst_56 {dimension_numbers = #tpu.dot_dimension_numbers<[1], [0], [0], [1], [0, 0, 1, 1], [], []>} : vector<32x32xf32>, vector<32x128xf32>, vector<32x128xf32> -> vector<32x128xf32>
    %248 = vector.broadcast %4 : vector<1x128xf32> to vector<32x128xf32>
    %249 = arith.addf %247, %248 : vector<32x128xf32>
    %250 = math.tanh %249 : vector<32x128xf32>
    %cst_57 = arith.constant 5.000000e-01 : f32
    %251 = vector.broadcast %cst_57 : f32 to vector<32x128xf32>
    %252 = arith.mulf %251, %250 : vector<32x128xf32>
    %cst_58 = arith.constant 5.000000e-01 : f32
    %253 = vector.broadcast %cst_58 : f32 to vector<32x128xf32>
    %254 = arith.addf %252, %253 : vector<32x128xf32>
    %255 = vector.extract_strided_slice %254 {offsets = [0, 0], sizes = [32, 32], strides = [1, 1]} : vector<32x128xf32> to vector<32x32xf32>
    %256 = vector.extract_strided_slice %254 {offsets = [0, 32], sizes = [32, 32], strides = [1, 1]} : vector<32x128xf32> to vector<32x32xf32>
    %257 = vector.extract_strided_slice %254 {offsets = [0, 96], sizes = [32, 32], strides = [1, 1]} : vector<32x128xf32> to vector<32x32xf32>
    %258 = vector.extract_strided_slice %250 {offsets = [0, 64], sizes = [32, 32], strides = [1, 1]} : vector<32x128xf32> to vector<32x32xf32>
    %259 = arith.mulf %256, %233 : vector<32x32xf32>
    %260 = arith.mulf %255, %258 : vector<32x32xf32>
    %261 = arith.addf %259, %260 : vector<32x32xf32>
    %262 = math.tanh %261 : vector<32x32xf32>
    %263 = arith.mulf %257, %262 : vector<32x32xf32>
    %264 = vector.broadcast %5 : vector<1x32xf32> to vector<32x32xf32>
    %265 = arith.mulf %263, %264 : vector<32x32xf32>
    %cst_59 = arith.constant dense<0.000000e+00> : vector<32xf32>
    %266 = vector.multi_reduction <add>, %265, %cst_59 [1] : vector<32x32xf32> to vector<32xf32>
    %267 = vector.shape_cast %266 : vector<32xf32> to vector<32x1xf32>
    %268 = vector.broadcast %6 : vector<1x1xf32> to vector<32x1xf32>
    %269 = arith.addf %267, %268 : vector<32x1xf32>
    %c3_i32 = arith.constant 3 : i32
    %270 = vector.broadcast %c3_i32 : i32 to vector<32x24xi32>
    %271 = arith.cmpi eq, %161, %270 : vector<32x24xi32>
    %272 = vector.shape_cast %269 : vector<32x1xf32> to vector<32x1xf32>
    %273 = vector.broadcast %272 : vector<32x1xf32> to vector<32x24xf32>
    %274 = arith.select %271, %273, %246 : vector<32x24xi1>, vector<32x24xf32>
    %cst_60 = arith.constant dense<0.000000e+00> : vector<32x128xf32>
    %275 = tpu.matmul %263, %3, %cst_60 {dimension_numbers = #tpu.dot_dimension_numbers<[1], [0], [0], [1], [0, 0, 1, 1], [], []>} : vector<32x32xf32>, vector<32x128xf32>, vector<32x128xf32> -> vector<32x128xf32>
    %276 = vector.broadcast %4 : vector<1x128xf32> to vector<32x128xf32>
    %277 = arith.addf %275, %276 : vector<32x128xf32>
    %278 = math.tanh %277 : vector<32x128xf32>
    %cst_61 = arith.constant 5.000000e-01 : f32
    %279 = vector.broadcast %cst_61 : f32 to vector<32x128xf32>
    %280 = arith.mulf %279, %278 : vector<32x128xf32>
    %cst_62 = arith.constant 5.000000e-01 : f32
    %281 = vector.broadcast %cst_62 : f32 to vector<32x128xf32>
    %282 = arith.addf %280, %281 : vector<32x128xf32>
    %283 = vector.extract_strided_slice %282 {offsets = [0, 0], sizes = [32, 32], strides = [1, 1]} : vector<32x128xf32> to vector<32x32xf32>
    %284 = vector.extract_strided_slice %282 {offsets = [0, 32], sizes = [32, 32], strides = [1, 1]} : vector<32x128xf32> to vector<32x32xf32>
    %285 = vector.extract_strided_slice %282 {offsets = [0, 96], sizes = [32, 32], strides = [1, 1]} : vector<32x128xf32> to vector<32x32xf32>
    %286 = vector.extract_strided_slice %278 {offsets = [0, 64], sizes = [32, 32], strides = [1, 1]} : vector<32x128xf32> to vector<32x32xf32>
    %287 = arith.mulf %284, %261 : vector<32x32xf32>
    %288 = arith.mulf %283, %286 : vector<32x32xf32>
    %289 = arith.addf %287, %288 : vector<32x32xf32>
    %290 = math.tanh %289 : vector<32x32xf32>
    %291 = arith.mulf %285, %290 : vector<32x32xf32>
    %292 = vector.broadcast %5 : vector<1x32xf32> to vector<32x32xf32>
    %293 = arith.mulf %291, %292 : vector<32x32xf32>
    %cst_63 = arith.constant dense<0.000000e+00> : vector<32xf32>
    %294 = vector.multi_reduction <add>, %293, %cst_63 [1] : vector<32x32xf32> to vector<32xf32>
    %295 = vector.shape_cast %294 : vector<32xf32> to vector<32x1xf32>
    %296 = vector.broadcast %6 : vector<1x1xf32> to vector<32x1xf32>
    %297 = arith.addf %295, %296 : vector<32x1xf32>
    %c4_i32 = arith.constant 4 : i32
    %298 = vector.broadcast %c4_i32 : i32 to vector<32x24xi32>
    %299 = arith.cmpi eq, %161, %298 : vector<32x24xi32>
    %300 = vector.shape_cast %297 : vector<32x1xf32> to vector<32x1xf32>
    %301 = vector.broadcast %300 : vector<32x1xf32> to vector<32x24xf32>
    %302 = arith.select %299, %301, %274 : vector<32x24xi1>, vector<32x24xf32>
    %cst_64 = arith.constant dense<0.000000e+00> : vector<32x128xf32>
    %303 = tpu.matmul %291, %3, %cst_64 {dimension_numbers = #tpu.dot_dimension_numbers<[1], [0], [0], [1], [0, 0, 1, 1], [], []>} : vector<32x32xf32>, vector<32x128xf32>, vector<32x128xf32> -> vector<32x128xf32>
    %304 = vector.broadcast %4 : vector<1x128xf32> to vector<32x128xf32>
    %305 = arith.addf %303, %304 : vector<32x128xf32>
    %306 = math.tanh %305 : vector<32x128xf32>
    %cst_65 = arith.constant 5.000000e-01 : f32
    %307 = vector.broadcast %cst_65 : f32 to vector<32x128xf32>
    %308 = arith.mulf %307, %306 : vector<32x128xf32>
    %cst_66 = arith.constant 5.000000e-01 : f32
    %309 = vector.broadcast %cst_66 : f32 to vector<32x128xf32>
    %310 = arith.addf %308, %309 : vector<32x128xf32>
    %311 = vector.extract_strided_slice %310 {offsets = [0, 0], sizes = [32, 32], strides = [1, 1]} : vector<32x128xf32> to vector<32x32xf32>
    %312 = vector.extract_strided_slice %310 {offsets = [0, 32], sizes = [32, 32], strides = [1, 1]} : vector<32x128xf32> to vector<32x32xf32>
    %313 = vector.extract_strided_slice %310 {offsets = [0, 96], sizes = [32, 32], strides = [1, 1]} : vector<32x128xf32> to vector<32x32xf32>
    %314 = vector.extract_strided_slice %306 {offsets = [0, 64], sizes = [32, 32], strides = [1, 1]} : vector<32x128xf32> to vector<32x32xf32>
    %315 = arith.mulf %312, %289 : vector<32x32xf32>
    %316 = arith.mulf %311, %314 : vector<32x32xf32>
    %317 = arith.addf %315, %316 : vector<32x32xf32>
    %318 = math.tanh %317 : vector<32x32xf32>
    %319 = arith.mulf %313, %318 : vector<32x32xf32>
    %320 = vector.broadcast %5 : vector<1x32xf32> to vector<32x32xf32>
    %321 = arith.mulf %319, %320 : vector<32x32xf32>
    %cst_67 = arith.constant dense<0.000000e+00> : vector<32xf32>
    %322 = vector.multi_reduction <add>, %321, %cst_67 [1] : vector<32x32xf32> to vector<32xf32>
    %323 = vector.shape_cast %322 : vector<32xf32> to vector<32x1xf32>
    %324 = vector.broadcast %6 : vector<1x1xf32> to vector<32x1xf32>
    %325 = arith.addf %323, %324 : vector<32x1xf32>
    %c5_i32 = arith.constant 5 : i32
    %326 = vector.broadcast %c5_i32 : i32 to vector<32x24xi32>
    %327 = arith.cmpi eq, %161, %326 : vector<32x24xi32>
    %328 = vector.shape_cast %325 : vector<32x1xf32> to vector<32x1xf32>
    %329 = vector.broadcast %328 : vector<32x1xf32> to vector<32x24xf32>
    %330 = arith.select %327, %329, %302 : vector<32x24xi1>, vector<32x24xf32>
    %cst_68 = arith.constant dense<0.000000e+00> : vector<32x128xf32>
    %331 = tpu.matmul %319, %3, %cst_68 {dimension_numbers = #tpu.dot_dimension_numbers<[1], [0], [0], [1], [0, 0, 1, 1], [], []>} : vector<32x32xf32>, vector<32x128xf32>, vector<32x128xf32> -> vector<32x128xf32>
    %332 = vector.broadcast %4 : vector<1x128xf32> to vector<32x128xf32>
    %333 = arith.addf %331, %332 : vector<32x128xf32>
    %334 = math.tanh %333 : vector<32x128xf32>
    %cst_69 = arith.constant 5.000000e-01 : f32
    %335 = vector.broadcast %cst_69 : f32 to vector<32x128xf32>
    %336 = arith.mulf %335, %334 : vector<32x128xf32>
    %cst_70 = arith.constant 5.000000e-01 : f32
    %337 = vector.broadcast %cst_70 : f32 to vector<32x128xf32>
    %338 = arith.addf %336, %337 : vector<32x128xf32>
    %339 = vector.extract_strided_slice %338 {offsets = [0, 0], sizes = [32, 32], strides = [1, 1]} : vector<32x128xf32> to vector<32x32xf32>
    %340 = vector.extract_strided_slice %338 {offsets = [0, 32], sizes = [32, 32], strides = [1, 1]} : vector<32x128xf32> to vector<32x32xf32>
    %341 = vector.extract_strided_slice %338 {offsets = [0, 96], sizes = [32, 32], strides = [1, 1]} : vector<32x128xf32> to vector<32x32xf32>
    %342 = vector.extract_strided_slice %334 {offsets = [0, 64], sizes = [32, 32], strides = [1, 1]} : vector<32x128xf32> to vector<32x32xf32>
    %343 = arith.mulf %340, %317 : vector<32x32xf32>
    %344 = arith.mulf %339, %342 : vector<32x32xf32>
    %345 = arith.addf %343, %344 : vector<32x32xf32>
    %346 = math.tanh %345 : vector<32x32xf32>
    %347 = arith.mulf %341, %346 : vector<32x32xf32>
    %348 = vector.broadcast %5 : vector<1x32xf32> to vector<32x32xf32>
    %349 = arith.mulf %347, %348 : vector<32x32xf32>
    %cst_71 = arith.constant dense<0.000000e+00> : vector<32xf32>
    %350 = vector.multi_reduction <add>, %349, %cst_71 [1] : vector<32x32xf32> to vector<32xf32>
    %351 = vector.shape_cast %350 : vector<32xf32> to vector<32x1xf32>
    %352 = vector.broadcast %6 : vector<1x1xf32> to vector<32x1xf32>
    %353 = arith.addf %351, %352 : vector<32x1xf32>
    %c6_i32 = arith.constant 6 : i32
    %354 = vector.broadcast %c6_i32 : i32 to vector<32x24xi32>
    %355 = arith.cmpi eq, %161, %354 : vector<32x24xi32>
    %356 = vector.shape_cast %353 : vector<32x1xf32> to vector<32x1xf32>
    %357 = vector.broadcast %356 : vector<32x1xf32> to vector<32x24xf32>
    %358 = arith.select %355, %357, %330 : vector<32x24xi1>, vector<32x24xf32>
    %cst_72 = arith.constant dense<0.000000e+00> : vector<32x128xf32>
    %359 = tpu.matmul %347, %3, %cst_72 {dimension_numbers = #tpu.dot_dimension_numbers<[1], [0], [0], [1], [0, 0, 1, 1], [], []>} : vector<32x32xf32>, vector<32x128xf32>, vector<32x128xf32> -> vector<32x128xf32>
    %360 = vector.broadcast %4 : vector<1x128xf32> to vector<32x128xf32>
    %361 = arith.addf %359, %360 : vector<32x128xf32>
    %362 = math.tanh %361 : vector<32x128xf32>
    %cst_73 = arith.constant 5.000000e-01 : f32
    %363 = vector.broadcast %cst_73 : f32 to vector<32x128xf32>
    %364 = arith.mulf %363, %362 : vector<32x128xf32>
    %cst_74 = arith.constant 5.000000e-01 : f32
    %365 = vector.broadcast %cst_74 : f32 to vector<32x128xf32>
    %366 = arith.addf %364, %365 : vector<32x128xf32>
    %367 = vector.extract_strided_slice %366 {offsets = [0, 0], sizes = [32, 32], strides = [1, 1]} : vector<32x128xf32> to vector<32x32xf32>
    %368 = vector.extract_strided_slice %366 {offsets = [0, 32], sizes = [32, 32], strides = [1, 1]} : vector<32x128xf32> to vector<32x32xf32>
    %369 = vector.extract_strided_slice %366 {offsets = [0, 96], sizes = [32, 32], strides = [1, 1]} : vector<32x128xf32> to vector<32x32xf32>
    %370 = vector.extract_strided_slice %362 {offsets = [0, 64], sizes = [32, 32], strides = [1, 1]} : vector<32x128xf32> to vector<32x32xf32>
    %371 = arith.mulf %368, %345 : vector<32x32xf32>
    %372 = arith.mulf %367, %370 : vector<32x32xf32>
    %373 = arith.addf %371, %372 : vector<32x32xf32>
    %374 = math.tanh %373 : vector<32x32xf32>
    %375 = arith.mulf %369, %374 : vector<32x32xf32>
    %376 = vector.broadcast %5 : vector<1x32xf32> to vector<32x32xf32>
    %377 = arith.mulf %375, %376 : vector<32x32xf32>
    %cst_75 = arith.constant dense<0.000000e+00> : vector<32xf32>
    %378 = vector.multi_reduction <add>, %377, %cst_75 [1] : vector<32x32xf32> to vector<32xf32>
    %379 = vector.shape_cast %378 : vector<32xf32> to vector<32x1xf32>
    %380 = vector.broadcast %6 : vector<1x1xf32> to vector<32x1xf32>
    %381 = arith.addf %379, %380 : vector<32x1xf32>
    %c7_i32 = arith.constant 7 : i32
    %382 = vector.broadcast %c7_i32 : i32 to vector<32x24xi32>
    %383 = arith.cmpi eq, %161, %382 : vector<32x24xi32>
    %384 = vector.shape_cast %381 : vector<32x1xf32> to vector<32x1xf32>
    %385 = vector.broadcast %384 : vector<32x1xf32> to vector<32x24xf32>
    %386 = arith.select %383, %385, %358 : vector<32x24xi1>, vector<32x24xf32>
    %cst_76 = arith.constant dense<0.000000e+00> : vector<32x128xf32>
    %387 = tpu.matmul %375, %3, %cst_76 {dimension_numbers = #tpu.dot_dimension_numbers<[1], [0], [0], [1], [0, 0, 1, 1], [], []>} : vector<32x32xf32>, vector<32x128xf32>, vector<32x128xf32> -> vector<32x128xf32>
    %388 = vector.broadcast %4 : vector<1x128xf32> to vector<32x128xf32>
    %389 = arith.addf %387, %388 : vector<32x128xf32>
    %390 = math.tanh %389 : vector<32x128xf32>
    %cst_77 = arith.constant 5.000000e-01 : f32
    %391 = vector.broadcast %cst_77 : f32 to vector<32x128xf32>
    %392 = arith.mulf %391, %390 : vector<32x128xf32>
    %cst_78 = arith.constant 5.000000e-01 : f32
    %393 = vector.broadcast %cst_78 : f32 to vector<32x128xf32>
    %394 = arith.addf %392, %393 : vector<32x128xf32>
    %395 = vector.extract_strided_slice %394 {offsets = [0, 0], sizes = [32, 32], strides = [1, 1]} : vector<32x128xf32> to vector<32x32xf32>
    %396 = vector.extract_strided_slice %394 {offsets = [0, 32], sizes = [32, 32], strides = [1, 1]} : vector<32x128xf32> to vector<32x32xf32>
    %397 = vector.extract_strided_slice %394 {offsets = [0, 96], sizes = [32, 32], strides = [1, 1]} : vector<32x128xf32> to vector<32x32xf32>
    %398 = vector.extract_strided_slice %390 {offsets = [0, 64], sizes = [32, 32], strides = [1, 1]} : vector<32x128xf32> to vector<32x32xf32>
    %399 = arith.mulf %396, %373 : vector<32x32xf32>
    %400 = arith.mulf %395, %398 : vector<32x32xf32>
    %401 = arith.addf %399, %400 : vector<32x32xf32>
    %402 = math.tanh %401 : vector<32x32xf32>
    %403 = arith.mulf %397, %402 : vector<32x32xf32>
    %404 = vector.broadcast %5 : vector<1x32xf32> to vector<32x32xf32>
    %405 = arith.mulf %403, %404 : vector<32x32xf32>
    %cst_79 = arith.constant dense<0.000000e+00> : vector<32xf32>
    %406 = vector.multi_reduction <add>, %405, %cst_79 [1] : vector<32x32xf32> to vector<32xf32>
    %407 = vector.shape_cast %406 : vector<32xf32> to vector<32x1xf32>
    %408 = vector.broadcast %6 : vector<1x1xf32> to vector<32x1xf32>
    %409 = arith.addf %407, %408 : vector<32x1xf32>
    %c8_i32 = arith.constant 8 : i32
    %410 = vector.broadcast %c8_i32 : i32 to vector<32x24xi32>
    %411 = arith.cmpi eq, %161, %410 : vector<32x24xi32>
    %412 = vector.shape_cast %409 : vector<32x1xf32> to vector<32x1xf32>
    %413 = vector.broadcast %412 : vector<32x1xf32> to vector<32x24xf32>
    %414 = arith.select %411, %413, %386 : vector<32x24xi1>, vector<32x24xf32>
    %cst_80 = arith.constant dense<0.000000e+00> : vector<32x128xf32>
    %415 = tpu.matmul %403, %3, %cst_80 {dimension_numbers = #tpu.dot_dimension_numbers<[1], [0], [0], [1], [0, 0, 1, 1], [], []>} : vector<32x32xf32>, vector<32x128xf32>, vector<32x128xf32> -> vector<32x128xf32>
    %416 = vector.broadcast %4 : vector<1x128xf32> to vector<32x128xf32>
    %417 = arith.addf %415, %416 : vector<32x128xf32>
    %418 = math.tanh %417 : vector<32x128xf32>
    %cst_81 = arith.constant 5.000000e-01 : f32
    %419 = vector.broadcast %cst_81 : f32 to vector<32x128xf32>
    %420 = arith.mulf %419, %418 : vector<32x128xf32>
    %cst_82 = arith.constant 5.000000e-01 : f32
    %421 = vector.broadcast %cst_82 : f32 to vector<32x128xf32>
    %422 = arith.addf %420, %421 : vector<32x128xf32>
    %423 = vector.extract_strided_slice %422 {offsets = [0, 0], sizes = [32, 32], strides = [1, 1]} : vector<32x128xf32> to vector<32x32xf32>
    %424 = vector.extract_strided_slice %422 {offsets = [0, 32], sizes = [32, 32], strides = [1, 1]} : vector<32x128xf32> to vector<32x32xf32>
    %425 = vector.extract_strided_slice %422 {offsets = [0, 96], sizes = [32, 32], strides = [1, 1]} : vector<32x128xf32> to vector<32x32xf32>
    %426 = vector.extract_strided_slice %418 {offsets = [0, 64], sizes = [32, 32], strides = [1, 1]} : vector<32x128xf32> to vector<32x32xf32>
    %427 = arith.mulf %424, %401 : vector<32x32xf32>
    %428 = arith.mulf %423, %426 : vector<32x32xf32>
    %429 = arith.addf %427, %428 : vector<32x32xf32>
    %430 = math.tanh %429 : vector<32x32xf32>
    %431 = arith.mulf %425, %430 : vector<32x32xf32>
    %432 = vector.broadcast %5 : vector<1x32xf32> to vector<32x32xf32>
    %433 = arith.mulf %431, %432 : vector<32x32xf32>
    %cst_83 = arith.constant dense<0.000000e+00> : vector<32xf32>
    %434 = vector.multi_reduction <add>, %433, %cst_83 [1] : vector<32x32xf32> to vector<32xf32>
    %435 = vector.shape_cast %434 : vector<32xf32> to vector<32x1xf32>
    %436 = vector.broadcast %6 : vector<1x1xf32> to vector<32x1xf32>
    %437 = arith.addf %435, %436 : vector<32x1xf32>
    %c9_i32 = arith.constant 9 : i32
    %438 = vector.broadcast %c9_i32 : i32 to vector<32x24xi32>
    %439 = arith.cmpi eq, %161, %438 : vector<32x24xi32>
    %440 = vector.shape_cast %437 : vector<32x1xf32> to vector<32x1xf32>
    %441 = vector.broadcast %440 : vector<32x1xf32> to vector<32x24xf32>
    %442 = arith.select %439, %441, %414 : vector<32x24xi1>, vector<32x24xf32>
    %cst_84 = arith.constant dense<0.000000e+00> : vector<32x128xf32>
    %443 = tpu.matmul %431, %3, %cst_84 {dimension_numbers = #tpu.dot_dimension_numbers<[1], [0], [0], [1], [0, 0, 1, 1], [], []>} : vector<32x32xf32>, vector<32x128xf32>, vector<32x128xf32> -> vector<32x128xf32>
    %444 = vector.broadcast %4 : vector<1x128xf32> to vector<32x128xf32>
    %445 = arith.addf %443, %444 : vector<32x128xf32>
    %446 = math.tanh %445 : vector<32x128xf32>
    %cst_85 = arith.constant 5.000000e-01 : f32
    %447 = vector.broadcast %cst_85 : f32 to vector<32x128xf32>
    %448 = arith.mulf %447, %446 : vector<32x128xf32>
    %cst_86 = arith.constant 5.000000e-01 : f32
    %449 = vector.broadcast %cst_86 : f32 to vector<32x128xf32>
    %450 = arith.addf %448, %449 : vector<32x128xf32>
    %451 = vector.extract_strided_slice %450 {offsets = [0, 0], sizes = [32, 32], strides = [1, 1]} : vector<32x128xf32> to vector<32x32xf32>
    %452 = vector.extract_strided_slice %450 {offsets = [0, 32], sizes = [32, 32], strides = [1, 1]} : vector<32x128xf32> to vector<32x32xf32>
    %453 = vector.extract_strided_slice %450 {offsets = [0, 96], sizes = [32, 32], strides = [1, 1]} : vector<32x128xf32> to vector<32x32xf32>
    %454 = vector.extract_strided_slice %446 {offsets = [0, 64], sizes = [32, 32], strides = [1, 1]} : vector<32x128xf32> to vector<32x32xf32>
    %455 = arith.mulf %452, %429 : vector<32x32xf32>
    %456 = arith.mulf %451, %454 : vector<32x32xf32>
    %457 = arith.addf %455, %456 : vector<32x32xf32>
    %458 = math.tanh %457 : vector<32x32xf32>
    %459 = arith.mulf %453, %458 : vector<32x32xf32>
    %460 = vector.broadcast %5 : vector<1x32xf32> to vector<32x32xf32>
    %461 = arith.mulf %459, %460 : vector<32x32xf32>
    %cst_87 = arith.constant dense<0.000000e+00> : vector<32xf32>
    %462 = vector.multi_reduction <add>, %461, %cst_87 [1] : vector<32x32xf32> to vector<32xf32>
    %463 = vector.shape_cast %462 : vector<32xf32> to vector<32x1xf32>
    %464 = vector.broadcast %6 : vector<1x1xf32> to vector<32x1xf32>
    %465 = arith.addf %463, %464 : vector<32x1xf32>
    %c10_i32 = arith.constant 10 : i32
    %466 = vector.broadcast %c10_i32 : i32 to vector<32x24xi32>
    %467 = arith.cmpi eq, %161, %466 : vector<32x24xi32>
    %468 = vector.shape_cast %465 : vector<32x1xf32> to vector<32x1xf32>
    %469 = vector.broadcast %468 : vector<32x1xf32> to vector<32x24xf32>
    %470 = arith.select %467, %469, %442 : vector<32x24xi1>, vector<32x24xf32>
    %cst_88 = arith.constant dense<0.000000e+00> : vector<32x128xf32>
    %471 = tpu.matmul %459, %3, %cst_88 {dimension_numbers = #tpu.dot_dimension_numbers<[1], [0], [0], [1], [0, 0, 1, 1], [], []>} : vector<32x32xf32>, vector<32x128xf32>, vector<32x128xf32> -> vector<32x128xf32>
    %472 = vector.broadcast %4 : vector<1x128xf32> to vector<32x128xf32>
    %473 = arith.addf %471, %472 : vector<32x128xf32>
    %474 = math.tanh %473 : vector<32x128xf32>
    %cst_89 = arith.constant 5.000000e-01 : f32
    %475 = vector.broadcast %cst_89 : f32 to vector<32x128xf32>
    %476 = arith.mulf %475, %474 : vector<32x128xf32>
    %cst_90 = arith.constant 5.000000e-01 : f32
    %477 = vector.broadcast %cst_90 : f32 to vector<32x128xf32>
    %478 = arith.addf %476, %477 : vector<32x128xf32>
    %479 = vector.extract_strided_slice %478 {offsets = [0, 0], sizes = [32, 32], strides = [1, 1]} : vector<32x128xf32> to vector<32x32xf32>
    %480 = vector.extract_strided_slice %478 {offsets = [0, 32], sizes = [32, 32], strides = [1, 1]} : vector<32x128xf32> to vector<32x32xf32>
    %481 = vector.extract_strided_slice %478 {offsets = [0, 96], sizes = [32, 32], strides = [1, 1]} : vector<32x128xf32> to vector<32x32xf32>
    %482 = vector.extract_strided_slice %474 {offsets = [0, 64], sizes = [32, 32], strides = [1, 1]} : vector<32x128xf32> to vector<32x32xf32>
    %483 = arith.mulf %480, %457 : vector<32x32xf32>
    %484 = arith.mulf %479, %482 : vector<32x32xf32>
    %485 = arith.addf %483, %484 : vector<32x32xf32>
    %486 = math.tanh %485 : vector<32x32xf32>
    %487 = arith.mulf %481, %486 : vector<32x32xf32>
    %488 = vector.broadcast %5 : vector<1x32xf32> to vector<32x32xf32>
    %489 = arith.mulf %487, %488 : vector<32x32xf32>
    %cst_91 = arith.constant dense<0.000000e+00> : vector<32xf32>
    %490 = vector.multi_reduction <add>, %489, %cst_91 [1] : vector<32x32xf32> to vector<32xf32>
    %491 = vector.shape_cast %490 : vector<32xf32> to vector<32x1xf32>
    %492 = vector.broadcast %6 : vector<1x1xf32> to vector<32x1xf32>
    %493 = arith.addf %491, %492 : vector<32x1xf32>
    %c11_i32 = arith.constant 11 : i32
    %494 = vector.broadcast %c11_i32 : i32 to vector<32x24xi32>
    %495 = arith.cmpi eq, %161, %494 : vector<32x24xi32>
    %496 = vector.shape_cast %493 : vector<32x1xf32> to vector<32x1xf32>
    %497 = vector.broadcast %496 : vector<32x1xf32> to vector<32x24xf32>
    %498 = arith.select %495, %497, %470 : vector<32x24xi1>, vector<32x24xf32>
    %cst_92 = arith.constant dense<0.000000e+00> : vector<32x128xf32>
    %499 = tpu.matmul %487, %3, %cst_92 {dimension_numbers = #tpu.dot_dimension_numbers<[1], [0], [0], [1], [0, 0, 1, 1], [], []>} : vector<32x32xf32>, vector<32x128xf32>, vector<32x128xf32> -> vector<32x128xf32>
    %500 = vector.broadcast %4 : vector<1x128xf32> to vector<32x128xf32>
    %501 = arith.addf %499, %500 : vector<32x128xf32>
    %502 = math.tanh %501 : vector<32x128xf32>
    %cst_93 = arith.constant 5.000000e-01 : f32
    %503 = vector.broadcast %cst_93 : f32 to vector<32x128xf32>
    %504 = arith.mulf %503, %502 : vector<32x128xf32>
    %cst_94 = arith.constant 5.000000e-01 : f32
    %505 = vector.broadcast %cst_94 : f32 to vector<32x128xf32>
    %506 = arith.addf %504, %505 : vector<32x128xf32>
    %507 = vector.extract_strided_slice %506 {offsets = [0, 0], sizes = [32, 32], strides = [1, 1]} : vector<32x128xf32> to vector<32x32xf32>
    %508 = vector.extract_strided_slice %506 {offsets = [0, 32], sizes = [32, 32], strides = [1, 1]} : vector<32x128xf32> to vector<32x32xf32>
    %509 = vector.extract_strided_slice %506 {offsets = [0, 96], sizes = [32, 32], strides = [1, 1]} : vector<32x128xf32> to vector<32x32xf32>
    %510 = vector.extract_strided_slice %502 {offsets = [0, 64], sizes = [32, 32], strides = [1, 1]} : vector<32x128xf32> to vector<32x32xf32>
    %511 = arith.mulf %508, %485 : vector<32x32xf32>
    %512 = arith.mulf %507, %510 : vector<32x32xf32>
    %513 = arith.addf %511, %512 : vector<32x32xf32>
    %514 = math.tanh %513 : vector<32x32xf32>
    %515 = arith.mulf %509, %514 : vector<32x32xf32>
    %516 = vector.broadcast %5 : vector<1x32xf32> to vector<32x32xf32>
    %517 = arith.mulf %515, %516 : vector<32x32xf32>
    %cst_95 = arith.constant dense<0.000000e+00> : vector<32xf32>
    %518 = vector.multi_reduction <add>, %517, %cst_95 [1] : vector<32x32xf32> to vector<32xf32>
    %519 = vector.shape_cast %518 : vector<32xf32> to vector<32x1xf32>
    %520 = vector.broadcast %6 : vector<1x1xf32> to vector<32x1xf32>
    %521 = arith.addf %519, %520 : vector<32x1xf32>
    %c12_i32 = arith.constant 12 : i32
    %522 = vector.broadcast %c12_i32 : i32 to vector<32x24xi32>
    %523 = arith.cmpi eq, %161, %522 : vector<32x24xi32>
    %524 = vector.shape_cast %521 : vector<32x1xf32> to vector<32x1xf32>
    %525 = vector.broadcast %524 : vector<32x1xf32> to vector<32x24xf32>
    %526 = arith.select %523, %525, %498 : vector<32x24xi1>, vector<32x24xf32>
    %cst_96 = arith.constant dense<0.000000e+00> : vector<32x128xf32>
    %527 = tpu.matmul %515, %3, %cst_96 {dimension_numbers = #tpu.dot_dimension_numbers<[1], [0], [0], [1], [0, 0, 1, 1], [], []>} : vector<32x32xf32>, vector<32x128xf32>, vector<32x128xf32> -> vector<32x128xf32>
    %528 = vector.broadcast %4 : vector<1x128xf32> to vector<32x128xf32>
    %529 = arith.addf %527, %528 : vector<32x128xf32>
    %530 = math.tanh %529 : vector<32x128xf32>
    %cst_97 = arith.constant 5.000000e-01 : f32
    %531 = vector.broadcast %cst_97 : f32 to vector<32x128xf32>
    %532 = arith.mulf %531, %530 : vector<32x128xf32>
    %cst_98 = arith.constant 5.000000e-01 : f32
    %533 = vector.broadcast %cst_98 : f32 to vector<32x128xf32>
    %534 = arith.addf %532, %533 : vector<32x128xf32>
    %535 = vector.extract_strided_slice %534 {offsets = [0, 0], sizes = [32, 32], strides = [1, 1]} : vector<32x128xf32> to vector<32x32xf32>
    %536 = vector.extract_strided_slice %534 {offsets = [0, 32], sizes = [32, 32], strides = [1, 1]} : vector<32x128xf32> to vector<32x32xf32>
    %537 = vector.extract_strided_slice %534 {offsets = [0, 96], sizes = [32, 32], strides = [1, 1]} : vector<32x128xf32> to vector<32x32xf32>
    %538 = vector.extract_strided_slice %530 {offsets = [0, 64], sizes = [32, 32], strides = [1, 1]} : vector<32x128xf32> to vector<32x32xf32>
    %539 = arith.mulf %536, %513 : vector<32x32xf32>
    %540 = arith.mulf %535, %538 : vector<32x32xf32>
    %541 = arith.addf %539, %540 : vector<32x32xf32>
    %542 = math.tanh %541 : vector<32x32xf32>
    %543 = arith.mulf %537, %542 : vector<32x32xf32>
    %544 = vector.broadcast %5 : vector<1x32xf32> to vector<32x32xf32>
    %545 = arith.mulf %543, %544 : vector<32x32xf32>
    %cst_99 = arith.constant dense<0.000000e+00> : vector<32xf32>
    %546 = vector.multi_reduction <add>, %545, %cst_99 [1] : vector<32x32xf32> to vector<32xf32>
    %547 = vector.shape_cast %546 : vector<32xf32> to vector<32x1xf32>
    %548 = vector.broadcast %6 : vector<1x1xf32> to vector<32x1xf32>
    %549 = arith.addf %547, %548 : vector<32x1xf32>
    %c13_i32 = arith.constant 13 : i32
    %550 = vector.broadcast %c13_i32 : i32 to vector<32x24xi32>
    %551 = arith.cmpi eq, %161, %550 : vector<32x24xi32>
    %552 = vector.shape_cast %549 : vector<32x1xf32> to vector<32x1xf32>
    %553 = vector.broadcast %552 : vector<32x1xf32> to vector<32x24xf32>
    %554 = arith.select %551, %553, %526 : vector<32x24xi1>, vector<32x24xf32>
    %cst_100 = arith.constant dense<0.000000e+00> : vector<32x128xf32>
    %555 = tpu.matmul %543, %3, %cst_100 {dimension_numbers = #tpu.dot_dimension_numbers<[1], [0], [0], [1], [0, 0, 1, 1], [], []>} : vector<32x32xf32>, vector<32x128xf32>, vector<32x128xf32> -> vector<32x128xf32>
    %556 = vector.broadcast %4 : vector<1x128xf32> to vector<32x128xf32>
    %557 = arith.addf %555, %556 : vector<32x128xf32>
    %558 = math.tanh %557 : vector<32x128xf32>
    %cst_101 = arith.constant 5.000000e-01 : f32
    %559 = vector.broadcast %cst_101 : f32 to vector<32x128xf32>
    %560 = arith.mulf %559, %558 : vector<32x128xf32>
    %cst_102 = arith.constant 5.000000e-01 : f32
    %561 = vector.broadcast %cst_102 : f32 to vector<32x128xf32>
    %562 = arith.addf %560, %561 : vector<32x128xf32>
    %563 = vector.extract_strided_slice %562 {offsets = [0, 0], sizes = [32, 32], strides = [1, 1]} : vector<32x128xf32> to vector<32x32xf32>
    %564 = vector.extract_strided_slice %562 {offsets = [0, 32], sizes = [32, 32], strides = [1, 1]} : vector<32x128xf32> to vector<32x32xf32>
    %565 = vector.extract_strided_slice %562 {offsets = [0, 96], sizes = [32, 32], strides = [1, 1]} : vector<32x128xf32> to vector<32x32xf32>
    %566 = vector.extract_strided_slice %558 {offsets = [0, 64], sizes = [32, 32], strides = [1, 1]} : vector<32x128xf32> to vector<32x32xf32>
    %567 = arith.mulf %564, %541 : vector<32x32xf32>
    %568 = arith.mulf %563, %566 : vector<32x32xf32>
    %569 = arith.addf %567, %568 : vector<32x32xf32>
    %570 = math.tanh %569 : vector<32x32xf32>
    %571 = arith.mulf %565, %570 : vector<32x32xf32>
    %572 = vector.broadcast %5 : vector<1x32xf32> to vector<32x32xf32>
    %573 = arith.mulf %571, %572 : vector<32x32xf32>
    %cst_103 = arith.constant dense<0.000000e+00> : vector<32xf32>
    %574 = vector.multi_reduction <add>, %573, %cst_103 [1] : vector<32x32xf32> to vector<32xf32>
    %575 = vector.shape_cast %574 : vector<32xf32> to vector<32x1xf32>
    %576 = vector.broadcast %6 : vector<1x1xf32> to vector<32x1xf32>
    %577 = arith.addf %575, %576 : vector<32x1xf32>
    %c14_i32 = arith.constant 14 : i32
    %578 = vector.broadcast %c14_i32 : i32 to vector<32x24xi32>
    %579 = arith.cmpi eq, %161, %578 : vector<32x24xi32>
    %580 = vector.shape_cast %577 : vector<32x1xf32> to vector<32x1xf32>
    %581 = vector.broadcast %580 : vector<32x1xf32> to vector<32x24xf32>
    %582 = arith.select %579, %581, %554 : vector<32x24xi1>, vector<32x24xf32>
    %cst_104 = arith.constant dense<0.000000e+00> : vector<32x128xf32>
    %583 = tpu.matmul %571, %3, %cst_104 {dimension_numbers = #tpu.dot_dimension_numbers<[1], [0], [0], [1], [0, 0, 1, 1], [], []>} : vector<32x32xf32>, vector<32x128xf32>, vector<32x128xf32> -> vector<32x128xf32>
    %584 = vector.broadcast %4 : vector<1x128xf32> to vector<32x128xf32>
    %585 = arith.addf %583, %584 : vector<32x128xf32>
    %586 = math.tanh %585 : vector<32x128xf32>
    %cst_105 = arith.constant 5.000000e-01 : f32
    %587 = vector.broadcast %cst_105 : f32 to vector<32x128xf32>
    %588 = arith.mulf %587, %586 : vector<32x128xf32>
    %cst_106 = arith.constant 5.000000e-01 : f32
    %589 = vector.broadcast %cst_106 : f32 to vector<32x128xf32>
    %590 = arith.addf %588, %589 : vector<32x128xf32>
    %591 = vector.extract_strided_slice %590 {offsets = [0, 0], sizes = [32, 32], strides = [1, 1]} : vector<32x128xf32> to vector<32x32xf32>
    %592 = vector.extract_strided_slice %590 {offsets = [0, 32], sizes = [32, 32], strides = [1, 1]} : vector<32x128xf32> to vector<32x32xf32>
    %593 = vector.extract_strided_slice %590 {offsets = [0, 96], sizes = [32, 32], strides = [1, 1]} : vector<32x128xf32> to vector<32x32xf32>
    %594 = vector.extract_strided_slice %586 {offsets = [0, 64], sizes = [32, 32], strides = [1, 1]} : vector<32x128xf32> to vector<32x32xf32>
    %595 = arith.mulf %592, %569 : vector<32x32xf32>
    %596 = arith.mulf %591, %594 : vector<32x32xf32>
    %597 = arith.addf %595, %596 : vector<32x32xf32>
    %598 = math.tanh %597 : vector<32x32xf32>
    %599 = arith.mulf %593, %598 : vector<32x32xf32>
    %600 = vector.broadcast %5 : vector<1x32xf32> to vector<32x32xf32>
    %601 = arith.mulf %599, %600 : vector<32x32xf32>
    %cst_107 = arith.constant dense<0.000000e+00> : vector<32xf32>
    %602 = vector.multi_reduction <add>, %601, %cst_107 [1] : vector<32x32xf32> to vector<32xf32>
    %603 = vector.shape_cast %602 : vector<32xf32> to vector<32x1xf32>
    %604 = vector.broadcast %6 : vector<1x1xf32> to vector<32x1xf32>
    %605 = arith.addf %603, %604 : vector<32x1xf32>
    %c15_i32 = arith.constant 15 : i32
    %606 = vector.broadcast %c15_i32 : i32 to vector<32x24xi32>
    %607 = arith.cmpi eq, %161, %606 : vector<32x24xi32>
    %608 = vector.shape_cast %605 : vector<32x1xf32> to vector<32x1xf32>
    %609 = vector.broadcast %608 : vector<32x1xf32> to vector<32x24xf32>
    %610 = arith.select %607, %609, %582 : vector<32x24xi1>, vector<32x24xf32>
    %cst_108 = arith.constant dense<0.000000e+00> : vector<32x128xf32>
    %611 = tpu.matmul %599, %3, %cst_108 {dimension_numbers = #tpu.dot_dimension_numbers<[1], [0], [0], [1], [0, 0, 1, 1], [], []>} : vector<32x32xf32>, vector<32x128xf32>, vector<32x128xf32> -> vector<32x128xf32>
    %612 = vector.broadcast %4 : vector<1x128xf32> to vector<32x128xf32>
    %613 = arith.addf %611, %612 : vector<32x128xf32>
    %614 = math.tanh %613 : vector<32x128xf32>
    %cst_109 = arith.constant 5.000000e-01 : f32
    %615 = vector.broadcast %cst_109 : f32 to vector<32x128xf32>
    %616 = arith.mulf %615, %614 : vector<32x128xf32>
    %cst_110 = arith.constant 5.000000e-01 : f32
    %617 = vector.broadcast %cst_110 : f32 to vector<32x128xf32>
    %618 = arith.addf %616, %617 : vector<32x128xf32>
    %619 = vector.extract_strided_slice %618 {offsets = [0, 0], sizes = [32, 32], strides = [1, 1]} : vector<32x128xf32> to vector<32x32xf32>
    %620 = vector.extract_strided_slice %618 {offsets = [0, 32], sizes = [32, 32], strides = [1, 1]} : vector<32x128xf32> to vector<32x32xf32>
    %621 = vector.extract_strided_slice %618 {offsets = [0, 96], sizes = [32, 32], strides = [1, 1]} : vector<32x128xf32> to vector<32x32xf32>
    %622 = vector.extract_strided_slice %614 {offsets = [0, 64], sizes = [32, 32], strides = [1, 1]} : vector<32x128xf32> to vector<32x32xf32>
    %623 = arith.mulf %620, %597 : vector<32x32xf32>
    %624 = arith.mulf %619, %622 : vector<32x32xf32>
    %625 = arith.addf %623, %624 : vector<32x32xf32>
    %626 = math.tanh %625 : vector<32x32xf32>
    %627 = arith.mulf %621, %626 : vector<32x32xf32>
    %628 = vector.broadcast %5 : vector<1x32xf32> to vector<32x32xf32>
    %629 = arith.mulf %627, %628 : vector<32x32xf32>
    %cst_111 = arith.constant dense<0.000000e+00> : vector<32xf32>
    %630 = vector.multi_reduction <add>, %629, %cst_111 [1] : vector<32x32xf32> to vector<32xf32>
    %631 = vector.shape_cast %630 : vector<32xf32> to vector<32x1xf32>
    %632 = vector.broadcast %6 : vector<1x1xf32> to vector<32x1xf32>
    %633 = arith.addf %631, %632 : vector<32x1xf32>
    %c16_i32 = arith.constant 16 : i32
    %634 = vector.broadcast %c16_i32 : i32 to vector<32x24xi32>
    %635 = arith.cmpi eq, %161, %634 : vector<32x24xi32>
    %636 = vector.shape_cast %633 : vector<32x1xf32> to vector<32x1xf32>
    %637 = vector.broadcast %636 : vector<32x1xf32> to vector<32x24xf32>
    %638 = arith.select %635, %637, %610 : vector<32x24xi1>, vector<32x24xf32>
    %cst_112 = arith.constant dense<0.000000e+00> : vector<32x128xf32>
    %639 = tpu.matmul %627, %3, %cst_112 {dimension_numbers = #tpu.dot_dimension_numbers<[1], [0], [0], [1], [0, 0, 1, 1], [], []>} : vector<32x32xf32>, vector<32x128xf32>, vector<32x128xf32> -> vector<32x128xf32>
    %640 = vector.broadcast %4 : vector<1x128xf32> to vector<32x128xf32>
    %641 = arith.addf %639, %640 : vector<32x128xf32>
    %642 = math.tanh %641 : vector<32x128xf32>
    %cst_113 = arith.constant 5.000000e-01 : f32
    %643 = vector.broadcast %cst_113 : f32 to vector<32x128xf32>
    %644 = arith.mulf %643, %642 : vector<32x128xf32>
    %cst_114 = arith.constant 5.000000e-01 : f32
    %645 = vector.broadcast %cst_114 : f32 to vector<32x128xf32>
    %646 = arith.addf %644, %645 : vector<32x128xf32>
    %647 = vector.extract_strided_slice %646 {offsets = [0, 0], sizes = [32, 32], strides = [1, 1]} : vector<32x128xf32> to vector<32x32xf32>
    %648 = vector.extract_strided_slice %646 {offsets = [0, 32], sizes = [32, 32], strides = [1, 1]} : vector<32x128xf32> to vector<32x32xf32>
    %649 = vector.extract_strided_slice %646 {offsets = [0, 96], sizes = [32, 32], strides = [1, 1]} : vector<32x128xf32> to vector<32x32xf32>
    %650 = vector.extract_strided_slice %642 {offsets = [0, 64], sizes = [32, 32], strides = [1, 1]} : vector<32x128xf32> to vector<32x32xf32>
    %651 = arith.mulf %648, %625 : vector<32x32xf32>
    %652 = arith.mulf %647, %650 : vector<32x32xf32>
    %653 = arith.addf %651, %652 : vector<32x32xf32>
    %654 = math.tanh %653 : vector<32x32xf32>
    %655 = arith.mulf %649, %654 : vector<32x32xf32>
    %656 = vector.broadcast %5 : vector<1x32xf32> to vector<32x32xf32>
    %657 = arith.mulf %655, %656 : vector<32x32xf32>
    %cst_115 = arith.constant dense<0.000000e+00> : vector<32xf32>
    %658 = vector.multi_reduction <add>, %657, %cst_115 [1] : vector<32x32xf32> to vector<32xf32>
    %659 = vector.shape_cast %658 : vector<32xf32> to vector<32x1xf32>
    %660 = vector.broadcast %6 : vector<1x1xf32> to vector<32x1xf32>
    %661 = arith.addf %659, %660 : vector<32x1xf32>
    %c17_i32 = arith.constant 17 : i32
    %662 = vector.broadcast %c17_i32 : i32 to vector<32x24xi32>
    %663 = arith.cmpi eq, %161, %662 : vector<32x24xi32>
    %664 = vector.shape_cast %661 : vector<32x1xf32> to vector<32x1xf32>
    %665 = vector.broadcast %664 : vector<32x1xf32> to vector<32x24xf32>
    %666 = arith.select %663, %665, %638 : vector<32x24xi1>, vector<32x24xf32>
    %cst_116 = arith.constant dense<0.000000e+00> : vector<32x128xf32>
    %667 = tpu.matmul %655, %3, %cst_116 {dimension_numbers = #tpu.dot_dimension_numbers<[1], [0], [0], [1], [0, 0, 1, 1], [], []>} : vector<32x32xf32>, vector<32x128xf32>, vector<32x128xf32> -> vector<32x128xf32>
    %668 = vector.broadcast %4 : vector<1x128xf32> to vector<32x128xf32>
    %669 = arith.addf %667, %668 : vector<32x128xf32>
    %670 = math.tanh %669 : vector<32x128xf32>
    %cst_117 = arith.constant 5.000000e-01 : f32
    %671 = vector.broadcast %cst_117 : f32 to vector<32x128xf32>
    %672 = arith.mulf %671, %670 : vector<32x128xf32>
    %cst_118 = arith.constant 5.000000e-01 : f32
    %673 = vector.broadcast %cst_118 : f32 to vector<32x128xf32>
    %674 = arith.addf %672, %673 : vector<32x128xf32>
    %675 = vector.extract_strided_slice %674 {offsets = [0, 0], sizes = [32, 32], strides = [1, 1]} : vector<32x128xf32> to vector<32x32xf32>
    %676 = vector.extract_strided_slice %674 {offsets = [0, 32], sizes = [32, 32], strides = [1, 1]} : vector<32x128xf32> to vector<32x32xf32>
    %677 = vector.extract_strided_slice %674 {offsets = [0, 96], sizes = [32, 32], strides = [1, 1]} : vector<32x128xf32> to vector<32x32xf32>
    %678 = vector.extract_strided_slice %670 {offsets = [0, 64], sizes = [32, 32], strides = [1, 1]} : vector<32x128xf32> to vector<32x32xf32>
    %679 = arith.mulf %676, %653 : vector<32x32xf32>
    %680 = arith.mulf %675, %678 : vector<32x32xf32>
    %681 = arith.addf %679, %680 : vector<32x32xf32>
    %682 = math.tanh %681 : vector<32x32xf32>
    %683 = arith.mulf %677, %682 : vector<32x32xf32>
    %684 = vector.broadcast %5 : vector<1x32xf32> to vector<32x32xf32>
    %685 = arith.mulf %683, %684 : vector<32x32xf32>
    %cst_119 = arith.constant dense<0.000000e+00> : vector<32xf32>
    %686 = vector.multi_reduction <add>, %685, %cst_119 [1] : vector<32x32xf32> to vector<32xf32>
    %687 = vector.shape_cast %686 : vector<32xf32> to vector<32x1xf32>
    %688 = vector.broadcast %6 : vector<1x1xf32> to vector<32x1xf32>
    %689 = arith.addf %687, %688 : vector<32x1xf32>
    %c18_i32 = arith.constant 18 : i32
    %690 = vector.broadcast %c18_i32 : i32 to vector<32x24xi32>
    %691 = arith.cmpi eq, %161, %690 : vector<32x24xi32>
    %692 = vector.shape_cast %689 : vector<32x1xf32> to vector<32x1xf32>
    %693 = vector.broadcast %692 : vector<32x1xf32> to vector<32x24xf32>
    %694 = arith.select %691, %693, %666 : vector<32x24xi1>, vector<32x24xf32>
    %cst_120 = arith.constant dense<0.000000e+00> : vector<32x128xf32>
    %695 = tpu.matmul %683, %3, %cst_120 {dimension_numbers = #tpu.dot_dimension_numbers<[1], [0], [0], [1], [0, 0, 1, 1], [], []>} : vector<32x32xf32>, vector<32x128xf32>, vector<32x128xf32> -> vector<32x128xf32>
    %696 = vector.broadcast %4 : vector<1x128xf32> to vector<32x128xf32>
    %697 = arith.addf %695, %696 : vector<32x128xf32>
    %698 = math.tanh %697 : vector<32x128xf32>
    %cst_121 = arith.constant 5.000000e-01 : f32
    %699 = vector.broadcast %cst_121 : f32 to vector<32x128xf32>
    %700 = arith.mulf %699, %698 : vector<32x128xf32>
    %cst_122 = arith.constant 5.000000e-01 : f32
    %701 = vector.broadcast %cst_122 : f32 to vector<32x128xf32>
    %702 = arith.addf %700, %701 : vector<32x128xf32>
    %703 = vector.extract_strided_slice %702 {offsets = [0, 0], sizes = [32, 32], strides = [1, 1]} : vector<32x128xf32> to vector<32x32xf32>
    %704 = vector.extract_strided_slice %702 {offsets = [0, 32], sizes = [32, 32], strides = [1, 1]} : vector<32x128xf32> to vector<32x32xf32>
    %705 = vector.extract_strided_slice %702 {offsets = [0, 96], sizes = [32, 32], strides = [1, 1]} : vector<32x128xf32> to vector<32x32xf32>
    %706 = vector.extract_strided_slice %698 {offsets = [0, 64], sizes = [32, 32], strides = [1, 1]} : vector<32x128xf32> to vector<32x32xf32>
    %707 = arith.mulf %704, %681 : vector<32x32xf32>
    %708 = arith.mulf %703, %706 : vector<32x32xf32>
    %709 = arith.addf %707, %708 : vector<32x32xf32>
    %710 = math.tanh %709 : vector<32x32xf32>
    %711 = arith.mulf %705, %710 : vector<32x32xf32>
    %712 = vector.broadcast %5 : vector<1x32xf32> to vector<32x32xf32>
    %713 = arith.mulf %711, %712 : vector<32x32xf32>
    %cst_123 = arith.constant dense<0.000000e+00> : vector<32xf32>
    %714 = vector.multi_reduction <add>, %713, %cst_123 [1] : vector<32x32xf32> to vector<32xf32>
    %715 = vector.shape_cast %714 : vector<32xf32> to vector<32x1xf32>
    %716 = vector.broadcast %6 : vector<1x1xf32> to vector<32x1xf32>
    %717 = arith.addf %715, %716 : vector<32x1xf32>
    %c19_i32 = arith.constant 19 : i32
    %718 = vector.broadcast %c19_i32 : i32 to vector<32x24xi32>
    %719 = arith.cmpi eq, %161, %718 : vector<32x24xi32>
    %720 = vector.shape_cast %717 : vector<32x1xf32> to vector<32x1xf32>
    %721 = vector.broadcast %720 : vector<32x1xf32> to vector<32x24xf32>
    %722 = arith.select %719, %721, %694 : vector<32x24xi1>, vector<32x24xf32>
    %cst_124 = arith.constant dense<0.000000e+00> : vector<32x128xf32>
    %723 = tpu.matmul %711, %3, %cst_124 {dimension_numbers = #tpu.dot_dimension_numbers<[1], [0], [0], [1], [0, 0, 1, 1], [], []>} : vector<32x32xf32>, vector<32x128xf32>, vector<32x128xf32> -> vector<32x128xf32>
    %724 = vector.broadcast %4 : vector<1x128xf32> to vector<32x128xf32>
    %725 = arith.addf %723, %724 : vector<32x128xf32>
    %726 = math.tanh %725 : vector<32x128xf32>
    %cst_125 = arith.constant 5.000000e-01 : f32
    %727 = vector.broadcast %cst_125 : f32 to vector<32x128xf32>
    %728 = arith.mulf %727, %726 : vector<32x128xf32>
    %cst_126 = arith.constant 5.000000e-01 : f32
    %729 = vector.broadcast %cst_126 : f32 to vector<32x128xf32>
    %730 = arith.addf %728, %729 : vector<32x128xf32>
    %731 = vector.extract_strided_slice %730 {offsets = [0, 0], sizes = [32, 32], strides = [1, 1]} : vector<32x128xf32> to vector<32x32xf32>
    %732 = vector.extract_strided_slice %730 {offsets = [0, 32], sizes = [32, 32], strides = [1, 1]} : vector<32x128xf32> to vector<32x32xf32>
    %733 = vector.extract_strided_slice %730 {offsets = [0, 96], sizes = [32, 32], strides = [1, 1]} : vector<32x128xf32> to vector<32x32xf32>
    %734 = vector.extract_strided_slice %726 {offsets = [0, 64], sizes = [32, 32], strides = [1, 1]} : vector<32x128xf32> to vector<32x32xf32>
    %735 = arith.mulf %732, %709 : vector<32x32xf32>
    %736 = arith.mulf %731, %734 : vector<32x32xf32>
    %737 = arith.addf %735, %736 : vector<32x32xf32>
    %738 = math.tanh %737 : vector<32x32xf32>
    %739 = arith.mulf %733, %738 : vector<32x32xf32>
    %740 = vector.broadcast %5 : vector<1x32xf32> to vector<32x32xf32>
    %741 = arith.mulf %739, %740 : vector<32x32xf32>
    %cst_127 = arith.constant dense<0.000000e+00> : vector<32xf32>
    %742 = vector.multi_reduction <add>, %741, %cst_127 [1] : vector<32x32xf32> to vector<32xf32>
    %743 = vector.shape_cast %742 : vector<32xf32> to vector<32x1xf32>
    %744 = vector.broadcast %6 : vector<1x1xf32> to vector<32x1xf32>
    %745 = arith.addf %743, %744 : vector<32x1xf32>
    %c20_i32 = arith.constant 20 : i32
    %746 = vector.broadcast %c20_i32 : i32 to vector<32x24xi32>
    %747 = arith.cmpi eq, %161, %746 : vector<32x24xi32>
    %748 = vector.shape_cast %745 : vector<32x1xf32> to vector<32x1xf32>
    %749 = vector.broadcast %748 : vector<32x1xf32> to vector<32x24xf32>
    %750 = arith.select %747, %749, %722 : vector<32x24xi1>, vector<32x24xf32>
    %cst_128 = arith.constant dense<0.000000e+00> : vector<32x128xf32>
    %751 = tpu.matmul %739, %3, %cst_128 {dimension_numbers = #tpu.dot_dimension_numbers<[1], [0], [0], [1], [0, 0, 1, 1], [], []>} : vector<32x32xf32>, vector<32x128xf32>, vector<32x128xf32> -> vector<32x128xf32>
    %752 = vector.broadcast %4 : vector<1x128xf32> to vector<32x128xf32>
    %753 = arith.addf %751, %752 : vector<32x128xf32>
    %754 = math.tanh %753 : vector<32x128xf32>
    %cst_129 = arith.constant 5.000000e-01 : f32
    %755 = vector.broadcast %cst_129 : f32 to vector<32x128xf32>
    %756 = arith.mulf %755, %754 : vector<32x128xf32>
    %cst_130 = arith.constant 5.000000e-01 : f32
    %757 = vector.broadcast %cst_130 : f32 to vector<32x128xf32>
    %758 = arith.addf %756, %757 : vector<32x128xf32>
    %759 = vector.extract_strided_slice %758 {offsets = [0, 0], sizes = [32, 32], strides = [1, 1]} : vector<32x128xf32> to vector<32x32xf32>
    %760 = vector.extract_strided_slice %758 {offsets = [0, 32], sizes = [32, 32], strides = [1, 1]} : vector<32x128xf32> to vector<32x32xf32>
    %761 = vector.extract_strided_slice %758 {offsets = [0, 96], sizes = [32, 32], strides = [1, 1]} : vector<32x128xf32> to vector<32x32xf32>
    %762 = vector.extract_strided_slice %754 {offsets = [0, 64], sizes = [32, 32], strides = [1, 1]} : vector<32x128xf32> to vector<32x32xf32>
    %763 = arith.mulf %760, %737 : vector<32x32xf32>
    %764 = arith.mulf %759, %762 : vector<32x32xf32>
    %765 = arith.addf %763, %764 : vector<32x32xf32>
    %766 = math.tanh %765 : vector<32x32xf32>
    %767 = arith.mulf %761, %766 : vector<32x32xf32>
    %768 = vector.broadcast %5 : vector<1x32xf32> to vector<32x32xf32>
    %769 = arith.mulf %767, %768 : vector<32x32xf32>
    %cst_131 = arith.constant dense<0.000000e+00> : vector<32xf32>
    %770 = vector.multi_reduction <add>, %769, %cst_131 [1] : vector<32x32xf32> to vector<32xf32>
    %771 = vector.shape_cast %770 : vector<32xf32> to vector<32x1xf32>
    %772 = vector.broadcast %6 : vector<1x1xf32> to vector<32x1xf32>
    %773 = arith.addf %771, %772 : vector<32x1xf32>
    %c21_i32 = arith.constant 21 : i32
    %774 = vector.broadcast %c21_i32 : i32 to vector<32x24xi32>
    %775 = arith.cmpi eq, %161, %774 : vector<32x24xi32>
    %776 = vector.shape_cast %773 : vector<32x1xf32> to vector<32x1xf32>
    %777 = vector.broadcast %776 : vector<32x1xf32> to vector<32x24xf32>
    %778 = arith.select %775, %777, %750 : vector<32x24xi1>, vector<32x24xf32>
    %cst_132 = arith.constant dense<0.000000e+00> : vector<32x128xf32>
    %779 = tpu.matmul %767, %3, %cst_132 {dimension_numbers = #tpu.dot_dimension_numbers<[1], [0], [0], [1], [0, 0, 1, 1], [], []>} : vector<32x32xf32>, vector<32x128xf32>, vector<32x128xf32> -> vector<32x128xf32>
    %780 = vector.broadcast %4 : vector<1x128xf32> to vector<32x128xf32>
    %781 = arith.addf %779, %780 : vector<32x128xf32>
    %782 = math.tanh %781 : vector<32x128xf32>
    %cst_133 = arith.constant 5.000000e-01 : f32
    %783 = vector.broadcast %cst_133 : f32 to vector<32x128xf32>
    %784 = arith.mulf %783, %782 : vector<32x128xf32>
    %cst_134 = arith.constant 5.000000e-01 : f32
    %785 = vector.broadcast %cst_134 : f32 to vector<32x128xf32>
    %786 = arith.addf %784, %785 : vector<32x128xf32>
    %787 = vector.extract_strided_slice %786 {offsets = [0, 0], sizes = [32, 32], strides = [1, 1]} : vector<32x128xf32> to vector<32x32xf32>
    %788 = vector.extract_strided_slice %786 {offsets = [0, 32], sizes = [32, 32], strides = [1, 1]} : vector<32x128xf32> to vector<32x32xf32>
    %789 = vector.extract_strided_slice %786 {offsets = [0, 96], sizes = [32, 32], strides = [1, 1]} : vector<32x128xf32> to vector<32x32xf32>
    %790 = vector.extract_strided_slice %782 {offsets = [0, 64], sizes = [32, 32], strides = [1, 1]} : vector<32x128xf32> to vector<32x32xf32>
    %791 = arith.mulf %788, %765 : vector<32x32xf32>
    %792 = arith.mulf %787, %790 : vector<32x32xf32>
    %793 = arith.addf %791, %792 : vector<32x32xf32>
    %794 = math.tanh %793 : vector<32x32xf32>
    %795 = arith.mulf %789, %794 : vector<32x32xf32>
    %796 = vector.broadcast %5 : vector<1x32xf32> to vector<32x32xf32>
    %797 = arith.mulf %795, %796 : vector<32x32xf32>
    %cst_135 = arith.constant dense<0.000000e+00> : vector<32xf32>
    %798 = vector.multi_reduction <add>, %797, %cst_135 [1] : vector<32x32xf32> to vector<32xf32>
    %799 = vector.shape_cast %798 : vector<32xf32> to vector<32x1xf32>
    %800 = vector.broadcast %6 : vector<1x1xf32> to vector<32x1xf32>
    %801 = arith.addf %799, %800 : vector<32x1xf32>
    %c22_i32 = arith.constant 22 : i32
    %802 = vector.broadcast %c22_i32 : i32 to vector<32x24xi32>
    %803 = arith.cmpi eq, %161, %802 : vector<32x24xi32>
    %804 = vector.shape_cast %801 : vector<32x1xf32> to vector<32x1xf32>
    %805 = vector.broadcast %804 : vector<32x1xf32> to vector<32x24xf32>
    %806 = arith.select %803, %805, %778 : vector<32x24xi1>, vector<32x24xf32>
    %cst_136 = arith.constant dense<0.000000e+00> : vector<32x128xf32>
    %807 = tpu.matmul %795, %3, %cst_136 {dimension_numbers = #tpu.dot_dimension_numbers<[1], [0], [0], [1], [0, 0, 1, 1], [], []>} : vector<32x32xf32>, vector<32x128xf32>, vector<32x128xf32> -> vector<32x128xf32>
    %808 = vector.broadcast %4 : vector<1x128xf32> to vector<32x128xf32>
    %809 = arith.addf %807, %808 : vector<32x128xf32>
    %810 = math.tanh %809 : vector<32x128xf32>
    %cst_137 = arith.constant 5.000000e-01 : f32
    %811 = vector.broadcast %cst_137 : f32 to vector<32x128xf32>
    %812 = arith.mulf %811, %810 : vector<32x128xf32>
    %cst_138 = arith.constant 5.000000e-01 : f32
    %813 = vector.broadcast %cst_138 : f32 to vector<32x128xf32>
    %814 = arith.addf %812, %813 : vector<32x128xf32>
    %815 = vector.extract_strided_slice %814 {offsets = [0, 0], sizes = [32, 32], strides = [1, 1]} : vector<32x128xf32> to vector<32x32xf32>
    %816 = vector.extract_strided_slice %814 {offsets = [0, 32], sizes = [32, 32], strides = [1, 1]} : vector<32x128xf32> to vector<32x32xf32>
    %817 = vector.extract_strided_slice %814 {offsets = [0, 96], sizes = [32, 32], strides = [1, 1]} : vector<32x128xf32> to vector<32x32xf32>
    %818 = vector.extract_strided_slice %810 {offsets = [0, 64], sizes = [32, 32], strides = [1, 1]} : vector<32x128xf32> to vector<32x32xf32>
    %819 = arith.mulf %816, %793 : vector<32x32xf32>
    %820 = arith.mulf %815, %818 : vector<32x32xf32>
    %821 = arith.addf %819, %820 : vector<32x32xf32>
    %822 = math.tanh %821 : vector<32x32xf32>
    %823 = arith.mulf %817, %822 : vector<32x32xf32>
    %824 = vector.broadcast %5 : vector<1x32xf32> to vector<32x32xf32>
    %825 = arith.mulf %823, %824 : vector<32x32xf32>
    %cst_139 = arith.constant dense<0.000000e+00> : vector<32xf32>
    %826 = vector.multi_reduction <add>, %825, %cst_139 [1] : vector<32x32xf32> to vector<32xf32>
    %827 = vector.shape_cast %826 : vector<32xf32> to vector<32x1xf32>
    %828 = vector.broadcast %6 : vector<1x1xf32> to vector<32x1xf32>
    %829 = arith.addf %827, %828 : vector<32x1xf32>
    %c23_i32 = arith.constant 23 : i32
    %830 = vector.broadcast %c23_i32 : i32 to vector<32x24xi32>
    %831 = arith.cmpi eq, %161, %830 : vector<32x24xi32>
    %832 = vector.shape_cast %829 : vector<32x1xf32> to vector<32x1xf32>
    %833 = vector.broadcast %832 : vector<32x1xf32> to vector<32x24xf32>
    %834 = arith.select %831, %833, %806 : vector<32x24xi1>, vector<32x24xf32>
    %c0_140 = arith.constant 0 : index
    %c0_141 = arith.constant 0 : index
    %835 = vector.load %arg10[%c0_140, %c0_141] : memref<32x24xf32, #tpu.memory_space<vmem>>, vector<32x24xf32>
    tpu.vector_store %arg10[%c0_140, %c0_141], %834 {strides = array<i32>} : memref<32x24xf32, #tpu.memory_space<vmem>>, vector<32x24xf32>,
    return
  }
}

</mosaic_0001>

<bundles_post_ra>
// kernel: lstm_forecaster.1
= control target key start
LH: loop header
LB: loop body
LE: loop exit
PB: predicated region body
PF: predicated region fallthrough
CT: control target
= control target key end

     0   :  { %v6610_v2 = vmov 0   ;;  %vm320_vm0 = vcmask 261120   ;;  %s6612_s22 = smov 32   ;;  %s9739_s4 = inlined_call_operand.vmem [shape: f32[32,128], index: 4, kind: input, shape index: {}]   ;;  %s9740_s0 = inlined_call_operand.vmem [shape: f32[8,32,1], index: 0, kind: input, shape index: {}]   ;;  %s9741_s1 = inlined_call_operand.vmem [shape: f32[32,32], index: 1, kind: input, shape index: {}]   ;;  %s9742_s3 = inlined_call_operand.vmem [shape: f32[1,128], index: 3, kind: input, shape index: {}]   ;;  %s9743_s5 = inlined_call_operand.vmem [shape: f32[1,128], index: 5, kind: input, shape index: {}]   ;;  %s9744_s2 = inlined_call_operand.vmem [shape: f32[32,32], index: 2, kind: input, shape index: {}]   ;;  %s9745_s6 = inlined_call_operand.vmem [shape: f32[32,128], index: 6, kind: input, shape index: {}]   ;;  %s9746_s7 = inlined_call_operand.vmem [shape: f32[1,128], index: 7, kind: input, shape index: {}]   ;;  %s9747_s8 = inlined_call_operand.vmem [shape: f32[1,32], index: 8, kind: input, shape index: {}]   ;;  %s9748_s9 = inlined_call_operand.<no memory space> [shape: f32[1,1], index: 9, kind: input, shape index: {}]   ;;  %s9749_s10 = inlined_call_operand.vmem [shape: f32[32,24], index: 10, kind: output, shape index: {}]  }
   0x1   :  { %v41_v0 = vld [vmem:[%s9739_s4 + $0x18] sm:$0xff]  ;;  %v40_v1 = vld [vmem:[%s9739_s4 + $0x10] sm:$0xff]  ;;  %6075 = vset.pattern.permute.xlu0 %v6610_v2  ;;  %6076 = vset.pattern.permute.xlu1 %v6610_v2  ;;  %v50_v3 = vld [vmem:[%s9740_s0] sm:$0xff] }
   0x2   :  { %345 = vmatpush.msra.mxu0 %v41_v0  ;;  %490 = vmatpush.msra.mxu1 %v41_v0  ;;  %v39_v4 = vld [vmem:[%s9739_s4 + $0x8] sm:$0xff]  ;;  %v52_v5 = vld [vmem:[%s9740_s0 + $0x10] sm:$0xff]  ;;  %v38_v6 = vld [vmem:[%s9739_s4] sm:$0xff]  ;;  %s6613_s4 = smov 96  }
   0x3   :  { %84 = vperm.xlu0 %6075, %v50_v3   ;;  %6077 = vset.pattern.permute.xlu2 %v6610_v2  ;;  %v312_v7 = vld [vmem:[%s9741_s1] sm:$0xff]  ;;  %v51_v8 = vld [vmem:[%s9740_s0 + $0x8] sm:$0xff]  ;;  %v53_v9 = vld [vmem:[%s9740_s0 + $0x18] sm:$0xff] }
   0x4   :  { %346 = vmatpush.msra.mxu0 %v40_v1  ;;  %491 = vmatpush.msra.mxu1 %v40_v1  ;;  %v313_v10 = vld [vmem:[%s9741_s1 + $0x8] sm:$0xff]  ;;  %v314_v11 = vld [vmem:[%s9741_s1 + $0x10] sm:$0xff]  ;;  %v315_v12 = vld [vmem:[%s9741_s1 + $0x18] sm:$0xff]  ;;  %s6611_s1 = smov 64  }
   0x5   :  { %94 = vperm.xlu1 %6076, %v52_v5   ;;  %619 = vmatpush.msra.mxu2 %v41_v0  ;;  %v6712_v13 = vld [vmem:[%s9742_s3] ss:$0 sm:$0xff]  ;;  %v317_v40 = vld [vmem:[%s9744_s2 + $0x8] sm:$0xff]  ;;  %v318_v48 = vld [vmem:[%s9744_s2 + $0x10] sm:$0xff] }
   0x6   :  { %347 = vmatpush.msra.mxu0 %v39_v4  ;;  %492 = vmatpush.msra.mxu1 %v39_v4  ;;  %v6718_v16 = vld [vmem:[%s9743_s5] ss:$0 sm:$0xff]  ;;  %v319_v50 = vld [vmem:[%s9744_s2 + $0x18] sm:$0xff] }
   0x7   :  { %620 = vmatpush.msra.mxu2 %v40_v1  ;;  %748 = vmatpush.msra.mxu3 %v41_v0  ;;  %v316_v35 = vld [vmem:[%s9744_s2] sm:$0xff] }
   0x8   :  { %348 = vmatpush.msra.mxu0 %v38_v6  ;;  %493 = vmatpush.msra.mxu1 %v38_v6 }
   0x9   :  { %5943 = vmatmul.msk.f32.vlgmr.msra.gmra.mxu0 %vm320_vm0, %v312_v7  ;;  %621 = vmatpush.msra.mxu2 %v39_v4 }
   0xa   :  { %749 = vmatpush.msra.mxu3 %v40_v1  ;;  %877 = vmatpush.msrb.mxu0 %v41_v0 }
   0xb   :  { %89 = vperm.xlu0 %6075, %v51_v8   ;;  %622 = vmatpush.msra.mxu2 %v38_v6 }
   0xc   :  { %750 = vmatpush.msra.mxu3 %v39_v4  ;;  %878 = vmatpush.msrb.mxu0 %v40_v1 }
   0xd   :  { %99 = vperm.xlu1 %6076, %v53_v9   ;;  %1006 = vmatpush.msrb.mxu1 %v41_v0 }
   0xe   :  { %751 = vmatpush.msra.mxu3 %v38_v6  ;;  %879 = vmatpush.msrb.mxu0 %v39_v4 }
   0xf   :  { %1007 = vmatpush.msrb.mxu1 %v40_v1  ;;  %1135 = vmatpush.msrb.mxu2 %v41_v0 }
  0x10   :  { %880 = vmatpush.msrb.mxu0 %v38_v6  ;;  %1264 = vmatpush.msrb.mxu3 %v41_v0 }
  0x11   :  { %5944 = vmatmul.msk.f32.gmra.mxu0 %vm320_vm0, %v313_v10  ;;  %1008 = vmatpush.msrb.mxu1 %v39_v4 }
  0x12   :  { %1136 = vmatpush.msrb.mxu2 %v40_v1  ;;  %1265 = vmatpush.msrb.mxu3 %v40_v1 }
  0x13   :  { %1009 = vmatpush.msrb.mxu1 %v38_v6 }
  0x14   :  { %1137 = vmatpush.msrb.mxu2 %v39_v4  ;;  %1266 = vmatpush.msrb.mxu3 %v39_v4 }
  0x16   :  { %1138 = vmatpush.msrb.mxu2 %v38_v6  ;;  %1267 = vmatpush.msrb.mxu3 %v38_v6 }
  0x19   :  { %5945 = vmatmul.msk.f32.gmra.mxu0 %vm320_vm0, %v314_v11 }
  0x21   :  { %5946 = vmatmul.msk.f32.gmra.mxu0 %vm320_vm0, %v315_v12 }
  0x75   :  { %v85_v14 = vpop.permute.xlu0 %84 }
  0x76   :  { %v245_v15 = vmul.f32 %v6712_v13, %v85_v14 }
  0x77   :  { %v95_v22 = vpop.permute.xlu1 %94 }
  0x78   :  { %v280_v17 = vadd.f32 %v6718_v16, %v245_v15  ;;  %v247_v27 = vmul.f32 %v6712_v13, %v95_v22 }
  0x7a   :  { %v282_v28 = vadd.f32 %v6718_v16, %v247_v27 }
  0x7d   :  { %v90_v18 = vpop.permute.xlu0 %89 }
  0x7e   :  { %v246_v21 = vmul.f32 %v6712_v13, %v90_v18 }
  0x7f   :  { %v100_v29 = vpop.permute.xlu1 %99 }
  0x80   :  { %v281_v23 = vadd.f32 %v6718_v16, %v246_v21  ;;  %v248_v33 = vmul.f32 %v6712_v13, %v100_v29 }
  0x82   :  { %v283_v34 = vadd.f32 %v6718_v16, %v248_v33 }
  0x86   :  { %v350_v19 = vpop.f32.mrf.mxu0 }
  0x87   :  { %v351_v20 = vadd.f32 %v350_v19, %v280_v17  ;;  %v54_v19 = vld [vmem:[%s9740_s0 + $0x20] sm:$0xff] }
  0x89   :  { %6083 = vtanh.f32 %v351_v20  ;;  %v57_v20 = vld [vmem:[%s9740_s0 + $0x38] sm:$0xff] }
  0x8e   :  { %v353_v24 = vpop.f32.mrf.mxu0 }
  0x8f   :  { %v6084_v25 = vpop.eup %6083  ;;  %v354_v26 = vadd.f32 %v353_v24, %v281_v23 }
  0x90   :  { %398 = vrot.lane.b32.xlu2 %v6084_v25, %s6611_s1  ;;  %v366_v41 = vmul.f32 0.5, %v6084_v25 }
  0x91   :  { %6085 = vtanh.f32 %v354_v26  ;;  %v55_v26 = vld [vmem:[%s9740_s0 + $0x28] sm:$0xff] }
  0x92   :  { %v370_v42 = vadd.f32 0.5, %v366_v41 }
  0x96   :  { %v356_v30 = vpop.f32.mrf.mxu0 }
  0x97   :  { %v6086_v31 = vpop.eup %6085  ;;  %v357_v32 = vadd.f32 %v356_v30, %v282_v28  ;;  %v56_v30 = vld [vmem:[%s9740_s0 + $0x30] sm:$0xff] }
  0x98   :  { %400 = vrot.lane.b32.xlu2 %v6086_v31, %s6611_s1  ;;  %v367_v45 = vmul.f32 0.5, %v6086_v31 }
  0x99   :  { %6087 = vtanh.f32 %v357_v32 }
  0x9a   :  { %v371_v46 = vadd.f32 0.5, %v367_v45 }
  0x9e   :  { %v359_v36 = vpop.f32.mrf.mxu0 }
  0x9f   :  { %v6088_v37 = vpop.eup %6087  ;;  %v360_v38 = vadd.f32 %v359_v36, %v283_v34 }
  0xa0   :  { %402 = vrot.lane.b32.xlu0 %v6088_v37, %s6611_s1  ;;  %378 = vrot.lane.b32.xlu2 %v316_v35, %s6612_s22  ;;  %v368_v51 = vmul.f32 0.5, %v6088_v37 }
  0xa1   :  { %6089 = vtanh.f32 %v360_v38 }
  0xa2   :  { %v372_v52 = vadd.f32 0.5, %v368_v51 }
  0xa7   :  { %v6090_v39 = vpop.eup %6089 }
  0xa8   :  { %404 = vrot.lane.b32.xlu1 %v6090_v39, %s6611_s1  ;;  %v369_v55 = vmul.f32 0.5, %v6090_v39 }
  0xaa   :  { %v373_v56 = vadd.f32 0.5, %v369_v55 }
  0xb0   :  { %380 = vrot.lane.b32.xlu1 %v317_v40, %s6612_s22 }
  0xea   :  { %v399_v43 = vpop.permute.xlu2 %398 }
  0xeb   :  { %v410_v44 = vmul.f32 %v399_v43, %v370_v42 }
  0xed   :  { %418 = vrot.lane.b32.xlu0 %v410_v44, %s6612_s22 }
  0xf2   :  { %v401_v47 = vpop.permute.xlu2 %400 }
  0xf3   :  { %v411_v49 = vmul.f32 %v401_v47, %v371_v46 }
  0xf5   :  { %382 = vrot.lane.b32.xlu0 %v318_v48, %s6612_s22  ;;  %420 = vrot.lane.b32.xlu2 %v411_v49, %s6612_s22 }
  0xfa   :  { %v379_v59 = vpop.permute.xlu2 %378 }
  0xfb   :  { %v390_v1 = vmul.f32 %v379_v59, %v370_v42 }
  0xfd   :  { %384 = vrot.lane.b32.xlu2 %v319_v50, %s6612_s22 }
 0x112   :  { %v403_v53 = vpop.permute.xlu0 %402 }
 0x113   :  { %v412_v54 = vmul.f32 %v403_v53, %v372_v52 }
 0x115   :  { %422 = vrot.lane.b32.xlu1 %v412_v54, %s6612_s22 }
 0x11a   :  { %v405_v57 = vpop.permute.xlu1 %404 }
 0x11b   :  { %v413_v58 = vmul.f32 %v405_v57, %v373_v56 }
 0x11d   :  { %424 = vrot.lane.b32.xlu0 %v413_v58, %s6612_s22 }
 0x122   :  { %v381_v60 = vpop.permute.xlu1 %380 }
 0x123   :  { %v391_v61 = vmul.f32 %v381_v60, %v371_v46 }
 0x14f   :  { %v421_v62 = vpop.permute.xlu2 %420 }
 0x150   :  { %v6751_v63 = vadd.f32 %v421_v62, %v391_v61 }
 0x152   :  { %6091 = vtanh.f32 %v6751_v63 }
 0x157   :  { %v385_v9 = vpop.permute.xlu2 %384 }
 0x158   :  { %v6092_v0 = vpop.eup %6091  ;;  %v393_v10 = vmul.f32 %v385_v9, %v373_v56 }
 0x159   :  { %444 = vrot.lane.b32.xlu2 %v6092_v0, %s6611_s1 }
 0x15f   :  { %v419_v2 = vpop.permute.xlu0 %418 }
 0x160   :  { %v6755_v3 = vadd.f32 %v419_v2, %v390_v1 }
 0x162   :  { %6093 = vtanh.f32 %v6755_v3 }
 0x167   :  { %v383_v5 = vpop.permute.xlu0 %382 }
 0x168   :  { %v6094_v4 = vpop.eup %6093  ;;  %v392_v6 = vmul.f32 %v383_v5, %v372_v52 }
 0x169   :  { %442 = vrot.lane.b32.xlu1 %v6094_v4, %s6611_s1 }
 0x187   :  { %v423_v7 = vpop.permute.xlu1 %422 }
 0x188   :  { %v6759_v8 = vadd.f32 %v423_v7, %v392_v6 }
 0x18a   :  { %6095 = vtanh.f32 %v6759_v8 }
 0x18f   :  { %v425_v11 = vpop.permute.xlu0 %424 }
 0x190   :  { %v6096_v12 = vpop.eup %6095  ;;  %v6762_v14 = vadd.f32 %v425_v11, %v393_v10 }
 0x191   :  { %446 = vrot.lane.b32.xlu0 %v6096_v12, %s6611_s1 }
 0x192   :  { %6097 = vtanh.f32 %v6762_v14 }
 0x198   :  { %v6098_v15 = vpop.eup %6097 }
 0x199   :  { %448 = vrot.lane.b32.xlu1 %v6098_v15, %s6611_s1 }
 0x1b3   :  { %v445_v17 = vpop.permute.xlu2 %444 }
 0x1b4   :  { %v455_v18 = vmul.f32 %v445_v17, %v371_v46 }
 0x1b6   :  { %464 = vrot.lane.b32.xlu0 %v455_v18, %s6612_s22 }
 0x1be   :  { %104 = vperm.xlu0 %6075, %v54_v19  }
 0x1c6   :  { %119 = vperm.xlu0 %6075, %v57_v20  }
 0x1db   :  { %v443_v21 = vpop.permute.xlu1 %442 }
 0x1dc   :  { %v454_v22 = vmul.f32 %v443_v21, %v370_v42 }
 0x1de   :  { %462 = vrot.lane.b32.xlu2 %v454_v22, %s6612_s22 }
 0x203   :  { %v447_v23 = vpop.permute.xlu0 %446 }
 0x204   :  { %v456_v24 = vmul.f32 %v447_v23, %v372_v52 }
 0x206   :  { %466 = vrot.lane.b32.xlu1 %v456_v24, %s6612_s22 }
 0x20b   :  { %v449_v25 = vpop.permute.xlu1 %448 }
 0x20c   :  { %v457_v27 = vmul.f32 %v449_v25, %v373_v56 }
 0x20e   :  { %468 = vrot.lane.b32.xlu2 %v457_v27, %s6612_s22  ;;  %109 = vperm.xlu1 %6076, %v55_v26  }
 0x216   :  { %114 = vperm.xlu2 %6077, %v56_v30  }
 0x228   :  { %v465_v29 = vpop.permute.xlu0 %464 }
 0x230   :  { %v105_v33 = vpop.permute.xlu0 %104 }
 0x231   :  { %v249_v34 = vmul.f32 %v6712_v13, %v105_v33 }
 0x233   :  { %v284_v35 = vadd.f32 %v6718_v16, %v249_v34 }
 0x238   :  { %v463_v28 = vpop.permute.xlu2 %462  ;;  %v120_v48 = vpop.permute.xlu0 %119 }
 0x239   :  { %5947 = vmatmul.msk.f32.vlgmr.msra.gmra.mxu1 %vm320_vm0, %v463_v28  ;;  %v252_v51 = vmul.f32 %v6712_v13, %v120_v48 }
 0x23b   :  { %v287_v52 = vadd.f32 %v6718_v16, %v252_v51 }
 0x241   :  { %5948 = vmatmul.msk.f32.gmra.mxu1 %vm320_vm0, %v465_v29 }
 0x268   :  { %v469_v32 = vpop.permute.xlu2 %468 }
 0x270   :  { %v115_v45 = vpop.permute.xlu2 %114 }
 0x271   :  { %v251_v46 = vmul.f32 %v6712_v13, %v115_v45 }
 0x273   :  { %v286_v47 = vadd.f32 %v6718_v16, %v251_v46 }
 0x278   :  { %v467_v31 = vpop.permute.xlu1 %466 }
 0x279   :  { %5949 = vmatmul.msk.f32.gmra.mxu1 %vm320_vm0, %v467_v31 }
 0x280   :  { %v110_v36 = vpop.permute.xlu1 %109 }
 0x281   :  { %5950 = vmatmul.msk.f32.gmra.mxu1 %vm320_vm0, %v469_v32  ;;  %v250_v39 = vmul.f32 %v6712_v13, %v110_v36  ;;  %v61_v32 = vld [vmem:[%s9740_s0 + $0x58] sm:$0xff]  ;;  %v59_v36 = vld [vmem:[%s9740_s0 + $0x48] sm:$0xff] }
 0x283   :  { %v285_v40 = vadd.f32 %v6718_v16, %v250_v39 }
 0x2b6   :  { %v495_v37 = vpop.f32.mrf.mxu1 }
 0x2b7   :  { %v496_v38 = vadd.f32 %v495_v37, %v284_v35 }
 0x2b9   :  { %6099 = vtanh.f32 %v496_v38  ;;  %v60_v38 = vld [vmem:[%s9740_s0 + $0x50] sm:$0xff] }
 0x2be   :  { %v498_v41 = vpop.f32.mrf.mxu1 }
 0x2bf   :  { %v6100_v42 = vpop.eup %6099  ;;  %v499_v43 = vadd.f32 %v498_v41, %v285_v40 }
 0x2c0   :  { %527 = vrot.lane.b32.xlu1 %v6100_v42, %s6611_s1  ;;  %v511_v61 = vmul.f32 0.5, %v6100_v42 }
 0x2c1   :  { %6101 = vtanh.f32 %v499_v43 }
 0x2c2   :  { %v515_v62 = vadd.f32 0.5, %v511_v61 }
 0x2c4   :  { %v519_v12 = vmul.f32 %v515_v62, %v6755_v3 }
 0x2c7   :  { %v6102_v44 = vpop.eup %6101 }
 0x2c8   :  { %529 = vrot.lane.b32.xlu2 %v6102_v44, %s6611_s1  ;;  %v512_v57 = vmul.f32 0.5, %v6102_v44 }
 0x2ca   :  { %v516_v58 = vadd.f32 0.5, %v512_v57 }
 0x2cc   :  { %v520_v18 = vmul.f32 %v516_v58, %v6751_v63 }
 0x2f6   :  { %v501_v49 = vpop.f32.mrf.mxu1 }
 0x2f7   :  { %v502_v50 = vadd.f32 %v501_v49, %v286_v47 }
 0x2f9   :  { %6103 = vtanh.f32 %v502_v50 }
 0x2fe   :  { %v504_v53 = vpop.f32.mrf.mxu1 }
 0x2ff   :  { %v6104_v54 = vpop.eup %6103  ;;  %v505_v55 = vadd.f32 %v504_v53, %v287_v52 }
 0x300   :  { %531 = vrot.lane.b32.xlu0 %v6104_v54, %s6611_s1  ;;  %v513_v2 = vmul.f32 0.5, %v6104_v54 }
 0x301   :  { %6105 = vtanh.f32 %v505_v55 }
 0x302   :  { %v517_v4 = vadd.f32 0.5, %v513_v2 }
 0x304   :  { %v521_v63 = vmul.f32 %v517_v4, %v6759_v8  ;;  %v58_v8 = vld [vmem:[%s9740_s0 + $0x40] sm:$0xff] }
 0x307   :  { %v6106_v56 = vpop.eup %6105 }
 0x308   :  { %533 = vrot.lane.b32.xlu1 %v6106_v56, %s6611_s1  ;;  %v514_v7 = vmul.f32 0.5, %v6106_v56 }
 0x30a   :  { %v518_v9 = vadd.f32 0.5, %v514_v7 }
 0x30c   :  { %v522_v3 = vmul.f32 %v518_v9, %v6762_v14 }
 0x322   :  { %v530_v59 = vpop.permute.xlu2 %529 }
 0x323   :  { %v540_v60 = vmul.f32 %v530_v59, %v516_v58 }
 0x325   :  { %549 = vrot.lane.b32.xlu0 %v540_v60, %s6612_s22 }
 0x332   :  { %v528_v0 = vpop.permute.xlu1 %527 }
 0x333   :  { %v539_v1 = vmul.f32 %v528_v0, %v515_v62 }
 0x335   :  { %547 = vrot.lane.b32.xlu2 %v539_v1, %s6612_s22 }
 0x372   :  { %v532_v5 = vpop.permute.xlu0 %531 }
 0x373   :  { %v541_v6 = vmul.f32 %v532_v5, %v517_v4 }
 0x375   :  { %551 = vrot.lane.b32.xlu1 %v541_v6, %s6612_s22 }
 0x37a   :  { %v534_v10 = vpop.permute.xlu1 %533 }
 0x37b   :  { %v542_v11 = vmul.f32 %v534_v10, %v518_v9 }
 0x37d   :  { %553 = vrot.lane.b32.xlu2 %v542_v11, %s6612_s22 }
 0x38f   :  { %v548_v15 = vpop.permute.xlu2 %547 }
 0x390   :  { %v6804_v17 = vadd.f32 %v548_v15, %v519_v12 }
 0x392   :  { %6107 = vtanh.f32 %v6804_v17 }
 0x397   :  { %v550_v19 = vpop.permute.xlu0 %549 }
 0x398   :  { %v6108_v20 = vpop.eup %6107  ;;  %v6808_v21 = vadd.f32 %v550_v19, %v520_v18 }
 0x399   :  { %571 = vrot.lane.b32.xlu0 %v6108_v20, %s6611_s1 }
 0x39a   :  { %6109 = vtanh.f32 %v6808_v21 }
 0x3a0   :  { %v6110_v22 = vpop.eup %6109 }
 0x3a1   :  { %573 = vrot.lane.b32.xlu1 %v6110_v22, %s6611_s1 }
 0x3d7   :  { %v554_v23 = vpop.permute.xlu2 %553 }
 0x3d8   :  { %v6814_v24 = vadd.f32 %v554_v23, %v522_v3 }
 0x3da   :  { %6111 = vtanh.f32 %v6814_v24 }
 0x3e0   :  { %v6112_v25 = vpop.eup %6111 }
 0x3e1   :  { %577 = vrot.lane.b32.xlu0 %v6112_v25, %s6611_s1 }
 0x3e7   :  { %v552_v26 = vpop.permute.xlu1 %551 }
 0x3e8   :  { %v6819_v27 = vadd.f32 %v552_v26, %v521_v63 }
 0x3ea   :  { %6113 = vtanh.f32 %v6819_v27 }
 0x3f0   :  { %v6114_v28 = vpop.eup %6113 }
 0x3f1   :  { %575 = vrot.lane.b32.xlu2 %v6114_v28, %s6611_s1 }
 0x40b   :  { %v572_v29 = vpop.permute.xlu0 %571 }
 0x40c   :  { %v583_v14 = vmul.f32 %v572_v29, %v515_v62 }
 0x40e   :  { %591 = vrot.lane.b32.xlu1 %v583_v14, %s6612_s22 }
 0x413   :  { %v574_v30 = vpop.permute.xlu1 %573 }
 0x414   :  { %v584_v31 = vmul.f32 %v574_v30, %v516_v58 }
 0x416   :  { %593 = vrot.lane.b32.xlu2 %v584_v31, %s6612_s22 }
 0x41e   :  { %124 = vperm.xlu2 %6077, %v58_v8  }
 0x426   :  { %139 = vperm.xlu2 %6077, %v61_v32  }
 0x44b   :  { %v576_v33 = vpop.permute.xlu2 %575 }
 0x44c   :  { %v585_v34 = vmul.f32 %v576_v33, %v517_v4 }
 0x44e   :  { %595 = vrot.lane.b32.xlu0 %v585_v34, %s6612_s22 }
 0x453   :  { %v578_v35 = vpop.permute.xlu0 %577 }
 0x454   :  { %v586_v37 = vmul.f32 %v578_v35, %v518_v9 }
 0x456   :  { %129 = vperm.xlu0 %6075, %v59_v36   ;;  %597 = vrot.lane.b32.xlu1 %v586_v37, %s6612_s22 }
 0x45e   :  { %134 = vperm.xlu1 %6076, %v60_v38  }
 0x470   :  { %v594_v40 = vpop.permute.xlu2 %593 }
 0x478   :  { %v125_v43 = vpop.permute.xlu2 %124 }
 0x479   :  { %v253_v44 = vmul.f32 %v6712_v13, %v125_v43 }
 0x47b   :  { %v288_v45 = vadd.f32 %v6718_v16, %v253_v44 }
 0x480   :  { %v592_v39 = vpop.permute.xlu1 %591  ;;  %v140_v58 = vpop.permute.xlu2 %139 }
 0x481   :  { %5951 = vmatmul.msk.f32.vlgmr.msra.gmra.mxu2 %vm320_vm0, %v592_v39  ;;  %v256_v61 = vmul.f32 %v6712_v13, %v140_v58 }
 0x483   :  { %v291_v62 = vadd.f32 %v6718_v16, %v256_v61 }
 0x489   :  { %5952 = vmatmul.msk.f32.gmra.mxu2 %vm320_vm0, %v594_v40 }
 0x4c0   :  { %v596_v41 = vpop.permute.xlu0 %595 }
 0x4c1   :  { %5953 = vmatmul.msk.f32.gmra.mxu2 %vm320_vm0, %v596_v41 }
 0x4c8   :  { %v598_v42 = vpop.permute.xlu1 %597  ;;  %v130_v46 = vpop.permute.xlu0 %129 }
 0x4c9   :  { %5954 = vmatmul.msk.f32.gmra.mxu2 %vm320_vm0, %v598_v42  ;;  %v254_v49 = vmul.f32 %v6712_v13, %v130_v46  ;;  %v65_v42 = vld [vmem:[%s9740_s0 + $0x78] sm:$0xff]  ;;  %v63_v46 = vld [vmem:[%s9740_s0 + $0x68] sm:$0xff] }
 0x4cb   :  { %v289_v50 = vadd.f32 %v6718_v16, %v254_v49 }
 0x4d0   :  { %v135_v55 = vpop.permute.xlu1 %134 }
 0x4d1   :  { %v255_v56 = vmul.f32 %v6712_v13, %v135_v55 }
 0x4d3   :  { %v290_v57 = vadd.f32 %v6718_v16, %v255_v56 }
 0x504   :  { %v624_v47 = vpop.f32.mrf.mxu2 }
 0x505   :  { %v625_v48 = vadd.f32 %v624_v47, %v288_v45 }
 0x507   :  { %6115 = vtanh.f32 %v625_v48  ;;  %v64_v48 = vld [vmem:[%s9740_s0 + $0x70] sm:$0xff] }
 0x50c   :  { %v627_v51 = vpop.f32.mrf.mxu2 }
 0x50d   :  { %v6116_v52 = vpop.eup %6115  ;;  %v628_v53 = vadd.f32 %v627_v51, %v289_v50 }
 0x50e   :  { %656 = vrot.lane.b32.xlu0 %v6116_v52, %s6611_s1  ;;  %v640_v5 = vmul.f32 0.5, %v6116_v52 }
 0x50f   :  { %6117 = vtanh.f32 %v628_v53 }
 0x510   :  { %v644_v6 = vadd.f32 0.5, %v640_v5 }
 0x512   :  { %v648_v30 = vmul.f32 %v644_v6, %v6804_v17 }
 0x515   :  { %v6118_v54 = vpop.eup %6117 }
 0x516   :  { %658 = vrot.lane.b32.xlu1 %v6118_v54, %s6611_s1  ;;  %v641_v10 = vmul.f32 0.5, %v6118_v54 }
 0x518   :  { %v645_v11 = vadd.f32 0.5, %v641_v10 }
 0x51a   :  { %v649_v26 = vmul.f32 %v645_v11, %v6808_v21 }
 0x544   :  { %v630_v59 = vpop.f32.mrf.mxu2 }
 0x545   :  { %v631_v60 = vadd.f32 %v630_v59, %v290_v57 }
 0x547   :  { %6119 = vtanh.f32 %v631_v60 }
 0x54c   :  { %v633_v0 = vpop.f32.mrf.mxu2 }
 0x54d   :  { %v6120_v1 = vpop.eup %6119  ;;  %v634_v2 = vadd.f32 %v633_v0, %v291_v62 }
 0x54e   :  { %660 = vrot.lane.b32.xlu2 %v6120_v1, %s6611_s1  ;;  %v642_v18 = vmul.f32 0.5, %v6120_v1 }
 0x54f   :  { %6121 = vtanh.f32 %v634_v2 }
 0x550   :  { %v646_v19 = vadd.f32 0.5, %v642_v18 }
 0x552   :  { %v650_v21 = vmul.f32 %v646_v19, %v6819_v27 }
 0x555   :  { %v6122_v4 = vpop.eup %6121 }
 0x556   :  { %662 = vrot.lane.b32.xlu0 %v6122_v4, %s6611_s1  ;;  %v643_v3 = vmul.f32 0.5, %v6122_v4 }
 0x558   :  { %v647_v23 = vadd.f32 0.5, %v643_v3 }
 0x55a   :  { %v651_v17 = vmul.f32 %v647_v23, %v6814_v24  ;;  %v62_v24 = vld [vmem:[%s9740_s0 + $0x60] sm:$0xff] }
 0x580   :  { %v657_v7 = vpop.permute.xlu0 %656 }
 0x581   :  { %v668_v9 = vmul.f32 %v657_v7, %v644_v6 }
 0x583   :  { %676 = vrot.lane.b32.xlu1 %v668_v9, %s6612_s22 }
 0x588   :  { %v659_v12 = vpop.permute.xlu1 %658 }
 0x589   :  { %v669_v15 = vmul.f32 %v659_v12, %v645_v11 }
 0x58b   :  { %678 = vrot.lane.b32.xlu2 %v669_v15, %s6612_s22 }
 0x5a8   :  { %v661_v20 = vpop.permute.xlu2 %660 }
 0x5a9   :  { %v670_v22 = vmul.f32 %v661_v20, %v646_v19 }
 0x5ab   :  { %680 = vrot.lane.b32.xlu0 %v670_v22, %s6612_s22 }
 0x5c8   :  { %v663_v25 = vpop.permute.xlu0 %662 }
 0x5c9   :  { %v671_v63 = vmul.f32 %v663_v25, %v647_v23 }
 0x5cb   :  { %682 = vrot.lane.b32.xlu1 %v671_v63, %s6612_s22 }
 0x5e5   :  { %v679_v28 = vpop.permute.xlu2 %678 }
 0x5e6   :  { %v6860_v29 = vadd.f32 %v679_v28, %v649_v26 }
 0x5e8   :  { %6123 = vtanh.f32 %v6860_v29 }
 0x5ee   :  { %v6124_v14 = vpop.eup %6123 }
 0x5ef   :  { %702 = vrot.lane.b32.xlu0 %v6124_v14, %s6611_s1 }
 0x5f5   :  { %v677_v31 = vpop.permute.xlu1 %676 }
 0x5f6   :  { %v6865_v8 = vadd.f32 %v677_v31, %v648_v30 }
 0x5f8   :  { %6125 = vtanh.f32 %v6865_v8 }
 0x5fe   :  { %v6126_v32 = vpop.eup %6125 }
 0x5ff   :  { %700 = vrot.lane.b32.xlu2 %v6126_v32, %s6611_s1 }
 0x61d   :  { %v681_v33 = vpop.permute.xlu0 %680 }
 0x61e   :  { %v6870_v34 = vadd.f32 %v681_v33, %v650_v21 }
 0x620   :  { %6127 = vtanh.f32 %v6870_v34 }
 0x626   :  { %v6128_v35 = vpop.eup %6127 }
 0x627   :  { %704 = vrot.lane.b32.xlu1 %v6128_v35, %s6611_s1 }
 0x63d   :  { %v683_v36 = vpop.permute.xlu1 %682 }
 0x63e   :  { %v6875_v37 = vadd.f32 %v683_v36, %v651_v17 }
 0x640   :  { %6129 = vtanh.f32 %v6875_v37 }
 0x646   :  { %v6130_v38 = vpop.eup %6129 }
 0x647   :  { %706 = vrot.lane.b32.xlu2 %v6130_v38, %s6611_s1 }
 0x659   :  { %v701_v39 = vpop.permute.xlu2 %700 }
 0x65a   :  { %v712_v27 = vmul.f32 %v701_v39, %v644_v6 }
 0x65c   :  { %720 = vrot.lane.b32.xlu0 %v712_v27, %s6612_s22 }
 0x661   :  { %v703_v40 = vpop.permute.xlu0 %702 }
 0x662   :  { %v713_v41 = vmul.f32 %v703_v40, %v645_v11 }
 0x664   :  { %722 = vrot.lane.b32.xlu1 %v713_v41, %s6612_s22 }
 0x66c   :  { %144 = vperm.xlu1 %6076, %v62_v24  }
 0x674   :  { %159 = vperm.xlu1 %6076, %v65_v42  }
 0x699   :  { %v705_v43 = vpop.permute.xlu1 %704 }
 0x69a   :  { %v714_v44 = vmul.f32 %v705_v43, %v646_v19 }
 0x69c   :  { %724 = vrot.lane.b32.xlu2 %v714_v44, %s6612_s22 }
 0x6a1   :  { %v707_v45 = vpop.permute.xlu2 %706 }
 0x6a2   :  { %v715_v47 = vmul.f32 %v707_v45, %v647_v23 }
 0x6a4   :  { %726 = vrot.lane.b32.xlu0 %v715_v47, %s6612_s22  ;;  %149 = vperm.xlu2 %6077, %v63_v46  }
 0x6ac   :  { %154 = vperm.xlu0 %6075, %v64_v48  }
 0x6ce   :  { %v721_v49 = vpop.permute.xlu0 %720 }
 0x6cf   :  { %5955 = vmatmul.msk.f32.vlgmr.msra.gmra.mxu3 %vm320_vm0, %v721_v49 }
 0x6d6   :  { %v723_v50 = vpop.permute.xlu1 %722 }
 0x6d7   :  { %5956 = vmatmul.msk.f32.gmra.mxu3 %vm320_vm0, %v723_v50 }
 0x6de   :  { %v145_v53 = vpop.permute.xlu1 %144 }
 0x6df   :  { %v257_v54 = vmul.f32 %v6712_v13, %v145_v53 }
 0x6e1   :  { %v292_v55 = vadd.f32 %v6718_v16, %v257_v54 }
 0x6e6   :  { %v160_v10 = vpop.permute.xlu1 %159 }
 0x6e7   :  { %v260_v11 = vmul.f32 %v6712_v13, %v160_v10 }
 0x6e9   :  { %v295_v12 = vadd.f32 %v6718_v16, %v260_v11 }
 0x6f6   :  { %v725_v51 = vpop.permute.xlu2 %724 }
 0x6f7   :  { %5957 = vmatmul.msk.f32.gmra.mxu3 %vm320_vm0, %v725_v51 }
 0x6fe   :  { %v150_v56 = vpop.permute.xlu2 %149 }
 0x6ff   :  { %v258_v59 = vmul.f32 %v6712_v13, %v150_v56 }
 0x701   :  { %v293_v60 = vadd.f32 %v6718_v16, %v258_v59 }
 0x716   :  { %v727_v52 = vpop.permute.xlu0 %726 }
 0x717   :  { %5958 = vmatmul.msk.f32.gmra.mxu3 %vm320_vm0, %v727_v52  ;;  %v69_v52 = vld [vmem:[%s9740_s0 + $0x98] sm:$0xff] }
 0x71e   :  { %v155_v2 = vpop.permute.xlu0 %154 }
 0x71f   :  { %v259_v4 = vmul.f32 %v6712_v13, %v155_v2 }
 0x721   :  { %v294_v5 = vadd.f32 %v6718_v16, %v259_v4 }
 0x752   :  { %v753_v57 = vpop.f32.mrf.mxu3 }
 0x753   :  { %v754_v58 = vadd.f32 %v753_v57, %v292_v55  ;;  %v67_v55 = vld [vmem:[%s9740_s0 + $0x88] sm:$0xff] }
 0x755   :  { %6131 = vtanh.f32 %v754_v58  ;;  %v68_v58 = vld [vmem:[%s9740_s0 + $0x90] sm:$0xff] }
 0x75a   :  { %v756_v61 = vpop.f32.mrf.mxu3 }
 0x75b   :  { %v6132_v62 = vpop.eup %6131  ;;  %v757_v0 = vadd.f32 %v756_v61, %v293_v60 }
 0x75c   :  { %785 = vrot.lane.b32.xlu2 %v6132_v62, %s6611_s1  ;;  %v769_v20 = vmul.f32 0.5, %v6132_v62 }
 0x75d   :  { %6133 = vtanh.f32 %v757_v0 }
 0x75e   :  { %v773_v22 = vadd.f32 0.5, %v769_v20 }
 0x760   :  { %v777_v36 = vmul.f32 %v773_v22, %v6865_v8 }
 0x763   :  { %v6134_v1 = vpop.eup %6133 }
 0x764   :  { %787 = vrot.lane.b32.xlu0 %v6134_v1, %s6611_s1  ;;  %v770_v25 = vmul.f32 0.5, %v6134_v1 }
 0x766   :  { %v774_v63 = vadd.f32 0.5, %v770_v25 }
 0x768   :  { %v778_v40 = vmul.f32 %v774_v63, %v6860_v29 }
 0x77a   :  { %v759_v6 = vpop.f32.mrf.mxu3 }
 0x77b   :  { %v760_v7 = vadd.f32 %v759_v6, %v294_v5 }
 0x77d   :  { %6135 = vtanh.f32 %v760_v7 }
 0x783   :  { %v6136_v9 = vpop.eup %6135 }
 0x784   :  { %789 = vrot.lane.b32.xlu1 %v6136_v9, %s6611_s1  ;;  %v771_v14 = vmul.f32 0.5, %v6136_v9 }
 0x786   :  { %v775_v30 = vadd.f32 0.5, %v771_v14 }
 0x788   :  { %v779_v42 = vmul.f32 %v775_v30, %v6870_v34 }
 0x79a   :  { %v762_v15 = vpop.f32.mrf.mxu3 }
 0x79b   :  { %v763_v18 = vadd.f32 %v762_v15, %v295_v12 }
 0x79d   :  { %6137 = vtanh.f32 %v763_v18 }
 0x7a3   :  { %v6138_v19 = vpop.eup %6137 }
 0x7a4   :  { %791 = vrot.lane.b32.xlu2 %v6138_v19, %s6611_s1  ;;  %v772_v21 = vmul.f32 0.5, %v6138_v19 }
 0x7a6   :  { %v776_v33 = vadd.f32 0.5, %v772_v21 }
 0x7a8   :  { %v780_v29 = vmul.f32 %v776_v33, %v6875_v37  ;;  %v66_v37 = vld [vmem:[%s9740_s0 + $0x80] sm:$0xff] }
 0x7b6   :  { %v786_v3 = vpop.permute.xlu2 %785 }
 0x7b7   :  { %v797_v23 = vmul.f32 %v786_v3, %v773_v22 }
 0x7b9   :  { %805 = vrot.lane.b32.xlu0 %v797_v23, %s6612_s22 }
 0x7d6   :  { %v788_v26 = vpop.permute.xlu0 %787 }
 0x7d7   :  { %v798_v28 = vmul.f32 %v788_v26, %v774_v63 }
 0x7d9   :  { %807 = vrot.lane.b32.xlu1 %v798_v28, %s6612_s22 }
 0x7f6   :  { %v790_v31 = vpop.permute.xlu1 %789 }
 0x7f7   :  { %v799_v32 = vmul.f32 %v790_v31, %v775_v30 }
 0x7f9   :  { %809 = vrot.lane.b32.xlu2 %v799_v32, %s6612_s22 }
 0x7fe   :  { %v792_v35 = vpop.permute.xlu2 %791 }
 0x7ff   :  { %v800_v17 = vmul.f32 %v792_v35, %v776_v33 }
 0x801   :  { %811 = vrot.lane.b32.xlu0 %v800_v17, %s6612_s22 }
 0x82b   :  { %v806_v38 = vpop.permute.xlu0 %805 }
 0x82c   :  { %v6916_v39 = vadd.f32 %v806_v38, %v777_v36 }
 0x82e   :  { %6139 = vtanh.f32 %v6916_v39 }
 0x834   :  { %v6140_v27 = vpop.eup %6139 }
 0x835   :  { %829 = vrot.lane.b32.xlu1 %v6140_v27, %s6611_s1 }
 0x84b   :  { %v808_v41 = vpop.permute.xlu1 %807 }
 0x84c   :  { %v6921_v24 = vadd.f32 %v808_v41, %v778_v40 }
 0x84e   :  { %6141 = vtanh.f32 %v6921_v24 }
 0x853   :  { %v810_v43 = vpop.permute.xlu2 %809 }
 0x854   :  { %v6142_v44 = vpop.eup %6141  ;;  %v6925_v8 = vadd.f32 %v810_v43, %v779_v42 }
 0x855   :  { %831 = vrot.lane.b32.xlu2 %v6142_v44, %s6611_s1 }
 0x856   :  { %6143 = vtanh.f32 %v6925_v8 }
 0x85c   :  { %v6144_v45 = vpop.eup %6143 }
 0x85d   :  { %833 = vrot.lane.b32.xlu0 %v6144_v45, %s6611_s1 }
 0x873   :  { %v812_v46 = vpop.permute.xlu0 %811 }
 0x874   :  { %v6931_v47 = vadd.f32 %v812_v46, %v780_v29 }
 0x876   :  { %6145 = vtanh.f32 %v6931_v47 }
 0x87c   :  { %v6146_v48 = vpop.eup %6145 }
 0x87d   :  { %835 = vrot.lane.b32.xlu1 %v6146_v48, %s6611_s1 }
 0x8a7   :  { %v830_v34 = vpop.permute.xlu1 %829 }
 0x8a8   :  { %v841_v49 = vmul.f32 %v830_v34, %v773_v22 }
 0x8aa   :  { %849 = vrot.lane.b32.xlu2 %v841_v49, %s6612_s22 }
 0x8af   :  { %v832_v50 = vpop.permute.xlu2 %831 }
 0x8b0   :  { %v842_v51 = vmul.f32 %v832_v50, %v774_v63 }
 0x8b2   :  { %851 = vrot.lane.b32.xlu0 %v842_v51, %s6612_s22 }
 0x8ba   :  { %164 = vperm.xlu0 %6075, %v66_v37  }
 0x8c2   :  { %179 = vperm.xlu0 %6075, %v69_v52  }
 0x8cf   :  { %v834_v53 = vpop.permute.xlu0 %833 }
 0x8d0   :  { %v843_v54 = vmul.f32 %v834_v53, %v775_v30 }
 0x8d2   :  { %853 = vrot.lane.b32.xlu1 %v843_v54, %s6612_s22 }
 0x8da   :  { %169 = vperm.xlu1 %6076, %v67_v55  }
 0x8ef   :  { %v836_v56 = vpop.permute.xlu1 %835 }
 0x8f0   :  { %v844_v57 = vmul.f32 %v836_v56, %v776_v33 }
 0x8f2   :  { %855 = vrot.lane.b32.xlu2 %v844_v57, %s6612_s22 }
 0x8fa   :  { %174 = vperm.xlu2 %6077, %v68_v58  }
 0x904   :  { %v850_v59 = vpop.permute.xlu2 %849 }
 0x905   :  { %5959 = vmatmul.msk.f32.vlgmr.msrb.gmra.mxu0 %vm320_vm0, %v850_v59 }
 0x924   :  { %v852_v60 = vpop.permute.xlu0 %851 }
 0x925   :  { %5960 = vmatmul.msk.f32.gmra.mxu0 %vm320_vm0, %v852_v60  ;;  %v73_v60 = vld [vmem:[%s9740_s0 + $0xb8] sm:$0xff] }
 0x92c   :  { %v165_v0 = vpop.permute.xlu0 %164 }
 0x92d   :  { %v261_v1 = vmul.f32 %v6712_v13, %v165_v0 }
 0x92f   :  { %v296_v2 = vadd.f32 %v6718_v16, %v261_v1  ;;  %v71_v1 = vld [vmem:[%s9740_s0 + $0xa8] sm:$0xff] }
 0x934   :  { %v180_v22 = vpop.permute.xlu0 %179 }
 0x935   :  { %v264_v25 = vmul.f32 %v6712_v13, %v180_v22 }
 0x937   :  { %v299_v63 = vadd.f32 %v6718_v16, %v264_v25 }
 0x944   :  { %v854_v61 = vpop.permute.xlu1 %853 }
 0x945   :  { %5961 = vmatmul.msk.f32.gmra.mxu0 %vm320_vm0, %v854_v61 }
 0x94c   :  { %v856_v62 = vpop.permute.xlu2 %855  ;;  %v170_v7 = vpop.permute.xlu1 %169 }
 0x94d   :  { %5962 = vmatmul.msk.f32.gmra.mxu0 %vm320_vm0, %v856_v62  ;;  %v262_v9 = vmul.f32 %v6712_v13, %v170_v7 }
 0x94f   :  { %v297_v10 = vadd.f32 %v6718_v16, %v262_v9 }
 0x954   :  { %v175_v18 = vpop.permute.xlu2 %174 }
 0x955   :  { %v263_v19 = vmul.f32 %v6712_v13, %v175_v18 }
 0x957   :  { %v298_v20 = vadd.f32 %v6718_v16, %v263_v19 }
 0x982   :  { %v882_v4 = vpop.f32.mrf.mxu0 }
 0x983   :  { %v883_v5 = vadd.f32 %v882_v4, %v296_v2  ;;  %v72_v4 = vld [vmem:[%s9740_s0 + $0xb0] sm:$0xff] }
 0x985   :  { %6147 = vtanh.f32 %v883_v5 }
 0x98b   :  { %v6148_v6 = vpop.eup %6147 }
 0x98c   :  { %914 = vrot.lane.b32.xlu1 %v6148_v6, %s6611_s1  ;;  %v898_v31 = vmul.f32 0.5, %v6148_v6 }
 0x98e   :  { %v902_v32 = vadd.f32 0.5, %v898_v31 }
 0x990   :  { %v906_v45 = vmul.f32 %v902_v32, %v6916_v39 }
 0x9a2   :  { %v885_v11 = vpop.f32.mrf.mxu0 }
 0x9a3   :  { %v886_v12 = vadd.f32 %v885_v11, %v297_v10  ;;  %v7014_v11 = vld [vmem:[%s9742_s3] ss:$0 sm:$0xff] }
 0x9a5   :  { %6149 = vtanh.f32 %v886_v12 }
 0x9ab   :  { %v6150_v15 = vpop.eup %6149 }
 0x9ac   :  { %916 = vrot.lane.b32.xlu2 %v6150_v15, %s6611_s1  ;;  %v899_v35 = vmul.f32 0.5, %v6150_v15  ;;  %v7020_v15 = vld [vmem:[%s9743_s5] ss:$0 sm:$0xff] }
 0x9ae   :  { %v903_v13 = vadd.f32 0.5, %v899_v35 }
 0x9b0   :  { %v907_v34 = vmul.f32 %v903_v13, %v6921_v24 }
 0x9c2   :  { %v888_v3 = vpop.f32.mrf.mxu0 }
 0x9c3   :  { %v889_v23 = vadd.f32 %v888_v3, %v298_v20 }
 0x9c5   :  { %6151 = vtanh.f32 %v889_v23 }
 0x9ca   :  { %v891_v26 = vpop.f32.mrf.mxu0 }
 0x9cb   :  { %v6152_v28 = vpop.eup %6151  ;;  %v892_v14 = vadd.f32 %v891_v26, %v299_v63 }
 0x9cc   :  { %918 = vrot.lane.b32.xlu0 %v6152_v28, %s6611_s1  ;;  %v900_v16 = vmul.f32 0.5, %v6152_v28 }
 0x9cd   :  { %6153 = vtanh.f32 %v892_v14 }
 0x9ce   :  { %v904_v38 = vadd.f32 0.5, %v900_v16 }
 0x9d0   :  { %v908_v24 = vmul.f32 %v904_v38, %v6925_v8  ;;  %v70_v8 = vld [vmem:[%s9740_s0 + $0xa0] sm:$0xff] }
 0x9d3   :  { %v6154_v30 = vpop.eup %6153 }
 0x9d4   :  { %920 = vrot.lane.b32.xlu1 %v6154_v30, %s6611_s1  ;;  %v901_v41 = vmul.f32 0.5, %v6154_v30 }
 0x9d6   :  { %v905_v42 = vadd.f32 0.5, %v901_v41 }
 0x9d8   :  { %v909_v39 = vmul.f32 %v905_v42, %v6931_v47 }
 0x9fe   :  { %v915_v21 = vpop.permute.xlu1 %914 }
 0x9ff   :  { %v926_v33 = vmul.f32 %v915_v21, %v902_v32 }
 0xa01   :  { %934 = vrot.lane.b32.xlu2 %v926_v33, %s6612_s22 }
 0xa06   :  { %v917_v17 = vpop.permute.xlu2 %916 }
 0xa07   :  { %v927_v36 = vmul.f32 %v917_v17, %v903_v13 }
 0xa09   :  { %936 = vrot.lane.b32.xlu0 %v927_v36, %s6612_s22 }
 0xa3e   :  { %v919_v27 = vpop.permute.xlu0 %918 }
 0xa3f   :  { %v928_v40 = vmul.f32 %v919_v27, %v904_v38 }
 0xa41   :  { %938 = vrot.lane.b32.xlu1 %v928_v40, %s6612_s22 }
 0xa46   :  { %v921_v43 = vpop.permute.xlu1 %920 }
 0xa47   :  { %v929_v44 = vmul.f32 %v921_v43, %v905_v42 }
 0xa49   :  { %940 = vrot.lane.b32.xlu2 %v929_v44, %s6612_s22 }
 0xa5b   :  { %v935_v29 = vpop.permute.xlu2 %934 }
 0xa5c   :  { %v6972_v46 = vadd.f32 %v935_v29, %v906_v45 }
 0xa5e   :  { %6155 = vtanh.f32 %v6972_v46 }
 0xa64   :  { %v6156_v48 = vpop.eup %6155 }
 0xa65   :  { %958 = vrot.lane.b32.xlu0 %v6156_v48, %s6611_s1 }
 0xa7b   :  { %v937_v49 = vpop.permute.xlu0 %936 }
 0xa7c   :  { %v6977_v50 = vadd.f32 %v937_v49, %v907_v34 }
 0xa7e   :  { %6157 = vtanh.f32 %v6977_v50 }
 0xa84   :  { %v6158_v51 = vpop.eup %6157 }
 0xa85   :  { %960 = vrot.lane.b32.xlu1 %v6158_v51, %s6611_s1 }
 0xaa3   :  { %v941_v37 = vpop.permute.xlu2 %940 }
 0xaa4   :  { %v6982_v52 = vadd.f32 %v941_v37, %v909_v39 }
 0xaa6   :  { %6159 = vtanh.f32 %v6982_v52 }
 0xaac   :  { %v6160_v53 = vpop.eup %6159 }
 0xaad   :  { %964 = vrot.lane.b32.xlu0 %v6160_v53, %s6611_s1 }
 0xab3   :  { %v939_v54 = vpop.permute.xlu1 %938 }
 0xab4   :  { %v6987_v55 = vadd.f32 %v939_v54, %v908_v24 }
 0xab6   :  { %6161 = vtanh.f32 %v6987_v55 }
 0xabc   :  { %v6162_v56 = vpop.eup %6161 }
 0xabd   :  { %962 = vrot.lane.b32.xlu2 %v6162_v56, %s6611_s1 }
 0xad7   :  { %v959_v57 = vpop.permute.xlu0 %958 }
 0xad8   :  { %v970_v47 = vmul.f32 %v959_v57, %v902_v32 }
 0xada   :  { %978 = vrot.lane.b32.xlu1 %v970_v47, %s6612_s22 }
 0xaf7   :  { %v961_v58 = vpop.permute.xlu1 %960 }
 0xaf8   :  { %v971_v59 = vmul.f32 %v961_v58, %v903_v13 }
 0xafa   :  { %980 = vrot.lane.b32.xlu2 %v971_v59, %s6612_s22 }
 0xb02   :  { %184 = vperm.xlu2 %6077, %v70_v8  }
 0xb0a   :  { %199 = vperm.xlu2 %6077, %v73_v60  }
 0xb17   :  { %v963_v61 = vpop.permute.xlu2 %962 }
 0xb18   :  { %v972_v62 = vmul.f32 %v963_v61, %v904_v38 }
 0xb1a   :  { %982 = vrot.lane.b32.xlu0 %v972_v62, %s6612_s22 }
 0xb1f   :  { %v965_v0 = vpop.permute.xlu0 %964 }
 0xb20   :  { %v973_v2 = vmul.f32 %v965_v0, %v905_v42 }
 0xb22   :  { %189 = vperm.xlu0 %6075, %v71_v1   ;;  %984 = vrot.lane.b32.xlu1 %v973_v2, %s6612_s22 }
 0xb2a   :  { %194 = vperm.xlu1 %6076, %v72_v4  }
 0xb4c   :  { %v979_v5 = vpop.permute.xlu1 %978 }
 0xb4d   :  { %5963 = vmatmul.msk.f32.vlgmr.msrb.gmra.mxu1 %vm320_vm0, %v979_v5 }
 0xb54   :  { %v981_v6 = vpop.permute.xlu2 %980 }
 0xb55   :  { %5964 = vmatmul.msk.f32.gmra.mxu1 %vm320_vm0, %v981_v6 }
 0xb5c   :  { %v185_v10 = vpop.permute.xlu2 %184 }
 0xb5d   :  { %v265_v12 = vmul.f32 %v7014_v11, %v185_v10 }
 0xb5f   :  { %v300_v18 = vadd.f32 %v7020_v15, %v265_v12 }
 0xb64   :  { %v200_v32 = vpop.permute.xlu2 %199 }
 0xb65   :  { %v268_v35 = vmul.f32 %v7014_v11, %v200_v32 }
 0xb67   :  { %v303_v13 = vadd.f32 %v7020_v15, %v268_v35 }
 0xb8c   :  { %v983_v7 = vpop.permute.xlu0 %982 }
 0xb8d   :  { %5965 = vmatmul.msk.f32.gmra.mxu1 %vm320_vm0, %v983_v7 }
 0xb94   :  { %v985_v9 = vpop.permute.xlu1 %984  ;;  %v190_v19 = vpop.permute.xlu0 %189 }
 0xb95   :  { %5966 = vmatmul.msk.f32.gmra.mxu1 %vm320_vm0, %v985_v9  ;;  %v266_v3 = vmul.f32 %v7014_v11, %v190_v19  ;;  %v77_v9 = vld [vmem:[%s9740_s0 + $0xd8] sm:$0xff]  ;;  %v75_v19 = vld [vmem:[%s9740_s0 + $0xc8] sm:$0xff] }
 0xb97   :  { %v301_v23 = vadd.f32 %v7020_v15, %v266_v3 }
 0xb9c   :  { %v195_v14 = vpop.permute.xlu1 %194 }
 0xb9d   :  { %v267_v30 = vmul.f32 %v7014_v11, %v195_v14 }
 0xb9f   :  { %v302_v31 = vadd.f32 %v7020_v15, %v267_v30 }
 0xbca   :  { %v1011_v20 = vpop.f32.mrf.mxu1 }
 0xbcb   :  { %v1012_v22 = vadd.f32 %v1011_v20, %v300_v18 }
 0xbcd   :  { %6163 = vtanh.f32 %v1012_v22  ;;  %v76_v22 = vld [vmem:[%s9740_s0 + $0xd0] sm:$0xff] }
 0xbd2   :  { %v1014_v25 = vpop.f32.mrf.mxu1 }
 0xbd3   :  { %v6164_v63 = vpop.eup %6163  ;;  %v1015_v26 = vadd.f32 %v1014_v25, %v301_v23 }
 0xbd4   :  { %1043 = vrot.lane.b32.xlu0 %v6164_v63, %s6611_s1  ;;  %v1027_v27 = vmul.f32 0.5, %v6164_v63 }
 0xbd5   :  { %6165 = vtanh.f32 %v1015_v26 }
 0xbd6   :  { %v1031_v40 = vadd.f32 0.5, %v1027_v27 }
 0xbd8   :  { %v1035_v58 = vmul.f32 %v1031_v40, %v6972_v46 }
 0xbdb   :  { %v6166_v28 = vpop.eup %6165 }
 0xbdc   :  { %1045 = vrot.lane.b32.xlu1 %v6166_v28, %s6611_s1  ;;  %v1028_v43 = vmul.f32 0.5, %v6166_v28 }
 0xbde   :  { %v1032_v44 = vadd.f32 0.5, %v1028_v43 }
 0xbe0   :  { %v1036_v54 = vmul.f32 %v1032_v44, %v6977_v50 }
 0xc0a   :  { %v1017_v21 = vpop.f32.mrf.mxu1 }
 0xc0b   :  { %v1018_v33 = vadd.f32 %v1017_v21, %v302_v31 }
 0xc0d   :  { %6167 = vtanh.f32 %v1018_v33 }
 0xc12   :  { %v1020_v17 = vpop.f32.mrf.mxu1 }
 0xc13   :  { %v6168_v36 = vpop.eup %6167  ;;  %v1021_v16 = vadd.f32 %v1020_v17, %v303_v13 }
 0xc14   :  { %1047 = vrot.lane.b32.xlu2 %v6168_v36, %s6611_s1  ;;  %v1029_v48 = vmul.f32 0.5, %v6168_v36 }
 0xc15   :  { %6169 = vtanh.f32 %v1021_v16 }
 0xc16   :  { %v1033_v34 = vadd.f32 0.5, %v1029_v48 }
 0xc18   :  { %v1037_v50 = vmul.f32 %v1033_v34, %v6987_v55 }
 0xc1b   :  { %v6170_v38 = vpop.eup %6169 }
 0xc1c   :  { %1049 = vrot.lane.b32.xlu0 %v6170_v38, %s6611_s1  ;;  %v1030_v39 = vmul.f32 0.5, %v6170_v38 }
 0xc1e   :  { %v1034_v37 = vadd.f32 0.5, %v1030_v39 }
 0xc20   :  { %v1038_v46 = vmul.f32 %v1034_v37, %v6982_v52  ;;  %v74_v52 = vld [vmem:[%s9740_s0 + $0xc0] sm:$0xff] }
 0xc46   :  { %v1044_v41 = vpop.permute.xlu0 %1043 }
 0xc47   :  { %v1055_v42 = vmul.f32 %v1044_v41, %v1031_v40 }
 0xc49   :  { %1063 = vrot.lane.b32.xlu1 %v1055_v42, %s6612_s22 }
 0xc4e   :  { %v1046_v45 = vpop.permute.xlu1 %1045 }
 0xc4f   :  { %v1056_v29 = vmul.f32 %v1046_v45, %v1032_v44 }
 0xc51   :  { %1065 = vrot.lane.b32.xlu2 %v1056_v29, %s6612_s22 }
 0xc6e   :  { %v1048_v49 = vpop.permute.xlu2 %1047 }
 0xc6f   :  { %v1057_v51 = vmul.f32 %v1048_v49, %v1033_v34 }
 0xc71   :  { %1067 = vrot.lane.b32.xlu0 %v1057_v51, %s6612_s22 }
 0xc8e   :  { %v1050_v53 = vpop.permute.xlu0 %1049 }
 0xc8f   :  { %v1058_v24 = vmul.f32 %v1050_v53, %v1034_v37 }
 0xc91   :  { %1069 = vrot.lane.b32.xlu1 %v1058_v24, %s6612_s22 }
 0xcab   :  { %v1066_v56 = vpop.permute.xlu2 %1065 }
 0xcac   :  { %v7038_v57 = vadd.f32 %v1066_v56, %v1036_v54 }
 0xcae   :  { %6171 = vtanh.f32 %v7038_v57 }
 0xcb4   :  { %v6172_v47 = vpop.eup %6171 }
 0xcb5   :  { %1089 = vrot.lane.b32.xlu0 %v6172_v47, %s6611_s1 }
 0xcbb   :  { %v1064_v59 = vpop.permute.xlu1 %1063 }
 0xcbc   :  { %v7043_v8 = vadd.f32 %v1064_v59, %v1035_v58 }
 0xcbe   :  { %6173 = vtanh.f32 %v7043_v8 }
 0xcc4   :  { %v6174_v60 = vpop.eup %6173 }
 0xcc5   :  { %1087 = vrot.lane.b32.xlu2 %v6174_v60, %s6611_s1 }
 0xce3   :  { %v1068_v61 = vpop.permute.xlu0 %1067 }
 0xce4   :  { %v7048_v62 = vadd.f32 %v1068_v61, %v1037_v50 }
 0xce6   :  { %6175 = vtanh.f32 %v7048_v62 }
 0xcec   :  { %v6176_v0 = vpop.eup %6175 }
 0xced   :  { %1091 = vrot.lane.b32.xlu1 %v6176_v0, %s6611_s1 }
 0xd03   :  { %v1070_v1 = vpop.permute.xlu1 %1069 }
 0xd04   :  { %v7053_v2 = vadd.f32 %v1070_v1, %v1038_v46 }
 0xd06   :  { %6177 = vtanh.f32 %v7053_v2 }
 0xd0c   :  { %v6178_v4 = vpop.eup %6177 }
 0xd0d   :  { %1093 = vrot.lane.b32.xlu2 %v6178_v4, %s6611_s1 }
 0xd1f   :  { %v1088_v5 = vpop.permute.xlu2 %1087 }
 0xd20   :  { %v1099_v55 = vmul.f32 %v1088_v5, %v1031_v40 }
 0xd22   :  { %1107 = vrot.lane.b32.xlu0 %v1099_v55, %s6612_s22 }
 0xd27   :  { %v1090_v6 = vpop.permute.xlu0 %1089 }
 0xd28   :  { %v1100_v7 = vmul.f32 %v1090_v6, %v1032_v44 }
 0xd2a   :  { %1109 = vrot.lane.b32.xlu1 %v1100_v7, %s6612_s22 }
 0xd32   :  { %204 = vperm.xlu1 %6076, %v74_v52  }
 0xd3a   :  { %219 = vperm.xlu1 %6076, %v77_v9  }
 0xd5f   :  { %v1092_v10 = vpop.permute.xlu1 %1091 }
 0xd60   :  { %v1101_v12 = vmul.f32 %v1092_v10, %v1033_v34 }
 0xd62   :  { %1111 = vrot.lane.b32.xlu2 %v1101_v12, %s6612_s22 }
 0xd67   :  { %v1094_v18 = vpop.permute.xlu2 %1093 }
 0xd68   :  { %v1102_v20 = vmul.f32 %v1094_v18, %v1034_v37 }
 0xd6a   :  { %1113 = vrot.lane.b32.xlu0 %v1102_v20, %s6612_s22  ;;  %209 = vperm.xlu2 %6077, %v75_v19  }
 0xd72   :  { %214 = vperm.xlu0 %6075, %v76_v22  }
 0xd94   :  { %v1108_v3 = vpop.permute.xlu0 %1107 }
 0xd95   :  { %5967 = vmatmul.msk.f32.vlgmr.msrb.gmra.mxu2 %vm320_vm0, %v1108_v3 }
 0xd9c   :  { %v1110_v23 = vpop.permute.xlu1 %1109 }
 0xd9d   :  { %5968 = vmatmul.msk.f32.gmra.mxu2 %vm320_vm0, %v1110_v23 }
 0xda4   :  { %v205_v26 = vpop.permute.xlu1 %204 }
 0xda5   :  { %v269_v28 = vmul.f32 %v7014_v11, %v205_v26 }
 0xda7   :  { %v304_v14 = vadd.f32 %v7020_v15, %v269_v28 }
 0xdac   :  { %v220_v43 = vpop.permute.xlu1 %219 }
 0xdad   :  { %v272_v44 = vmul.f32 %v7014_v11, %v220_v43 }
 0xdaf   :  { %v307_v45 = vadd.f32 %v7020_v15, %v272_v44 }
 0xdbc   :  { %v1112_v25 = vpop.permute.xlu2 %1111 }
 0xdbd   :  { %5969 = vmatmul.msk.f32.gmra.mxu2 %vm320_vm0, %v1112_v25 }
 0xdc4   :  { %v210_v30 = vpop.permute.xlu2 %209 }
 0xdc5   :  { %v270_v21 = vmul.f32 %v7014_v11, %v210_v30 }
 0xdc7   :  { %v305_v33 = vadd.f32 %v7020_v15, %v270_v21 }
 0xddc   :  { %v1114_v63 = vpop.permute.xlu0 %1113 }
 0xddd   :  { %5970 = vmatmul.msk.f32.gmra.mxu2 %vm320_vm0, %v1114_v63  ;;  %v81_v63 = vld [vmem:[%s9740_s0 + $0xf8] sm:$0xff] }
 0xde4   :  { %v215_v16 = vpop.permute.xlu0 %214 }
 0xde5   :  { %v271_v38 = vmul.f32 %v7014_v11, %v215_v16 }
 0xde7   :  { %v306_v27 = vadd.f32 %v7020_v15, %v271_v38 }
 0xe18   :  { %v1140_v31 = vpop.f32.mrf.mxu2 }
 0xe19   :  { %v1141_v32 = vadd.f32 %v1140_v31, %v304_v14  ;;  %v79_v14 = vld [vmem:[%s9740_s0 + $0xe8] sm:$0xff] }
 0xe1b   :  { %6179 = vtanh.f32 %v1141_v32  ;;  %v80_v32 = vld [vmem:[%s9740_s0 + $0xf0] sm:$0xff] }
 0xe20   :  { %v1143_v35 = vpop.f32.mrf.mxu2 }
 0xe21   :  { %v6180_v13 = vpop.eup %6179  ;;  %v1144_v17 = vadd.f32 %v1143_v35, %v305_v33 }
 0xe22   :  { %1172 = vrot.lane.b32.xlu2 %v6180_v13, %s6611_s1  ;;  %v1156_v49 = vmul.f32 0.5, %v6180_v13 }
 0xe23   :  { %6181 = vtanh.f32 %v1144_v17 }
 0xe24   :  { %v1160_v51 = vadd.f32 0.5, %v1156_v49 }
 0xe26   :  { %v1164_v1 = vmul.f32 %v1160_v51, %v7043_v8 }
 0xe29   :  { %v6182_v36 = vpop.eup %6181 }
 0xe2a   :  { %1174 = vrot.lane.b32.xlu0 %v6182_v36, %s6611_s1  ;;  %v1157_v53 = vmul.f32 0.5, %v6182_v36 }
 0xe2c   :  { %v1161_v24 = vadd.f32 0.5, %v1157_v53 }
 0xe2e   :  { %v1165_v6 = vmul.f32 %v1161_v24, %v7038_v57 }
 0xe40   :  { %v1146_v40 = vpop.f32.mrf.mxu2 }
 0xe41   :  { %v1147_v41 = vadd.f32 %v1146_v40, %v306_v27 }
 0xe43   :  { %6183 = vtanh.f32 %v1147_v41 }
 0xe49   :  { %v6184_v42 = vpop.eup %6183 }
 0xe4a   :  { %1176 = vrot.lane.b32.xlu1 %v6184_v42, %s6611_s1  ;;  %v1158_v47 = vmul.f32 0.5, %v6184_v42 }
 0xe4c   :  { %v1162_v58 = vadd.f32 0.5, %v1158_v47 }
 0xe4e   :  { %v1166_v9 = vmul.f32 %v1162_v58, %v7048_v62 }
 0xe60   :  { %v1149_v29 = vpop.f32.mrf.mxu2 }
 0xe61   :  { %v1150_v48 = vadd.f32 %v1149_v29, %v307_v45 }
 0xe63   :  { %6185 = vtanh.f32 %v1150_v48 }
 0xe69   :  { %v6186_v34 = vpop.eup %6185 }
 0xe6a   :  { %1178 = vrot.lane.b32.xlu2 %v6186_v34, %s6611_s1  ;;  %v1159_v50 = vmul.f32 0.5, %v6186_v34 }
 0xe6c   :  { %v1163_v61 = vadd.f32 0.5, %v1159_v50 }
 0xe6e   :  { %v1167_v57 = vmul.f32 %v1163_v61, %v7053_v2  ;;  %v78_v2 = vld [vmem:[%s9740_s0 + $0xe0] sm:$0xff] }
 0xe7c   :  { %v1173_v39 = vpop.permute.xlu2 %1172 }
 0xe7d   :  { %v1184_v37 = vmul.f32 %v1173_v39, %v1160_v51 }
 0xe7f   :  { %1192 = vrot.lane.b32.xlu0 %v1184_v37, %s6612_s22 }
 0xe9c   :  { %v1175_v54 = vpop.permute.xlu0 %1174 }
 0xe9d   :  { %v1185_v56 = vmul.f32 %v1175_v54, %v1161_v24 }
 0xe9f   :  { %1194 = vrot.lane.b32.xlu1 %v1185_v56, %s6612_s22 }
 0xebc   :  { %v1177_v59 = vpop.permute.xlu1 %1176 }
 0xebd   :  { %v1186_v60 = vmul.f32 %v1177_v59, %v1162_v58 }
 0xebf   :  { %1196 = vrot.lane.b32.xlu2 %v1186_v60, %s6612_s22 }
 0xec4   :  { %v1179_v0 = vpop.permute.xlu2 %1178 }
 0xec5   :  { %v1187_v46 = vmul.f32 %v1179_v0, %v1163_v61 }
 0xec7   :  { %1198 = vrot.lane.b32.xlu0 %v1187_v46, %s6612_s22 }
 0xef1   :  { %v1193_v4 = vpop.permute.xlu0 %1192 }
 0xef2   :  { %v7094_v5 = vadd.f32 %v1193_v4, %v1164_v1 }
 0xef4   :  { %6187 = vtanh.f32 %v7094_v5 }
 0xefa   :  { %v6188_v55 = vpop.eup %6187 }
 0xefb   :  { %1216 = vrot.lane.b32.xlu1 %v6188_v55, %s6611_s1 }
 0xf11   :  { %v1195_v7 = vpop.permute.xlu1 %1194 }
 0xf12   :  { %v7099_v52 = vadd.f32 %v1195_v7, %v1165_v6 }
 0xf14   :  { %6189 = vtanh.f32 %v7099_v52 }
 0xf19   :  { %v1197_v10 = vpop.permute.xlu2 %1196 }
 0xf1a   :  { %v6190_v12 = vpop.eup %6189  ;;  %v7103_v8 = vadd.f32 %v1197_v10, %v1166_v9 }
 0xf1b   :  { %1218 = vrot.lane.b32.xlu2 %v6190_v12, %s6611_s1 }
 0xf1c   :  { %6191 = vtanh.f32 %v7103_v8 }
 0xf22   :  { %v6192_v18 = vpop.eup %6191 }
 0xf23   :  { %1220 = vrot.lane.b32.xlu0 %v6192_v18, %s6611_s1 }
 0xf39   :  { %v1199_v19 = vpop.permute.xlu0 %1198 }
 0xf3a   :  { %v7109_v20 = vadd.f32 %v1199_v19, %v1167_v57 }
 0xf3c   :  { %6193 = vtanh.f32 %v7109_v20 }
 0xf42   :  { %v6194_v22 = vpop.eup %6193 }
 0xf43   :  { %1222 = vrot.lane.b32.xlu1 %v6194_v22, %s6611_s1 }
 0xf6d   :  { %v1217_v62 = vpop.permute.xlu1 %1216 }
 0xf6e   :  { %v1228_v3 = vmul.f32 %v1217_v62, %v1160_v51 }
 0xf70   :  { %1236 = vrot.lane.b32.xlu2 %v1228_v3, %s6612_s22 }
 0xf75   :  { %v1219_v23 = vpop.permute.xlu2 %1218 }
 0xf76   :  { %v1229_v25 = vmul.f32 %v1219_v23, %v1161_v24 }
 0xf78   :  { %1238 = vrot.lane.b32.xlu0 %v1229_v25, %s6612_s22 }
 0xf80   :  { %224 = vperm.xlu0 %6075, %v78_v2  }
 0xf88   :  { %239 = vperm.xlu0 %6075, %v81_v63  }
 0xf95   :  { %v1221_v26 = vpop.permute.xlu0 %1220 }
 0xf96   :  { %v1230_v28 = vmul.f32 %v1221_v26, %v1162_v58 }
 0xf98   :  { %1240 = vrot.lane.b32.xlu1 %v1230_v28, %s6612_s22 }
 0xfa0   :  { %229 = vperm.xlu1 %6076, %v79_v14  }
 0xfb5   :  { %v1223_v30 = vpop.permute.xlu1 %1222 }
 0xfb6   :  { %v1231_v31 = vmul.f32 %v1223_v30, %v1163_v61 }
 0xfb8   :  { %1242 = vrot.lane.b32.xlu2 %v1231_v31, %s6612_s22 }
 0xfc0   :  { %234 = vperm.xlu2 %6077, %v80_v32  }
 0xfca   :  { %v1237_v21 = vpop.permute.xlu2 %1236 }
 0xfcb   :  { %5971 = vmatmul.msk.f32.vlgmr.msrb.gmra.mxu3 %vm320_vm0, %v1237_v21 }
 0xfea   :  { %v1239_v33 = vpop.permute.xlu0 %1238 }
 0xfeb   :  { %5972 = vmatmul.msk.f32.gmra.mxu3 %vm320_vm0, %v1239_v33  ;;  %v7187_v33 = vld [vmem:[%s9745_s6 + $0x10] sm:$0xff] }
 0xff2   :  { %v225_v17 = vpop.permute.xlu0 %224 }
 0xff3   :  { %v273_v36 = vmul.f32 %v7014_v11, %v225_v17 }
 0xff5   :  { %v308_v16 = vadd.f32 %v7020_v15, %v273_v36 }
 0xffa   :  { %v240_v51 = vpop.permute.xlu0 %239 }
 0xffb   :  { %v276_v53 = vmul.f32 %v7014_v11, %v240_v51 }
 0xffd   :  { %v311_v24 = vadd.f32 %v7020_v15, %v276_v53 }
0x100a   :  { %v1241_v35 = vpop.permute.xlu1 %1240 }
0x100b   :  { %5973 = vmatmul.msk.f32.gmra.mxu3 %vm320_vm0, %v1241_v35  ;;  %v7194_v35 = vld [vmem:[%s9745_s6 + $0x8] sm:$0xff] }
0x1012   :  { %v1243_v13 = vpop.permute.xlu2 %1242  ;;  %v230_v41 = vpop.permute.xlu1 %229 }
0x1013   :  { %5974 = vmatmul.msk.f32.gmra.mxu3 %vm320_vm0, %v1243_v13  ;;  %v274_v42 = vmul.f32 %v7014_v11, %v230_v41  ;;  %v7203_v13 = vld [vmem:[%s9745_s6] sm:$0xff] }
0x1015   :  { %v309_v43 = vadd.f32 %v7020_v15, %v274_v42 }
0x101a   :  { %v235_v48 = vpop.permute.xlu2 %234 }
0x101b   :  { %v275_v34 = vmul.f32 %v7014_v11, %v235_v48 }
0x101d   :  { %v310_v49 = vadd.f32 %v7020_v15, %v275_v34 }
0x104e   :  { %v1269_v38 = vpop.f32.mrf.mxu3 }
0x104f   :  { %v1270_v27 = vadd.f32 %v1269_v38, %v308_v16 }
0x1051   :  { %6195 = vtanh.f32 %v1270_v27 }
0x1057   :  { %v6196_v40 = vpop.eup %6195 }
0x1058   :  { %1301 = vrot.lane.b32.xlu1 %v6196_v40, %s6611_s1  ;;  %v1285_v59 = vmul.f32 0.5, %v6196_v40 }
0x105a   :  { %v1289_v60 = vadd.f32 0.5, %v1285_v59 }
0x105c   :  { %v1293_v18 = vmul.f32 %v1289_v60, %v7094_v5 }
0x106e   :  { %v1272_v44 = vpop.f32.mrf.mxu3 }
0x106f   :  { %v1273_v45 = vadd.f32 %v1272_v44, %v309_v43  ;;  %v7246_v43 = vld [vmem:[%s9746_s7] ss:$0 sm:$0xff] }
0x1071   :  { %6197 = vtanh.f32 %v1273_v45 }
0x1077   :  { %v6198_v29 = vpop.eup %6197 }
0x1078   :  { %1303 = vrot.lane.b32.xlu2 %v6198_v29, %s6611_s1  ;;  %v1286_v0 = vmul.f32 0.5, %v6198_v29 }
0x107a   :  { %v1290_v11 = vadd.f32 0.5, %v1286_v0 }
0x107c   :  { %v1294_v62 = vmul.f32 %v1290_v11, %v7099_v52 }
0x108e   :  { %v1275_v39 = vpop.f32.mrf.mxu3 }
0x108f   :  { %v1276_v37 = vadd.f32 %v1275_v39, %v310_v49 }
0x1091   :  { %6199 = vtanh.f32 %v1276_v37 }
0x1096   :  { %v1278_v54 = vpop.f32.mrf.mxu3 }
0x1097   :  { %v6200_v56 = vpop.eup %6199  ;;  %v1279_v47 = vadd.f32 %v1278_v54, %v311_v24 }
0x1098   :  { %1305 = vrot.lane.b32.xlu0 %v6200_v56, %s6611_s1  ;;  %v1287_v15 = vmul.f32 0.5, %v6200_v56 }
0x1099   :  { %6201 = vtanh.f32 %v1279_v47 }
0x109a   :  { %v7147_v4 = vadd.f32 0.5, %v1287_v15 }
0x109c   :  { %v1295_v52 = vmul.f32 %v7147_v4, %v7103_v8  ;;  %v7182_v8 = vld [vmem:[%s9745_s6 + $0x18] sm:$0xff] }
0x109d   :  { %1398 = vmatpush.msra.mxu0 %v7182_v8  ;;  %1596 = vmatpush.msra.mxu1 %v7182_v8 }
0x109e   :  { %1786 = vmatpush.msra.mxu2 %v7182_v8  ;;  %1976 = vmatpush.msra.mxu3 %v7182_v8 }
0x109f   :  { %v6202_v58 = vpop.eup %6201  ;;  %1399 = vmatpush.msra.mxu0 %v7187_v33  ;;  %1597 = vmatpush.msra.mxu1 %v7187_v33 }
0x10a0   :  { %1307 = vrot.lane.b32.xlu1 %v6202_v58, %s6611_s1  ;;  %v1288_v7 = vmul.f32 0.5, %v6202_v58  ;;  %1787 = vmatpush.msra.mxu2 %v7187_v33 }
0x10a1   :  { %1977 = vmatpush.msra.mxu3 %v7187_v33  ;;  %1400 = vmatpush.msra.mxu0 %v7194_v35 }
0x10a2   :  { %v7151_v9 = vadd.f32 0.5, %v1288_v7  ;;  %1598 = vmatpush.msra.mxu1 %v7194_v35  ;;  %1788 = vmatpush.msra.mxu2 %v7194_v35 }
0x10a3   :  { %1978 = vmatpush.msra.mxu3 %v7194_v35  ;;  %1401 = vmatpush.msra.mxu0 %v7203_v13 }
0x10a4   :  { %v1296_v5 = vmul.f32 %v7151_v9, %v7109_v20  ;;  %1599 = vmatpush.msra.mxu1 %v7203_v13  ;;  %1789 = vmatpush.msra.mxu2 %v7203_v13 }
0x10a5   :  { %1979 = vmatpush.msra.mxu3 %v7203_v13  ;;  %2166 = vmatpush.msrb.mxu0 %v7182_v8 }
0x10a6   :  { %2356 = vmatpush.msrb.mxu1 %v7182_v8  ;;  %2546 = vmatpush.msrb.mxu2 %v7182_v8 }
0x10a7   :  { %2736 = vmatpush.msrb.mxu3 %v7182_v8  ;;  %2167 = vmatpush.msrb.mxu0 %v7187_v33 }
0x10a8   :  { %2357 = vmatpush.msrb.mxu1 %v7187_v33  ;;  %2547 = vmatpush.msrb.mxu2 %v7187_v33 }
0x10a9   :  { %2737 = vmatpush.msrb.mxu3 %v7187_v33  ;;  %2168 = vmatpush.msrb.mxu0 %v7194_v35 }
0x10aa   :  { %2358 = vmatpush.msrb.mxu1 %v7194_v35  ;;  %2548 = vmatpush.msrb.mxu2 %v7194_v35 }
0x10ab   :  { %2738 = vmatpush.msrb.mxu3 %v7194_v35  ;;  %2169 = vmatpush.msrb.mxu0 %v7203_v13 }
0x10ac   :  { %2359 = vmatpush.msrb.mxu1 %v7203_v13  ;;  %2549 = vmatpush.msrb.mxu2 %v7203_v13 }
0x10ad   :  { %2739 = vmatpush.msrb.mxu3 %v7203_v13 }
0x10ca   :  { %v1302_v50 = vpop.permute.xlu1 %1301 }
0x10cb   :  { %v1313_v61 = vmul.f32 %v1302_v50, %v1289_v60 }
0x10cd   :  { %1321 = vrot.lane.b32.xlu2 %v1313_v61, %s6612_s22 }
0x10d2   :  { %v1304_v46 = vpop.permute.xlu2 %1303 }
0x10d3   :  { %v1314_v1 = vmul.f32 %v1304_v46, %v1290_v11 }
0x10d5   :  { %1323 = vrot.lane.b32.xlu0 %v1314_v1, %s6612_s22 }
0x110a   :  { %v1306_v55 = vpop.permute.xlu0 %1305 }
0x110b   :  { %v1315_v6 = vmul.f32 %v1306_v55, %v7147_v4 }
0x110d   :  { %1325 = vrot.lane.b32.xlu1 %v1315_v6, %s6612_s22 }
0x1112   :  { %v1308_v10 = vpop.permute.xlu1 %1307 }
0x1113   :  { %v1316_v12 = vmul.f32 %v1308_v10, %v7151_v9 }
0x1115   :  { %1327 = vrot.lane.b32.xlu2 %v1316_v12, %s6612_s22 }
0x1127   :  { %v1322_v57 = vpop.permute.xlu2 %1321 }
0x1128   :  { %v7156_v19 = vadd.f32 %v1322_v57, %v1293_v18 }
0x112a   :  { %6203 = vtanh.f32 %v7156_v19 }
0x1130   :  { %v6204_v22 = vpop.eup %6203 }
0x1131   :  { %1345 = vrot.lane.b32.xlu0 %v6204_v22, %s6611_s1 }
0x1147   :  { %v1324_v3 = vpop.permute.xlu0 %1323 }
0x1148   :  { %v7161_v23 = vadd.f32 %v1324_v3, %v1294_v62 }
0x114a   :  { %6205 = vtanh.f32 %v7161_v23 }
0x1150   :  { %v6206_v25 = vpop.eup %6205 }
0x1151   :  { %1347 = vrot.lane.b32.xlu1 %v6206_v25, %s6611_s1 }
0x116f   :  { %v1328_v2 = vpop.permute.xlu2 %1327 }
0x1170   :  { %v7167_v63 = vadd.f32 %v1328_v2, %v1296_v5 }
0x1172   :  { %6207 = vtanh.f32 %v7167_v63 }
0x1178   :  { %v6208_v26 = vpop.eup %6207 }
0x1179   :  { %1351 = vrot.lane.b32.xlu0 %v6208_v26, %s6611_s1 }
0x117f   :  { %v1326_v28 = vpop.permute.xlu1 %1325 }
0x1180   :  { %v7173_v14 = vadd.f32 %v1326_v28, %v1295_v52 }
0x1182   :  { %6209 = vtanh.f32 %v7173_v14 }
0x1188   :  { %v6210_v30 = vpop.eup %6209 }
0x1189   :  { %1349 = vrot.lane.b32.xlu2 %v6210_v30, %s6611_s1 }
0x11a3   :  { %v1346_v20 = vpop.permute.xlu0 %1345 }
0x11a4   :  { %v1357_v31 = vmul.f32 %v1346_v20, %v1289_v60 }
0x11a6   :  { %1370 = vrot.lane.b32.xlu1 %v1357_v31, %s6612_s22 }
0x11c3   :  { %v1348_v32 = vpop.permute.xlu1 %1347 }
0x11c4   :  { %v1358_v21 = vmul.f32 %v1348_v32, %v1290_v11 }
0x11c6   :  { %1372 = vrot.lane.b32.xlu2 %v1358_v21, %s6612_s22 }
0x11e3   :  { %v1350_v17 = vpop.permute.xlu2 %1349 }
0x11e4   :  { %v1359_v36 = vmul.f32 %v1350_v17, %v7147_v4 }
0x11e6   :  { %1374 = vrot.lane.b32.xlu0 %v1359_v36, %s6612_s22 }
0x11eb   :  { %v1352_v16 = vpop.permute.xlu0 %1351 }
0x11ec   :  { %v1360_v38 = vmul.f32 %v1352_v16, %v7151_v9 }
0x11ee   :  { %1376 = vrot.lane.b32.xlu1 %v1360_v38, %s6612_s22 }
0x1218   :  { %v1371_v27 = vpop.permute.xlu1 %1370 }
0x1219   :  { %5975 = vmatmul.msk.f32.vlgmr.msra.gmra.mxu0 %vm320_vm0, %v1371_v27 }
0x121a   :  { %2926 = vmatpush.msra.mxu0 %v7182_v8 }
0x121c   :  { %2927 = vmatpush.msra.mxu0 %v7187_v33 }
0x121e   :  { %2928 = vmatpush.msra.mxu0 %v7194_v35 }
0x1220   :  { %v1373_v40 = vpop.permute.xlu2 %1372  ;;  %2929 = vmatpush.msra.mxu0 %v7203_v13 }
0x1221   :  { %5976 = vmatmul.msk.f32.gmra.mxu0 %vm320_vm0, %v1373_v40 }
0x1258   :  { %v1375_v41 = vpop.permute.xlu0 %1374 }
0x1259   :  { %5977 = vmatmul.msk.f32.gmra.mxu0 %vm320_vm0, %v1375_v41 }
0x1260   :  { %v1377_v42 = vpop.permute.xlu1 %1376 }
0x1261   :  { %5978 = vmatmul.msk.f32.gmra.mxu0 %vm320_vm0, %v1377_v42 }
0x1296   :  { %v1403_v44 = vpop.f32.mrf.mxu0 }
0x1297   :  { %v1404_v45 = vadd.f32 %v7246_v43, %v1403_v44 }
0x1299   :  { %6211 = vtanh.f32 %v1404_v45 }
0x129e   :  { %v1406_v29 = vpop.f32.mrf.mxu0 }
0x129f   :  { %v6212_v48 = vpop.eup %6211  ;;  %v1407_v34 = vadd.f32 %v7246_v43, %v1406_v29 }
0x12a0   :  { %1435 = vrot.lane.b32.xlu2 %v6212_v48, %s6611_s1  ;;  %v1419_v56 = vmul.f32 0.5, %v6212_v48 }
0x12a1   :  { %6213 = vtanh.f32 %v1407_v34 }
0x12a2   :  { %v1423_v47 = vadd.f32 0.5, %v1419_v56 }
0x12a4   :  { %v1427_v9 = vmul.f32 %v1423_v47, %v7156_v19 }
0x12a7   :  { %v6214_v49 = vpop.eup %6213 }
0x12a8   :  { %1437 = vrot.lane.b32.xlu0 %v6214_v49, %s6611_s1  ;;  %v1420_v60 = vmul.f32 0.5, %v6214_v49 }
0x12aa   :  { %v1424_v50 = vadd.f32 0.5, %v1420_v60 }
0x12ac   :  { %v1428_v57 = vmul.f32 %v1424_v50, %v7161_v23 }
0x12d6   :  { %v1409_v51 = vpop.f32.mrf.mxu0 }
0x12d7   :  { %v1410_v39 = vadd.f32 %v7246_v43, %v1409_v51 }
0x12d9   :  { %6215 = vtanh.f32 %v1410_v39 }
0x12de   :  { %v1412_v37 = vpop.f32.mrf.mxu0 }
0x12df   :  { %v6216_v53 = vpop.eup %6215  ;;  %v1413_v24 = vadd.f32 %v7246_v43, %v1412_v37 }
0x12e0   :  { %1439 = vrot.lane.b32.xlu1 %v6216_v53, %s6611_s1  ;;  %v1421_v4 = vmul.f32 0.5, %v6216_v53 }
0x12e1   :  { %6217 = vtanh.f32 %v1413_v24 }
0x12e2   :  { %v1425_v55 = vadd.f32 0.5, %v1421_v4 }
0x12e4   :  { %v1429_v19 = vmul.f32 %v1425_v55, %v7173_v14 }
0x12e7   :  { %v6218_v54 = vpop.eup %6217 }
0x12e8   :  { %1441 = vrot.lane.b32.xlu2 %v6218_v54, %s6611_s1  ;;  %v1422_v11 = vmul.f32 0.5, %v6218_v54 }
0x12ea   :  { %v1426_v46 = vadd.f32 0.5, %v1422_v11 }
0x12ec   :  { %v1430_v2 = vmul.f32 %v1426_v46, %v7167_v63 }
0x12fa   :  { %v1436_v58 = vpop.permute.xlu2 %1435 }
0x12fb   :  { %v1447_v59 = vmul.f32 %v1436_v58, %v1423_v47 }
0x12fd   :  { %1455 = vrot.lane.b32.xlu0 %v1447_v59, %s6612_s22 }
0x131a   :  { %v1438_v61 = vpop.permute.xlu0 %1437 }
0x131b   :  { %v1448_v0 = vmul.f32 %v1438_v61, %v1424_v50 }
0x131d   :  { %1457 = vrot.lane.b32.xlu1 %v1448_v0, %s6612_s22 }
0x1342   :  { %v1442_v1 = vpop.permute.xlu2 %1441 }
0x1343   :  { %v1450_v15 = vmul.f32 %v1442_v1, %v1426_v46 }
0x1345   :  { %1461 = vrot.lane.b32.xlu0 %v1450_v15, %s6612_s22 }
0x1352   :  { %v1440_v6 = vpop.permute.xlu1 %1439 }
0x1353   :  { %v1449_v7 = vmul.f32 %v1440_v6, %v1425_v55 }
0x1355   :  { %1459 = vrot.lane.b32.xlu2 %v1449_v7, %s6612_s22 }
0x136f   :  { %v1456_v10 = vpop.permute.xlu0 %1455 }
0x1370   :  { %v7261_v12 = vadd.f32 %v1456_v10, %v1427_v9 }
0x1372   :  { %6219 = vtanh.f32 %v7261_v12 }
0x1378   :  { %v6220_v18 = vpop.eup %6219 }
0x1379   :  { %1479 = vrot.lane.b32.xlu1 %v6220_v18, %s6611_s1 }
0x138f   :  { %v1458_v22 = vpop.permute.xlu1 %1457 }
0x1390   :  { %v7266_v62 = vadd.f32 %v1458_v22, %v1428_v57 }
0x1392   :  { %6221 = vtanh.f32 %v7266_v62 }
0x1398   :  { %v6222_v3 = vpop.eup %6221 }
0x1399   :  { %1481 = vrot.lane.b32.xlu2 %v6222_v3, %s6611_s1 }
0x13af   :  { %v1460_v25 = vpop.permute.xlu2 %1459 }
0x13b0   :  { %v7271_v5 = vadd.f32 %v1460_v25, %v1429_v19 }
0x13b2   :  { %6223 = vtanh.f32 %v7271_v5 }
0x13b7   :  { %v1462_v26 = vpop.permute.xlu0 %1461 }
0x13b8   :  { %v6224_v52 = vpop.eup %6223  ;;  %v7275_v23 = vadd.f32 %v1462_v26, %v1430_v2 }
0x13b9   :  { %1483 = vrot.lane.b32.xlu0 %v6224_v52, %s6611_s1 }
0x13ba   :  { %6225 = vtanh.f32 %v7275_v23 }
0x13c0   :  { %v6226_v28 = vpop.eup %6225 }
0x13c1   :  { %1485 = vrot.lane.b32.xlu1 %v6226_v28, %s6611_s1 }
0x13eb   :  { %v1480_v30 = vpop.permute.xlu1 %1479 }
0x13ec   :  { %v7280_v14 = vmul.f32 %v1480_v30, %v1423_v47 }
0x13ee   :  { %1568 = vrot.lane.b32.xlu2 %v7280_v14, %s6612_s22 }
0x13f3   :  { %v1482_v20 = vpop.permute.xlu2 %1481 }
0x13f4   :  { %v7284_v31 = vmul.f32 %v1482_v20, %v1424_v50 }
0x13f6   :  { %1570 = vrot.lane.b32.xlu0 %v7284_v31, %s6612_s22 }
0x142b   :  { %v1484_v63 = vpop.permute.xlu0 %1483 }
0x142c   :  { %v7288_v32 = vmul.f32 %v1484_v63, %v1425_v55 }
0x142e   :  { %1572 = vrot.lane.b32.xlu1 %v7288_v32, %s6612_s22 }
0x1433   :  { %v1486_v21 = vpop.permute.xlu1 %1485 }
0x1434   :  { %v7292_v17 = vmul.f32 %v1486_v21, %v1426_v46 }
0x1436   :  { %1574 = vrot.lane.b32.xlu2 %v7292_v17, %s6612_s22 }
0x1448   :  { %v1569_v36 = vpop.permute.xlu2 %1568 }
0x1449   :  { %5979 = vmatmul.msk.f32.vlgmr.msra.gmra.mxu1 %vm320_vm0, %v1569_v36 }
0x144a   :  { %3116 = vmatpush.msra.mxu1 %v7182_v8 }
0x144c   :  { %3117 = vmatpush.msra.mxu1 %v7187_v33 }
0x144e   :  { %3118 = vmatpush.msra.mxu1 %v7194_v35 }
0x1450   :  { %3119 = vmatpush.msra.mxu1 %v7203_v13 }
0x1468   :  { %v1571_v16 = vpop.permute.xlu0 %1570 }
0x1469   :  { %5980 = vmatmul.msk.f32.gmra.mxu1 %vm320_vm0, %v1571_v16 }
0x1490   :  { %v1575_v27 = vpop.permute.xlu2 %1574 }
0x14a0   :  { %v1573_v38 = vpop.permute.xlu1 %1572 }
0x14a1   :  { %5981 = vmatmul.msk.f32.gmra.mxu1 %vm320_vm0, %v1573_v38 }
0x14a9   :  { %5982 = vmatmul.msk.f32.gmra.mxu1 %vm320_vm0, %v1575_v27 }
0x14c6   :  { %v1601_v40 = vpop.f32.mrf.mxu1 }
0x14c7   :  { %v1602_v41 = vadd.f32 %v7246_v43, %v1601_v40 }
0x14c9   :  { %6227 = vtanh.f32 %v1602_v41 }
0x14cf   :  { %v6228_v42 = vpop.eup %6227 }
0x14d0   :  { %1633 = vrot.lane.b32.xlu0 %v6228_v42, %s6611_s1  ;;  %v1617_v53 = vmul.f32 0.5, %v6228_v42 }
0x14d2   :  { %v1621_v24 = vadd.f32 0.5, %v1617_v53 }
0x14d4   :  { %v1625_v55 = vmul.f32 %v1621_v24, %v7261_v12 }
0x14e6   :  { %v1604_v44 = vpop.f32.mrf.mxu1 }
0x14e7   :  { %v1605_v45 = vadd.f32 %v7246_v43, %v1604_v44 }
0x14e9   :  { %6229 = vtanh.f32 %v1605_v45 }
0x14ef   :  { %v6230_v29 = vpop.eup %6229 }
0x14f0   :  { %1635 = vrot.lane.b32.xlu1 %v6230_v29, %s6611_s1  ;;  %v1618_v47 = vmul.f32 0.5, %v6230_v29 }
0x14f2   :  { %v1622_v58 = vadd.f32 0.5, %v1618_v47 }
0x14f4   :  { %v1626_v9 = vmul.f32 %v1622_v58, %v7266_v62 }
0x151e   :  { %v1607_v48 = vpop.f32.mrf.mxu1 }
0x151f   :  { %v1608_v34 = vadd.f32 %v7246_v43, %v1607_v48 }
0x1521   :  { %6231 = vtanh.f32 %v1608_v34 }
0x1526   :  { %v1610_v49 = vpop.f32.mrf.mxu1 }
0x1527   :  { %v6232_v51 = vpop.eup %6231  ;;  %v1611_v39 = vadd.f32 %v7246_v43, %v1610_v49 }
0x1528   :  { %1637 = vrot.lane.b32.xlu2 %v6232_v51, %s6611_s1  ;;  %v1619_v50 = vmul.f32 0.5, %v6232_v51 }
0x1529   :  { %6233 = vtanh.f32 %v1611_v39 }
0x152a   :  { %v1623_v61 = vadd.f32 0.5, %v1619_v50 }
0x152c   :  { %v1627_v12 = vmul.f32 %v1623_v61, %v7271_v5 }
0x152f   :  { %v6234_v37 = vpop.eup %6233 }
0x1530   :  { %1639 = vrot.lane.b32.xlu0 %v6234_v37, %s6611_s1  ;;  %v1620_v46 = vmul.f32 0.5, %v6234_v37 }
0x1532   :  { %v1624_v1 = vadd.f32 0.5, %v1620_v46 }
0x1534   :  { %v1628_v62 = vmul.f32 %v1624_v1, %v7275_v23 }
0x1542   :  { %v1634_v54 = vpop.permute.xlu0 %1633 }
0x1543   :  { %v1645_v56 = vmul.f32 %v1634_v54, %v1621_v24 }
0x1545   :  { %1653 = vrot.lane.b32.xlu1 %v1645_v56, %s6612_s22 }
0x1562   :  { %v1636_v59 = vpop.permute.xlu1 %1635 }
0x1563   :  { %v1646_v60 = vmul.f32 %v1636_v59, %v1622_v58 }
0x1565   :  { %1655 = vrot.lane.b32.xlu2 %v1646_v60, %s6612_s22 }
0x1582   :  { %v1638_v0 = vpop.permute.xlu2 %1637 }
0x1583   :  { %v1647_v11 = vmul.f32 %v1638_v0, %v1623_v61 }
0x1585   :  { %1657 = vrot.lane.b32.xlu0 %v1647_v11, %s6612_s22 }
0x15a2   :  { %v1640_v15 = vpop.permute.xlu0 %1639 }
0x15a3   :  { %v1648_v4 = vmul.f32 %v1640_v15, %v1624_v1 }
0x15a5   :  { %1659 = vrot.lane.b32.xlu1 %v1648_v4, %s6612_s22 }
0x15b7   :  { %v1654_v6 = vpop.permute.xlu1 %1653 }
0x15b8   :  { %v7317_v7 = vadd.f32 %v1654_v6, %v1625_v55 }
0x15ba   :  { %6235 = vtanh.f32 %v7317_v7 }
0x15bf   :  { %v1656_v10 = vpop.permute.xlu2 %1655 }
0x15c0   :  { %v6236_v18 = vpop.eup %6235  ;;  %v7321_v57 = vadd.f32 %v1656_v10, %v1626_v9 }
0x15c1   :  { %1677 = vrot.lane.b32.xlu2 %v6236_v18, %s6611_s1 }
0x15c2   :  { %6237 = vtanh.f32 %v7321_v57 }
0x15c8   :  { %v6238_v22 = vpop.eup %6237 }
0x15c9   :  { %1679 = vrot.lane.b32.xlu0 %v6238_v22, %s6611_s1 }
0x15f7   :  { %v1658_v3 = vpop.permute.xlu0 %1657 }
0x15f8   :  { %v7327_v19 = vadd.f32 %v1658_v3, %v1627_v12 }
0x15fa   :  { %6239 = vtanh.f32 %v7327_v19 }
0x1600   :  { %v6240_v25 = vpop.eup %6239 }
0x1601   :  { %1681 = vrot.lane.b32.xlu1 %v6240_v25, %s6611_s1 }
0x1617   :  { %v1660_v2 = vpop.permute.xlu1 %1659 }
0x1618   :  { %v7332_v26 = vadd.f32 %v1660_v2, %v1628_v62 }
0x161a   :  { %6241 = vtanh.f32 %v7332_v26 }
0x161b   :  { %v1678_v52 = vpop.permute.xlu2 %1677 }
0x161c   :  { %v7335_v28 = vmul.f32 %v1678_v52, %v1621_v24 }
0x161e   :  { %1758 = vrot.lane.b32.xlu0 %v7335_v28, %s6612_s22 }
0x1620   :  { %v6242_v5 = vpop.eup %6241 }
0x1621   :  { %1683 = vrot.lane.b32.xlu2 %v6242_v5, %s6611_s1 }
0x163b   :  { %v1680_v30 = vpop.permute.xlu0 %1679 }
0x163c   :  { %v7340_v20 = vmul.f32 %v1680_v30, %v1622_v58 }
0x163e   :  { %1760 = vrot.lane.b32.xlu1 %v7340_v20, %s6612_s22 }
0x1673   :  { %v1682_v23 = vpop.permute.xlu1 %1681 }
0x1674   :  { %v7344_v63 = vmul.f32 %v1682_v23, %v1623_v61 }
0x1676   :  { %1762 = vrot.lane.b32.xlu2 %v7344_v63, %s6612_s22 }
0x167b   :  { %v1684_v21 = vpop.permute.xlu2 %1683 }
0x167c   :  { %v7348_v36 = vmul.f32 %v1684_v21, %v1624_v1 }
0x167e   :  { %1764 = vrot.lane.b32.xlu0 %v7348_v36, %s6612_s22 }
0x1690   :  { %v1759_v16 = vpop.permute.xlu0 %1758 }
0x1691   :  { %5983 = vmatmul.msk.f32.vlgmr.msra.gmra.mxu2 %vm320_vm0, %v1759_v16 }
0x1692   :  { %3306 = vmatpush.msra.mxu2 %v7182_v8 }
0x1694   :  { %3307 = vmatpush.msra.mxu2 %v7187_v33 }
0x1696   :  { %3308 = vmatpush.msra.mxu2 %v7194_v35 }
0x1698   :  { %3309 = vmatpush.msra.mxu2 %v7203_v13 }
0x16b0   :  { %v1761_v38 = vpop.permute.xlu1 %1760 }
0x16b1   :  { %5984 = vmatmul.msk.f32.gmra.mxu2 %vm320_vm0, %v1761_v38 }
0x16d0   :  { %v1763_v27 = vpop.permute.xlu2 %1762 }
0x16d1   :  { %5985 = vmatmul.msk.f32.gmra.mxu2 %vm320_vm0, %v1763_v27 }
0x16f0   :  { %v1765_v40 = vpop.permute.xlu0 %1764 }
0x16f1   :  { %5986 = vmatmul.msk.f32.gmra.mxu2 %vm320_vm0, %v1765_v40 }
0x1714   :  { %v1791_v41 = vpop.f32.mrf.mxu2 }
0x1715   :  { %v1792_v42 = vadd.f32 %v7246_v43, %v1791_v41 }
0x1717   :  { %6243 = vtanh.f32 %v1792_v42 }
0x171d   :  { %v6244_v44 = vpop.eup %6243 }
0x171e   :  { %1823 = vrot.lane.b32.xlu1 %v6244_v44, %s6611_s1  ;;  %v1807_v24 = vmul.f32 0.5, %v6244_v44 }
0x1720   :  { %v1811_v54 = vadd.f32 0.5, %v1807_v24 }
0x1722   :  { %v1815_v15 = vmul.f32 %v1811_v54, %v7317_v7 }
0x1734   :  { %v1794_v45 = vpop.f32.mrf.mxu2 }
0x1735   :  { %v1795_v29 = vadd.f32 %v7246_v43, %v1794_v45 }
0x1737   :  { %6245 = vtanh.f32 %v1795_v29 }
0x173d   :  { %v6246_v48 = vpop.eup %6245 }
0x173e   :  { %1825 = vrot.lane.b32.xlu2 %v6246_v48, %s6611_s1  ;;  %v1808_v58 = vmul.f32 0.5, %v6246_v48 }
0x1740   :  { %v1812_v59 = vadd.f32 0.5, %v1808_v58 }
0x1742   :  { %v1816_v22 = vmul.f32 %v1812_v59, %v7321_v57 }
0x1754   :  { %v1797_v34 = vpop.f32.mrf.mxu2 }
0x1755   :  { %v1798_v49 = vadd.f32 %v7246_v43, %v1797_v34 }
0x1757   :  { %6247 = vtanh.f32 %v1798_v49 }
0x175d   :  { %v6248_v51 = vpop.eup %6247 }
0x175e   :  { %1827 = vrot.lane.b32.xlu0 %v6248_v51, %s6611_s1  ;;  %v1809_v61 = vmul.f32 0.5, %v6248_v51 }
0x1760   :  { %v1813_v0 = vadd.f32 0.5, %v1809_v61 }
0x1762   :  { %v1817_v25 = vmul.f32 %v1813_v0, %v7327_v19 }
0x1774   :  { %v1800_v39 = vpop.f32.mrf.mxu2 }
0x1775   :  { %v1801_v37 = vadd.f32 %v7246_v43, %v1800_v39 }
0x1777   :  { %6249 = vtanh.f32 %v1801_v37 }
0x177d   :  { %v6250_v53 = vpop.eup %6249 }
0x177e   :  { %1829 = vrot.lane.b32.xlu1 %v6250_v53, %s6611_s1  ;;  %v1810_v1 = vmul.f32 0.5, %v6250_v53 }
0x1780   :  { %v1814_v6 = vadd.f32 0.5, %v1810_v1 }
0x1782   :  { %v1818_v52 = vmul.f32 %v1814_v6, %v7332_v26 }
0x1790   :  { %v1824_v56 = vpop.permute.xlu1 %1823 }
0x1791   :  { %v1835_v47 = vmul.f32 %v1824_v56, %v1811_v54 }
0x1793   :  { %1843 = vrot.lane.b32.xlu2 %v1835_v47, %s6612_s22 }
0x1798   :  { %v1826_v60 = vpop.permute.xlu2 %1825 }
0x1799   :  { %v1836_v50 = vmul.f32 %v1826_v60, %v1812_v59 }
0x179b   :  { %1845 = vrot.lane.b32.xlu0 %v1836_v50, %s6612_s22 }
0x17d0   :  { %v1828_v11 = vpop.permute.xlu0 %1827 }
0x17d1   :  { %v1837_v46 = vmul.f32 %v1828_v11, %v1813_v0 }
0x17d3   :  { %1847 = vrot.lane.b32.xlu1 %v1837_v46, %s6612_s22 }
0x17ed   :  { %v1844_v4 = vpop.permute.xlu2 %1843 }
0x17ee   :  { %v7372_v55 = vadd.f32 %v1844_v4, %v1815_v15 }
0x17f0   :  { %6251 = vtanh.f32 %v7372_v55  ;;  %v1830_v9 = vpop.permute.xlu1 %1829 }
0x17f1   :  { %v1838_v10 = vmul.f32 %v1830_v9, %v1814_v6 }
0x17f3   :  { %1849 = vrot.lane.b32.xlu2 %v1838_v10, %s6612_s22 }
0x17f6   :  { %v6252_v18 = vpop.eup %6251 }
0x17f7   :  { %1867 = vrot.lane.b32.xlu0 %v6252_v18, %s6611_s1 }
0x180d   :  { %v1846_v12 = vpop.permute.xlu0 %1845 }
0x180e   :  { %v7378_v3 = vadd.f32 %v1846_v12, %v1816_v22 }
0x1810   :  { %6253 = vtanh.f32 %v7378_v3 }
0x1816   :  { %v6254_v7 = vpop.eup %6253 }
0x1817   :  { %1869 = vrot.lane.b32.xlu1 %v6254_v7, %s6611_s1 }
0x1845   :  { %v1848_v62 = vpop.permute.xlu1 %1847 }
0x1846   :  { %v7383_v2 = vadd.f32 %v1848_v62, %v1817_v25 }
0x1848   :  { %6255 = vtanh.f32 %v7383_v2 }
0x184d   :  { %v1850_v5 = vpop.permute.xlu2 %1849 }
0x184e   :  { %v6256_v30 = vpop.eup %6255  ;;  %v7387_v57 = vadd.f32 %v1850_v5, %v1818_v52 }
0x184f   :  { %1871 = vrot.lane.b32.xlu2 %v6256_v30, %s6611_s1 }
0x1850   :  { %6257 = vtanh.f32 %v7387_v57 }
0x1856   :  { %v6258_v23 = vpop.eup %6257 }
0x1857   :  { %1873 = vrot.lane.b32.xlu0 %v6258_v23, %s6611_s1 }
0x1869   :  { %v1868_v21 = vpop.permute.xlu0 %1867 }
0x186a   :  { %v7392_v19 = vmul.f32 %v1868_v21, %v1811_v54 }
0x186c   :  { %1948 = vrot.lane.b32.xlu1 %v7392_v19, %s6612_s22 }
0x1889   :  { %v1870_v16 = vpop.permute.xlu1 %1869 }
0x188a   :  { %v7396_v38 = vmul.f32 %v1870_v16, %v1812_v59 }
0x188c   :  { %1950 = vrot.lane.b32.xlu2 %v7396_v38, %s6612_s22 }
0x18a9   :  { %v1872_v26 = vpop.permute.xlu2 %1871 }
0x18aa   :  { %v7400_v27 = vmul.f32 %v1872_v26, %v1813_v0 }
0x18ac   :  { %1952 = vrot.lane.b32.xlu0 %v7400_v27, %s6612_s22 }
0x18c9   :  { %v1874_v40 = vpop.permute.xlu0 %1873 }
0x18ca   :  { %v7404_v41 = vmul.f32 %v1874_v40, %v1814_v6 }
0x18cc   :  { %1954 = vrot.lane.b32.xlu1 %v7404_v41, %s6612_s22 }
0x18de   :  { %v1949_v42 = vpop.permute.xlu1 %1948 }
0x18df   :  { %5987 = vmatmul.msk.f32.vlgmr.msra.gmra.mxu3 %vm320_vm0, %v1949_v42 }
0x18e0   :  { %3496 = vmatpush.msra.mxu3 %v7182_v8 }
0x18e2   :  { %3497 = vmatpush.msra.mxu3 %v7187_v33 }
0x18e4   :  { %3498 = vmatpush.msra.mxu3 %v7194_v35 }
0x18e6   :  { %v1951_v44 = vpop.permute.xlu2 %1950  ;;  %3499 = vmatpush.msra.mxu3 %v7203_v13 }
0x18e7   :  { %5988 = vmatmul.msk.f32.gmra.mxu3 %vm320_vm0, %v1951_v44 }
0x191e   :  { %v1953_v45 = vpop.permute.xlu0 %1952 }
0x191f   :  { %5989 = vmatmul.msk.f32.gmra.mxu3 %vm320_vm0, %v1953_v45 }
0x193e   :  { %v1955_v29 = vpop.permute.xlu1 %1954 }
0x193f   :  { %5990 = vmatmul.msk.f32.gmra.mxu3 %vm320_vm0, %v1955_v29 }
0x1962   :  { %v1981_v48 = vpop.f32.mrf.mxu3 }
0x1963   :  { %v1982_v34 = vadd.f32 %v7246_v43, %v1981_v48 }
0x1965   :  { %6259 = vtanh.f32 %v1982_v34 }
0x196a   :  { %v1984_v49 = vpop.f32.mrf.mxu3 }
0x196b   :  { %v6260_v51 = vpop.eup %6259  ;;  %v1985_v39 = vadd.f32 %v7246_v43, %v1984_v49 }
0x196c   :  { %2013 = vrot.lane.b32.xlu2 %v6260_v51, %s6611_s1  ;;  %v1997_v56 = vmul.f32 0.5, %v6260_v51 }
0x196d   :  { %6261 = vtanh.f32 %v1985_v39 }
0x196e   :  { %v2001_v59 = vadd.f32 0.5, %v1997_v56 }
0x1970   :  { %v2005_v7 = vmul.f32 %v2001_v59, %v7372_v55 }
0x1973   :  { %v6262_v37 = vpop.eup %6261 }
0x1974   :  { %2015 = vrot.lane.b32.xlu0 %v6262_v37, %s6611_s1  ;;  %v1998_v0 = vmul.f32 0.5, %v6262_v37 }
0x1976   :  { %v2002_v11 = vadd.f32 0.5, %v1998_v0 }
0x1978   :  { %v2006_v5 = vmul.f32 %v2002_v11, %v7378_v3 }
0x19a2   :  { %v1987_v53 = vpop.f32.mrf.mxu3 }
0x19a3   :  { %v1988_v24 = vadd.f32 %v7246_v43, %v1987_v53 }
0x19a5   :  { %6263 = vtanh.f32 %v1988_v24 }
0x19ab   :  { %v6264_v54 = vpop.eup %6263 }
0x19ac   :  { %2017 = vrot.lane.b32.xlu1 %v6264_v54, %s6611_s1  ;;  %v1999_v15 = vmul.f32 0.5, %v6264_v54 }
0x19ae   :  { %v2003_v4 = vadd.f32 0.5, %v1999_v15 }
0x19b0   :  { %v2007_v55 = vmul.f32 %v2003_v4, %v7383_v2 }
0x19c2   :  { %v1990_v47 = vpop.f32.mrf.mxu3 }
0x19c3   :  { %v1991_v58 = vadd.f32 %v7246_v43, %v1990_v47 }
0x19c5   :  { %6265 = vtanh.f32 %v1991_v58 }
0x19c6   :  { %v2014_v60 = vpop.permute.xlu2 %2013 }
0x19c7   :  { %v2025_v50 = vmul.f32 %v2014_v60, %v2001_v59 }
0x19c9   :  { %2033 = vrot.lane.b32.xlu0 %v2025_v50, %s6612_s22 }
0x19cb   :  { %v6266_v61 = vpop.eup %6265 }
0x19cc   :  { %2019 = vrot.lane.b32.xlu2 %v6266_v61, %s6611_s1  ;;  %v2000_v10 = vmul.f32 0.5, %v6266_v61 }
0x19ce   :  { %v2004_v18 = vadd.f32 0.5, %v2000_v10 }
0x19d0   :  { %v2008_v3 = vmul.f32 %v2004_v18, %v7387_v57 }
0x19e6   :  { %v2016_v46 = vpop.permute.xlu0 %2015 }
0x19e7   :  { %v2026_v1 = vmul.f32 %v2016_v46, %v2002_v11 }
0x19e9   :  { %2035 = vrot.lane.b32.xlu1 %v2026_v1, %s6612_s22 }
0x1a1e   :  { %v2018_v6 = vpop.permute.xlu1 %2017 }
0x1a1f   :  { %v2027_v9 = vmul.f32 %v2018_v6, %v2003_v4 }
0x1a21   :  { %2037 = vrot.lane.b32.xlu2 %v2027_v9, %s6612_s22 }
0x1a26   :  { %v2020_v22 = vpop.permute.xlu2 %2019 }
0x1a27   :  { %v2028_v12 = vmul.f32 %v2020_v22, %v2004_v18 }
0x1a29   :  { %2039 = vrot.lane.b32.xlu0 %v2028_v12, %s6612_s22 }
0x1a3b   :  { %v2034_v25 = vpop.permute.xlu0 %2033 }
0x1a3c   :  { %v7429_v62 = vadd.f32 %v2034_v25, %v2005_v7 }
0x1a3e   :  { %6267 = vtanh.f32 %v7429_v62 }
0x1a44   :  { %v6268_v52 = vpop.eup %6267 }
0x1a45   :  { %2057 = vrot.lane.b32.xlu1 %v6268_v52, %s6611_s1 }
0x1a5b   :  { %v2036_v30 = vpop.permute.xlu1 %2035 }
0x1a5c   :  { %v7434_v23 = vadd.f32 %v2036_v30, %v2006_v5 }
0x1a5e   :  { %6269 = vtanh.f32 %v7434_v23 }
0x1a64   :  { %v6270_v21 = vpop.eup %6269 }
0x1a65   :  { %2059 = vrot.lane.b32.xlu2 %v6270_v21, %s6611_s1 }
0x1a7b   :  { %v2038_v16 = vpop.permute.xlu2 %2037 }
0x1a7c   :  { %v7439_v26 = vadd.f32 %v2038_v16, %v2007_v55 }
0x1a7e   :  { %6271 = vtanh.f32 %v7439_v26 }
0x1a84   :  { %v6272_v40 = vpop.eup %6271 }
0x1a85   :  { %2061 = vrot.lane.b32.xlu0 %v6272_v40, %s6611_s1 }
0x1a9b   :  { %v2040_v42 = vpop.permute.xlu0 %2039 }
0x1a9c   :  { %v7444_v44 = vadd.f32 %v2040_v42, %v2008_v3 }
0x1a9e   :  { %6273 = vtanh.f32 %v7444_v44 }
0x1aa4   :  { %v6274_v45 = vpop.eup %6273 }
0x1aa5   :  { %2063 = vrot.lane.b32.xlu1 %v6274_v45, %s6611_s1 }
0x1ab7   :  { %v2058_v29 = vpop.permute.xlu1 %2057 }
0x1ab8   :  { %v7448_v2 = vmul.f32 %v2058_v29, %v2001_v59 }
0x1aba   :  { %2138 = vrot.lane.b32.xlu2 %v7448_v2, %s6612_s22 }
0x1abf   :  { %v2060_v48 = vpop.permute.xlu2 %2059 }
0x1ac0   :  { %v7452_v34 = vmul.f32 %v2060_v48, %v2002_v11 }
0x1ac2   :  { %2140 = vrot.lane.b32.xlu0 %v7452_v34, %s6612_s22 }
0x1af7   :  { %v2062_v57 = vpop.permute.xlu0 %2061 }
0x1af8   :  { %v7456_v49 = vmul.f32 %v2062_v57, %v2003_v4 }
0x1afa   :  { %2142 = vrot.lane.b32.xlu1 %v7456_v49, %s6612_s22 }
0x1b14   :  { %v2139_v51 = vpop.permute.xlu2 %2138 }
0x1b15   :  { %5991 = vmatmul.msk.f32.vlgmr.msrb.gmra.mxu0 %vm320_vm0, %v2139_v51 }
0x1b16   :  { %3686 = vmatpush.msrb.mxu0 %v7182_v8 }
0x1b17   :  { %v2064_v39 = vpop.permute.xlu1 %2063 }
0x1b18   :  { %v7462_v37 = vmul.f32 %v2064_v39, %v2004_v18  ;;  %3687 = vmatpush.msrb.mxu0 %v7187_v33 }
0x1b1a   :  { %2144 = vrot.lane.b32.xlu2 %v7462_v37, %s6612_s22  ;;  %3688 = vmatpush.msrb.mxu0 %v7194_v35 }
0x1b1c   :  { %3689 = vmatpush.msrb.mxu0 %v7203_v13 }
0x1b34   :  { %v2141_v53 = vpop.permute.xlu0 %2140 }
0x1b35   :  { %5992 = vmatmul.msk.f32.gmra.mxu0 %vm320_vm0, %v2141_v53 }
0x1b6c   :  { %v2143_v24 = vpop.permute.xlu1 %2142 }
0x1b6d   :  { %5993 = vmatmul.msk.f32.gmra.mxu0 %vm320_vm0, %v2143_v24 }
0x1b74   :  { %v2145_v54 = vpop.permute.xlu2 %2144 }
0x1b75   :  { %5994 = vmatmul.msk.f32.gmra.mxu0 %vm320_vm0, %v2145_v54 }
0x1b92   :  { %v2171_v56 = vpop.f32.mrf.mxu0 }
0x1b93   :  { %v2172_v47 = vadd.f32 %v7246_v43, %v2171_v56 }
0x1b95   :  { %6275 = vtanh.f32 %v2172_v47 }
0x1b9b   :  { %v6276_v58 = vpop.eup %6275 }
0x1b9c   :  { %2203 = vrot.lane.b32.xlu0 %v6276_v58, %s6611_s1  ;;  %v2187_v4 = vmul.f32 0.5, %v6276_v58 }
0x1b9e   :  { %v2191_v6 = vadd.f32 0.5, %v2187_v4 }
0x1ba0   :  { %v2195_v3 = vmul.f32 %v2191_v6, %v7429_v62 }
0x1bb2   :  { %v2174_v59 = vpop.f32.mrf.mxu0 }
0x1bb3   :  { %v2175_v60 = vadd.f32 %v7246_v43, %v2174_v59 }
0x1bb5   :  { %6277 = vtanh.f32 %v2175_v60 }
0x1bbb   :  { %v6278_v50 = vpop.eup %6277 }
0x1bbc   :  { %2205 = vrot.lane.b32.xlu1 %v6278_v50, %s6611_s1  ;;  %v2188_v18 = vmul.f32 0.5, %v6278_v50 }
0x1bbe   :  { %v2192_v22 = vadd.f32 0.5, %v2188_v18 }
0x1bc0   :  { %v2196_v29 = vmul.f32 %v2192_v22, %v7434_v23 }
0x1bea   :  { %v2177_v61 = vpop.f32.mrf.mxu0 }
0x1beb   :  { %v2178_v0 = vadd.f32 %v7246_v43, %v2177_v61 }
0x1bed   :  { %6279 = vtanh.f32 %v2178_v0 }
0x1bf2   :  { %v2180_v11 = vpop.f32.mrf.mxu0 }
0x1bf3   :  { %v6280_v46 = vpop.eup %6279  ;;  %v2181_v1 = vadd.f32 %v7246_v43, %v2180_v11 }
0x1bf4   :  { %2207 = vrot.lane.b32.xlu2 %v6280_v46, %s6611_s1  ;;  %v2189_v25 = vmul.f32 0.5, %v6280_v46 }
0x1bf5   :  { %6281 = vtanh.f32 %v2181_v1 }
0x1bf6   :  { %v2193_v52 = vadd.f32 0.5, %v2189_v25 }
0x1bf8   :  { %v2197_v62 = vmul.f32 %v2193_v52, %v7439_v26 }
0x1bfb   :  { %v6282_v15 = vpop.eup %6281 }
0x1bfc   :  { %2209 = vrot.lane.b32.xlu0 %v6282_v15, %s6611_s1  ;;  %v2190_v21 = vmul.f32 0.5, %v6282_v15 }
0x1bfe   :  { %v2194_v55 = vadd.f32 0.5, %v2190_v21 }
0x1c00   :  { %v2198_v23 = vmul.f32 %v2194_v55, %v7444_v44 }
0x1c0e   :  { %v2204_v9 = vpop.permute.xlu0 %2203 }
0x1c0f   :  { %v2215_v10 = vmul.f32 %v2204_v9, %v2191_v6 }
0x1c11   :  { %2223 = vrot.lane.b32.xlu1 %v2215_v10, %s6612_s22 }
0x1c2e   :  { %v2206_v12 = vpop.permute.xlu1 %2205 }
0x1c2f   :  { %v2216_v7 = vmul.f32 %v2206_v12, %v2192_v22 }
0x1c31   :  { %2225 = vrot.lane.b32.xlu2 %v2216_v7, %s6612_s22 }
0x1c4e   :  { %v2208_v5 = vpop.permute.xlu2 %2207 }
0x1c4f   :  { %v2217_v30 = vmul.f32 %v2208_v5, %v2193_v52 }
0x1c51   :  { %2227 = vrot.lane.b32.xlu0 %v2217_v30, %s6612_s22 }
0x1c6e   :  { %v2210_v16 = vpop.permute.xlu0 %2209 }
0x1c6f   :  { %v2218_v40 = vmul.f32 %v2210_v16, %v2194_v55 }
0x1c71   :  { %2229 = vrot.lane.b32.xlu1 %v2218_v40, %s6612_s22 }
0x1c83   :  { %v2224_v42 = vpop.permute.xlu1 %2223 }
0x1c84   :  { %v7485_v45 = vadd.f32 %v2224_v42, %v2195_v3 }
0x1c86   :  { %6283 = vtanh.f32 %v7485_v45 }
0x1c8b   :  { %v2226_v48 = vpop.permute.xlu2 %2225 }
0x1c8c   :  { %v6284_v57 = vpop.eup %6283  ;;  %v7489_v51 = vadd.f32 %v2226_v48, %v2196_v29 }
0x1c8d   :  { %2247 = vrot.lane.b32.xlu2 %v6284_v57, %s6611_s1 }
0x1c8e   :  { %6285 = vtanh.f32 %v7489_v51 }
0x1c94   :  { %v6286_v39 = vpop.eup %6285 }
0x1c95   :  { %2249 = vrot.lane.b32.xlu0 %v6286_v39, %s6611_s1 }
0x1cc3   :  { %v2228_v53 = vpop.permute.xlu0 %2227 }
0x1cc4   :  { %v7495_v24 = vadd.f32 %v2228_v53, %v2197_v62 }
0x1cc6   :  { %6287 = vtanh.f32 %v7495_v24 }
0x1ccc   :  { %v6288_v54 = vpop.eup %6287 }
0x1ccd   :  { %2251 = vrot.lane.b32.xlu1 %v6288_v54, %s6611_s1 }
0x1ce3   :  { %v2230_v56 = vpop.permute.xlu1 %2229 }
0x1ce4   :  { %v7500_v47 = vadd.f32 %v2230_v56, %v2198_v23 }
0x1ce6   :  { %6289 = vtanh.f32 %v7500_v47 }
0x1ce7   :  { %v2248_v58 = vpop.permute.xlu2 %2247 }
0x1ce8   :  { %v7503_v59 = vmul.f32 %v2248_v58, %v2191_v6 }
0x1cea   :  { %2328 = vrot.lane.b32.xlu0 %v7503_v59, %s6612_s22 }
0x1cec   :  { %v6290_v26 = vpop.eup %6289 }
0x1ced   :  { %2253 = vrot.lane.b32.xlu2 %v6290_v26, %s6611_s1 }
0x1d07   :  { %v2250_v60 = vpop.permute.xlu0 %2249 }
0x1d08   :  { %v7508_v50 = vmul.f32 %v2250_v60, %v2192_v22 }
0x1d0a   :  { %2330 = vrot.lane.b32.xlu1 %v7508_v50, %s6612_s22 }
0x1d3f   :  { %v2252_v44 = vpop.permute.xlu1 %2251 }
0x1d40   :  { %v7512_v61 = vmul.f32 %v2252_v44, %v2193_v52 }
0x1d42   :  { %2332 = vrot.lane.b32.xlu2 %v7512_v61, %s6612_s22 }
0x1d47   :  { %v2254_v0 = vpop.permute.xlu2 %2253 }
0x1d48   :  { %v7516_v11 = vmul.f32 %v2254_v0, %v2194_v55 }
0x1d4a   :  { %2334 = vrot.lane.b32.xlu0 %v7516_v11, %s6612_s22 }
0x1d5c   :  { %v2329_v46 = vpop.permute.xlu0 %2328 }
0x1d5d   :  { %5995 = vmatmul.msk.f32.vlgmr.msrb.gmra.mxu1 %vm320_vm0, %v2329_v46 }
0x1d5e   :  { %3876 = vmatpush.msrb.mxu1 %v7182_v8 }
0x1d60   :  { %3877 = vmatpush.msrb.mxu1 %v7187_v33 }
0x1d62   :  { %3878 = vmatpush.msrb.mxu1 %v7194_v35 }
0x1d64   :  { %3879 = vmatpush.msrb.mxu1 %v7203_v13 }
0x1d7c   :  { %v2331_v1 = vpop.permute.xlu1 %2330 }
0x1d7d   :  { %5996 = vmatmul.msk.f32.gmra.mxu1 %vm320_vm0, %v2331_v1 }
0x1d9c   :  { %v2333_v15 = vpop.permute.xlu2 %2332 }
0x1d9d   :  { %5997 = vmatmul.msk.f32.gmra.mxu1 %vm320_vm0, %v2333_v15 }
0x1dbc   :  { %v2335_v4 = vpop.permute.xlu0 %2334 }
0x1dbd   :  { %5998 = vmatmul.msk.f32.gmra.mxu1 %vm320_vm0, %v2335_v4 }
0x1dda   :  { %v2361_v6 = vpop.f32.mrf.mxu1 }
0x1ddb   :  { %v2362_v9 = vadd.f32 %v7246_v43, %v2361_v6 }
0x1ddd   :  { %6291 = vtanh.f32 %v2362_v9 }
0x1de3   :  { %v6292_v8 = vpop.eup %6291 }
0x1de4   :  { %2393 = vrot.lane.b32.xlu1 %v6292_v8, %s6611_s1  ;;  %v2377_v52 = vmul.f32 0.5, %v6292_v8 }
0x1de6   :  { %v2381_v5 = vadd.f32 0.5, %v2377_v52 }
0x1de8   :  { %v2385_v39 = vmul.f32 %v2381_v5, %v7485_v45 }
0x1dfa   :  { %v2364_v33 = vpop.f32.mrf.mxu1 }
0x1dfb   :  { %v2365_v35 = vadd.f32 %v7246_v43, %v2364_v33 }
0x1dfd   :  { %6293 = vtanh.f32 %v2365_v35 }
0x1e03   :  { %v6294_v13 = vpop.eup %6293 }
0x1e04   :  { %2395 = vrot.lane.b32.xlu2 %v6294_v13, %s6611_s1  ;;  %v2378_v55 = vmul.f32 0.5, %v6294_v13 }
0x1e06   :  { %v2382_v16 = vadd.f32 0.5, %v2378_v55 }
0x1e08   :  { %v2386_v26 = vmul.f32 %v2382_v16, %v7489_v51 }
0x1e1a   :  { %v2367_v10 = vpop.f32.mrf.mxu1 }
0x1e1b   :  { %v2368_v18 = vadd.f32 %v7246_v43, %v2367_v10 }
0x1e1d   :  { %6295 = vtanh.f32 %v2368_v18 }
0x1e23   :  { %v6296_v22 = vpop.eup %6295 }
0x1e24   :  { %2397 = vrot.lane.b32.xlu0 %v6296_v22, %s6611_s1  ;;  %v2379_v42 = vmul.f32 0.5, %v6296_v22 }
0x1e26   :  { %v2383_v29 = vadd.f32 0.5, %v2379_v42 }
0x1e28   :  { %v2387_v0 = vmul.f32 %v2383_v29, %v7495_v24 }
0x1e3a   :  { %v2370_v12 = vpop.f32.mrf.mxu1 }
0x1e3b   :  { %v2371_v7 = vadd.f32 %v7246_v43, %v2370_v12  ;;  %v7580_v12 = vld [vmem:[%s9745_s6 + $0x18] sm:$0xff] }
0x1e3d   :  { %6297 = vtanh.f32 %v2371_v7  ;;  %v7586_v7 = vld [vmem:[%s9745_s6 + $0x10] sm:$0xff] }
0x1e43   :  { %v6298_v25 = vpop.eup %6297 }
0x1e44   :  { %2399 = vrot.lane.b32.xlu1 %v6298_v25, %s6611_s1  ;;  %v2380_v57 = vmul.f32 0.5, %v6298_v25  ;;  %v7592_v25 = vld [vmem:[%s9745_s6 + $0x8] sm:$0xff] }
0x1e46   :  { %v2384_v54 = vadd.f32 0.5, %v2380_v57 }
0x1e48   :  { %v2388_v15 = vmul.f32 %v2384_v54, %v7500_v47 }
0x1e56   :  { %v2394_v30 = vpop.permute.xlu1 %2393 }
0x1e57   :  { %v2405_v21 = vmul.f32 %v2394_v30, %v2381_v5 }
0x1e59   :  { %2413 = vrot.lane.b32.xlu2 %v2405_v21, %s6612_s22 }
0x1e5e   :  { %v2396_v40 = vpop.permute.xlu2 %2395 }
0x1e5f   :  { %v2406_v3 = vmul.f32 %v2396_v40, %v2382_v16 }
0x1e61   :  { %2415 = vrot.lane.b32.xlu0 %v2406_v3, %s6612_s22 }
0x1e96   :  { %v2398_v48 = vpop.permute.xlu0 %2397 }
0x1e97   :  { %v2407_v43 = vmul.f32 %v2398_v48, %v2383_v29 }
0x1e99   :  { %2417 = vrot.lane.b32.xlu1 %v2407_v43, %s6612_s22 }
0x1eb3   :  { %v2414_v62 = vpop.permute.xlu2 %2413 }
0x1eb4   :  { %v7540_v53 = vadd.f32 %v2414_v62, %v2385_v39 }
0x1eb6   :  { %6299 = vtanh.f32 %v7540_v53  ;;  %v2400_v23 = vpop.permute.xlu1 %2399 }
0x1eb7   :  { %v2408_v56 = vmul.f32 %v2400_v23, %v2384_v54 }
0x1eb9   :  { %2419 = vrot.lane.b32.xlu2 %v2408_v56, %s6612_s22 }
0x1ebc   :  { %v6300_v58 = vpop.eup %6299 }
0x1ebd   :  { %2437 = vrot.lane.b32.xlu0 %v6300_v58, %s6611_s1 }
0x1ed3   :  { %v2416_v60 = vpop.permute.xlu0 %2415 }
0x1ed4   :  { %v7546_v44 = vadd.f32 %v2416_v60, %v2386_v26 }
0x1ed6   :  { %6301 = vtanh.f32 %v7546_v44 }
0x1edc   :  { %v6302_v45 = vpop.eup %6301 }
0x1edd   :  { %2439 = vrot.lane.b32.xlu1 %v6302_v45, %s6611_s1 }
0x1f0b   :  { %v2418_v46 = vpop.permute.xlu1 %2417 }
0x1f0c   :  { %v7551_v1 = vadd.f32 %v2418_v46, %v2387_v0 }
0x1f0e   :  { %6303 = vtanh.f32 %v7551_v1 }
0x1f13   :  { %v2420_v4 = vpop.permute.xlu2 %2419 }
0x1f14   :  { %v6304_v6 = vpop.eup %6303  ;;  %v7555_v51 = vadd.f32 %v2420_v4, %v2388_v15 }
0x1f15   :  { %2441 = vrot.lane.b32.xlu2 %v6304_v6, %s6611_s1 }
0x1f16   :  { %6305 = vtanh.f32 %v7555_v51 }
0x1f1c   :  { %v6306_v9 = vpop.eup %6305 }
0x1f1d   :  { %2443 = vrot.lane.b32.xlu0 %v6306_v9, %s6611_s1 }
0x1f2f   :  { %v2438_v8 = vpop.permute.xlu0 %2437 }
0x1f30   :  { %v7560_v24 = vmul.f32 %v2438_v8, %v2381_v5  ;;  %v7598_v5 = vld [vmem:[%s9745_s6] sm:$0xff] }
0x1f32   :  { %2518 = vrot.lane.b32.xlu1 %v7560_v24, %s6612_s22 }
0x1f4f   :  { %v2440_v33 = vpop.permute.xlu1 %2439 }
0x1f50   :  { %v7564_v35 = vmul.f32 %v2440_v33, %v2382_v16  ;;  %v7607_v16 = vld [vmem:[%s9746_s7] ss:$0 sm:$0xff] }
0x1f52   :  { %2520 = vrot.lane.b32.xlu2 %v7564_v35, %s6612_s22 }
0x1f6f   :  { %v2442_v47 = vpop.permute.xlu2 %2441 }
0x1f70   :  { %v7568_v13 = vmul.f32 %v2442_v47, %v2383_v29 }
0x1f72   :  { %2522 = vrot.lane.b32.xlu0 %v7568_v13, %s6612_s22 }
0x1f8f   :  { %v2444_v10 = vpop.permute.xlu0 %2443 }
0x1f90   :  { %v7572_v18 = vmul.f32 %v2444_v10, %v2384_v54 }
0x1f92   :  { %2524 = vrot.lane.b32.xlu1 %v7572_v18, %s6612_s22 }
0x1fa4   :  { %v2519_v22 = vpop.permute.xlu1 %2518 }
0x1fa5   :  { %5999 = vmatmul.msk.f32.vlgmr.msrb.gmra.mxu2 %vm320_vm0, %v2519_v22 }
0x1fa6   :  { %4066 = vmatpush.msrb.mxu2 %v7580_v12 }
0x1fa8   :  { %4067 = vmatpush.msrb.mxu2 %v7586_v7 }
0x1faa   :  { %4068 = vmatpush.msrb.mxu2 %v7592_v25 }
0x1fac   :  { %v2521_v52 = vpop.permute.xlu2 %2520  ;;  %4069 = vmatpush.msrb.mxu2 %v7598_v5 }
0x1fad   :  { %6000 = vmatmul.msk.f32.gmra.mxu2 %vm320_vm0, %v2521_v52 }
0x1fe4   :  { %v2523_v30 = vpop.permute.xlu0 %2522 }
0x1fe5   :  { %6001 = vmatmul.msk.f32.gmra.mxu2 %vm320_vm0, %v2523_v30 }
0x2004   :  { %v2525_v21 = vpop.permute.xlu1 %2524 }
0x2005   :  { %6002 = vmatmul.msk.f32.gmra.mxu2 %vm320_vm0, %v2525_v21 }
0x2028   :  { %v2551_v55 = vpop.f32.mrf.mxu2 }
0x2029   :  { %v2552_v40 = vadd.f32 %v7607_v16, %v2551_v55 }
0x202b   :  { %6307 = vtanh.f32 %v2552_v40 }
0x2030   :  { %v2554_v3 = vpop.f32.mrf.mxu2 }
0x2031   :  { %v6308_v42 = vpop.eup %6307  ;;  %v2555_v29 = vadd.f32 %v7607_v16, %v2554_v3 }
0x2032   :  { %2583 = vrot.lane.b32.xlu2 %v6308_v42, %s6611_s1  ;;  %v2567_v62 = vmul.f32 0.5, %v6308_v42 }
0x2033   :  { %6309 = vtanh.f32 %v2555_v29 }
0x2034   :  { %v2571_v56 = vadd.f32 0.5, %v2567_v62 }
0x2036   :  { %v2575_v52 = vmul.f32 %v2571_v56, %v7540_v53 }
0x2039   :  { %v6310_v48 = vpop.eup %6309 }
0x203a   :  { %2585 = vrot.lane.b32.xlu0 %v6310_v48, %s6611_s1  ;;  %v2568_v45 = vmul.f32 0.5, %v6310_v48 }
0x203c   :  { %v2572_v0 = vadd.f32 0.5, %v2568_v45 }
0x203e   :  { %v2576_v40 = vmul.f32 %v2572_v0, %v7546_v44 }
0x2068   :  { %v2557_v43 = vpop.f32.mrf.mxu2 }
0x2069   :  { %v2558_v57 = vadd.f32 %v7607_v16, %v2557_v43 }
0x206b   :  { %6311 = vtanh.f32 %v2558_v57 }
0x2071   :  { %v6312_v39 = vpop.eup %6311 }
0x2072   :  { %2587 = vrot.lane.b32.xlu1 %v6312_v39, %s6611_s1  ;;  %v2569_v4 = vmul.f32 0.5, %v6312_v39 }
0x2074   :  { %v2573_v6 = vadd.f32 0.5, %v2569_v4 }
0x2076   :  { %v2577_v53 = vmul.f32 %v2573_v6, %v7551_v1 }
0x2088   :  { %v2560_v54 = vpop.f32.mrf.mxu2 }
0x2089   :  { %v2561_v23 = vadd.f32 %v7607_v16, %v2560_v54 }
0x208b   :  { %6313 = vtanh.f32 %v2561_v23 }
0x208c   :  { %v2584_v58 = vpop.permute.xlu2 %2583 }
0x208d   :  { %v2595_v26 = vmul.f32 %v2584_v58, %v2571_v56 }
0x208f   :  { %2603 = vrot.lane.b32.xlu0 %v2595_v26, %s6612_s22 }
0x2091   :  { %v6314_v60 = vpop.eup %6313 }
0x2092   :  { %2589 = vrot.lane.b32.xlu2 %v6314_v60, %s6611_s1  ;;  %v2570_v33 = vmul.f32 0.5, %v6314_v60 }
0x2094   :  { %v2574_v47 = vadd.f32 0.5, %v2570_v33 }
0x2096   :  { %v2578_v44 = vmul.f32 %v2574_v47, %v7555_v51 }
0x20ac   :  { %v2586_v46 = vpop.permute.xlu0 %2585 }
0x20ad   :  { %v2596_v15 = vmul.f32 %v2586_v46, %v2572_v0 }
0x20af   :  { %2605 = vrot.lane.b32.xlu1 %v2596_v15, %s6612_s22 }
0x20e4   :  { %v2588_v9 = vpop.permute.xlu1 %2587 }
0x20e5   :  { %v2597_v8 = vmul.f32 %v2588_v9, %v2573_v6 }
0x20e7   :  { %2607 = vrot.lane.b32.xlu2 %v2597_v8, %s6612_s22 }
0x20ec   :  { %v2590_v10 = vpop.permute.xlu2 %2589 }
0x20ed   :  { %v2598_v22 = vmul.f32 %v2590_v10, %v2574_v47 }
0x20ef   :  { %2609 = vrot.lane.b32.xlu0 %v2598_v22, %s6612_s22 }
0x2101   :  { %v2604_v30 = vpop.permute.xlu0 %2603 }
0x2102   :  { %v7622_v21 = vadd.f32 %v2604_v30, %v2575_v52 }
0x2104   :  { %6315 = vtanh.f32 %v7622_v21 }
0x210a   :  { %v6316_v55 = vpop.eup %6315 }
0x210b   :  { %2627 = vrot.lane.b32.xlu1 %v6316_v55, %s6611_s1 }
0x2121   :  { %v2606_v3 = vpop.permute.xlu1 %2605 }
0x2122   :  { %v7627_v42 = vadd.f32 %v2606_v3, %v2576_v40 }
0x2124   :  { %6317 = vtanh.f32 %v7627_v42 }
0x212a   :  { %v6318_v29 = vpop.eup %6317 }
0x212b   :  { %2629 = vrot.lane.b32.xlu2 %v6318_v29, %s6611_s1 }
0x2141   :  { %v2608_v48 = vpop.permute.xlu2 %2607 }
0x2142   :  { %v7632_v43 = vadd.f32 %v2608_v48, %v2577_v53 }
0x2144   :  { %6319 = vtanh.f32 %v7632_v43 }
0x214a   :  { %v6320_v57 = vpop.eup %6319 }
0x214b   :  { %2631 = vrot.lane.b32.xlu0 %v6320_v57, %s6611_s1 }
0x2161   :  { %v2610_v39 = vpop.permute.xlu0 %2609 }
0x2162   :  { %v7637_v62 = vadd.f32 %v2610_v39, %v2578_v44 }
0x2164   :  { %6321 = vtanh.f32 %v7637_v62 }
0x216a   :  { %v6322_v54 = vpop.eup %6321 }
0x216b   :  { %2633 = vrot.lane.b32.xlu1 %v6322_v54, %s6611_s1 }
0x217d   :  { %v2628_v23 = vpop.permute.xlu1 %2627 }
0x217e   :  { %v7641_v1 = vmul.f32 %v2628_v23, %v2571_v56 }
0x2180   :  { %2708 = vrot.lane.b32.xlu2 %v7641_v1, %s6612_s22 }
0x2185   :  { %v2630_v58 = vpop.permute.xlu2 %2629 }
0x2186   :  { %v7645_v26 = vmul.f32 %v2630_v58, %v2572_v0 }
0x2188   :  { %2710 = vrot.lane.b32.xlu0 %v7645_v26, %s6612_s22 }
0x21bd   :  { %v2632_v51 = vpop.permute.xlu0 %2631 }
0x21be   :  { %v7649_v60 = vmul.f32 %v2632_v51, %v2573_v6 }
0x21c0   :  { %2712 = vrot.lane.b32.xlu1 %v7649_v60, %s6612_s22 }
0x21da   :  { %v2709_v45 = vpop.permute.xlu2 %2708 }
0x21db   :  { %6003 = vmatmul.msk.f32.vlgmr.msrb.gmra.mxu3 %vm320_vm0, %v2709_v45 }
0x21dc   :  { %4256 = vmatpush.msrb.mxu3 %v7580_v12 }
0x21dd   :  { %v2634_v56 = vpop.permute.xlu1 %2633 }
0x21de   :  { %v7655_v46 = vmul.f32 %v2634_v56, %v2574_v47  ;;  %4257 = vmatpush.msrb.mxu3 %v7586_v7 }
0x21e0   :  { %2714 = vrot.lane.b32.xlu2 %v7655_v46, %s6612_s22  ;;  %4258 = vmatpush.msrb.mxu3 %v7592_v25 }
0x21e2   :  { %4259 = vmatpush.msrb.mxu3 %v7598_v5 }
0x21fa   :  { %v2711_v0 = vpop.permute.xlu0 %2710 }
0x21fb   :  { %6004 = vmatmul.msk.f32.gmra.mxu3 %vm320_vm0, %v2711_v0 }
0x2232   :  { %v2713_v15 = vpop.permute.xlu1 %2712 }
0x2233   :  { %6005 = vmatmul.msk.f32.gmra.mxu3 %vm320_vm0, %v2713_v15 }
0x223a   :  { %v2715_v4 = vpop.permute.xlu2 %2714 }
0x223b   :  { %6006 = vmatmul.msk.f32.gmra.mxu3 %vm320_vm0, %v2715_v4 }
0x225e   :  { %v2741_v6 = vpop.f32.mrf.mxu3 }
0x225f   :  { %v2742_v9 = vadd.f32 %v7607_v16, %v2741_v6 }
0x2261   :  { %6323 = vtanh.f32 %v2742_v9 }
0x2267   :  { %v6324_v8 = vpop.eup %6323 }
0x2268   :  { %2773 = vrot.lane.b32.xlu0 %v6324_v8, %s6611_s1  ;;  %v2757_v29 = vmul.f32 0.5, %v6324_v8 }
0x226a   :  { %v2761_v53 = vadd.f32 0.5, %v2757_v29 }
0x226c   :  { %v2765_v9 = vmul.f32 %v2761_v53, %v7622_v21 }
0x227e   :  { %v2744_v33 = vpop.f32.mrf.mxu3 }
0x227f   :  { %v2745_v47 = vadd.f32 %v7607_v16, %v2744_v33 }
0x2281   :  { %6325 = vtanh.f32 %v2745_v47 }
0x2287   :  { %v6326_v10 = vpop.eup %6325 }
0x2288   :  { %2775 = vrot.lane.b32.xlu1 %v6326_v10, %s6611_s1  ;;  %v2758_v44 = vmul.f32 0.5, %v6326_v10 }
0x228a   :  { %v2762_v39 = vadd.f32 0.5, %v2758_v44 }
0x228c   :  { %v2766_v47 = vmul.f32 %v2762_v39, %v7627_v42 }
0x22b6   :  { %v2747_v22 = vpop.f32.mrf.mxu3 }
0x22b7   :  { %v2748_v52 = vadd.f32 %v7607_v16, %v2747_v22 }
0x22b9   :  { %6327 = vtanh.f32 %v2748_v52 }
0x22be   :  { %v2750_v30 = vpop.f32.mrf.mxu3 }
0x22bf   :  { %v6328_v55 = vpop.eup %6327  ;;  %v2751_v40 = vadd.f32 %v7607_v16, %v2750_v30 }
0x22c0   :  { %2777 = vrot.lane.b32.xlu2 %v6328_v55, %s6611_s1  ;;  %v2759_v58 = vmul.f32 0.5, %v6328_v55 }
0x22c1   :  { %6329 = vtanh.f32 %v2751_v40 }
0x22c2   :  { %v2763_v51 = vadd.f32 0.5, %v2759_v58 }
0x22c4   :  { %v2767_v21 = vmul.f32 %v2763_v51, %v7632_v43 }
0x22c7   :  { %v6330_v3 = vpop.eup %6329 }
0x22c8   :  { %2779 = vrot.lane.b32.xlu0 %v6330_v3, %s6611_s1  ;;  %v2760_v0 = vmul.f32 0.5, %v6330_v3 }
0x22ca   :  { %v2764_v15 = vadd.f32 0.5, %v2760_v0 }
0x22cc   :  { %v2768_v42 = vmul.f32 %v2764_v15, %v7637_v62 }
0x22da   :  { %v2774_v48 = vpop.permute.xlu0 %2773 }
0x22db   :  { %v2785_v57 = vmul.f32 %v2774_v48, %v2761_v53 }
0x22dd   :  { %2793 = vrot.lane.b32.xlu1 %v2785_v57, %s6612_s22 }
0x22fa   :  { %v2776_v54 = vpop.permute.xlu1 %2775 }
0x22fb   :  { %v2786_v23 = vmul.f32 %v2776_v54, %v2762_v39 }
0x22fd   :  { %2795 = vrot.lane.b32.xlu2 %v2786_v23, %s6612_s22 }
0x231a   :  { %v2778_v45 = vpop.permute.xlu2 %2777 }
0x231b   :  { %v2787_v56 = vmul.f32 %v2778_v45, %v2763_v51 }
0x231d   :  { %2797 = vrot.lane.b32.xlu0 %v2787_v56, %s6612_s22 }
0x233a   :  { %v2780_v4 = vpop.permute.xlu0 %2779 }
0x233b   :  { %v2788_v6 = vmul.f32 %v2780_v4, %v2764_v15 }
0x233d   :  { %2799 = vrot.lane.b32.xlu1 %v2788_v6, %s6612_s22 }
0x234f   :  { %v2794_v8 = vpop.permute.xlu1 %2793 }
0x2350   :  { %v7678_v33 = vadd.f32 %v2794_v8, %v2765_v9 }
0x2352   :  { %6331 = vtanh.f32 %v7678_v33 }
0x2357   :  { %v2796_v10 = vpop.permute.xlu2 %2795 }
0x2358   :  { %v6332_v22 = vpop.eup %6331  ;;  %v7682_v52 = vadd.f32 %v2796_v10, %v2766_v47 }
0x2359   :  { %2817 = vrot.lane.b32.xlu2 %v6332_v22, %s6611_s1 }
0x235a   :  { %6333 = vtanh.f32 %v7682_v52 }
0x2360   :  { %v6334_v30 = vpop.eup %6333 }
0x2361   :  { %2819 = vrot.lane.b32.xlu0 %v6334_v30, %s6611_s1 }
0x238f   :  { %v2798_v55 = vpop.permute.xlu0 %2797 }
0x2390   :  { %v7688_v40 = vadd.f32 %v2798_v55, %v2767_v21 }
0x2392   :  { %6335 = vtanh.f32 %v7688_v40 }
0x2398   :  { %v6336_v3 = vpop.eup %6335 }
0x2399   :  { %2821 = vrot.lane.b32.xlu1 %v6336_v3, %s6611_s1 }
0x23af   :  { %v2800_v29 = vpop.permute.xlu1 %2799 }
0x23b0   :  { %v7693_v48 = vadd.f32 %v2800_v29, %v2768_v42 }
0x23b2   :  { %6337 = vtanh.f32 %v7693_v48 }
0x23b3   :  { %v2818_v57 = vpop.permute.xlu2 %2817 }
0x23b4   :  { %v7696_v44 = vmul.f32 %v2818_v57, %v2761_v53 }
0x23b6   :  { %2898 = vrot.lane.b32.xlu0 %v7696_v44, %s6612_s22 }
0x23b8   :  { %v6338_v43 = vpop.eup %6337 }
0x23b9   :  { %2823 = vrot.lane.b32.xlu2 %v6338_v43, %s6611_s1 }
0x23d3   :  { %v2820_v54 = vpop.permute.xlu0 %2819 }
0x23d4   :  { %v7701_v23 = vmul.f32 %v2820_v54, %v2762_v39 }
0x23d6   :  { %2900 = vrot.lane.b32.xlu1 %v7701_v23, %s6612_s22 }
0x240b   :  { %v2822_v62 = vpop.permute.xlu1 %2821 }
0x240c   :  { %v7705_v58 = vmul.f32 %v2822_v62, %v2763_v51 }
0x240e   :  { %2902 = vrot.lane.b32.xlu2 %v7705_v58, %s6612_s22 }
0x2413   :  { %v2824_v53 = vpop.permute.xlu2 %2823 }
0x2414   :  { %v7709_v45 = vmul.f32 %v2824_v53, %v2764_v15 }
0x2416   :  { %2904 = vrot.lane.b32.xlu0 %v7709_v45, %s6612_s22 }
0x2428   :  { %v2899_v56 = vpop.permute.xlu0 %2898 }
0x2429   :  { %6007 = vmatmul.msk.f32.vlgmr.msra.gmra.mxu0 %vm320_vm0, %v2899_v56 }
0x242a   :  { %4446 = vmatpush.msra.mxu0 %v7580_v12 }
0x242c   :  { %4447 = vmatpush.msra.mxu0 %v7586_v7 }
0x242e   :  { %4448 = vmatpush.msra.mxu0 %v7592_v25 }
0x2430   :  { %4449 = vmatpush.msra.mxu0 %v7598_v5 }
0x2448   :  { %v2901_v39 = vpop.permute.xlu1 %2900 }
0x2449   :  { %6008 = vmatmul.msk.f32.gmra.mxu0 %vm320_vm0, %v2901_v39 }
0x2468   :  { %v2903_v51 = vpop.permute.xlu2 %2902 }
0x2469   :  { %6009 = vmatmul.msk.f32.gmra.mxu0 %vm320_vm0, %v2903_v51 }
0x2488   :  { %v2905_v0 = vpop.permute.xlu0 %2904 }
0x2489   :  { %6010 = vmatmul.msk.f32.gmra.mxu0 %vm320_vm0, %v2905_v0 }
0x24a6   :  { %v2931_v15 = vpop.f32.mrf.mxu0 }
0x24a7   :  { %v2932_v4 = vadd.f32 %v7607_v16, %v2931_v15 }
0x24a9   :  { %6339 = vtanh.f32 %v2932_v4 }
0x24af   :  { %v6340_v6 = vpop.eup %6339 }
0x24b0   :  { %2963 = vrot.lane.b32.xlu1 %v6340_v6, %s6611_s1  ;;  %v2947_v42 = vmul.f32 0.5, %v6340_v6 }
0x24b2   :  { %v2951_v29 = vadd.f32 0.5, %v2947_v42 }
0x24b4   :  { %v2955_v6 = vmul.f32 %v2951_v29, %v7678_v33 }
0x24c6   :  { %v2934_v9 = vpop.f32.mrf.mxu0 }
0x24c7   :  { %v2935_v8 = vadd.f32 %v7607_v16, %v2934_v9 }
0x24c9   :  { %6341 = vtanh.f32 %v2935_v8 }
0x24cf   :  { %v6342_v47 = vpop.eup %6341 }
0x24d0   :  { %2965 = vrot.lane.b32.xlu2 %v6342_v47, %s6611_s1  ;;  %v2948_v54 = vmul.f32 0.5, %v6342_v47 }
0x24d2   :  { %v2952_v62 = vadd.f32 0.5, %v2948_v54 }
0x24e6   :  { %v2937_v10 = vpop.f32.mrf.mxu0 }
0x24e7   :  { %v2938_v22 = vadd.f32 %v7607_v16, %v2937_v10 }
0x24e9   :  { %6343 = vtanh.f32 %v2938_v22 }
0x24ef   :  { %v6344_v30 = vpop.eup %6343 }
0x24f0   :  { %2967 = vrot.lane.b32.xlu0 %v6344_v30, %s6611_s1  ;;  %v2949_v39 = vmul.f32 0.5, %v6344_v30  ;;  %v2956_v30 = vmul.f32 %v2952_v62, %v7682_v52 }
0x24f2   :  { %v2953_v51 = vadd.f32 0.5, %v2949_v39 }
0x2506   :  { %v2940_v21 = vpop.f32.mrf.mxu0 }
0x2507   :  { %v2941_v55 = vadd.f32 %v7607_v16, %v2940_v21 }
0x2509   :  { %6345 = vtanh.f32 %v2941_v55 }
0x250f   :  { %v6346_v3 = vpop.eup %6345 }
0x2510   :  { %2969 = vrot.lane.b32.xlu1 %v6346_v3, %s6611_s1  ;;  %v2950_v4 = vmul.f32 0.5, %v6346_v3  ;;  %v2957_v3 = vmul.f32 %v2953_v51, %v7688_v40 }
0x2512   :  { %v2954_v10 = vadd.f32 0.5, %v2950_v4 }
0x2514   :  { %v2958_v54 = vmul.f32 %v2954_v10, %v7693_v48 }
0x2522   :  { %v2964_v57 = vpop.permute.xlu1 %2963 }
0x2523   :  { %v2975_v43 = vmul.f32 %v2964_v57, %v2951_v29 }
0x2525   :  { %2983 = vrot.lane.b32.xlu2 %v2975_v43, %s6612_s22 }
0x252a   :  { %v2966_v53 = vpop.permute.xlu2 %2965 }
0x252b   :  { %v2976_v56 = vmul.f32 %v2966_v53, %v2952_v62 }
0x252d   :  { %2985 = vrot.lane.b32.xlu0 %v2976_v56, %s6612_s22 }
0x2562   :  { %v2968_v0 = vpop.permute.xlu0 %2967 }
0x2563   :  { %v2977_v15 = vmul.f32 %v2968_v0, %v2953_v51 }
0x2565   :  { %2987 = vrot.lane.b32.xlu1 %v2977_v15, %s6612_s22 }
0x257f   :  { %v2984_v9 = vpop.permute.xlu2 %2983 }
0x2580   :  { %v7733_v8 = vadd.f32 %v2984_v9, %v2955_v6 }
0x2582   :  { %6347 = vtanh.f32 %v7733_v8  ;;  %v2970_v47 = vpop.permute.xlu1 %2969 }
0x2583   :  { %v2978_v22 = vmul.f32 %v2970_v47, %v2954_v10 }
0x2585   :  { %2989 = vrot.lane.b32.xlu2 %v2978_v22, %s6612_s22 }
0x2588   :  { %v6348_v21 = vpop.eup %6347 }
0x2589   :  { %3007 = vrot.lane.b32.xlu0 %v6348_v21, %s6611_s1 }
0x259f   :  { %v2986_v55 = vpop.permute.xlu0 %2985 }
0x25a0   :  { %v7739_v42 = vadd.f32 %v2986_v55, %v2956_v30 }
0x25a2   :  { %6349 = vtanh.f32 %v7739_v42 }
0x25a8   :  { %v6350_v33 = vpop.eup %6349 }
0x25a9   :  { %3009 = vrot.lane.b32.xlu1 %v6350_v33, %s6611_s1 }
0x25d7   :  { %v2988_v57 = vpop.permute.xlu1 %2987 }
0x25d8   :  { %v7744_v43 = vadd.f32 %v2988_v57, %v2957_v3 }
0x25da   :  { %6351 = vtanh.f32 %v7744_v43 }
0x25df   :  { %v2990_v53 = vpop.permute.xlu2 %2989 }
0x25e0   :  { %v6352_v56 = vpop.eup %6351  ;;  %v7748_v52 = vadd.f32 %v2990_v53, %v2958_v54 }
0x25e1   :  { %3011 = vrot.lane.b32.xlu2 %v6352_v56, %s6611_s1 }
0x25e2   :  { %6353 = vtanh.f32 %v7748_v52 }
0x25e8   :  { %v6354_v39 = vpop.eup %6353 }
0x25e9   :  { %3013 = vrot.lane.b32.xlu0 %v6354_v39, %s6611_s1 }
0x25fb   :  { %v3008_v0 = vpop.permute.xlu0 %3007 }
0x25fc   :  { %v7753_v40 = vmul.f32 %v3008_v0, %v2951_v29 }
0x25fe   :  { %3088 = vrot.lane.b32.xlu1 %v7753_v40, %s6612_s22 }
0x261b   :  { %v3010_v15 = vpop.permute.xlu1 %3009 }
0x261c   :  { %v7757_v4 = vmul.f32 %v3010_v15, %v2952_v62 }
0x261e   :  { %3090 = vrot.lane.b32.xlu2 %v7757_v4, %s6612_s22 }
0x263b   :  { %v3012_v48 = vpop.permute.xlu2 %3011 }
0x263c   :  { %v7761_v6 = vmul.f32 %v3012_v48, %v2953_v51 }
0x263e   :  { %3092 = vrot.lane.b32.xlu0 %v7761_v6, %s6612_s22 }
0x265b   :  { %v3014_v9 = vpop.permute.xlu0 %3013 }
0x265c   :  { %v7765_v47 = vmul.f32 %v3014_v9, %v2954_v10 }
0x265e   :  { %3094 = vrot.lane.b32.xlu1 %v7765_v47, %s6612_s22 }
0x2670   :  { %v3089_v29 = vpop.permute.xlu1 %3088 }
0x2671   :  { %6011 = vmatmul.msk.f32.vlgmr.msra.gmra.mxu1 %vm320_vm0, %v3089_v29 }
0x2672   :  { %4636 = vmatpush.msra.mxu1 %v7580_v12 }
0x2674   :  { %4637 = vmatpush.msra.mxu1 %v7586_v7 }
0x2676   :  { %4638 = vmatpush.msra.mxu1 %v7592_v25 }
0x2678   :  { %v3091_v62 = vpop.permute.xlu2 %3090  ;;  %4639 = vmatpush.msra.mxu1 %v7598_v5 }
0x2679   :  { %6012 = vmatmul.msk.f32.gmra.mxu1 %vm320_vm0, %v3091_v62 }
0x26b0   :  { %v3093_v51 = vpop.permute.xlu0 %3092 }
0x26b1   :  { %6013 = vmatmul.msk.f32.gmra.mxu1 %vm320_vm0, %v3093_v51 }
0x26d0   :  { %v3095_v10 = vpop.permute.xlu1 %3094 }
0x26d1   :  { %6014 = vmatmul.msk.f32.gmra.mxu1 %vm320_vm0, %v3095_v10 }
0x26ee   :  { %v3121_v22 = vpop.f32.mrf.mxu1 }
0x26ef   :  { %v3122_v21 = vadd.f32 %v7607_v16, %v3121_v22 }
0x26f1   :  { %6355 = vtanh.f32 %v3122_v21 }
0x26f6   :  { %v3124_v30 = vpop.f32.mrf.mxu1 }
0x26f7   :  { %v6356_v55 = vpop.eup %6355  ;;  %v3125_v33 = vadd.f32 %v7607_v16, %v3124_v30 }
0x26f8   :  { %3153 = vrot.lane.b32.xlu2 %v6356_v55, %s6611_s1  ;;  %v3137_v56 = vmul.f32 0.5, %v6356_v55 }
0x26f9   :  { %6357 = vtanh.f32 %v3125_v33 }
0x26fa   :  { %v3141_v15 = vadd.f32 0.5, %v3137_v56 }
0x26ff   :  { %v6358_v3 = vpop.eup %6357 }
0x2700   :  { %3155 = vrot.lane.b32.xlu0 %v6358_v3, %s6611_s1  ;;  %v3138_v62 = vmul.f32 0.5, %v6358_v3 }
0x2702   :  { %v3142_v51 = vadd.f32 0.5, %v3138_v62 }
0x272e   :  { %v3127_v57 = vpop.f32.mrf.mxu1 }
0x272f   :  { %v3128_v54 = vadd.f32 %v7607_v16, %v3127_v57 }
0x2731   :  { %6359 = vtanh.f32 %v3128_v54 }
0x2737   :  { %v6360_v53 = vpop.eup %6359 }
0x2738   :  { %3157 = vrot.lane.b32.xlu1 %v6360_v53, %s6611_s1  ;;  %v3139_v21 = vmul.f32 0.5, %v6360_v53  ;;  %v3146_v53 = vmul.f32 %v3142_v51, %v7739_v42 }
0x273a   :  { %v3143_v30 = vadd.f32 0.5, %v3139_v21 }
0x274e   :  { %v3130_v39 = vpop.f32.mrf.mxu1 }
0x274f   :  { %v3131_v0 = vadd.f32 %v7607_v16, %v3130_v39 }
0x2751   :  { %6361 = vtanh.f32 %v3131_v0  ;;  %v3145_v0 = vmul.f32 %v3141_v15, %v7733_v8  ;;  %v3147_v8 = vmul.f32 %v3143_v30, %v7744_v43 }
0x2752   :  { %v3154_v48 = vpop.permute.xlu2 %3153 }
0x2753   :  { %v3165_v9 = vmul.f32 %v3154_v48, %v3141_v15 }
0x2755   :  { %3173 = vrot.lane.b32.xlu0 %v3165_v9, %s6612_s22 }
0x2757   :  { %v6362_v29 = vpop.eup %6361 }
0x2758   :  { %3159 = vrot.lane.b32.xlu2 %v6362_v29, %s6611_s1  ;;  %v3140_v57 = vmul.f32 0.5, %v6362_v29 }
0x275a   :  { %v3144_v54 = vadd.f32 0.5, %v3140_v57 }
0x275c   :  { %v3148_v42 = vmul.f32 %v3144_v54, %v7748_v52 }
0x2772   :  { %v3156_v10 = vpop.permute.xlu0 %3155 }
0x2773   :  { %v3166_v22 = vmul.f32 %v3156_v10, %v3142_v51 }
0x2775   :  { %3175 = vrot.lane.b32.xlu1 %v3166_v22, %s6612_s22 }
0x27aa   :  { %v3158_v55 = vpop.permute.xlu1 %3157 }
0x27ab   :  { %v3167_v33 = vmul.f32 %v3158_v55, %v3143_v30 }
0x27ad   :  { %3177 = vrot.lane.b32.xlu2 %v3167_v33, %s6612_s22 }
0x27b2   :  { %v3160_v56 = vpop.permute.xlu2 %3159 }
0x27b3   :  { %v3168_v39 = vmul.f32 %v3160_v56, %v3144_v54 }
0x27b5   :  { %3179 = vrot.lane.b32.xlu0 %v3168_v39, %s6612_s22 }
0x27c7   :  { %v3174_v3 = vpop.permute.xlu0 %3173 }
0x27c8   :  { %v7790_v48 = vadd.f32 %v3174_v3, %v3145_v0 }
0x27ca   :  { %6363 = vtanh.f32 %v7790_v48 }
0x27d0   :  { %v6364_v9 = vpop.eup %6363 }
0x27d1   :  { %3197 = vrot.lane.b32.xlu1 %v6364_v9, %s6611_s1 }
0x27e7   :  { %v3176_v62 = vpop.permute.xlu1 %3175 }
0x27e8   :  { %v7795_v10 = vadd.f32 %v3176_v62, %v3146_v53 }
0x27ea   :  { %6365 = vtanh.f32 %v7795_v10 }
0x27f0   :  { %v6366_v29 = vpop.eup %6365 }
0x27f1   :  { %3199 = vrot.lane.b32.xlu2 %v6366_v29, %s6611_s1 }
0x2807   :  { %v3178_v22 = vpop.permute.xlu2 %3177 }
0x2808   :  { %v7800_v21 = vadd.f32 %v3178_v22, %v3147_v8 }
0x280a   :  { %6367 = vtanh.f32 %v7800_v21 }
0x2810   :  { %v6368_v55 = vpop.eup %6367 }
0x2811   :  { %3201 = vrot.lane.b32.xlu0 %v6368_v55, %s6611_s1 }
0x2827   :  { %v3180_v33 = vpop.permute.xlu0 %3179 }
0x2828   :  { %v7805_v57 = vadd.f32 %v3180_v33, %v3148_v42 }
0x282a   :  { %6369 = vtanh.f32 %v7805_v57 }
0x2830   :  { %v6370_v56 = vpop.eup %6369 }
0x2831   :  { %3203 = vrot.lane.b32.xlu1 %v6370_v56, %s6611_s1 }
0x2843   :  { %v3198_v39 = vpop.permute.xlu1 %3197 }
0x2844   :  { %v7809_v43 = vmul.f32 %v3198_v39, %v3141_v15 }
0x2846   :  { %9772 = vst [vmem:[#allocation3_spill] sm:$0xff] %v7809_v43  ;;  %3278 = vrot.lane.b32.xlu2 %v7809_v43, %s6612_s22 }
0x284b   :  { %v3200_v0 = vpop.permute.xlu2 %3199 }
0x284c   :  { %v7813_v3 = vmul.f32 %v3200_v0, %v3142_v51 }
0x284e   :  { %9773 = vst [vmem:[#allocation4_spill] sm:$0xff] %v7813_v3  ;;  %3280 = vrot.lane.b32.xlu0 %v7813_v3, %s6612_s22 }
0x2883   :  { %v3202_v52 = vpop.permute.xlu0 %3201 }
0x2884   :  { %v7817_v9 = vmul.f32 %v3202_v52, %v3143_v30 }
0x2886   :  { %3282 = vrot.lane.b32.xlu1 %v7817_v9, %s6612_s22 }
0x28a0   :  { %v3279_v53 = vpop.permute.xlu2 %3278 }
0x28a1   :  { %6015 = vmatmul.msk.f32.vlgmr.msra.gmra.mxu2 %vm320_vm0, %v3279_v53 }
0x28a2   :  { %4826 = vmatpush.msra.mxu2 %v7580_v12 }
0x28a3   :  { %v3204_v15 = vpop.permute.xlu1 %3203 }
0x28a4   :  { %v7823_v62 = vmul.f32 %v3204_v15, %v3144_v54  ;;  %4827 = vmatpush.msra.mxu2 %v7586_v7 }
0x28a6   :  { %9774 = vst [vmem:[#allocation5_spill] sm:$0xff] %v7823_v62  ;;  %3284 = vrot.lane.b32.xlu2 %v7823_v62, %s6612_s22  ;;  %4828 = vmatpush.msra.mxu2 %v7592_v25 }
0x28a8   :  { %4829 = vmatpush.msra.mxu2 %v7598_v5 }
0x28c0   :  { %v3281_v51 = vpop.permute.xlu0 %3280 }
0x28c1   :  { %6016 = vmatmul.msk.f32.gmra.mxu2 %vm320_vm0, %v3281_v51 }
0x28f8   :  { %v3283_v30 = vpop.permute.xlu1 %3282 }
0x28f9   :  { %6017 = vmatmul.msk.f32.gmra.mxu2 %vm320_vm0, %v3283_v30 }
0x2900   :  { %v3285_v29 = vpop.permute.xlu2 %3284 }
0x2901   :  { %6018 = vmatmul.msk.f32.gmra.mxu2 %vm320_vm0, %v3285_v29 }
0x2924   :  { %v3311_v54 = vpop.f32.mrf.mxu2 }
0x2925   :  { %v3312_v8 = vadd.f32 %v7607_v16, %v3311_v54 }
0x2927   :  { %6371 = vtanh.f32 %v3312_v8 }
0x292d   :  { %v6372_v22 = vpop.eup %6371 }
0x292e   :  { %3343 = vrot.lane.b32.xlu0 %v6372_v22, %s6611_s1  ;;  %v3327_v51 = vmul.f32 0.5, %v6372_v22 }
0x2930   :  { %v3331_v30 = vadd.f32 0.5, %v3327_v51 }
0x2944   :  { %v3314_v55 = vpop.f32.mrf.mxu2 }
0x2945   :  { %v3315_v42 = vadd.f32 %v7607_v16, %v3314_v55 }
0x2947   :  { %6373 = vtanh.f32 %v3315_v42 }
0x294d   :  { %v6374_v33 = vpop.eup %6373 }
0x294e   :  { %3345 = vrot.lane.b32.xlu1 %v6374_v33, %s6611_s1  ;;  %v3328_v8 = vmul.f32 0.5, %v6374_v33 }
0x2950   :  { %v3332_v55 = vadd.f32 0.5, %v3328_v8 }
0x297c   :  { %v3317_v56 = vpop.f32.mrf.mxu2 }
0x297d   :  { %v3318_v39 = vadd.f32 %v7607_v16, %v3317_v56 }
0x297f   :  { %6375 = vtanh.f32 %v3318_v39 }
0x2984   :  { %v3320_v0 = vpop.f32.mrf.mxu2 }
0x2985   :  { %v6376_v52 = vpop.eup %6375  ;;  %v3321_v53 = vadd.f32 %v7607_v16, %v3320_v0 }
0x2986   :  { %3347 = vrot.lane.b32.xlu2 %v6376_v52, %s6611_s1  ;;  %v3329_v39 = vmul.f32 0.5, %v6376_v52  ;;  %v3336_v52 = vmul.f32 %v3332_v55, %v7795_v10 }
0x2987   :  { %6377 = vtanh.f32 %v3321_v53 }
0x2988   :  { %v3333_v0 = vadd.f32 0.5, %v3329_v39 }
0x298d   :  { %v6378_v15 = vpop.eup %6377 }
0x298e   :  { %3349 = vrot.lane.b32.xlu0 %v6378_v15, %s6611_s1  ;;  %v3330_v53 = vmul.f32 0.5, %v6378_v15 }
0x2990   :  { %v3334_v43 = vadd.f32 0.5, %v3330_v53 }
0x2992   :  { %v3338_v10 = vmul.f32 %v3334_v43, %v7805_v57 }
0x29a0   :  { %v3344_v29 = vpop.permute.xlu0 %3343 }
0x29a1   :  { %v3355_v54 = vmul.f32 %v3344_v29, %v3331_v30  ;;  %v3335_v29 = vmul.f32 %v3331_v30, %v7790_v48  ;;  %v3337_v48 = vmul.f32 %v3333_v0, %v7800_v21 }
0x29a3   :  { %3363 = vrot.lane.b32.xlu1 %v3355_v54, %s6612_s22 }
0x29c0   :  { %v3346_v42 = vpop.permute.xlu1 %3345 }
0x29c1   :  { %v3356_v56 = vmul.f32 %v3346_v42, %v3332_v55 }
0x29c3   :  { %3365 = vrot.lane.b32.xlu2 %v3356_v56, %s6612_s22 }
0x29e0   :  { %v3348_v3 = vpop.permute.xlu2 %3347 }
0x29e1   :  { %v3357_v62 = vmul.f32 %v3348_v3, %v3333_v0 }
0x29e3   :  { %3367 = vrot.lane.b32.xlu0 %v3357_v62, %s6612_s22 }
0x2a00   :  { %v3350_v22 = vpop.permute.xlu0 %3349 }
0x2a01   :  { %v3358_v51 = vmul.f32 %v3350_v22, %v3334_v43 }
0x2a03   :  { %3369 = vrot.lane.b32.xlu1 %v3358_v51, %s6612_s22 }
0x2a15   :  { %v3364_v33 = vpop.permute.xlu1 %3363 }
0x2a16   :  { %v7846_v54 = vadd.f32 %v3364_v33, %v3335_v29 }
0x2a18   :  { %6379 = vtanh.f32 %v7846_v54 }
0x2a1d   :  { %v3366_v8 = vpop.permute.xlu2 %3365 }
0x2a1e   :  { %v6380_v42 = vpop.eup %6379  ;;  %v7850_v3 = vadd.f32 %v3366_v8, %v3336_v52 }
0x2a1f   :  { %3387 = vrot.lane.b32.xlu2 %v6380_v42, %s6611_s1 }
0x2a20   :  { %6381 = vtanh.f32 %v7850_v3 }
0x2a26   :  { %v6382_v62 = vpop.eup %6381 }
0x2a27   :  { %3389 = vrot.lane.b32.xlu0 %v6382_v62, %s6611_s1 }
0x2a55   :  { %v3368_v15 = vpop.permute.xlu0 %3367 }
0x2a56   :  { %v7856_v56 = vadd.f32 %v3368_v15, %v3337_v48 }
0x2a58   :  { %6383 = vtanh.f32 %v7856_v56 }
0x2a5e   :  { %v6384_v39 = vpop.eup %6383 }
0x2a5f   :  { %3391 = vrot.lane.b32.xlu1 %v6384_v39, %s6611_s1 }
0x2a75   :  { %v3370_v53 = vpop.permute.xlu1 %3369 }
0x2a76   :  { %v7861_v22 = vadd.f32 %v3370_v53, %v3338_v10 }
0x2a78   :  { %6385 = vtanh.f32 %v7861_v22 }
0x2a79   :  { %v3388_v51 = vpop.permute.xlu2 %3387 }
0x2a7a   :  { %v7864_v29 = vmul.f32 %v3388_v51, %v3331_v30 }
0x2a7c   :  { %9775 = vst [vmem:[#allocation6_spill] sm:$0xff] %v7864_v29  ;;  %3468 = vrot.lane.b32.xlu0 %v7864_v29, %s6612_s22 }
0x2a7e   :  { %v6386_v21 = vpop.eup %6385 }
0x2a7f   :  { %3393 = vrot.lane.b32.xlu2 %v6386_v21, %s6611_s1 }
0x2a99   :  { %v3390_v33 = vpop.permute.xlu0 %3389 }
0x2a9a   :  { %v7869_v52 = vmul.f32 %v3390_v33, %v3332_v55 }
0x2a9c   :  { %9776 = vst [vmem:[#allocation7_spill] sm:$0xff] %v7869_v52  ;;  %3470 = vrot.lane.b32.xlu1 %v7869_v52, %s6612_s22 }
0x2ad1   :  { %v3392_v57 = vpop.permute.xlu1 %3391 }
0x2ad2   :  { %v7873_v8 = vmul.f32 %v3392_v57, %v3333_v0 }
0x2ad4   :  { %9777 = vst [vmem:[#allocation8_spill] sm:$0xff] %v7873_v8  ;;  %3472 = vrot.lane.b32.xlu2 %v7873_v8, %s6612_s22 }
0x2ad9   :  { %v3394_v30 = vpop.permute.xlu2 %3393 }
0x2ada   :  { %v7877_v42 = vmul.f32 %v3394_v30, %v3334_v43 }
0x2adc   :  { %9778 = vst [vmem:[#allocation9_spill] sm:$0xff] %v7877_v42  ;;  %3474 = vrot.lane.b32.xlu0 %v7877_v42, %s6612_s22 }
0x2aee   :  { %v3469_v62 = vpop.permute.xlu0 %3468 }
0x2aef   :  { %6019 = vmatmul.msk.f32.vlgmr.msra.gmra.mxu3 %vm320_vm0, %v3469_v62 }
0x2af0   :  { %5016 = vmatpush.msra.mxu3 %v7580_v12 }
0x2af2   :  { %5017 = vmatpush.msra.mxu3 %v7586_v7 }
0x2af4   :  { %5018 = vmatpush.msra.mxu3 %v7592_v25 }
0x2af6   :  { %5019 = vmatpush.msra.mxu3 %v7598_v5 }
0x2b0e   :  { %v3471_v55 = vpop.permute.xlu1 %3470 }
0x2b0f   :  { %6020 = vmatmul.msk.f32.gmra.mxu3 %vm320_vm0, %v3471_v55 }
0x2b2e   :  { %v3473_v0 = vpop.permute.xlu2 %3472 }
0x2b2f   :  { %6021 = vmatmul.msk.f32.gmra.mxu3 %vm320_vm0, %v3473_v0 }
0x2b4e   :  { %v3475_v43 = vpop.permute.xlu0 %3474 }
0x2b4f   :  { %6022 = vmatmul.msk.f32.gmra.mxu3 %vm320_vm0, %v3475_v43 }
0x2b72   :  { %v3501_v48 = vpop.f32.mrf.mxu3 }
0x2b73   :  { %v3502_v15 = vadd.f32 %v7607_v16, %v3501_v48 }
0x2b75   :  { %6387 = vtanh.f32 %v3502_v15 }
0x2b7b   :  { %v6388_v12 = vpop.eup %6387 }
0x2b7c   :  { %3533 = vrot.lane.b32.xlu1 %v6388_v12, %s6611_s1  ;;  %v3517_v57 = vmul.f32 0.5, %v6388_v12 }
0x2b7e   :  { %v3521_v30 = vadd.f32 0.5, %v3517_v57 }
0x2b80   :  { %v3525_v12 = vmul.f32 %v3521_v30, %v7846_v54 }
0x2b92   :  { %v3504_v7 = vpop.f32.mrf.mxu3 }
0x2b93   :  { %v3505_v25 = vadd.f32 %v7607_v16, %v3504_v7 }
0x2b95   :  { %6389 = vtanh.f32 %v3505_v25 }
0x2b9b   :  { %v6390_v5 = vpop.eup %6389 }
0x2b9c   :  { %3535 = vrot.lane.b32.xlu2 %v6390_v5, %s6611_s1  ;;  %v3518_v0 = vmul.f32 0.5, %v6390_v5 }
0x2b9e   :  { %v3522_v43 = vadd.f32 0.5, %v3518_v0 }
0x2bb2   :  { %v3507_v39 = vpop.f32.mrf.mxu3 }
0x2bb3   :  { %v3508_v10 = vadd.f32 %v7607_v16, %v3507_v39 }
0x2bb5   :  { %6391 = vtanh.f32 %v3508_v10 }
0x2bbb   :  { %v6392_v53 = vpop.eup %6391 }
0x2bbc   :  { %3537 = vrot.lane.b32.xlu0 %v6392_v53, %s6611_s1  ;;  %v3519_v7 = vmul.f32 0.5, %v6392_v53  ;;  %v3526_v53 = vmul.f32 %v3522_v43, %v7850_v3 }
0x2bbe   :  { %v3523_v25 = vadd.f32 0.5, %v3519_v7 }
0x2bd2   :  { %v3510_v51 = vpop.f32.mrf.mxu3 }
0x2bd3   :  { %v3511_v21 = vadd.f32 %v7607_v16, %v3510_v51 }
0x2bd5   :  { %6393 = vtanh.f32 %v3511_v21 }
0x2bdb   :  { %v6394_v33 = vpop.eup %6393 }
0x2bdc   :  { %3539 = vrot.lane.b32.xlu1 %v6394_v33, %s6611_s1  ;;  %v3520_v10 = vmul.f32 0.5, %v6394_v33  ;;  %v3527_v33 = vmul.f32 %v3523_v25, %v7856_v56 }
0x2bde   :  { %v3524_v57 = vadd.f32 0.5, %v3520_v10 }
0x2bee   :  { %v3534_v62 = vpop.permute.xlu1 %3533 }
0x2bef   :  { %v3545_v55 = vmul.f32 %v3534_v62, %v3521_v30 }
0x2bf1   :  { %3553 = vrot.lane.b32.xlu2 %v3545_v55, %s6612_s22 }
0x2bf6   :  { %v3536_v48 = vpop.permute.xlu2 %3535 }
0x2bf7   :  { %v3546_v15 = vmul.f32 %v3536_v48, %v3522_v43 }
0x2bf9   :  { %3555 = vrot.lane.b32.xlu0 %v3546_v15, %s6612_s22 }
0x2c2e   :  { %v3538_v39 = vpop.permute.xlu0 %3537 }
0x2c2f   :  { %v3547_v16 = vmul.f32 %v3538_v39, %v3523_v25  ;;  %v3528_v39 = vmul.f32 %v3524_v57, %v7861_v22 }
0x2c31   :  { %3557 = vrot.lane.b32.xlu1 %v3547_v16, %s6612_s22 }
0x2c4b   :  { %v3554_v51 = vpop.permute.xlu2 %3553 }
0x2c4c   :  { %v7901_v21 = vadd.f32 %v3554_v51, %v3525_v12 }
0x2c4e   :  { %6395 = vtanh.f32 %v7901_v21  ;;  %v3540_v5 = vpop.permute.xlu1 %3539 }
0x2c4f   :  { %v3548_v62 = vmul.f32 %v3540_v5, %v3524_v57 }
0x2c51   :  { %3559 = vrot.lane.b32.xlu2 %v3548_v62, %s6612_s22 }
0x2c54   :  { %v6396_v55 = vpop.eup %6395 }
0x2c55   :  { %3577 = vrot.lane.b32.xlu0 %v6396_v55, %s6611_s1 }
0x2c6b   :  { %v3556_v0 = vpop.permute.xlu0 %3555 }
0x2c6c   :  { %v7907_v48 = vadd.f32 %v3556_v0, %v3526_v53 }
0x2c6e   :  { %6397 = vtanh.f32 %v7907_v48 }
0x2c74   :  { %v6398_v54 = vpop.eup %6397 }
0x2c75   :  { %3579 = vrot.lane.b32.xlu1 %v6398_v54, %s6611_s1 }
0x2ca3   :  { %v3558_v15 = vpop.permute.xlu1 %3557 }
0x2ca4   :  { %v7912_v7 = vadd.f32 %v3558_v15, %v3527_v33  ;;  %v7959_v33 = vld [vmem:[%s9745_s6] sm:$0xff] }
0x2ca6   :  { %6399 = vtanh.f32 %v7912_v7 }
0x2cab   :  { %v3560_v16 = vpop.permute.xlu2 %3559 }
0x2cac   :  { %v6400_v10 = vpop.eup %6399  ;;  %v7916_v3 = vadd.f32 %v3560_v16, %v3528_v39 }
0x2cad   :  { %3581 = vrot.lane.b32.xlu2 %v6400_v10, %s6611_s1  ;;  %v7968_v10 = vld [vmem:[%s9746_s7] ss:$0 sm:$0xff] }
0x2cae   :  { %6401 = vtanh.f32 %v7916_v3 }
0x2cb4   :  { %v6402_v12 = vpop.eup %6401 }
0x2cb5   :  { %3583 = vrot.lane.b32.xlu0 %v6402_v12, %s6611_s1 }
0x2cc7   :  { %v3578_v51 = vpop.permute.xlu0 %3577 }
0x2cc8   :  { %v7921_v56 = vmul.f32 %v3578_v51, %v3521_v30 }
0x2cca   :  { %9779 = vst [vmem:[#allocation10_spill] sm:$0xff] %v7921_v56  ;;  %3658 = vrot.lane.b32.xlu1 %v7921_v56, %s6612_s22 }
0x2ce7   :  { %v3580_v5 = vpop.permute.xlu1 %3579 }
0x2ce8   :  { %v7925_v62 = vmul.f32 %v3580_v5, %v3522_v43  ;;  %v7941_v43 = vld [vmem:[%s9745_s6 + $0x18] sm:$0xff] }
0x2cea   :  { %9780 = vst [vmem:[#allocation11_spill] sm:$0xff] %v7925_v62  ;;  %3660 = vrot.lane.b32.xlu2 %v7925_v62, %s6612_s22 }
0x2d07   :  { %v3582_v22 = vpop.permute.xlu2 %3581 }
0x2d08   :  { %v7929_v55 = vmul.f32 %v3582_v22, %v3523_v25  ;;  %v7947_v25 = vld [vmem:[%s9745_s6 + $0x10] sm:$0xff] }
0x2d0a   :  { %9781 = vst [vmem:[#allocation12_spill] sm:$0xff] %v7929_v55  ;;  %3662 = vrot.lane.b32.xlu0 %v7929_v55, %s6612_s22 }
0x2d27   :  { %v3584_v53 = vpop.permute.xlu0 %3583 }
0x2d28   :  { %v7933_v0 = vmul.f32 %v3584_v53, %v3524_v57  ;;  %v7953_v57 = vld [vmem:[%s9745_s6 + $0x8] sm:$0xff] }
0x2d2a   :  { %9782 = vst [vmem:[#allocation13_spill] sm:$0xff] %v7933_v0  ;;  %3664 = vrot.lane.b32.xlu1 %v7933_v0, %s6612_s22 }
0x2d3c   :  { %v3659_v30 = vpop.permute.xlu1 %3658 }
0x2d3d   :  { %6023 = vmatmul.msk.f32.vlgmr.msrb.gmra.mxu0 %vm320_vm0, %v3659_v30 }
0x2d3e   :  { %5206 = vmatpush.msrb.mxu0 %v7941_v43 }
0x2d40   :  { %5207 = vmatpush.msrb.mxu0 %v7947_v25 }
0x2d42   :  { %5208 = vmatpush.msrb.mxu0 %v7953_v57 }
0x2d44   :  { %v3661_v54 = vpop.permute.xlu2 %3660  ;;  %5209 = vmatpush.msrb.mxu0 %v7959_v33 }
0x2d45   :  { %6024 = vmatmul.msk.f32.gmra.mxu0 %vm320_vm0, %v3661_v54 }
0x2d7c   :  { %v3663_v15 = vpop.permute.xlu0 %3662 }
0x2d7d   :  { %6025 = vmatmul.msk.f32.gmra.mxu0 %vm320_vm0, %v3663_v15 }
0x2d9c   :  { %v3665_v39 = vpop.permute.xlu1 %3664 }
0x2d9d   :  { %6026 = vmatmul.msk.f32.gmra.mxu0 %vm320_vm0, %v3665_v39 }
0x2dba   :  { %v3691_v16 = vpop.f32.mrf.mxu0 }
0x2dbb   :  { %v3692_v12 = vadd.f32 %v7968_v10, %v3691_v16 }
0x2dbd   :  { %6403 = vtanh.f32 %v3692_v12 }
0x2dc2   :  { %v3694_v51 = vpop.f32.mrf.mxu0 }
0x2dc3   :  { %v6404_v5 = vpop.eup %6403  ;;  %v3695_v22 = vadd.f32 %v7968_v10, %v3694_v51 }
0x2dc4   :  { %3723 = vrot.lane.b32.xlu2 %v6404_v5, %s6611_s1  ;;  %v3707_v39 = vmul.f32 0.5, %v6404_v5 }
0x2dc5   :  { %6405 = vtanh.f32 %v3695_v22 }
0x2dc6   :  { %v3711_v62 = vadd.f32 0.5, %v3707_v39 }
0x2dcb   :  { %v6406_v53 = vpop.eup %6405 }
0x2dcc   :  { %3725 = vrot.lane.b32.xlu0 %v6406_v53, %s6611_s1  ;;  %v3708_v0 = vmul.f32 0.5, %v6406_v53 }
0x2dce   :  { %v3712_v55 = vadd.f32 0.5, %v3708_v0 }
0x2dfa   :  { %v3697_v30 = vpop.f32.mrf.mxu0 }
0x2dfb   :  { %v3698_v54 = vadd.f32 %v7968_v10, %v3697_v30 }
0x2dfd   :  { %6407 = vtanh.f32 %v3698_v54 }
0x2e03   :  { %v6408_v15 = vpop.eup %6407 }
0x2e04   :  { %3727 = vrot.lane.b32.xlu1 %v6408_v15, %s6611_s1  ;;  %v3709_v52 = vmul.f32 0.5, %v6408_v15 }
0x2e06   :  { %v3713_v5 = vadd.f32 0.5, %v3709_v52  ;;  %v3716_v52 = vmul.f32 %v3712_v55, %v7907_v48 }
0x2e1a   :  { %v3700_v16 = vpop.f32.mrf.mxu0 }
0x2e1b   :  { %v3701_v12 = vadd.f32 %v7968_v10, %v3700_v16 }
0x2e1d   :  { %6409 = vtanh.f32 %v3701_v12 }
0x2e1e   :  { %v3724_v51 = vpop.permute.xlu2 %3723 }
0x2e1f   :  { %v3735_v56 = vmul.f32 %v3724_v51, %v3711_v62 }
0x2e21   :  { %3743 = vrot.lane.b32.xlu0 %v3735_v56, %s6612_s22  ;;  %v3715_v56 = vmul.f32 %v3711_v62, %v7901_v21  ;;  %v3717_v21 = vmul.f32 %v3713_v5, %v7912_v7 }
0x2e23   :  { %v6410_v22 = vpop.eup %6409 }
0x2e24   :  { %3729 = vrot.lane.b32.xlu2 %v6410_v22, %s6611_s1  ;;  %v3710_v39 = vmul.f32 0.5, %v6410_v22 }
0x2e26   :  { %v3714_v16 = vadd.f32 0.5, %v3710_v39 }
0x2e28   :  { %v3718_v48 = vmul.f32 %v3714_v16, %v7916_v3 }
0x2e3e   :  { %v3726_v30 = vpop.permute.xlu0 %3725 }
0x2e3f   :  { %v3736_v54 = vmul.f32 %v3726_v30, %v3712_v55 }
0x2e41   :  { %3745 = vrot.lane.b32.xlu1 %v3736_v54, %s6612_s22 }
0x2e76   :  { %v3728_v8 = vpop.permute.xlu1 %3727 }
0x2e77   :  { %v3737_v42 = vmul.f32 %v3728_v8, %v3713_v5 }
0x2e79   :  { %3747 = vrot.lane.b32.xlu2 %v3737_v42, %s6612_s22 }
0x2e7e   :  { %v3730_v12 = vpop.permute.xlu2 %3729 }
0x2e7f   :  { %v3738_v51 = vmul.f32 %v3730_v12, %v3714_v16 }
0x2e81   :  { %3749 = vrot.lane.b32.xlu0 %v3738_v51, %s6612_s22 }
0x2e93   :  { %v3744_v53 = vpop.permute.xlu0 %3743 }
0x2e94   :  { %v7983_v0 = vadd.f32 %v3744_v53, %v3715_v56 }
0x2e96   :  { %6411 = vtanh.f32 %v7983_v0 }
0x2e9c   :  { %v6412_v30 = vpop.eup %6411 }
0x2e9d   :  { %3767 = vrot.lane.b32.xlu1 %v6412_v30, %s6611_s1 }
0x2eb3   :  { %v3746_v8 = vpop.permute.xlu1 %3745 }
0x2eb4   :  { %v7988_v42 = vadd.f32 %v3746_v8, %v3716_v52 }
0x2eb6   :  { %6413 = vtanh.f32 %v7988_v42 }
0x2ebc   :  { %v6414_v15 = vpop.eup %6413 }
0x2ebd   :  { %3769 = vrot.lane.b32.xlu2 %v6414_v15, %s6611_s1 }
0x2ed3   :  { %v3748_v22 = vpop.permute.xlu2 %3747 }
0x2ed4   :  { %v7993_v54 = vadd.f32 %v3748_v22, %v3717_v21 }
0x2ed6   :  { %6415 = vtanh.f32 %v7993_v54 }
0x2edc   :  { %v6416_v39 = vpop.eup %6415 }
0x2edd   :  { %3771 = vrot.lane.b32.xlu0 %v6416_v39, %s6611_s1 }
0x2ef3   :  { %v3750_v12 = vpop.permute.xlu0 %3749 }
0x2ef4   :  { %v7998_v51 = vadd.f32 %v3750_v12, %v3718_v48 }
0x2ef6   :  { %6417 = vtanh.f32 %v7998_v51 }
0x2efc   :  { %v6418_v56 = vpop.eup %6417 }
0x2efd   :  { %3773 = vrot.lane.b32.xlu1 %v6418_v56, %s6611_s1 }
0x2f0f   :  { %v3768_v53 = vpop.permute.xlu1 %3767 }
0x2f10   :  { %v8002_v7 = vmul.f32 %v3768_v53, %v3711_v62 }
0x2f12   :  { %9783 = vst [vmem:[#allocation14_spill] sm:$0xff] %v8002_v7  ;;  %3848 = vrot.lane.b32.xlu2 %v8002_v7, %s6612_s22 }
0x2f17   :  { %v3770_v30 = vpop.permute.xlu2 %3769 }
0x2f18   :  { %v8006_v52 = vmul.f32 %v3770_v30, %v3712_v55 }
0x2f1a   :  { %9784 = vst [vmem:[#allocation15_spill] sm:$0xff] %v8006_v52  ;;  %3850 = vrot.lane.b32.xlu0 %v8006_v52, %s6612_s22 }
0x2f4f   :  { %v3772_v3 = vpop.permute.xlu0 %3771 }
0x2f50   :  { %v8010_v8 = vmul.f32 %v3772_v3, %v3713_v5 }
0x2f52   :  { %9785 = vst [vmem:[#allocation16_spill] sm:$0xff] %v8010_v8  ;;  %3852 = vrot.lane.b32.xlu1 %v8010_v8, %s6612_s22 }
0x2f6c   :  { %v3849_v15 = vpop.permute.xlu2 %3848 }
0x2f6d   :  { %6027 = vmatmul.msk.f32.vlgmr.msrb.gmra.mxu1 %vm320_vm0, %v3849_v15 }
0x2f6e   :  { %5396 = vmatpush.msrb.mxu1 %v7941_v43 }
0x2f6f   :  { %v3774_v62 = vpop.permute.xlu1 %3773 }
0x2f70   :  { %v8016_v21 = vmul.f32 %v3774_v62, %v3714_v16  ;;  %5397 = vmatpush.msrb.mxu1 %v7947_v25 }
0x2f72   :  { %9786 = vst [vmem:[#allocation17_spill] sm:$0xff] %v8016_v21  ;;  %3854 = vrot.lane.b32.xlu2 %v8016_v21, %s6612_s22  ;;  %5398 = vmatpush.msrb.mxu1 %v7953_v57 }
0x2f74   :  { %5399 = vmatpush.msrb.mxu1 %v7959_v33 }
0x2f8c   :  { %v3851_v55 = vpop.permute.xlu0 %3850 }
0x2f8d   :  { %6028 = vmatmul.msk.f32.gmra.mxu1 %vm320_vm0, %v3851_v55 }
0x2fc4   :  { %v3853_v5 = vpop.permute.xlu1 %3852 }
0x2fc5   :  { %6029 = vmatmul.msk.f32.gmra.mxu1 %vm320_vm0, %v3853_v5 }
0x2fcc   :  { %v3855_v22 = vpop.permute.xlu2 %3854 }
0x2fcd   :  { %6030 = vmatmul.msk.f32.gmra.mxu1 %vm320_vm0, %v3855_v22 }
0x2fea   :  { %v3881_v16 = vpop.f32.mrf.mxu1 }
0x2feb   :  { %v3882_v39 = vadd.f32 %v7968_v10, %v3881_v16 }
0x2fed   :  { %6419 = vtanh.f32 %v3882_v39 }
0x2ff3   :  { %v6420_v48 = vpop.eup %6419 }
0x2ff4   :  { %3913 = vrot.lane.b32.xlu0 %v6420_v48, %s6611_s1  ;;  %v3897_v22 = vmul.f32 0.5, %v6420_v48 }
0x2ff6   :  { %v3901_v16 = vadd.f32 0.5, %v3897_v22 }
0x300a   :  { %v3884_v12 = vpop.f32.mrf.mxu1 }
0x300b   :  { %v3885_v56 = vadd.f32 %v7968_v10, %v3884_v12 }
0x300d   :  { %6421 = vtanh.f32 %v3885_v56 }
0x3013   :  { %v6422_v53 = vpop.eup %6421 }
0x3014   :  { %3915 = vrot.lane.b32.xlu1 %v6422_v53, %s6611_s1  ;;  %v3898_v56 = vmul.f32 0.5, %v6422_v53 }
0x3016   :  { %v3902_v8 = vadd.f32 0.5, %v3898_v56 }
0x3042   :  { %v3887_v30 = vpop.f32.mrf.mxu1 }
0x3043   :  { %v3888_v3 = vadd.f32 %v7968_v10, %v3887_v30 }
0x3045   :  { %6423 = vtanh.f32 %v3888_v3 }
0x304a   :  { %v3890_v15 = vpop.f32.mrf.mxu1 }
0x304b   :  { %v6424_v62 = vpop.eup %6423  ;;  %v3891_v55 = vadd.f32 %v7968_v10, %v3890_v15 }
0x304c   :  { %3917 = vrot.lane.b32.xlu2 %v6424_v62, %s6611_s1  ;;  %v3899_v52 = vmul.f32 0.5, %v6424_v62  ;;  %v3906_v62 = vmul.f32 %v3902_v8, %v7988_v42 }
0x304d   :  { %6425 = vtanh.f32 %v3891_v55 }
0x304e   :  { %v3903_v15 = vadd.f32 0.5, %v3899_v52 }
0x3053   :  { %v6426_v5 = vpop.eup %6425 }
0x3054   :  { %3919 = vrot.lane.b32.xlu0 %v6426_v5, %s6611_s1  ;;  %v3900_v55 = vmul.f32 0.5, %v6426_v5 }
0x3056   :  { %v3904_v29 = vadd.f32 0.5, %v3900_v55 }
0x3058   :  { %v3908_v42 = vmul.f32 %v3904_v29, %v7998_v51 }
0x3066   :  { %v3914_v39 = vpop.permute.xlu0 %3913 }
0x3067   :  { %v3925_v12 = vmul.f32 %v3914_v39, %v3901_v16  ;;  %v3905_v39 = vmul.f32 %v3901_v16, %v7983_v0  ;;  %v3907_v0 = vmul.f32 %v3903_v15, %v7993_v54 }
0x3069   :  { %3933 = vrot.lane.b32.xlu1 %v3925_v12, %s6612_s22 }
0x3086   :  { %v3916_v30 = vpop.permute.xlu1 %3915 }
0x3087   :  { %v3926_v3 = vmul.f32 %v3916_v30, %v3902_v8 }
0x3089   :  { %3935 = vrot.lane.b32.xlu2 %v3926_v3, %s6612_s22 }
0x30a6   :  { %v3918_v21 = vpop.permute.xlu2 %3917 }
0x30a7   :  { %v3927_v7 = vmul.f32 %v3918_v21, %v3903_v15 }
0x30a9   :  { %3937 = vrot.lane.b32.xlu0 %v3927_v7, %s6612_s22 }
0x30c6   :  { %v3920_v48 = vpop.permute.xlu0 %3919 }
0x30c7   :  { %v3928_v22 = vmul.f32 %v3920_v48, %v3904_v29 }
0x30c9   :  { %3939 = vrot.lane.b32.xlu1 %v3928_v22, %s6612_s22 }
0x30db   :  { %v3934_v53 = vpop.permute.xlu1 %3933 }
0x30dc   :  { %v8039_v12 = vadd.f32 %v3934_v53, %v3905_v39 }
0x30de   :  { %6427 = vtanh.f32 %v8039_v12 }
0x30e3   :  { %v3936_v52 = vpop.permute.xlu2 %3935 }
0x30e4   :  { %v6428_v56 = vpop.eup %6427  ;;  %v8043_v21 = vadd.f32 %v3936_v52, %v3906_v62 }
0x30e5   :  { %3957 = vrot.lane.b32.xlu2 %v6428_v56, %s6611_s1 }
0x30e6   :  { %6429 = vtanh.f32 %v8043_v21 }
0x30ec   :  { %v6430_v7 = vpop.eup %6429 }
0x30ed   :  { %3959 = vrot.lane.b32.xlu0 %v6430_v7, %s6611_s1 }
0x311b   :  { %v3938_v5 = vpop.permute.xlu0 %3937 }
0x311c   :  { %v8049_v30 = vadd.f32 %v3938_v5, %v3907_v0 }
0x311e   :  { %6431 = vtanh.f32 %v8049_v30 }
0x3124   :  { %v6432_v3 = vpop.eup %6431 }
0x3125   :  { %3961 = vrot.lane.b32.xlu1 %v6432_v3, %s6611_s1 }
0x313b   :  { %v3940_v55 = vpop.permute.xlu1 %3939 }
0x313c   :  { %v8054_v48 = vadd.f32 %v3940_v55, %v3908_v42 }
0x313e   :  { %6433 = vtanh.f32 %v8054_v48 }
0x313f   :  { %v3958_v22 = vpop.permute.xlu2 %3957 }
0x3140   :  { %v8057_v39 = vmul.f32 %v3958_v22, %v3901_v16 }
0x3142   :  { %9787 = vst [vmem:[#allocation18_spill] sm:$0xff] %v8057_v39  ;;  %4038 = vrot.lane.b32.xlu0 %v8057_v39, %s6612_s22 }
0x3144   :  { %v6434_v54 = vpop.eup %6433 }
0x3145   :  { %3963 = vrot.lane.b32.xlu2 %v6434_v54, %s6611_s1 }
0x315f   :  { %v3960_v53 = vpop.permute.xlu0 %3959 }
0x3160   :  { %v8062_v62 = vmul.f32 %v3960_v53, %v3902_v8 }
0x3162   :  { %9788 = vst [vmem:[#allocation19_spill] sm:$0xff] %v8062_v62  ;;  %4040 = vrot.lane.b32.xlu1 %v8062_v62, %s6612_s22 }
0x3197   :  { %v3962_v51 = vpop.permute.xlu1 %3961 }
0x3198   :  { %v8066_v52 = vmul.f32 %v3962_v51, %v3903_v15 }
0x319a   :  { %9789 = vst [vmem:[#allocation20_spill] sm:$0xff] %v8066_v52  ;;  %4042 = vrot.lane.b32.xlu2 %v8066_v52, %s6612_s22 }
0x319f   :  { %v3964_v16 = vpop.permute.xlu2 %3963 }
0x31a0   :  { %v8070_v56 = vmul.f32 %v3964_v16, %v3904_v29 }
0x31a2   :  { %9790 = vst [vmem:[#allocation21_spill] sm:$0xff] %v8070_v56  ;;  %4044 = vrot.lane.b32.xlu0 %v8070_v56, %s6612_s22 }
0x31b4   :  { %v4039_v7 = vpop.permute.xlu0 %4038 }
0x31b5   :  { %6031 = vmatmul.msk.f32.vlgmr.msrb.gmra.mxu2 %vm320_vm0, %v4039_v7 }
0x31b6   :  { %5586 = vmatpush.msrb.mxu2 %v7941_v43 }
0x31b8   :  { %5587 = vmatpush.msrb.mxu2 %v7947_v25 }
0x31ba   :  { %5588 = vmatpush.msrb.mxu2 %v7953_v57 }
0x31bc   :  { %5589 = vmatpush.msrb.mxu2 %v7959_v33 }
0x31d4   :  { %v4041_v8 = vpop.permute.xlu1 %4040 }
0x31d5   :  { %6032 = vmatmul.msk.f32.gmra.mxu2 %vm320_vm0, %v4041_v8 }
0x31f4   :  { %v4043_v15 = vpop.permute.xlu2 %4042 }
0x31f5   :  { %6033 = vmatmul.msk.f32.gmra.mxu2 %vm320_vm0, %v4043_v15 }
0x3214   :  { %v4045_v29 = vpop.permute.xlu0 %4044 }
0x3215   :  { %6034 = vmatmul.msk.f32.gmra.mxu2 %vm320_vm0, %v4045_v29 }
0x3238   :  { %v4071_v0 = vpop.f32.mrf.mxu2 }
0x3239   :  { %v4072_v5 = vadd.f32 %v7968_v10, %v4071_v0 }
0x323b   :  { %6435 = vtanh.f32 %v4072_v5 }
0x3241   :  { %v6436_v3 = vpop.eup %6435 }
0x3242   :  { %4103 = vrot.lane.b32.xlu1 %v6436_v3, %s6611_s1  ;;  %v4087_v15 = vmul.f32 0.5, %v6436_v3 }
0x3244   :  { %v4091_v29 = vadd.f32 0.5, %v4087_v15 }
0x3246   :  { %v4095_v3 = vmul.f32 %v4091_v29, %v8039_v12 }
0x3258   :  { %v4074_v42 = vpop.f32.mrf.mxu2 }
0x3259   :  { %v4075_v55 = vadd.f32 %v7968_v10, %v4074_v42 }
0x325b   :  { %6437 = vtanh.f32 %v4075_v55 }
0x3261   :  { %v6438_v22 = vpop.eup %6437 }
0x3262   :  { %4105 = vrot.lane.b32.xlu2 %v6438_v22, %s6611_s1  ;;  %v4088_v42 = vmul.f32 0.5, %v6438_v22 }
0x3264   :  { %v4092_v55 = vadd.f32 0.5, %v4088_v42 }
0x3278   :  { %v4077_v54 = vpop.f32.mrf.mxu2 }
0x3279   :  { %v4078_v53 = vadd.f32 %v7968_v10, %v4077_v54 }
0x327b   :  { %6439 = vtanh.f32 %v4078_v53 }
0x3281   :  { %v6440_v51 = vpop.eup %6439 }
0x3282   :  { %4107 = vrot.lane.b32.xlu0 %v6440_v51, %s6611_s1  ;;  %v4089_v62 = vmul.f32 0.5, %v6440_v51 }
0x3284   :  { %v4093_v52 = vadd.f32 0.5, %v4089_v62  ;;  %v4096_v62 = vmul.f32 %v4092_v55, %v8043_v21 }
0x3298   :  { %v4080_v16 = vpop.f32.mrf.mxu2 }
0x3299   :  { %v4081_v7 = vadd.f32 %v7968_v10, %v4080_v16 }
0x329b   :  { %6441 = vtanh.f32 %v4081_v7 }
0x32a1   :  { %v6442_v8 = vpop.eup %6441 }
0x32a2   :  { %4109 = vrot.lane.b32.xlu1 %v6442_v8, %s6611_s1  ;;  %v4090_v7 = vmul.f32 0.5, %v6442_v8  ;;  %v4097_v8 = vmul.f32 %v4093_v52, %v8049_v30 }
0x32b4   :  { %v4104_v0 = vpop.permute.xlu1 %4103 }
0x32b5   :  { %v4115_v5 = vmul.f32 %v4104_v0, %v4091_v29  ;;  %v4094_v0 = vadd.f32 0.5, %v4090_v7 }
0x32b7   :  { %4123 = vrot.lane.b32.xlu2 %v4115_v5, %s6612_s22 }
0x32bc   :  { %v4106_v54 = vpop.permute.xlu2 %4105 }
0x32bd   :  { %v4116_v53 = vmul.f32 %v4106_v54, %v4092_v55 }
0x32bf   :  { %4125 = vrot.lane.b32.xlu0 %v4116_v53, %s6612_s22 }
0x32f4   :  { %v4108_v56 = vpop.permute.xlu0 %4107 }
0x32f5   :  { %v4117_v16 = vmul.f32 %v4108_v56, %v4093_v52 }
0x32f7   :  { %4127 = vrot.lane.b32.xlu1 %v4117_v16, %s6612_s22  ;;  %v4098_v16 = vmul.f32 %v4094_v0, %v8054_v48 }
0x3311   :  { %v4124_v15 = vpop.permute.xlu2 %4123 }
0x3312   :  { %v8094_v39 = vadd.f32 %v4124_v15, %v4095_v3 }
0x3314   :  { %6443 = vtanh.f32 %v8094_v39  ;;  %v4110_v22 = vpop.permute.xlu1 %4109 }
0x3315   :  { %v4118_v5 = vmul.f32 %v4110_v22, %v4094_v0 }
0x3317   :  { %4129 = vrot.lane.b32.xlu2 %v4118_v5, %s6612_s22 }
0x331a   :  { %v6444_v42 = vpop.eup %6443 }
0x331b   :  { %4147 = vrot.lane.b32.xlu0 %v6444_v42, %s6611_s1 }
0x3331   :  { %v4126_v56 = vpop.permute.xlu0 %4125 }
0x3332   :  { %v8100_v51 = vadd.f32 %v4126_v56, %v4096_v62 }
0x3334   :  { %6445 = vtanh.f32 %v8100_v51 }
0x333a   :  { %v6446_v12 = vpop.eup %6445 }
0x333b   :  { %4149 = vrot.lane.b32.xlu1 %v6446_v12, %s6611_s1 }
0x3369   :  { %v4128_v54 = vpop.permute.xlu1 %4127 }
0x336a   :  { %v8105_v53 = vadd.f32 %v4128_v54, %v4097_v8 }
0x336c   :  { %6447 = vtanh.f32 %v8105_v53 }
0x3371   :  { %v4130_v7 = vpop.permute.xlu2 %4129 }
0x3372   :  { %v6448_v3 = vpop.eup %6447  ;;  %v8109_v21 = vadd.f32 %v4130_v7, %v4098_v16 }
0x3373   :  { %4151 = vrot.lane.b32.xlu2 %v6448_v3, %s6611_s1 }
0x3374   :  { %6449 = vtanh.f32 %v8109_v21 }
0x337a   :  { %v6450_v15 = vpop.eup %6449 }
0x337b   :  { %4153 = vrot.lane.b32.xlu0 %v6450_v15, %s6611_s1 }
0x338d   :  { %v4148_v22 = vpop.permute.xlu0 %4147 }
0x338e   :  { %v8114_v30 = vmul.f32 %v4148_v22, %v4091_v29 }
0x3390   :  { %4228 = vrot.lane.b32.xlu1 %v8114_v30, %s6612_s22 }
0x33ad   :  { %v4150_v5 = vpop.permute.xlu1 %4149 }
0x33ae   :  { %v8118_v42 = vmul.f32 %v4150_v5, %v4092_v55 }
0x33b0   :  { %4230 = vrot.lane.b32.xlu2 %v8118_v42, %s6612_s22 }
0x33cd   :  { %v4152_v48 = vpop.permute.xlu2 %4151 }
0x33ce   :  { %v8122_v62 = vmul.f32 %v4152_v48, %v4093_v52 }
0x33d0   :  { %4232 = vrot.lane.b32.xlu0 %v8122_v62, %s6612_s22 }
0x33ed   :  { %v4154_v56 = vpop.permute.xlu0 %4153 }
0x33ee   :  { %v8126_v12 = vmul.f32 %v4154_v56, %v4094_v0 }
0x33f0   :  { %4234 = vrot.lane.b32.xlu1 %v8126_v12, %s6612_s22 }
0x3402   :  { %v4229_v29 = vpop.permute.xlu1 %4228 }
0x3403   :  { %6035 = vmatmul.msk.f32.vlgmr.msrb.gmra.mxu3 %vm320_vm0, %v4229_v29 }
0x3404   :  { %5776 = vmatpush.msrb.mxu3 %v7941_v43 }
0x3406   :  { %5777 = vmatpush.msrb.mxu3 %v7947_v25 }
0x3408   :  { %5778 = vmatpush.msrb.mxu3 %v7953_v57 }
0x340a   :  { %v4231_v52 = vpop.permute.xlu2 %4230  ;;  %5779 = vmatpush.msrb.mxu3 %v7959_v33 }
0x340b   :  { %6036 = vmatmul.msk.f32.gmra.mxu3 %vm320_vm0, %v4231_v52 }
0x3442   :  { %v4233_v55 = vpop.permute.xlu0 %4232 }
0x3443   :  { %6037 = vmatmul.msk.f32.gmra.mxu3 %vm320_vm0, %v4233_v55 }
0x3462   :  { %v4235_v0 = vpop.permute.xlu1 %4234 }
0x3463   :  { %6038 = vmatmul.msk.f32.gmra.mxu3 %vm320_vm0, %v4235_v0 }
0x3486   :  { %v4261_v8 = vpop.f32.mrf.mxu3 }
0x3487   :  { %v4262_v54 = vadd.f32 %v7968_v10, %v4261_v8 }
0x3489   :  { %6451 = vtanh.f32 %v4262_v54 }
0x348e   :  { %v4264_v43 = vpop.f32.mrf.mxu3 }
0x348f   :  { %v6452_v16 = vpop.eup %6451  ;;  %v4265_v25 = vadd.f32 %v7968_v10, %v4264_v43 }
0x3490   :  { %4293 = vrot.lane.b32.xlu2 %v6452_v16, %s6611_s1  ;;  %v4277_v15 = vmul.f32 0.5, %v6452_v16 }
0x3491   :  { %6453 = vtanh.f32 %v4265_v25 }
0x3492   :  { %v4281_v48 = vadd.f32 0.5, %v4277_v15 }
0x3497   :  { %v6454_v57 = vpop.eup %6453 }
0x3498   :  { %4295 = vrot.lane.b32.xlu0 %v6454_v57, %s6611_s1  ;;  %v4278_v55 = vmul.f32 0.5, %v6454_v57 }
0x349a   :  { %v4282_v0 = vadd.f32 0.5, %v4278_v55 }
0x34c6   :  { %v4267_v33 = vpop.f32.mrf.mxu3 }
0x34c7   :  { %v4268_v7 = vadd.f32 %v7968_v10, %v4267_v33 }
0x34c9   :  { %6455 = vtanh.f32 %v4268_v7 }
0x34cf   :  { %v6456_v3 = vpop.eup %6455 }
0x34d0   :  { %4297 = vrot.lane.b32.xlu1 %v6456_v3, %s6611_s1  ;;  %v4279_v43 = vmul.f32 0.5, %v6456_v3  ;;  %v4286_v3 = vmul.f32 %v4282_v0, %v8100_v51 }
0x34d2   :  { %v4283_v16 = vadd.f32 0.5, %v4279_v43 }
0x34e6   :  { %v4270_v22 = vpop.f32.mrf.mxu3 }
0x34e7   :  { %v4271_v5 = vadd.f32 %v7968_v10, %v4270_v22 }
0x34e9   :  { %6457 = vtanh.f32 %v4271_v5 }
0x34ea   :  { %v4294_v56 = vpop.permute.xlu2 %4293 }
0x34eb   :  { %v4305_v29 = vmul.f32 %v4294_v56, %v4281_v48  ;;  %v4285_v56 = vmul.f32 %v4281_v48, %v8094_v39  ;;  %v4287_v39 = vmul.f32 %v4283_v16, %v8105_v53 }
0x34ed   :  { %4313 = vrot.lane.b32.xlu0 %v4305_v29, %s6612_s22 }
0x34ef   :  { %v6458_v52 = vpop.eup %6457 }
0x34f0   :  { %4299 = vrot.lane.b32.xlu2 %v6458_v52, %s6611_s1  ;;  %v4280_v7 = vmul.f32 0.5, %v6458_v52 }
0x34f2   :  { %v4284_v15 = vadd.f32 0.5, %v4280_v7 }
0x34f4   :  { %v4288_v51 = vmul.f32 %v4284_v15, %v8109_v21 }
0x350a   :  { %v4296_v8 = vpop.permute.xlu0 %4295 }
0x350b   :  { %v4306_v54 = vmul.f32 %v4296_v8, %v4282_v0 }
0x350d   :  { %4315 = vrot.lane.b32.xlu1 %v4306_v54, %s6612_s22 }
0x3542   :  { %v4298_v25 = vpop.permute.xlu1 %4297 }
0x3543   :  { %v4307_v33 = vmul.f32 %v4298_v25, %v4283_v16 }
0x3545   :  { %4317 = vrot.lane.b32.xlu2 %v4307_v33, %s6612_s22 }
0x354a   :  { %v4300_v22 = vpop.permute.xlu2 %4299 }
0x354b   :  { %v4308_v5 = vmul.f32 %v4300_v22, %v4284_v15 }
0x354d   :  { %4319 = vrot.lane.b32.xlu0 %v4308_v5, %s6612_s22 }
0x355f   :  { %v4314_v57 = vpop.permute.xlu0 %4313 }
0x3560   :  { %v8151_v29 = vadd.f32 %v4314_v57, %v4285_v56 }
0x3562   :  { %6459 = vtanh.f32 %v8151_v29 }
0x3568   :  { %v6460_v55 = vpop.eup %6459 }
0x3569   :  { %4337 = vrot.lane.b32.xlu1 %v6460_v55, %s6611_s1 }
0x357f   :  { %v4316_v8 = vpop.permute.xlu1 %4315 }
0x3580   :  { %v8156_v54 = vadd.f32 %v4316_v8, %v4286_v3 }
0x3582   :  { %6461 = vtanh.f32 %v8156_v54 }
0x3588   :  { %v6462_v52 = vpop.eup %6461 }
0x3589   :  { %4339 = vrot.lane.b32.xlu2 %v6462_v52, %s6611_s1 }
0x359f   :  { %v4318_v43 = vpop.permute.xlu2 %4317 }
0x35a0   :  { %v8161_v25 = vadd.f32 %v4318_v43, %v4287_v39 }
0x35a2   :  { %6463 = vtanh.f32 %v8161_v25 }
0x35a8   :  { %v6464_v33 = vpop.eup %6463 }
0x35a9   :  { %4341 = vrot.lane.b32.xlu0 %v6464_v33, %s6611_s1 }
0x35bf   :  { %v4320_v7 = vpop.permute.xlu0 %4319 }
0x35c0   :  { %v8166_v22 = vadd.f32 %v4320_v7, %v4288_v51 }
0x35c2   :  { %6465 = vtanh.f32 %v8166_v22 }
0x35c8   :  { %v6466_v5 = vpop.eup %6465 }
0x35c9   :  { %4343 = vrot.lane.b32.xlu1 %v6466_v5, %s6611_s1 }
0x35db   :  { %v4338_v56 = vpop.permute.xlu1 %4337 }
0x35dc   :  { %v8170_v53 = vmul.f32 %v4338_v56, %v4281_v48 }
0x35de   :  { %9791 = vst [vmem:[#allocation22_spill] sm:$0xff] %v8170_v53  ;;  %4418 = vrot.lane.b32.xlu2 %v8170_v53, %s6612_s22 }
0x35e3   :  { %v4340_v57 = vpop.permute.xlu2 %4339 }
0x35e4   :  { %v8174_v55 = vmul.f32 %v4340_v57, %v4282_v0 }
0x35e6   :  { %4420 = vrot.lane.b32.xlu0 %v8174_v55, %s6612_s22 }
0x361b   :  { %v4342_v21 = vpop.permute.xlu0 %4341 }
0x361c   :  { %v8178_v3 = vmul.f32 %v4342_v21, %v4283_v16 }
0x361e   :  { %9792 = vst [vmem:[#allocation23_spill] sm:$0xff] %v8178_v3  ;;  %4422 = vrot.lane.b32.xlu1 %v8178_v3, %s6612_s22 }
0x3638   :  { %v4419_v8 = vpop.permute.xlu2 %4418 }
0x3639   :  { %6039 = vmatmul.msk.f32.vlgmr.msra.gmra.mxu0 %vm320_vm0, %v4419_v8 }
0x363b   :  { %v4344_v48 = vpop.permute.xlu1 %4343 }
0x363c   :  { %v8183_v52 = vmul.f32 %v4344_v48, %v4284_v15 }
0x363e   :  { %9793 = vst [vmem:[#allocation24_spill] sm:$0xff] %v8183_v52  ;;  %4424 = vrot.lane.b32.xlu2 %v8183_v52, %s6612_s22 }
0x3658   :  { %v4421_v0 = vpop.permute.xlu0 %4420 }
0x3659   :  { %6040 = vmatmul.msk.f32.gmra.mxu0 %vm320_vm0, %v4421_v0 }
0x3690   :  { %v4423_v39 = vpop.permute.xlu1 %4422 }
0x3691   :  { %6041 = vmatmul.msk.f32.gmra.mxu0 %vm320_vm0, %v4423_v39 }
0x3698   :  { %v4425_v16 = vpop.permute.xlu2 %4424 }
0x3699   :  { %6042 = vmatmul.msk.f32.gmra.mxu0 %vm320_vm0, %v4425_v16 }
0x36b6   :  { %v4451_v43 = vpop.f32.mrf.mxu0 }
0x36b7   :  { %v4452_v33 = vadd.f32 %v7968_v10, %v4451_v43 }
0x36b9   :  { %6467 = vtanh.f32 %v4452_v33 }
0x36bf   :  { %v6468_v51 = vpop.eup %6467 }
0x36c0   :  { %4483 = vrot.lane.b32.xlu0 %v6468_v51, %s6611_s1  ;;  %v4467_v39 = vmul.f32 0.5, %v6468_v51 }
0x36c2   :  { %v4471_v16 = vadd.f32 0.5, %v4467_v39 }
0x36d6   :  { %v4454_v15 = vpop.f32.mrf.mxu0 }
0x36d7   :  { %v4455_v7 = vadd.f32 %v7968_v10, %v4454_v15 }
0x36d9   :  { %6469 = vtanh.f32 %v4455_v7 }
0x36df   :  { %v6470_v5 = vpop.eup %6469 }
0x36e0   :  { %4485 = vrot.lane.b32.xlu1 %v6470_v5, %s6611_s1  ;;  %v4468_v15 = vmul.f32 0.5, %v6470_v5  ;;  %v4475_v5 = vmul.f32 %v4471_v16, %v8151_v29 }
0x36e2   :  { %v4472_v7 = vadd.f32 0.5, %v4468_v15 }
0x370e   :  { %v4457_v56 = vpop.f32.mrf.mxu0 }
0x370f   :  { %v4458_v57 = vadd.f32 %v7968_v10, %v4457_v56 }
0x3711   :  { %6471 = vtanh.f32 %v4458_v57 }
0x3716   :  { %v4460_v21 = vpop.f32.mrf.mxu0 }
0x3717   :  { %v6472_v8 = vpop.eup %6471  ;;  %v4461_v48 = vadd.f32 %v7968_v10, %v4460_v21 }
0x3718   :  { %4487 = vrot.lane.b32.xlu2 %v6472_v8, %s6611_s1  ;;  %v4469_v3 = vmul.f32 0.5, %v6472_v8 }
0x3719   :  { %6473 = vtanh.f32 %v4461_v48 }
0x371a   :  { %v8200_v21 = vadd.f32 0.5, %v4469_v3  ;;  %v4476_v3 = vmul.f32 %v4472_v7, %v8156_v54 }
0x371c   :  { %v4477_v54 = vmul.f32 %v8200_v21, %v8161_v25 }
0x371f   :  { %v6474_v0 = vpop.eup %6473 }
0x3720   :  { %4489 = vrot.lane.b32.xlu0 %v6474_v0, %s6611_s1  ;;  %v4470_v51 = vmul.f32 0.5, %v6474_v0 }
0x3722   :  { %v4474_v39 = vadd.f32 0.5, %v4470_v51 }
0x3724   :  { %v4478_v51 = vmul.f32 %v4474_v39, %v8166_v22 }
0x3732   :  { %v4484_v43 = vpop.permute.xlu0 %4483 }
0x3733   :  { %v4495_v33 = vmul.f32 %v4484_v43, %v4471_v16 }
0x3735   :  { %4503 = vrot.lane.b32.xlu1 %v4495_v33, %s6612_s22 }
0x3752   :  { %v4486_v56 = vpop.permute.xlu1 %4485 }
0x3753   :  { %v4496_v57 = vmul.f32 %v4486_v56, %v4472_v7 }
0x3755   :  { %4505 = vrot.lane.b32.xlu2 %v4496_v57, %s6612_s22 }
0x3772   :  { %v4488_v53 = vpop.permute.xlu2 %4487 }
0x3773   :  { %v4497_v48 = vmul.f32 %v4488_v53, %v8200_v21 }
0x3775   :  { %4507 = vrot.lane.b32.xlu0 %v4497_v48, %s6612_s22 }
0x3792   :  { %v4490_v52 = vpop.permute.xlu0 %4489 }
0x3793   :  { %v4498_v43 = vmul.f32 %v4490_v52, %v4474_v39  ;;  %v6081_v52 = vld [vmem:[%s9747_s8] ss:$0 sm:$0xff] }
0x3795   :  { %4509 = vrot.lane.b32.xlu1 %v4498_v43, %s6612_s22 }
0x37a7   :  { %v4504_v33 = vpop.permute.xlu1 %4503 }
0x37a8   :  { %v8206_v15 = vadd.f32 %v4504_v33, %v4475_v5 }
0x37aa   :  { %6475 = vtanh.f32 %v8206_v15 }
0x37af   :  { %v4506_v8 = vpop.permute.xlu2 %4505 }
0x37b0   :  { %v6476_v56 = vpop.eup %6475  ;;  %v8210_v53 = vadd.f32 %v4506_v8, %v4476_v3 }
0x37b1   :  { %4527 = vrot.lane.b32.xlu2 %v6476_v56, %s6611_s1 }
0x37b2   :  { %6477 = vtanh.f32 %v8210_v53 }
0x37b8   :  { %v6478_v29 = vpop.eup %6477 }
0x37b9   :  { %4529 = vrot.lane.b32.xlu0 %v6478_v29, %s6611_s1  ;;  %1497 = vrot.lane.b32.xlu2 %v6081_v52, %s6613_s4 }
0x37e7   :  { %v4508_v0 = vpop.permute.xlu0 %4507 }
0x37e8   :  { %v8220_v57 = vadd.f32 %v4508_v0, %v4477_v54 }
0x37ea   :  { %6479 = vtanh.f32 %v8220_v57 }
0x37f0   :  { %v6480_v48 = vpop.eup %6479 }
0x37f1   :  { %4531 = vrot.lane.b32.xlu1 %v6480_v48, %s6611_s1 }
0x3807   :  { %v4510_v43 = vpop.permute.xlu1 %4509 }
0x3808   :  { %v8225_v5 = vadd.f32 %v4510_v43, %v4478_v51 }
0x380a   :  { %6481 = vtanh.f32 %v8225_v5 }
0x380b   :  { %v4528_v33 = vpop.permute.xlu2 %4527 }
0x380c   :  { %v8228_v3 = vmul.f32 %v4528_v33, %v4471_v16 }
0x380e   :  { %4608 = vrot.lane.b32.xlu0 %v8228_v3, %s6612_s22 }
0x3810   :  { %v6482_v25 = vpop.eup %6481 }
0x3811   :  { %4533 = vrot.lane.b32.xlu2 %v6482_v25, %s6611_s1 }
0x3813   :  { %v8233_v8 = vpop.permute.xlu2 %1497 }
0x3814   :  { %v1500_v56 = vmul.f32 %v8233_v8, %v7280_v14  ;;  %v1501_v22 = vmul.f32 %v8233_v8, %v7284_v31  ;;  %v1502_v16 = vmul.f32 %v8233_v8, %v7288_v32  ;;  %v1503_v52 = vmul.f32 %v8233_v8, %v7292_v17 }
0x3816   :  { %1508 = vrot.lane.b32.xlu0 %v1500_v56, %s6612_s22  ;;  %1510 = vrot.lane.b32.xlu1 %v1501_v22, %s6612_s22  ;;  %v1694_v56 = vmul.f32 %v7340_v20, %v8233_v8  ;;  %v1696_v22 = vmul.f32 %v7348_v36, %v8233_v8 }
0x3819   :  { %1512 = vrot.lane.b32.xlu2 %v1502_v16, %s6612_s22  ;;  %v1693_v16 = vmul.f32 %v7335_v28, %v8233_v8 }
0x381e   :  { %1514 = vrot.lane.b32.xlu0 %v1503_v52, %s6612_s22 }
0x382b   :  { %v4530_v29 = vpop.permute.xlu0 %4529 }
0x382c   :  { %v8247_v54 = vmul.f32 %v4530_v29, %v4472_v7  ;;  %v1695_v29 = vmul.f32 %v7344_v63, %v8233_v8 }
0x382e   :  { %4610 = vrot.lane.b32.xlu1 %v8247_v54, %s6612_s22 }
0x3863   :  { %v4532_v32 = vpop.permute.xlu1 %4531 }
0x386b   :  { %v4534_v14 = vpop.permute.xlu2 %4533 }
0x386c   :  { %v8251_v31 = vmul.f32 %v4534_v14, %v4474_v39  ;;  %v8260_v39 = vmul.f32 %v4532_v32, %v8200_v21  ;;  %v15_v21 = vstv %s9748_s9 }
0x386d   :  { %16 = vst [vmem:[#allocation2] sm:$0x1] %v15_v21  ;;  %v1883_v21 = vmul.f32 %v7392_v19, %v8233_v8 }
0x386e   :  { %4614 = vrot.lane.b32.xlu0 %v8251_v31, %s6612_s22 }
0x3873   :  { %v1513_v43 = vpop.permute.xlu2 %1512 }
0x3874   :  { %v1526_v33 = vsel %vm320_vm0, %v1513_v43, 0.0 }
0x3880   :  { %v4609_v0 = vpop.permute.xlu0 %4608 }
0x3881   :  { %6043 = vmatmul.msk.f32.vlgmr.msra.gmra.mxu1 %vm320_vm0, %v4609_v0 }
0x3888   :  { %v1511_v48 = vpop.permute.xlu1 %1510  ;;  %v1509_v17 = vpop.permute.xlu0 %1508 }
0x3889   :  { %v1523_v51 = vsel %vm320_vm0, %v1511_v48, 0.0  ;;  %v1520_v7 = vsel %vm320_vm0, %v1509_v17, 0.0 }
0x388a   :  { %1524 = vadd.xlane.f32.xlu2 %v1523_v51  ;;  %1521 = vadd.xlane.f32.xlu1 %v1520_v7 }
0x3890   :  { %v1515_v20 = vpop.permute.xlu0 %1514 }
0x3891   :  { %v1529_v52 = vsel %vm320_vm0, %v1515_v20, 0.0 }
0x3898   :  { %1527 = vadd.xlane.f32.xlu0 %v1526_v33  ;;  %v1884_v33 = vmul.f32 %v7396_v38, %v8233_v8 }
0x38a0   :  { %v4611_v25 = vpop.permute.xlu1 %4610 }
0x38a1   :  { %6044 = vmatmul.msk.f32.gmra.mxu1 %vm320_vm0, %v4611_v25 }
0x38a2   :  { %4612 = vrot.lane.b32.xlu2 %v8260_v39, %s6612_s22 }
0x38a3   :  { %1703 = vrot.lane.b32.xlu1 %v1694_v56, %s6612_s22 }
0x38ab   :  { %1707 = vrot.lane.b32.xlu1 %v1696_v22, %s6612_s22  ;;  %v1886_v22 = vmul.f32 %v7404_v41, %v8233_v8  ;;  %v1885_v41 = vmul.f32 %v7400_v27, %v8233_v8 }
0x38ac   :  { %1701 = vrot.lane.b32.xlu0 %v1693_v16, %s6612_s22 }
0x38cb   :  { %1530 = vadd.xlane.f32.xlu2 %v1529_v52 }
0x38e0   :  { %v4615_v14 = vpop.permute.xlu0 %4614 }
0x38e3   :  { %1705 = vrot.lane.b32.xlu2 %v1695_v29, %s6612_s22 }
0x38fd   :  { %v8281_v36 = vpop.xlane.xlu2 %1524  ;;  %v8284_v32 = vpop.xlane.xlu1 %1521 }
0x38fe   :  { %9794 = vst [vmem:[#allocation25_spill] sm:$0xff] %v8281_v36  ;;  %v4641_v25 = vpop.f32.mrf.mxu1 }
0x38ff   :  { %9795 = vst [vmem:[#allocation26_spill] sm:$0xff] %v8284_v32  ;;  %v4642_v56 = vadd.f32 %v7968_v10, %v4641_v25 }
0x3901   :  { %6483 = vtanh.f32 %v4642_v56 }
0x3905   :  { %v4613_v28 = vpop.permute.xlu2 %4612 }
0x3906   :  { %6045 = vmatmul.msk.f32.gmra.mxu1 %vm320_vm0, %v4613_v28 }
0x3907   :  { %v6484_v20 = vpop.eup %6483 }
0x390b   :  { %v8287_v48 = vpop.xlane.xlu0 %1527 }
0x390e   :  { %6046 = vmatmul.msk.f32.gmra.mxu1 %vm320_vm0, %v4615_v14 }
0x3915   :  { %v1704_v0 = vpop.permute.xlu1 %1703 }
0x3916   :  { %v1716_v17 = vsel %vm320_vm0, %v1704_v0, 0.0 }
0x3917   :  { %1717 = vadd.xlane.f32.xlu1 %v1716_v17 }
0x391d   :  { %v1708_v7 = vpop.permute.xlu1 %1707 }
0x391e   :  { %v1702_v51 = vpop.permute.xlu0 %1701  ;;  %v1722_v43 = vsel %vm320_vm0, %v1708_v7, 0.0  ;;  %v4644_v38 = vpop.f32.mrf.mxu1 }
0x391f   :  { %v1713_v63 = vsel %vm320_vm0, %v1702_v51, 0.0  ;;  %v4645_v52 = vadd.f32 %v7968_v10, %v4644_v38 }
0x3920   :  { %1714 = vadd.xlane.f32.xlu2 %v1713_v63 }
0x3921   :  { %6485 = vtanh.f32 %v4645_v52 }
0x3927   :  { %v6486_v14 = vpop.eup %6485 }
0x3928   :  { %1723 = vadd.xlane.f32.xlu2 %v1722_v43 }
0x3930   :  { %1893 = vrot.lane.b32.xlu1 %v1884_v33, %s6612_s22 }
0x3938   :  { %1897 = vrot.lane.b32.xlu1 %v1886_v22, %s6612_s22 }
0x393e   :  { %v8299_v16 = vpop.xlane.xlu2 %1530 }
0x393f   :  { %9796 = vst [vmem:[#allocation27_spill] sm:$0xff] %v8299_v16 }
0x3940   :  { %4673 = vrot.lane.b32.xlu1 %v6484_v20, %s6611_s1  ;;  %1891 = vrot.lane.b32.xlu2 %v1883_v21, %s6612_s22  ;;  %v4657_v21 = vmul.f32 0.5, %v6484_v20 }
0x3942   :  { %v4661_v38 = vadd.f32 0.5, %v4657_v21 }
0x3946   :  { %v1706_v29 = vpop.permute.xlu2 %1705 }
0x3947   :  { %v1719_v28 = vsel %vm320_vm0, %v1706_v29, 0.0 }
0x3948   :  { %1720 = vadd.xlane.f32.xlu0 %v1719_v28  ;;  %1895 = vrot.lane.b32.xlu2 %v1885_v41, %s6612_s22 }
0x3950   :  { %4675 = vrot.lane.b32.xlu2 %v6486_v14, %s6611_s1 }
0x3983   :  { %v4647_v19 = vpop.f32.mrf.mxu1 }
0x3984   :  { %v4648_v0 = vadd.f32 %v7968_v10, %v4647_v19  ;;  %v4658_v19 = vmul.f32 0.5, %v6486_v14 }
0x3986   :  { %6487 = vtanh.f32 %v4648_v0 }
0x398a   :  { %v8317_v43 = vpop.xlane.xlu1 %1717 }
0x398b   :  { %v4650_v17 = vpop.f32.mrf.mxu1 }
0x398c   :  { %v6488_v51 = vpop.eup %6487  ;;  %v4651_v63 = vadd.f32 %v7968_v10, %v4650_v17  ;;  %v4662_v17 = vadd.f32 0.5, %v4658_v19 }
0x398d   :  { %4677 = vrot.lane.b32.xlu0 %v6488_v51, %s6611_s1 }
0x398e   :  { %6489 = vtanh.f32 %v4651_v63 }
0x3993   :  { %v8314_v7 = vpop.xlane.xlu2 %1714 }
0x3994   :  { %v6490_v27 = vpop.eup %6489  ;;  %9797 = vst [vmem:[#allocation28_spill] sm:$0xff] %v8314_v7 }
0x3995   :  { %4679 = vrot.lane.b32.xlu1 %v6490_v27, %s6611_s1 }
0x399b   :  { %v8319_v33 = vpop.xlane.xlu2 %1723 }
0x399c   :  { %9798 = vst [vmem:[#allocation29_spill] sm:$0xff] %v8319_v33 }
0x39a2   :  { %v1894_v25 = vpop.permute.xlu1 %1893 }
0x39a3   :  { %v1892_v56 = vpop.permute.xlu2 %1891  ;;  %v1906_v28 = vsel %vm320_vm0, %v1894_v25, 0.0 }
0x39a4   :  { %v1903_v20 = vsel %vm320_vm0, %v1892_v56, 0.0 }
0x39aa   :  { %v8321_v22 = vpop.permute.xlu1 %1897 }
0x39ab   :  { %v1896_v10 = vpop.permute.xlu2 %1895 }
0x39ac   :  { %v1909_v41 = vsel %vm320_vm0, %v1896_v10, 0.0  ;;  %v4660_v10 = vmul.f32 0.5, %v6490_v27  ;;  %v2073_v27 = vmul.f32 %v7448_v2, %v8233_v8  ;;  %v2075_v2 = vmul.f32 %v7456_v49, %v8233_v8 }
0x39ae   :  { %v8331_v25 = vadd.f32 0.5, %v4660_v10 }
0x39b2   :  { %v4674_v52 = vpop.permute.xlu1 %4673 }
0x39b3   :  { %v4685_v29 = vmul.f32 %v4674_v52, %v4661_v38  ;;  %v4676_v0 = vpop.permute.xlu2 %4675  ;;  %v4659_v52 = vmul.f32 0.5, %v6488_v51 }
0x39b4   :  { %v4686_v63 = vmul.f32 %v4676_v0, %v4662_v17 }
0x39b5   :  { %4693 = vrot.lane.b32.xlu2 %v4685_v29, %s6612_s22  ;;  %v4663_v33 = vadd.f32 0.5, %v4659_v52 }
0x39b7   :  { %1910 = vadd.xlane.f32.xlu0 %v1909_v41 }
0x39bb   :  { %v8328_v21 = vpop.xlane.xlu0 %1720 }
0x39bc   :  { %9799 = vst [vmem:[#allocation30_spill] sm:$0xff] %v8328_v21 }
0x39bf   :  { %1907 = vadd.xlane.f32.xlu1 %v1906_v28  ;;  %v4665_v28 = vmul.f32 %v4661_v38, %v8206_v15  ;;  %v4666_v15 = vmul.f32 %v4662_v17, %v8210_v53 }
0x39cb   :  { %4695 = vrot.lane.b32.xlu0 %v4686_v63, %s6612_s22 }
0x39de   :  { %1904 = vadd.xlane.f32.xlu2 %v1903_v20 }
0x39ff   :  { %v4678_v29 = vpop.permute.xlu0 %4677 }
0x3a00   :  { %v4687_v7 = vmul.f32 %v4678_v29, %v4663_v33  ;;  %v4668_v29 = vmul.f32 %v8331_v25, %v8225_v5 }
0x3a02   :  { %4697 = vrot.lane.b32.xlu1 %v4687_v7, %s6612_s22  ;;  %v2076_v7 = vmul.f32 %v7462_v37, %v8233_v8 }
0x3a07   :  { %v4680_v14 = vpop.permute.xlu1 %4679 }
0x3a08   :  { %v4688_v41 = vmul.f32 %v4680_v14, %v8331_v25 }
0x3a0a   :  { %4699 = vrot.lane.b32.xlu2 %v4688_v41, %s6612_s22 }
0x3a0f   :  { %v4694_v56 = vpop.permute.xlu2 %4693 }
0x3a10   :  { %v8336_v19 = vadd.f32 %v4694_v56, %v4665_v28  ;;  %v4667_v28 = vmul.f32 %v4663_v33, %v8220_v57  ;;  %v2074_v57 = vmul.f32 %v7452_v34, %v8233_v8 }
0x3a12   :  { %6491 = vtanh.f32 %v8336_v19 }
0x3a18   :  { %v6492_v51 = vpop.eup %6491 }
0x3a19   :  { %4717 = vrot.lane.b32.xlu0 %v6492_v51, %s6611_s1 }
0x3a21   :  { %2081 = vrot.lane.b32.xlu0 %v2073_v27, %s6612_s22 }
0x3a29   :  { %2087 = vrot.lane.b32.xlu0 %v2076_v7, %s6612_s22  ;;  %v1912_v7 = vsel %vm320_vm0, %v8321_v22, 0.0 }
0x3a2a   :  { %v8346_v0 = vpop.xlane.xlu0 %1910 }
0x3a32   :  { %v8363_v14 = vpop.xlane.xlu1 %1907 }
0x3a33   :  { %9801 = vst [vmem:[#allocation32_spill] sm:$0xff] %v8363_v14 }
0x3a3d   :  { %v4696_v63 = vpop.permute.xlu0 %4695 }
0x3a3e   :  { %v8349_v20 = vadd.f32 %v4696_v63, %v4666_v15 }
0x3a40   :  { %6493 = vtanh.f32 %v8349_v20 }
0x3a46   :  { %v6494_v52 = vpop.eup %6493 }
0x3a47   :  { %4719 = vrot.lane.b32.xlu1 %v6494_v52, %s6611_s1 }
0x3a4f   :  { %2085 = vrot.lane.b32.xlu1 %v2075_v2, %s6612_s22 }
0x3a51   :  { %v8356_v37 = vpop.xlane.xlu2 %1904 }
0x3a52   :  { %9800 = vst [vmem:[#allocation31_spill] sm:$0xff] %v8356_v37 }
0x3a64   :  { %v4700_v10 = vpop.permute.xlu2 %4699 }
0x3a65   :  { %v8360_v53 = vadd.f32 %v4700_v10, %v4668_v29 }
0x3a67   :  { %6495 = vtanh.f32 %v8360_v53 }
0x3a6d   :  { %v6496_v41 = vpop.eup %6495 }
0x3a6e   :  { %4723 = vrot.lane.b32.xlu0 %v6496_v41, %s6611_s1 }
0x3a74   :  { %v4698_v49 = vpop.permute.xlu1 %4697 }
0x3a75   :  { %v8367_v56 = vadd.f32 %v4698_v49, %v4667_v28 }
0x3a77   :  { %6497 = vtanh.f32 %v8367_v56 }
0x3a7d   :  { %v6498_v51 = vpop.eup %6497 }
0x3a7e   :  { %4721 = vrot.lane.b32.xlu2 %v6498_v51, %s6611_s1 }
0x3a8b   :  { %v4718_v5 = vpop.permute.xlu0 %4717 }
0x3a8c   :  { %v8371_v27 = vmul.f32 %v4718_v5, %v4661_v38  ;;  %v2265_v38 = vmul.f32 %v7512_v61, %v8233_v8  ;;  %v2264_v61 = vmul.f32 %v7508_v50, %v8233_v8  ;;  %v2266_v50 = vmul.f32 %v7516_v11, %v8233_v8 }
0x3a8e   :  { %4798 = vrot.lane.b32.xlu1 %v8371_v27, %s6612_s22 }
0x3a93   :  { %v2082_v34 = vpop.permute.xlu0 %2081 }
0x3a94   :  { %v2093_v10 = vsel %vm320_vm0, %v2082_v34, 0.0  ;;  %v2455_v34 = vmul.f32 %v7568_v13, %v8233_v8 }
0x3aa7   :  { %1913 = vadd.xlane.f32.xlu2 %v1912_v7 }
0x3ab9   :  { %v4720_v15 = vpop.permute.xlu1 %4719 }
0x3aba   :  { %v8381_v2 = vmul.f32 %v4720_v15, %v4662_v17  ;;  %v2088_v17 = vpop.permute.xlu0 %2087  ;;  %v2263_v15 = vmul.f32 %v7503_v59, %v8233_v8 }
0x3abb   :  { %v2102_v41 = vsel %vm320_vm0, %v2088_v17, 0.0 }
0x3abf   :  { %2083 = vrot.lane.b32.xlu2 %v2074_v57, %s6612_s22 }
0x3ac1   :  { %v2086_v63 = vpop.permute.xlu1 %2085 }
0x3ac2   :  { %v2099_v52 = vsel %vm320_vm0, %v2086_v63, 0.0 }
0x3ac3   :  { %2100 = vadd.xlane.f32.xlu0 %v2099_v52 }
0x3ac7   :  { %4800 = vrot.lane.b32.xlu2 %v8381_v2, %s6612_s22 }
0x3ad7   :  { %2275 = vrot.lane.b32.xlu0 %v2265_v38, %s6612_s22 }
0x3ad8   :  { %v4722_v22 = vpop.permute.xlu2 %4721 }
0x3ad9   :  { %v8388_v29 = vmul.f32 %v4722_v22, %v4663_v33  ;;  %v2454_v22 = vmul.f32 %v7564_v35, %v8233_v8  ;;  %v2453_v35 = vmul.f32 %v7560_v24, %v8233_v8 }
0x3adf   :  { %4802 = vrot.lane.b32.xlu0 %v8388_v29, %s6612_s22 }
0x3ae0   :  { %v4724_v7 = vpop.permute.xlu0 %4723 }
0x3ae1   :  { %v8412_v38 = vmul.f32 %v4724_v7, %v8331_v25 }
0x3af0   :  { %2094 = vadd.xlane.f32.xlu2 %v2093_v10  ;;  %v2456_v10 = vmul.f32 %v7572_v18, %v8233_v8 }
0x3af8   :  { %2103 = vadd.xlane.f32.xlu2 %v2102_v41 }
0x3b00   :  { %v4799_v28 = vpop.permute.xlu1 %4798 }
0x3b01   :  { %6047 = vmatmul.msk.f32.vlgmr.msra.gmra.mxu2 %vm320_vm0, %v4799_v28 }
0x3b10   :  { %2273 = vrot.lane.b32.xlu2 %v2264_v61, %s6612_s22 }
0x3b1a   :  { %v8398_v33 = vpop.xlane.xlu2 %1913 }
0x3b1b   :  { %9802 = vst [vmem:[#allocation33_spill] sm:$0xff] %v8398_v33 }
0x3b22   :  { %v2084_v49 = vpop.permute.xlu2 %2083 }
0x3b23   :  { %v2096_v51 = vsel %vm320_vm0, %v2084_v49, 0.0 }
0x3b24   :  { %2097 = vadd.xlane.f32.xlu1 %v2096_v51 }
0x3b2a   :  { %v4801_v5 = vpop.permute.xlu2 %4800 }
0x3b2b   :  { %6048 = vmatmul.msk.f32.gmra.mxu2 %vm320_vm0, %v4801_v5 }
0x3b36   :  { %v8405_v57 = vpop.xlane.xlu0 %2100 }
0x3b37   :  { %9803 = vst [vmem:[#allocation34_spill] sm:$0xff] %v8405_v57 }
0x3b3d   :  { %2271 = vrot.lane.b32.xlu1 %v2263_v15, %s6612_s22 }
0x3b45   :  { %2277 = vrot.lane.b32.xlu1 %v2266_v50, %s6612_s22 }
0x3b49   :  { %v2276_v63 = vpop.permute.xlu0 %2275 }
0x3b4a   :  { %v2289_v52 = vsel %vm320_vm0, %v2276_v63, 0.0 }
0x3b4b   :  { %2290 = vadd.xlane.f32.xlu0 %v2289_v52 }
0x3b4d   :  { %4804 = vrot.lane.b32.xlu1 %v8412_v38, %s6612_s22 }
0x3b51   :  { %v4803_v59 = vpop.permute.xlu0 %4802 }
0x3b52   :  { %6049 = vmatmul.msk.f32.gmra.mxu2 %vm320_vm0, %v4803_v59  ;;  %v8446_v59 = vld [vmem:[%s9746_s7] ss:$0 sm:$0xff] }
0x3b5f   :  { %2463 = vrot.lane.b32.xlu0 %v2454_v22, %s6612_s22 }
0x3b63   :  { %v8420_v11 = vpop.xlane.xlu2 %2094 }
0x3b64   :  { %9804 = vst [vmem:[#allocation35_spill] sm:$0xff] %v8420_v11 }
0x3b67   :  { %2465 = vrot.lane.b32.xlu0 %v2455_v34, %s6612_s22  ;;  %v2645_v34 = vmul.f32 %v7649_v60, %v8233_v8 }
0x3b6b   :  { %v8425_v25 = vpop.xlane.xlu2 %2103 }
0x3b6f   :  { %2467 = vrot.lane.b32.xlu0 %v2456_v10, %s6612_s22 }
0x3b73   :  { %v2274_v17 = vpop.permute.xlu2 %2273 }
0x3b74   :  { %v2286_v41 = vsel %vm320_vm0, %v2274_v17, 0.0 }
0x3b77   :  { %2287 = vadd.xlane.f32.xlu1 %v2286_v41 }
0x3b84   :  { %v4831_v15 = vpop.f32.mrf.mxu2 }
0x3b90   :  { %2461 = vrot.lane.b32.xlu1 %v2453_v35, %s6612_s22  ;;  %v2644_v35 = vmul.f32 %v7645_v26, %v8233_v8  ;;  %v2643_v26 = vmul.f32 %v7641_v1, %v8233_v8 }
0x3b97   :  { %v8434_v28 = vpop.xlane.xlu1 %2097 }
0x3bae   :  { %v4834_v52 = vpop.f32.mrf.mxu2 }
0x3baf   :  { %v2272_v13 = vpop.permute.xlu1 %2271  ;;  %v4835_v22 = vadd.f32 %v8446_v59, %v4834_v52 }
0x3bb0   :  { %v2283_v61 = vsel %vm320_vm0, %v2272_v13, 0.0 }
0x3bb1   :  { %2284 = vadd.xlane.f32.xlu2 %v2283_v61  ;;  %6499 = vtanh.f32 %v4835_v22 }
0x3bb7   :  { %v2278_v49 = vpop.permute.xlu1 %2277  ;;  %v6500_v41 = vpop.eup %6499 }
0x3bb8   :  { %v2292_v18 = vsel %vm320_vm0, %v2278_v49, 0.0 }
0x3bb9   :  { %2293 = vadd.xlane.f32.xlu2 %v2292_v18 }
0x3bbe   :  { %v8439_v5 = vpop.xlane.xlu0 %2290 }
0x3bbf   :  { %v4805_v51 = vpop.permute.xlu1 %4804  ;;  %9805 = vst [vmem:[#allocation36_spill] sm:$0xff] %v8439_v5 }
0x3bc0   :  { %6050 = vmatmul.msk.f32.gmra.mxu2 %vm320_vm0, %v4805_v51 }
0x3bd1   :  { %v2464_v7 = vpop.permute.xlu0 %2463 }
0x3bd2   :  { %v2476_v24 = vsel %vm320_vm0, %v2464_v7, 0.0  ;;  %v4832_v7 = vadd.f32 %v8446_v59, %v4831_v15 }
0x3bd3   :  { %2477 = vadd.xlane.f32.xlu0 %v2476_v24 }
0x3bd5   :  { %v4837_v10 = vpop.f32.mrf.mxu2 }
0x3bd6   :  { %v4838_v17 = vadd.f32 %v8446_v59, %v4837_v10 }
0x3bd8   :  { %6501 = vtanh.f32 %v4838_v17 }
0x3bd9   :  { %v2466_v50 = vpop.permute.xlu0 %2465  ;;  %6503 = vtanh.f32 %v4832_v7 }
0x3bda   :  { %v2479_v63 = vsel %vm320_vm0, %v2466_v50, 0.0  ;;  %v2646_v50 = vmul.f32 %v7655_v46, %v8233_v8 }
0x3bdb   :  { %2480 = vadd.xlane.f32.xlu1 %v2479_v63 }
0x3bde   :  { %v6502_v13 = vpop.eup %6501 }
0x3bdf   :  { %v6504_v24 = vpop.eup %6503 }
0x3be1   :  { %v2468_v18 = vpop.permute.xlu0 %2467 }
0x3be2   :  { %v2482_v51 = vsel %vm320_vm0, %v2468_v18, 0.0  ;;  %v4847_v18 = vmul.f32 0.5, %v6504_v24 }
0x3be7   :  { %2655 = vrot.lane.b32.xlu0 %v2645_v34, %s6612_s22 }
0x3bea   :  { %v8458_v61 = vpop.xlane.xlu1 %2287 }
0x3beb   :  { %9806 = vst [vmem:[#allocation37_spill] sm:$0xff] %v8458_v61 }
0x3bef   :  { %4865 = vrot.lane.b32.xlu0 %v6500_v41, %s6611_s1 }
0x3bf4   :  { %2653 = vrot.lane.b32.xlu1 %v2644_v35, %s6612_s22 }
0x3bf7   :  { %4867 = vrot.lane.b32.xlu0 %v6502_v13, %s6611_s1 }
0x3c02   :  { %v2462_v60 = vpop.permute.xlu1 %2461 }
0x3c03   :  { %v2473_v49 = vsel %vm320_vm0, %v2462_v60, 0.0 }
0x3c04   :  { %2474 = vadd.xlane.f32.xlu2 %v2473_v49 }
0x3c0c   :  { %2483 = vadd.xlane.f32.xlu2 %v2482_v51  ;;  %v8484_v51 = vadd.f32 0.5, %v4847_v18 }
0x3c24   :  { %2651 = vrot.lane.b32.xlu2 %v2643_v26, %s6612_s22  ;;  %v8475_v10 = vpop.xlane.xlu2 %2284 }
0x3c2c   :  { %4863 = vrot.lane.b32.xlu2 %v6504_v24, %s6611_s1  ;;  %v8477_v17 = vpop.xlane.xlu2 %2293 }
0x3c34   :  { %2657 = vrot.lane.b32.xlu2 %v2646_v50, %s6612_s22  ;;  %v4848_v50 = vmul.f32 0.5, %v6500_v41 }
0x3c43   :  { %v4840_v63 = vpop.f32.mrf.mxu2 }
0x3c44   :  { %v4841_v52 = vadd.f32 %v8446_v59, %v4840_v63 }
0x3c46   :  { %6505 = vtanh.f32 %v4841_v52  ;;  %v8472_v15 = vpop.xlane.xlu0 %2477  ;;  %v4852_v52 = vadd.f32 0.5, %v4848_v50 }
0x3c4c   :  { %v6506_v22 = vpop.eup %6505 }
0x3c4d   :  { %4869 = vrot.lane.b32.xlu1 %v6506_v22, %s6611_s1 }
0x3c4e   :  { %v8490_v24 = vpop.xlane.xlu1 %2480 }
0x3c4f   :  { %9808 = vst [vmem:[#allocation39_spill] sm:$0xff] %v8490_v24 }
0x3c59   :  { %v2656_v1 = vpop.permute.xlu0 %2655 }
0x3c5a   :  { %v2669_v34 = vsel %vm320_vm0, %v2656_v1, 0.0 }
0x3c5d   :  { %2670 = vadd.xlane.f32.xlu2 %v2669_v34  ;;  %v4849_v34 = vmul.f32 0.5, %v6502_v13  ;;  %v2834_v13 = vmul.f32 %v7701_v23, %v8233_v8 }
0x3c5f   :  { %v4853_v57 = vadd.f32 0.5, %v4849_v34 }
0x3c61   :  { %v4866_v63 = vpop.permute.xlu0 %4865  ;;  %v4857_v23 = vmul.f32 %v4853_v57, %v8367_v56 }
0x3c62   :  { %v4876_v1 = vmul.f32 %v4866_v63, %v4852_v52 }
0x3c77   :  { %v8479_v46 = vpop.xlane.xlu2 %2474 }
0x3c78   :  { %9807 = vst [vmem:[#allocation38_spill] sm:$0xff] %v8479_v46  ;;  %v4868_v46 = vpop.permute.xlu0 %4867 }
0x3c79   :  { %v4877_v14 = vmul.f32 %v4868_v46, %v4853_v57 }
0x3c7f   :  { %v8481_v35 = vpop.xlane.xlu2 %2483 }
0x3c87   :  { %v2652_v60 = vpop.permute.xlu2 %2651 }
0x3c88   :  { %v2663_v49 = vsel %vm320_vm0, %v2652_v60, 0.0  ;;  %v2654_v60 = vpop.permute.xlu1 %2653 }
0x3c89   :  { %2664 = vadd.xlane.f32.xlu1 %v2663_v49  ;;  %v4850_v49 = vmul.f32 0.5, %v6506_v22  ;;  %v4856_v22 = vmul.f32 %v4852_v52, %v8349_v20  ;;  %v2833_v20 = vmul.f32 %v7696_v44, %v8233_v8 }
0x3c8b   :  { %v4854_v18 = vadd.f32 0.5, %v4850_v49 }
0x3c8d   :  { %v4858_v56 = vmul.f32 %v4854_v18, %v8360_v53 }
0x3c8f   :  { %v4864_v7 = vpop.permute.xlu2 %4863 }
0x3c90   :  { %v4875_v26 = vmul.f32 %v4864_v7, %v8484_v51 }
0x3c92   :  { %4883 = vrot.lane.b32.xlu0 %v4875_v26, %s6612_s22  ;;  %v2666_v26 = vsel %vm320_vm0, %v2654_v60, 0.0 }
0x3c97   :  { %v2658_v44 = vpop.permute.xlu2 %2657 }
0x3c9a   :  { %4885 = vrot.lane.b32.xlu0 %v4876_v1, %s6612_s22 }
0x3ca2   :  { %4887 = vrot.lane.b32.xlu0 %v4877_v14, %s6612_s22  ;;  %v4855_v14 = vmul.f32 %v8484_v51, %v8336_v19 }
0x3cbf   :  { %v4870_v7 = vpop.permute.xlu1 %4869 }
0x3cc0   :  { %v4878_v41 = vmul.f32 %v4870_v7, %v4854_v18 }
0x3cc2   :  { %4889 = vrot.lane.b32.xlu0 %v4878_v41, %s6612_s22  ;;  %v2836_v41 = vmul.f32 %v7709_v45, %v8233_v8 }
0x3cec   :  { %2667 = vadd.xlane.f32.xlu0 %v2666_v26 }
0x3d00   :  { %2843 = vrot.lane.b32.xlu0 %v2834_v13, %s6612_s22 }
0x3d04   :  { %v4884_v46 = vpop.permute.xlu0 %4883 }
0x3d05   :  { %v8499_v50 = vadd.f32 %v4884_v46, %v4855_v14  ;;  %v2672_v46 = vsel %vm320_vm0, %v2658_v44, 0.0 }
0x3d07   :  { %6507 = vtanh.f32 %v8499_v50 }
0x3d0c   :  { %v4886_v63 = vpop.permute.xlu0 %4885 }
0x3d0d   :  { %v6508_v1 = vpop.eup %6507  ;;  %v8503_v34 = vadd.f32 %v4886_v63, %v4856_v22  ;;  %v2835_v22 = vmul.f32 %v7705_v58, %v8233_v8 }
0x3d0e   :  { %4907 = vrot.lane.b32.xlu1 %v6508_v1, %s6611_s1  ;;  %v8531_v1 = vpop.xlane.xlu2 %2670 }
0x3d0f   :  { %6509 = vtanh.f32 %v8503_v34  ;;  %9810 = vst [vmem:[#allocation41_spill] sm:$0xff] %v8531_v1 }
0x3d14   :  { %v4888_v60 = vpop.permute.xlu0 %4887 }
0x3d15   :  { %v6510_v49 = vpop.eup %6509  ;;  %v8508_v19 = vadd.f32 %v4888_v60, %v4857_v23  ;;  %v8533_v23 = vpop.xlane.xlu1 %2664 }
0x3d16   :  { %4909 = vrot.lane.b32.xlu2 %v6510_v49, %s6611_s1 }
0x3d17   :  { %6511 = vtanh.f32 %v8508_v19 }
0x3d1d   :  { %v6512_v7 = vpop.eup %6511 }
0x3d1e   :  { %2841 = vrot.lane.b32.xlu2 %v2833_v20, %s6612_s22  ;;  %4911 = vrot.lane.b32.xlu1 %v6512_v7, %s6611_s1 }
0x3d26   :  { %2847 = vrot.lane.b32.xlu2 %v2836_v41, %s6612_s22 }
0x3d34   :  { %v4890_v26 = vpop.permute.xlu0 %4889 }
0x3d35   :  { %v8520_v13 = vadd.f32 %v4890_v26, %v4858_v56 }
0x3d37   :  { %6513 = vtanh.f32 %v8520_v13 }
0x3d3d   :  { %v6514_v14 = vpop.eup %6513 }
0x3d3e   :  { %4913 = vrot.lane.b32.xlu2 %v6514_v14, %s6611_s1 }
0x3d48   :  { %2673 = vadd.xlane.f32.xlu1 %v2672_v46 }
0x3d5f   :  { %v8528_v45 = vpop.xlane.xlu0 %2667 }
0x3d60   :  { %9809 = vst [vmem:[#allocation40_spill] sm:$0xff] %v8528_v45 }
0x3d61   :  { %2845 = vrot.lane.b32.xlu1 %v2835_v22, %s6612_s22 }
0x3d70   :  { %v4910_v60 = vpop.permute.xlu2 %4909 }
0x3d71   :  { %v8540_v58 = vmul.f32 %v4910_v60, %v4852_v52  ;;  %v3024_v52 = vmul.f32 %v7757_v4, %v8233_v8  ;;  %v3026_v4 = vmul.f32 %v7765_v47, %v8233_v8 }
0x3d72   :  { %v2844_v53 = vpop.permute.xlu0 %2843 }
0x3d73   :  { %v2856_v63 = vsel %vm320_vm0, %v2844_v53, 0.0 }
0x3d74   :  { %2857 = vadd.xlane.f32.xlu0 %v2856_v63 }
0x3d78   :  { %v2842_v7 = vpop.permute.xlu2 %2841 }
0x3d80   :  { %v4908_v49 = vpop.permute.xlu1 %4907  ;;  %v2848_v41 = vpop.permute.xlu2 %2847 }
0x3d81   :  { %v8536_v20 = vmul.f32 %v4908_v49, %v8484_v51  ;;  %v3023_v51 = vmul.f32 %v7753_v40, %v8233_v8  ;;  %v2862_v46 = vsel %vm320_vm0, %v2848_v41, 0.0  ;;  %v3025_v40 = vmul.f32 %v7761_v6, %v8233_v8 }
0x3d83   :  { %4988 = vrot.lane.b32.xlu1 %v8536_v20, %s6612_s22 }
0x3d88   :  { %4990 = vrot.lane.b32.xlu0 %v8540_v58, %s6612_s22 }
0x3d90   :  { %v4912_v56 = vpop.permute.xlu1 %4911 }
0x3d91   :  { %v8544_v26 = vmul.f32 %v4912_v56, %v4853_v57  ;;  %v2853_v57 = vsel %vm320_vm0, %v2842_v7, 0.0 }
0x3d93   :  { %4992 = vrot.lane.b32.xlu0 %v8544_v26, %s6612_s22 }
0x3d98   :  { %v4914_v14 = vpop.permute.xlu2 %4913 }
0x3d99   :  { %v8548_v44 = vmul.f32 %v4914_v14, %v4854_v18 }
0x3d9b   :  { %4994 = vrot.lane.b32.xlu0 %v8548_v44, %s6612_s22 }
0x3da3   :  { %3031 = vrot.lane.b32.xlu0 %v3023_v51, %s6612_s22  ;;  %v3215_v51 = vmul.f32 %v7817_v9, %v8233_v8 }
0x3dab   :  { %3033 = vrot.lane.b32.xlu0 %v3024_v52, %s6612_s22 }
0x3dad   :  { %2854 = vadd.xlane.f32.xlu1 %v2853_v57 }
0x3db5   :  { %2863 = vadd.xlane.f32.xlu1 %v2862_v46 }
0x3dbb   :  { %v8560_v18 = vpop.xlane.xlu1 %2673 }
0x3dd3   :  { %v2846_v22 = vpop.permute.xlu1 %2845 }
0x3dd4   :  { %v2859_v53 = vsel %vm320_vm0, %v2846_v22, 0.0 }
0x3dd5   :  { %2860 = vadd.xlane.f32.xlu2 %v2859_v53 }
0x3de7   :  { %v8568_v63 = vpop.xlane.xlu0 %2857 }
0x3ded   :  { %3035 = vrot.lane.b32.xlu2 %v3025_v40, %s6612_s22  ;;  %v9811_v40 = vld [vmem:[#allocation3_spill] sm:$0xff] }
0x3df5   :  { %v4989_v60 = vpop.permute.xlu1 %4988  ;;  %3037 = vrot.lane.b32.xlu2 %v3026_v4, %s6612_s22  ;;  %v3213_v4 = vmul.f32 %v9811_v40, %v8233_v8 }
0x3df6   :  { %6051 = vmatmul.msk.f32.vlgmr.msra.gmra.mxu3 %vm320_vm0, %v4989_v60  ;;  %v9812_v60 = vld [vmem:[#allocation5_spill] sm:$0xff] }
0x3df7   :  { %v3216_v9 = vmul.f32 %v9812_v60, %v8233_v8 }
0x3dfa   :  { %v4991_v49 = vpop.permute.xlu0 %4990 }
0x3dfe   :  { %6052 = vmatmul.msk.f32.gmra.mxu3 %vm320_vm0, %v4991_v49  ;;  %v9813_v49 = vld [vmem:[#allocation4_spill] sm:$0xff] }
0x3e05   :  { %v4993_v7 = vpop.permute.xlu0 %4992 }
0x3e06   :  { %6053 = vmatmul.msk.f32.gmra.mxu3 %vm320_vm0, %v4993_v7  ;;  %v3214_v7 = vmul.f32 %v9813_v49, %v8233_v8 }
0x3e0d   :  { %v4995_v41 = vpop.permute.xlu0 %4994 }
0x3e0e   :  { %6054 = vmatmul.msk.f32.gmra.mxu3 %vm320_vm0, %v4995_v41 }
0x3e15   :  { %v3032_v6 = vpop.permute.xlu0 %3031 }
0x3e16   :  { %v3043_v56 = vsel %vm320_vm0, %v3032_v6, 0.0 }
0x3e17   :  { %3044 = vadd.xlane.f32.xlu1 %v3043_v56 }
0x3e1d   :  { %v3034_v47 = vpop.permute.xlu0 %3033 }
0x3e1e   :  { %v3046_v14 = vsel %vm320_vm0, %v3034_v47, 0.0 }
0x3e1f   :  { %3047 = vadd.xlane.f32.xlu2 %v3046_v14 }
0x3e20   :  { %v8605_v49 = vpop.xlane.xlu1 %2854 }
0x3e37   :  { %3225 = vrot.lane.b32.xlu2 %v3215_v51, %s6612_s22 }
0x3e48   :  { %v8580_v52 = vpop.xlane.xlu2 %2860 }
0x3e50   :  { %v3036_v57 = vpop.permute.xlu2 %3035 }
0x3e51   :  { %v3049_v46 = vsel %vm320_vm0, %v3036_v57, 0.0 }
0x3e52   :  { %3050 = vadd.xlane.f32.xlu0 %v3049_v46  ;;  %v9815_v46 = vld [vmem:[#allocation6_spill] sm:$0xff] }
0x3e58   :  { %v3038_v22 = vpop.permute.xlu2 %3037 }
0x3e59   :  { %v3052_v53 = vsel %vm320_vm0, %v3038_v22, 0.0  ;;  %v3403_v22 = vmul.f32 %v9815_v46, %v8233_v8 }
0x3e5a   :  { %3053 = vadd.xlane.f32.xlu1 %v3052_v53 }
0x3e66   :  { %3221 = vrot.lane.b32.xlu0 %v3213_v4, %s6612_s22  ;;  %v9816_v4 = vld [vmem:[#allocation9_spill] sm:$0xff] }
0x3e67   :  { %v3406_v60 = vmul.f32 %v9816_v4, %v8233_v8 }
0x3e6e   :  { %3227 = vrot.lane.b32.xlu0 %v3216_v9, %s6612_s22 }
0x3e73   :  { %3223 = vrot.lane.b32.xlu1 %v3214_v7, %s6612_s22 }
0x3e79   :  { %v5021_v47 = vpop.f32.mrf.mxu3 }
0x3e7a   :  { %v5022_v14 = vadd.f32 %v8446_v59, %v5021_v47 }
0x3e7c   :  { %6515 = vtanh.f32 %v5022_v14 }
0x3e81   :  { %v5024_v51 = vpop.f32.mrf.mxu3 }
0x3e82   :  { %v6516_v57 = vpop.eup %6515 }
0x3e89   :  { %v5027_v53 = vpop.f32.mrf.mxu3 }
0x3e8a   :  { %v5028_v40 = vadd.f32 %v8446_v59, %v5027_v53 }
0x3e8c   :  { %6517 = vtanh.f32 %v5028_v40 }
0x3e91   :  { %v5030_v9 = vpop.f32.mrf.mxu3 }
0x3e92   :  { %v8593_v41 = vpop.xlane.xlu2 %3047  ;;  %v5031_v7 = vadd.f32 %v8446_v59, %v5030_v9  ;;  %v5025_v9 = vadd.f32 %v8446_v59, %v5024_v51 }
0x3e93   :  { %9814 = vst [vmem:[#allocation3_spill] sm:$0xff] %v8593_v41  ;;  %v9822_v41 = vld [vmem:[#allocation7_spill] sm:$0xff] }
0x3e94   :  { %6519 = vtanh.f32 %v5031_v7  ;;  %v3404_v1 = vmul.f32 %v9822_v41, %v8233_v8 }
0x3e95   :  { %6521 = vtanh.f32 %v5025_v9 }
0x3e9a   :  { %v3226_v6 = vpop.permute.xlu2 %3225 }
0x3e9b   :  { %v3239_v56 = vsel %vm320_vm0, %v3226_v6, 0.0  ;;  %v6518_v6 = vpop.eup %6517 }
0x3e9c   :  { %3240 = vadd.xlane.f32.xlu0 %v3239_v56  ;;  %v8609_v56 = vpop.xlane.xlu1 %2863  ;;  %v6520_v47 = vpop.eup %6519 }
0x3e9d   :  { %9817 = vst [vmem:[#allocation5_spill] sm:$0xff] %v8609_v56  ;;  %v6522_v7 = vpop.eup %6521  ;;  %v9820_v56 = vld [vmem:[#allocation8_spill] sm:$0xff] }
0x3e9e   :  { %v3405_v45 = vmul.f32 %v9820_v56, %v8233_v8  ;;  %v5039_v56 = vmul.f32 0.5, %v6518_v6 }
0x3ea4   :  { %v8614_v46 = vpop.xlane.xlu1 %3044 }
0x3ea5   :  { %9818 = vst [vmem:[#allocation4_spill] sm:$0xff] %v8614_v46 }
0x3eb0   :  { %5053 = vrot.lane.b32.xlu0 %v6516_v57, %s6611_s1 }
0x3eb8   :  { %3411 = vrot.lane.b32.xlu0 %v3403_v22, %s6612_s22 }
0x3ec0   :  { %3417 = vrot.lane.b32.xlu0 %v3406_v60, %s6612_s22 }
0x3ec5   :  { %v8611_v14 = vpop.xlane.xlu0 %3050 }
0x3ec8   :  { %5057 = vrot.lane.b32.xlu0 %v6518_v6, %s6611_s1 }
0x3ecd   :  { %v8617_v40 = vpop.xlane.xlu1 %3053 }
0x3ece   :  { %9819 = vst [vmem:[#allocation6_spill] sm:$0xff] %v8617_v40  ;;  %v5037_v40 = vmul.f32 0.5, %v6516_v57 }
0x3ed0   :  { %5059 = vrot.lane.b32.xlu0 %v6520_v47, %s6611_s1 }
0x3ed8   :  { %v3222_v22 = vpop.permute.xlu0 %3221 }
0x3ed9   :  { %v3233_v53 = vsel %vm320_vm0, %v3222_v22, 0.0 }
0x3eda   :  { %3234 = vadd.xlane.f32.xlu1 %v3233_v53 }
0x3ee0   :  { %v3228_v46 = vpop.permute.xlu0 %3227 }
0x3ee1   :  { %v3242_v53 = vsel %vm320_vm0, %v3228_v46, 0.0 }
0x3ee5   :  { %v3224_v4 = vpop.permute.xlu1 %3223 }
0x3ee6   :  { %v3236_v60 = vsel %vm320_vm0, %v3224_v4, 0.0  ;;  %v5041_v4 = vadd.f32 0.5, %v5037_v40 }
0x3ee7   :  { %3237 = vadd.xlane.f32.xlu2 %v3236_v60 }
0x3ef3   :  { %5055 = vrot.lane.b32.xlu1 %v6522_v7, %s6611_s1 }
0x3eff   :  { %3415 = vrot.lane.b32.xlu2 %v3405_v45, %s6612_s22  ;;  %v8632_v45 = vadd.f32 0.5, %v5039_v56 }
0x3f0f   :  { %v8625_v22 = vpop.xlane.xlu0 %3240 }
0x3f10   :  { %9821 = vst [vmem:[#allocation9_spill] sm:$0xff] %v8625_v22 }
0x3f1d   :  { %3243 = vadd.xlane.f32.xlu1 %v3242_v53 }
0x3f22   :  { %v5054_v60 = vpop.permute.xlu0 %5053 }
0x3f23   :  { %v5065_v36 = vmul.f32 %v5054_v60, %v5041_v4 }
0x3f25   :  { %5073 = vrot.lane.b32.xlu0 %v5065_v36, %s6612_s22  ;;  %v5038_v36 = vmul.f32 0.5, %v6522_v7 }
0x3f27   :  { %v5042_v41 = vadd.f32 0.5, %v5038_v36 }
0x3f2a   :  { %v3412_v51 = vpop.permute.xlu0 %3411 }
0x3f2b   :  { %v3423_v56 = vsel %vm320_vm0, %v3412_v51, 0.0  ;;  %v5047_v51 = vmul.f32 %v8632_v45, %v8508_v19 }
0x3f32   :  { %v3418_v9 = vpop.permute.xlu0 %3417 }
0x3f33   :  { %v3432_v19 = vsel %vm320_vm0, %v3418_v9, 0.0  ;;  %v9826_v9 = vld [vmem:[#allocation12_spill] sm:$0xff] }
0x3f36   :  { %3413 = vrot.lane.b32.xlu1 %v3404_v1, %s6612_s22 }
0x3f3a   :  { %v5058_v22 = vpop.permute.xlu0 %5057 }
0x3f3b   :  { %v5067_v46 = vmul.f32 %v5058_v22, %v8632_v45  ;;  %v5045_v22 = vmul.f32 %v5041_v4, %v8499_v50 }
0x3f3e   :  { %5077 = vrot.lane.b32.xlu1 %v5067_v46, %s6612_s22 }
0x3f42   :  { %v5060_v1 = vpop.permute.xlu0 %5059 }
0x3f4d   :  { %v8638_v40 = vpop.xlane.xlu1 %3234 }
0x3f4e   :  { %9823 = vst [vmem:[#allocation8_spill] sm:$0xff] %v8638_v40 }
0x3f5a   :  { %v8636_v57 = vpop.xlane.xlu2 %3237 }
0x3f62   :  { %v3416_v53 = vpop.permute.xlu2 %3415 }
0x3f63   :  { %v3429_v60 = vsel %vm320_vm0, %v3416_v53, 0.0  ;;  %v5040_v53 = vmul.f32 0.5, %v6520_v47  ;;  %v5046_v47 = vmul.f32 %v5042_v41, %v8503_v34 }
0x3f64   :  { %3430 = vadd.xlane.f32.xlu0 %v3429_v60 }
0x3f65   :  { %v5056_v6 = vpop.permute.xlu1 %5055  ;;  %v5044_v36 = vadd.f32 0.5, %v5040_v53 }
0x3f66   :  { %v5066_v24 = vmul.f32 %v5056_v6, %v5042_v41 }
0x3f67   :  { %v5068_v60 = vmul.f32 %v5060_v1, %v5044_v36 }
0x3f68   :  { %5075 = vrot.lane.b32.xlu2 %v5066_v24, %s6612_s22 }
0x3f90   :  { %v8647_v40 = vpop.xlane.xlu1 %3243 }
0x3f91   :  { %3424 = vadd.xlane.f32.xlu2 %v3423_v56  ;;  %9824 = vst [vmem:[#allocation7_spill] sm:$0xff] %v8647_v40 }
0x3f97   :  { %v5074_v46 = vpop.permute.xlu0 %5073 }
0x3f98   :  { %v8644_v5 = vadd.f32 %v5074_v46, %v5045_v22 }
0x3f9a   :  { %6523 = vtanh.f32 %v8644_v5 }
0x3fa0   :  { %v6524_v7 = vpop.eup %6523 }
0x3fa1   :  { %5097 = vrot.lane.b32.xlu1 %v6524_v7, %s6611_s1 }
0x3fa8   :  { %v3414_v24 = vpop.permute.xlu1 %3413 }
0x3fa9   :  { %5079 = vrot.lane.b32.xlu2 %v5068_v60, %s6612_s22  ;;  %v3426_v7 = vsel %vm320_vm0, %v3414_v24, 0.0  ;;  %v5048_v60 = vmul.f32 %v5044_v36, %v8520_v13  ;;  %v3595_v24 = vmul.f32 %v9826_v9, %v8233_v8 }
0x3fb0   :  { %v5078_v50 = vpop.permute.xlu1 %5077 }
0x3fb1   :  { %v8653_v6 = vadd.f32 %v5078_v50, %v5047_v51 }
0x3fb3   :  { %6525 = vtanh.f32 %v8653_v6 }
0x3fb9   :  { %v6526_v56 = vpop.eup %6525 }
0x3fba   :  { %5101 = vrot.lane.b32.xlu0 %v6526_v56, %s6611_s1 }
0x3fc2   :  { %v5076_v22 = vpop.permute.xlu2 %5075 }
0x3fc3   :  { %v8658_v46 = vadd.f32 %v5076_v22, %v5046_v47  ;;  %v9827_v22 = vld [vmem:[#allocation13_spill] sm:$0xff] }
0x3fc4   :  { %v3596_v13 = vmul.f32 %v9827_v22, %v8233_v8 }
0x3fc5   :  { %6527 = vtanh.f32 %v8658_v46 }
0x3fcb   :  { %v6528_v1 = vpop.eup %6527 }
0x3fcc   :  { %5099 = vrot.lane.b32.xlu1 %v6528_v1, %s6611_s1 }
0x3fd2   :  { %3433 = vadd.xlane.f32.xlu2 %v3432_v19 }
0x3fd7   :  { %v8681_v1 = vpop.xlane.xlu0 %3430 }
0x3fd8   :  { %9828 = vst [vmem:[#allocation12_spill] sm:$0xff] %v8681_v1 }
0x3ff6   :  { %3427 = vadd.xlane.f32.xlu1 %v3426_v7 }
0x4004   :  { %v8664_v53 = vpop.xlane.xlu2 %3424 }
0x4005   :  { %9825 = vst [vmem:[#allocation42_spill] sm:$0xff] %v8664_v53 }
0x400c   :  { %v5080_v51 = vpop.permute.xlu2 %5079 }
0x400d   :  { %v8667_v34 = vadd.f32 %v5080_v51, %v5048_v60 }
0x400f   :  { %6529 = vtanh.f32 %v8667_v34 }
0x4013   :  { %v5098_v50 = vpop.permute.xlu1 %5097 }
0x4014   :  { %v8670_v56 = vmul.f32 %v5098_v50, %v5041_v4 }
0x4015   :  { %v6530_v47 = vpop.eup %6529 }
0x4016   :  { %5103 = vrot.lane.b32.xlu0 %v6530_v47, %s6611_s1  ;;  %5178 = vrot.lane.b32.xlu2 %v8670_v56, %s6612_s22 }
0x401e   :  { %3605 = vrot.lane.b32.xlu0 %v3595_v24, %s6612_s22  ;;  %3607 = vrot.lane.b32.xlu2 %v3596_v13, %s6612_s22  ;;  %v9831_v13 = vld [vmem:[#allocation11_spill] sm:$0xff] }
0x402c   :  { %v5102_v7 = vpop.permute.xlu0 %5101 }
0x402d   :  { %v8688_v60 = vmul.f32 %v5102_v7, %v8632_v45  ;;  %v9830_v45 = vld [vmem:[#allocation10_spill] sm:$0xff] }
0x402e   :  { %v3593_v22 = vmul.f32 %v9830_v45, %v8233_v8 }
0x403e   :  { %v5100_v4 = vpop.permute.xlu1 %5099 }
0x403f   :  { %v8683_v19 = vmul.f32 %v5100_v4, %v5042_v41  ;;  %v3594_v4 = vmul.f32 %v9831_v13, %v8233_v8 }
0x4041   :  { %5180 = vrot.lane.b32.xlu1 %v8683_v19, %s6612_s22 }
0x4045   :  { %v8692_v51 = vpop.xlane.xlu2 %3433 }
0x4046   :  { %9829 = vst [vmem:[#allocation13_spill] sm:$0xff] %v8692_v51 }
0x4049   :  { %5182 = vrot.lane.b32.xlu1 %v8688_v60, %s6612_s22 }
0x4070   :  { %v5179_v50 = vpop.permute.xlu2 %5178 }
0x4071   :  { %6055 = vmatmul.msk.f32.vlgmr.msrb.gmra.mxu0 %vm320_vm0, %v5179_v50  ;;  %v8709_v50 = vpop.xlane.xlu1 %3427 }
0x4072   :  { %9833 = vst [vmem:[#allocation10_spill] sm:$0xff] %v8709_v50 }
0x4088   :  { %v5104_v47 = vpop.permute.xlu0 %5103 }
0x4089   :  { %v8695_v9 = vmul.f32 %v5104_v47, %v5044_v36  ;;  %v9832_v36 = vld [vmem:[#allocation14_spill] sm:$0xff]  ;;  %v9834_v47 = vld [vmem:[#allocation17_spill] sm:$0xff] }
0x408a   :  { %v3783_v7 = vmul.f32 %v9832_v36, %v8233_v8  ;;  %v3608_v36 = vpop.permute.xlu2 %3607 }
0x408b   :  { %5184 = vrot.lane.b32.xlu1 %v8695_v9, %s6612_s22  ;;  %v3622_v51 = vsel %vm320_vm0, %v3608_v36, 0.0 }
0x4090   :  { %v3606_v41 = vpop.permute.xlu0 %3605 }
0x4091   :  { %v3619_v24 = vsel %vm320_vm0, %v3606_v41, 0.0  ;;  %v3786_v41 = vmul.f32 %v9834_v47, %v8233_v8 }
0x4092   :  { %3620 = vadd.xlane.f32.xlu0 %v3619_v24 }
0x4093   :  { %3601 = vrot.lane.b32.xlu1 %v3593_v22, %s6612_s22 }
0x409b   :  { %3603 = vrot.lane.b32.xlu1 %v3594_v4, %s6612_s22 }
0x40a6   :  { %3791 = vrot.lane.b32.xlu0 %v3783_v7, %s6612_s22 }
0x40ae   :  { %3797 = vrot.lane.b32.xlu0 %v3786_v41, %s6612_s22  ;;  %v9835_v41 = vld [vmem:[#allocation15_spill] sm:$0xff] }
0x40b3   :  { %v5181_v24 = vpop.permute.xlu1 %5180 }
0x40b4   :  { %6056 = vmatmul.msk.f32.gmra.mxu0 %vm320_vm0, %v5181_v24  ;;  %v3784_v24 = vmul.f32 %v9835_v41, %v8233_v8 }
0x40bb   :  { %v5183_v45 = vpop.permute.xlu1 %5182 }
0x40bc   :  { %6057 = vmatmul.msk.f32.gmra.mxu0 %vm320_vm0, %v5183_v45  ;;  %v9836_v45 = vld [vmem:[#allocation16_spill] sm:$0xff] }
0x40bd   :  { %v3785_v40 = vmul.f32 %v9836_v45, %v8233_v8 }
0x40ee   :  { %v5211_v36 = vpop.f32.mrf.mxu0 }
0x40fd   :  { %v5185_v22 = vpop.permute.xlu1 %5184 }
0x40fe   :  { %6058 = vmatmul.msk.f32.gmra.mxu0 %vm320_vm0, %v5185_v22 }
0x4105   :  { %v3602_v13 = vpop.permute.xlu1 %3601  ;;  %v8726_v22 = vpop.xlane.xlu0 %3620 }
0x4106   :  { %v3613_v4 = vsel %vm320_vm0, %v3602_v13, 0.0  ;;  %9837 = vst [vmem:[#allocation11_spill] sm:$0xff] %v8726_v22 }
0x4107   :  { %3614 = vadd.xlane.f32.xlu1 %v3613_v4 }
0x410d   :  { %v3604_v7 = vpop.permute.xlu1 %3603 }
0x410e   :  { %v3616_v47 = vsel %vm320_vm0, %v3604_v7, 0.0 }
0x410f   :  { %3623 = vadd.xlane.f32.xlu1 %v3622_v51  ;;  %3617 = vadd.xlane.f32.xlu2 %v3616_v47 }
0x4118   :  { %v3792_v13 = vpop.permute.xlu0 %3791 }
0x4119   :  { %v3803_v4 = vsel %vm320_vm0, %v3792_v13, 0.0 }
0x4120   :  { %v3798_v22 = vpop.permute.xlu0 %3797 }
0x4121   :  { %v3812_v13 = vsel %vm320_vm0, %v3798_v22, 0.0 }
0x4127   :  { %3793 = vrot.lane.b32.xlu2 %v3784_v24, %s6612_s22 }
0x4128   :  { %3795 = vrot.lane.b32.xlu1 %v3785_v40, %s6612_s22 }
0x4131   :  { %v5214_v7 = vpop.f32.mrf.mxu0 }
0x4132   :  { %v5215_v51 = vadd.f32 %v8446_v59, %v5214_v7 }
0x4134   :  { %6531 = vtanh.f32 %v5215_v51 }
0x4139   :  { %v5217_v1 = vpop.f32.mrf.mxu0 }
0x413a   :  { %v6532_v47 = vpop.eup %6531 }
0x413b   :  { %v5228_v33 = vmul.f32 0.5, %v6532_v47 }
0x413d   :  { %v5232_v21 = vadd.f32 0.5, %v5228_v33 }
0x4150   :  { %3804 = vadd.xlane.f32.xlu2 %v3803_v4 }
0x4168   :  { %5245 = vrot.lane.b32.xlu2 %v6532_v47, %s6611_s1 }
0x417a   :  { %v8733_v45 = vpop.xlane.xlu1 %3614 }
0x417b   :  { %9838 = vst [vmem:[#allocation14_spill] sm:$0xff] %v8733_v45  ;;  %v5220_v51 = vpop.f32.mrf.mxu0  ;;  %v9840_v45 = vld [vmem:[#allocation18_spill] sm:$0xff] }
0x417c   :  { %v5221_v53 = vadd.f32 %v8446_v59, %v5220_v51  ;;  %v3973_v61 = vmul.f32 %v9840_v45, %v8233_v8 }
0x417e   :  { %6533 = vtanh.f32 %v5221_v53 }
0x4182   :  { %v8731_v41 = vpop.xlane.xlu2 %3617  ;;  %v8737_v4 = vpop.xlane.xlu1 %3623 }
0x4183   :  { %9839 = vst [vmem:[#allocation17_spill] sm:$0xff] %v8737_v4 }
0x4184   :  { %v6534_v22 = vpop.eup %6533 }
0x4185   :  { %v5230_v37 = vmul.f32 0.5, %v6534_v22 }
0x4187   :  { %v8768_v16 = vadd.f32 0.5, %v5230_v37 }
0x418a   :  { %v3794_v24 = vpop.permute.xlu2 %3793 }
0x418b   :  { %v3806_v40 = vsel %vm320_vm0, %v3794_v24, 0.0  ;;  %v5212_v24 = vadd.f32 %v8446_v59, %v5211_v36  ;;  %v5218_v36 = vadd.f32 %v8446_v59, %v5217_v1 }
0x418c   :  { %3807 = vadd.xlane.f32.xlu1 %v3806_v40  ;;  %v9841_v40 = vld [vmem:[#allocation21_spill] sm:$0xff] }
0x418d   :  { %6535 = vtanh.f32 %v5212_v24 }
0x418e   :  { %6537 = vtanh.f32 %v5218_v36 }
0x4191   :  { %3813 = vadd.xlane.f32.xlu2 %v3812_v13  ;;  %v3976_v13 = vmul.f32 %v9841_v40, %v8233_v8 }
0x419a   :  { %v3796_v7 = vpop.permute.xlu1 %3795 }
0x419b   :  { %v3809_v50 = vsel %vm320_vm0, %v3796_v7, 0.0  ;;  %v9842_v7 = vld [vmem:[#allocation20_spill] sm:$0xff] }
0x419c   :  { %3810 = vadd.xlane.f32.xlu0 %v3809_v50  ;;  %v6536_v50 = vpop.eup %6535  ;;  %v3975_v53 = vmul.f32 %v9842_v7, %v8233_v8 }
0x419d   :  { %v6538_v51 = vpop.eup %6537  ;;  %v5227_v1 = vmul.f32 0.5, %v6536_v50 }
0x41a5   :  { %3981 = vrot.lane.b32.xlu1 %v3973_v61, %s6612_s22  ;;  %v9843_v61 = vld [vmem:[#allocation19_spill] sm:$0xff] }
0x41a6   :  { %v3974_v45 = vmul.f32 %v9843_v61, %v8233_v8  ;;  %v5231_v61 = vadd.f32 0.5, %v5227_v1 }
0x41a8   :  { %v5235_v33 = vmul.f32 %v5231_v61, %v8644_v5  ;;  %v5238_v5 = vmul.f32 %v8768_v16, %v8667_v34  ;;  %v4164_v34 = vmul.f32 %v8118_v42, %v8233_v8 }
0x41a9   :  { %5249 = vrot.lane.b32.xlu2 %v6534_v22, %s6611_s1 }
0x41ad   :  { %3987 = vrot.lane.b32.xlu1 %v3976_v13, %s6612_s22 }
0x41b0   :  { %5243 = vrot.lane.b32.xlu0 %v6536_v50, %s6611_s1  ;;  %v5229_v50 = vmul.f32 0.5, %v6538_v51 }
0x41b1   :  { %3985 = vrot.lane.b32.xlu2 %v3975_v53, %s6612_s22 }
0x41b8   :  { %3983 = vrot.lane.b32.xlu0 %v3974_v45, %s6612_s22 }
0x41c0   :  { %5247 = vrot.lane.b32.xlu0 %v6538_v51, %s6611_s1  ;;  %v5236_v51 = vmul.f32 %v5232_v21, %v8658_v46 }
0x41c3   :  { %v8758_v24 = vpop.xlane.xlu2 %3804 }
0x41c4   :  { %9844 = vst [vmem:[#allocation15_spill] sm:$0xff] %v8758_v24 }
0x41cb   :  { %v5246_v13 = vpop.permute.xlu2 %5245 }
0x41ff   :  { %v8760_v40 = vpop.xlane.xlu1 %3807 }
0x4200   :  { %9845 = vst [vmem:[#allocation16_spill] sm:$0xff] %v8760_v40  ;;  %v5256_v40 = vmul.f32 %v5246_v13, %v5232_v21 }
0x4204   :  { %v8765_v11 = vpop.xlane.xlu2 %3813 }
0x420c   :  { %v5250_v24 = vpop.permute.xlu2 %5249 }
0x420f   :  { %v8763_v53 = vpop.xlane.xlu0 %3810 }
0x4214   :  { %v3986_v22 = vpop.permute.xlu2 %3985 }
0x4215   :  { %v3999_v37 = vsel %vm320_vm0, %v3986_v22, 0.0 }
0x4217   :  { %v3982_v7 = vpop.permute.xlu1 %3981 }
0x4218   :  { %v3993_v4 = vsel %vm320_vm0, %v3982_v7, 0.0  ;;  %v8773_v7 = vadd.f32 0.5, %v5229_v50 }
0x4219   :  { %3994 = vadd.xlane.f32.xlu0 %v3993_v4  ;;  %v5258_v4 = vmul.f32 %v5250_v24, %v8768_v16 }
0x421a   :  { %v5237_v46 = vmul.f32 %v8773_v7, %v8653_v6  ;;  %v4163_v6 = vmul.f32 %v8114_v30, %v8233_v8 }
0x4222   :  { %v5244_v45 = vpop.permute.xlu0 %5243 }
0x4223   :  { %v5255_v36 = vmul.f32 %v5244_v45, %v5231_v61 }
0x4225   :  { %5263 = vrot.lane.b32.xlu2 %v5255_v36, %s6612_s22 }
0x422a   :  { %v3984_v32 = vpop.permute.xlu0 %3983 }
0x422d   :  { %5269 = vrot.lane.b32.xlu0 %v5258_v4, %s6612_s22  ;;  %5265 = vrot.lane.b32.xlu2 %v5256_v40, %s6612_s22 }
0x4232   :  { %v5248_v1 = vpop.permute.xlu0 %5247 }
0x4233   :  { %v5257_v47 = vmul.f32 %v5248_v1, %v8773_v7  ;;  %v3988_v1 = vpop.permute.xlu1 %3987 }
0x4235   :  { %5267 = vrot.lane.b32.xlu1 %v5257_v47, %s6612_s22 }
0x425f   :  { %4000 = vadd.xlane.f32.xlu1 %v3999_v37 }
0x427f   :  { %v5264_v13 = vpop.permute.xlu2 %5263 }
0x4280   :  { %v8779_v24 = vadd.f32 %v5264_v13, %v5235_v33 }
0x4282   :  { %6539 = vtanh.f32 %v8779_v24 }
0x4287   :  { %v5266_v40 = vpop.permute.xlu2 %5265 }
0x4288   :  { %v6540_v45 = vpop.eup %6539  ;;  %v8783_v36 = vadd.f32 %v5266_v40, %v5236_v51  ;;  %v3996_v40 = vsel %vm320_vm0, %v3984_v32, 0.0  ;;  %v4002_v32 = vsel %vm320_vm0, %v3988_v1, 0.0  ;;  %v9848_v1 = vld [vmem:[#allocation24_spill] sm:$0xff] }
0x4289   :  { %5287 = vrot.lane.b32.xlu0 %v6540_v45, %s6611_s1 }
0x428a   :  { %6541 = vtanh.f32 %v8783_v36 }
0x428c   :  { %v8788_v50 = vpop.xlane.xlu0 %3994 }
0x428d   :  { %9846 = vst [vmem:[#allocation18_spill] sm:$0xff] %v8788_v50 }
0x4290   :  { %v6542_v4 = vpop.eup %6541 }
0x4291   :  { %5289 = vrot.lane.b32.xlu2 %v6542_v4, %s6611_s1 }
0x429f   :  { %v5270_v47 = vpop.permute.xlu0 %5269 }
0x42a0   :  { %v8792_v22 = vadd.f32 %v5270_v47, %v5238_v5  ;;  %v4166_v5 = vmul.f32 %v8126_v12, %v8233_v8  ;;  %v4165_v12 = vmul.f32 %v8122_v62, %v8233_v8 }
0x42a2   :  { %6543 = vtanh.f32 %v8792_v22 }
0x42a7   :  { %v5268_v37 = vpop.permute.xlu1 %5267 }
0x42a8   :  { %v6544_v33 = vpop.eup %6543  ;;  %v8797_v13 = vadd.f32 %v5268_v37, %v5237_v46 }
0x42a9   :  { %5293 = vrot.lane.b32.xlu2 %v6544_v33, %s6611_s1 }
0x42aa   :  { %6545 = vtanh.f32 %v8797_v13 }
0x42b0   :  { %v6546_v51 = vpop.eup %6545 }
0x42b1   :  { %5291 = vrot.lane.b32.xlu0 %v6546_v51, %s6611_s1  ;;  %v4356_v51 = vmul.f32 %v9848_v1, %v8233_v8 }
0x42b9   :  { %4173 = vrot.lane.b32.xlu0 %v4164_v34, %s6612_s22 }
0x42d2   :  { %3997 = vadd.xlane.f32.xlu2 %v3996_v40 }
0x42ea   :  { %4171 = vrot.lane.b32.xlu2 %v4163_v6, %s6612_s22 }
0x42eb   :  { %v5290_v45 = vpop.permute.xlu2 %5289 }
0x42ec   :  { %v8809_v4 = vmul.f32 %v5290_v45, %v5232_v21 }
0x42f2   :  { %5370 = vrot.lane.b32.xlu2 %v8809_v4, %s6612_s22 }
0x42fa   :  { %4177 = vrot.lane.b32.xlu2 %v4166_v5, %s6612_s22  ;;  %v8835_v5 = vpop.xlane.xlu1 %4000 }
0x42fb   :  { %v5288_v42 = vpop.permute.xlu0 %5287 }
0x42fc   :  { %v8816_v47 = vmul.f32 %v5288_v42, %v5231_v61  ;;  %v4354_v61 = vmul.f32 %v8174_v55, %v8233_v8 }
0x42fe   :  { %5368 = vrot.lane.b32.xlu1 %v8816_v47, %s6612_s22 }
0x4303   :  { %v5294_v37 = vpop.permute.xlu2 %5293 }
0x4323   :  { %v5292_v30 = vpop.permute.xlu0 %5291 }
0x4328   :  { %4003 = vadd.xlane.f32.xlu1 %v4002_v32 }
0x432b   :  { %v4174_v21 = vpop.permute.xlu0 %4173 }
0x432c   :  { %v4186_v46 = vsel %vm320_vm0, %v4174_v21, 0.0 }
0x432d   :  { %4187 = vadd.xlane.f32.xlu2 %v4186_v46  ;;  %v9849_v46 = vld [vmem:[#allocation22_spill] sm:$0xff] }
0x4341   :  { %4175 = vrot.lane.b32.xlu1 %v4165_v12, %s6612_s22  ;;  %v4353_v12 = vmul.f32 %v9849_v46, %v8233_v8 }
0x4345   :  { %v8827_v33 = vpop.xlane.xlu2 %3997  ;;  %4363 = vrot.lane.b32.xlu2 %v4354_v61, %s6612_s22  ;;  %v9850_v61 = vld [vmem:[#allocation23_spill] sm:$0xff] }
0x4346   :  { %9847 = vst [vmem:[#allocation21_spill] sm:$0xff] %v8827_v33  ;;  %v4355_v1 = vmul.f32 %v9850_v61, %v8233_v8  ;;  %v8858_v61 = vmul.f32 %v5292_v30, %v8773_v7  ;;  %v4544_v7 = vmul.f32 %v8247_v54, %v8233_v8 }
0x434d   :  { %v4172_v34 = vpop.permute.xlu2 %4171  ;;  %4367 = vrot.lane.b32.xlu2 %v4356_v51, %s6612_s22 }
0x434e   :  { %v4183_v40 = vsel %vm320_vm0, %v4172_v34, 0.0 }
0x434f   :  { %4184 = vadd.xlane.f32.xlu0 %v4183_v40 }
0x4355   :  { %v5371_v6 = vpop.permute.xlu2 %5370 }
0x435d   :  { %v4178_v62 = vpop.permute.xlu2 %4177 }
0x435e   :  { %v4192_v45 = vsel %vm320_vm0, %v4178_v62, 0.0 }
0x435f   :  { %4193 = vadd.xlane.f32.xlu0 %v4192_v45 }
0x4370   :  { %v5369_v55 = vpop.permute.xlu1 %5368 }
0x4371   :  { %6059 = vmatmul.msk.f32.vlgmr.msrb.gmra.mxu1 %vm320_vm0, %v5369_v55 }
0x4379   :  { %6060 = vmatmul.msk.f32.gmra.mxu1 %vm320_vm0, %v5371_v6 }
0x439b   :  { %v8839_v42 = vpop.xlane.xlu1 %4003 }
0x43a0   :  { %v8848_v51 = vpop.xlane.xlu2 %4187 }
0x43a1   :  { %9851 = vst [vmem:[#allocation20_spill] sm:$0xff] %v8848_v51 }
0x43a8   :  { %v4364_v34 = vpop.permute.xlu2 %4363 }
0x43a9   :  { %v4376_v40 = vsel %vm320_vm0, %v4364_v34, 0.0  ;;  %v4543_v34 = vmul.f32 %v8228_v3, %v8233_v8  ;;  %v4546_v3 = vmul.f32 %v8251_v31, %v8233_v8 }
0x43b3   :  { %v4176_v32 = vpop.permute.xlu1 %4175 }
0x43b4   :  { %v4189_v21 = vsel %vm320_vm0, %v4176_v32, 0.0 }
0x43b5   :  { %4190 = vadd.xlane.f32.xlu1 %v4189_v21 }
0x43ce   :  { %4361 = vrot.lane.b32.xlu1 %v4353_v12, %s6612_s22 }
0x43d6   :  { %4365 = vrot.lane.b32.xlu1 %v4355_v1, %s6612_s22  ;;  %v8863_v1 = vmul.f32 %v5294_v37, %v8768_v16  ;;  %v4545_v16 = vmul.f32 %v8260_v39, %v8233_v8 }
0x43ee   :  { %v5401_v6 = vpop.f32.mrf.mxu1 }
0x43ef   :  { %v5402_v62 = vadd.f32 %v8446_v59, %v5401_v6 }
0x43f1   :  { %6547 = vtanh.f32 %v5402_v62  ;;  %v8881_v62 = vpop.xlane.xlu0 %4184 }
0x43f6   :  { %v5404_v30 = vpop.f32.mrf.mxu1 }
0x43f7   :  { %v6548_v45 = vpop.eup %6547  ;;  %v5405_v37 = vadd.f32 %v8446_v59, %v5404_v30  ;;  %v8899_v30 = vld [vmem:[%s9746_s7] ss:$0 sm:$0xff] }
0x43f9   :  { %6549 = vtanh.f32 %v5405_v37  ;;  %v8884_v54 = vpop.xlane.xlu0 %4193 }
0x43fa   :  { %9853 = vst [vmem:[#allocation24_spill] sm:$0xff] %v8884_v54 }
0x4400   :  { %4377 = vadd.xlane.f32.xlu1 %v4376_v40  ;;  %v4368_v40 = vpop.permute.xlu2 %4367 }
0x4401   :  { %v4382_v6 = vsel %vm320_vm0, %v4368_v40, 0.0 }
0x4419   :  { %5433 = vrot.lane.b32.xlu1 %v6548_v45, %s6611_s1 }
0x4428   :  { %v8853_v55 = vpop.xlane.xlu1 %4190 }
0x4429   :  { %9852 = vst [vmem:[#allocation19_spill] sm:$0xff] %v8853_v55 }
0x4440   :  { %v4362_v32 = vpop.permute.xlu1 %4361 }
0x4441   :  { %v4373_v21 = vsel %vm320_vm0, %v4362_v32, 0.0  ;;  %v6550_v32 = vpop.eup %6549 }
0x4442   :  { %4374 = vadd.xlane.f32.xlu0 %v4373_v21 }
0x4448   :  { %v4366_v46 = vpop.permute.xlu1 %4365 }
0x4449   :  { %v4379_v12 = vsel %vm320_vm0, %v4366_v46, 0.0 }
0x444a   :  { %4380 = vadd.xlane.f32.xlu2 %v4379_v12 }
0x4456   :  { %5372 = vrot.lane.b32.xlu0 %v8858_v61, %s6612_s22 }
0x445e   :  { %5374 = vrot.lane.b32.xlu0 %v8863_v1, %s6612_s22 }
0x4462   :  { %4551 = vrot.lane.b32.xlu2 %v4543_v34, %s6612_s22 }
0x4488   :  { %4383 = vadd.xlane.f32.xlu0 %v4382_v6 }
0x449c   :  { %4553 = vrot.lane.b32.xlu0 %v4544_v7, %s6612_s22 }
0x44a4   :  { %4555 = vrot.lane.b32.xlu0 %v4545_v16, %s6612_s22 }
0x44ac   :  { %4557 = vrot.lane.b32.xlu0 %v4546_v3, %s6612_s22 }
0x44b4   :  { %5435 = vrot.lane.b32.xlu0 %v6550_v32, %s6611_s1 }
0x44b5   :  { %v8888_v39 = vpop.xlane.xlu0 %4374 }
0x44bd   :  { %v8886_v21 = vpop.xlane.xlu2 %4380 }
0x44c5   :  { %v4552_v46 = vpop.permute.xlu2 %4551 }
0x44c6   :  { %v4563_v59 = vsel %vm320_vm0, %v4552_v46, 0.0 }
0x44c7   :  { %4564 = vadd.xlane.f32.xlu2 %v4563_v59 }
0x44c8   :  { %v5373_v12 = vpop.permute.xlu0 %5372 }
0x44c9   :  { %6061 = vmatmul.msk.f32.gmra.mxu1 %vm320_vm0, %v5373_v12  ;;  %v8904_v12 = vpop.xlane.xlu1 %4377 }
0x44d0   :  { %v5375_v31 = vpop.permute.xlu0 %5374 }
0x44d1   :  { %6062 = vmatmul.msk.f32.gmra.mxu1 %vm320_vm0, %v5375_v31  ;;  %v5434_v54 = vpop.permute.xlu1 %5433 }
0x44fb   :  { %v8893_v34 = vpop.xlane.xlu0 %4383 }
0x450e   :  { %v4554_v40 = vpop.permute.xlu0 %4553 }
0x4516   :  { %v4556_v6 = vpop.permute.xlu0 %4555 }
0x4517   :  { %v4569_v7 = vsel %vm320_vm0, %v4556_v6, 0.0  ;;  %v5417_v6 = vmul.f32 0.5, %v6548_v45  ;;  %v4734_v45 = vmul.f32 %v8381_v2, %v8233_v8 }
0x4518   :  { %4570 = vadd.xlane.f32.xlu0 %v4569_v7 }
0x4519   :  { %v8907_v55 = vadd.f32 0.5, %v5417_v6  ;;  %v4566_v6 = vsel %vm320_vm0, %v4554_v40, 0.0 }
0x451e   :  { %v4558_v7 = vpop.permute.xlu0 %4557 }
0x4526   :  { %v5436_v51 = vpop.permute.xlu0 %5435 }
0x4546   :  { %v5407_v16 = vpop.f32.mrf.mxu1 }
0x4547   :  { %v5408_v37 = vadd.f32 %v8899_v30, %v5407_v16  ;;  %v5445_v16 = vmul.f32 %v5434_v54, %v8907_v55 }
0x4549   :  { %6551 = vtanh.f32 %v5408_v37  ;;  %v5418_v37 = vmul.f32 0.5, %v6550_v32 }
0x454e   :  { %v5410_v3 = vpop.f32.mrf.mxu1 }
0x454f   :  { %v6552_v46 = vpop.eup %6551  ;;  %v5411_v59 = vadd.f32 %v8899_v30, %v5410_v3  ;;  %v8911_v3 = vadd.f32 0.5, %v5418_v37 }
0x4550   :  { %5437 = vrot.lane.b32.xlu1 %v6552_v46, %s6611_s1  ;;  %v5419_v33 = vmul.f32 0.5, %v6552_v46 }
0x4551   :  { %6553 = vtanh.f32 %v5411_v59  ;;  %v5446_v59 = vmul.f32 %v5436_v51, %v8911_v3  ;;  %v5426_v46 = vmul.f32 %v8911_v3, %v8783_v36 }
0x4552   :  { %v8919_v54 = vadd.f32 0.5, %v5419_v33  ;;  %v4735_v33 = vmul.f32 %v8388_v29, %v8233_v8  ;;  %v4736_v29 = vmul.f32 %v8412_v38, %v8233_v8  ;;  %v5114_v38 = vmul.f32 %v8683_v19, %v8233_v8 }
0x4554   :  { %v5427_v19 = vmul.f32 %v8919_v54, %v8797_v13 }
0x4557   :  { %v6554_v31 = vpop.eup %6553 }
0x4558   :  { %5439 = vrot.lane.b32.xlu0 %v6554_v31, %s6611_s1  ;;  %v5420_v51 = vmul.f32 0.5, %v6554_v31 }
0x4560   :  { %5453 = vrot.lane.b32.xlu0 %v5445_v16, %s6612_s22 }
0x4568   :  { %5455 = vrot.lane.b32.xlu0 %v5446_v59, %s6612_s22  ;;  %v8925_v59 = vadd.f32 0.5, %v5420_v51 }
0x4570   :  { %4743 = vrot.lane.b32.xlu0 %v4734_v45, %s6612_s22 }
0x457a   :  { %4567 = vadd.xlane.f32.xlu1 %v4566_v6 }
0x458b   :  { %v8921_v32 = vpop.xlane.xlu0 %4570 }
0x45c2   :  { %v5438_v16 = vpop.permute.xlu1 %5437 }
0x45c3   :  { %v5447_v37 = vmul.f32 %v5438_v16, %v8919_v54  ;;  %v4733_v16 = vmul.f32 %v8371_v27, %v8233_v8  ;;  %v4925_v27 = vmul.f32 %v8544_v26, %v8233_v8  ;;  %v5425_v26 = vmul.f32 %v8907_v55, %v8779_v24 }
0x45c4   :  { %v5428_v24 = vmul.f32 %v8925_v59, %v8792_v22 }
0x45c5   :  { %5457 = vrot.lane.b32.xlu2 %v5447_v37, %s6612_s22 }
0x45ca   :  { %v5440_v50 = vpop.permute.xlu0 %5439 }
0x45cb   :  { %v5448_v2 = vmul.f32 %v5440_v50, %v8925_v59  ;;  %v4572_v50 = vsel %vm320_vm0, %v4558_v7, 0.0 }
0x45cd   :  { %5459 = vrot.lane.b32.xlu1 %v5448_v2, %s6612_s22 }
0x45d2   :  { %v5454_v40 = vpop.permute.xlu0 %5453 }
0x45d5   :  { %4745 = vrot.lane.b32.xlu1 %v4735_v33, %s6612_s22  ;;  %v8948_v33 = vpop.xlane.xlu2 %4564 }
0x45da   :  { %v5456_v45 = vpop.permute.xlu0 %5455 }
0x45db   :  { %v8934_v6 = vadd.f32 %v5456_v45, %v5426_v46 }
0x45dd   :  { %6555 = vtanh.f32 %v8934_v6 }
0x45e2   :  { %v4744_v13 = vpop.permute.xlu0 %4743 }
0x45e3   :  { %v6556_v31 = vpop.eup %6555 }
0x45e4   :  { %5479 = vrot.lane.b32.xlu1 %v6556_v31, %s6611_s1 }
0x45ed   :  { %v8945_v36 = vpop.xlane.xlu1 %4567 }
0x45ee   :  { %4573 = vadd.xlane.f32.xlu2 %v4572_v50  ;;  %v5303_v50 = vmul.f32 %v8816_v47, %v8233_v8 }
0x4606   :  { %4741 = vrot.lane.b32.xlu2 %v4733_v16, %s6612_s22  ;;  %v8964_v16 = vadd.f32 %v5454_v40, %v5425_v26 }
0x4608   :  { %6557 = vtanh.f32 %v8964_v16 }
0x460e   :  { %4747 = vrot.lane.b32.xlu2 %v4736_v29, %s6612_s22  ;;  %v5306_v29 = vmul.f32 %v8863_v1, %v8233_v8  ;;  %v6558_v47 = vpop.eup %6557 }
0x461f   :  { %v5458_v7 = vpop.permute.xlu2 %5457 }
0x463f   :  { %v5460_v37 = vpop.permute.xlu1 %5459 }
0x4640   :  { %v8978_v40 = vadd.f32 %v5460_v37, %v5428_v24 }
0x4647   :  { %v4746_v51 = vpop.permute.xlu1 %4745 }
0x4648   :  { %v4759_v2 = vsel %vm320_vm0, %v4746_v51, 0.0  ;;  %v8972_v51 = vadd.f32 %v5458_v7, %v5427_v19 }
0x4649   :  { %4760 = vadd.xlane.f32.xlu2 %v4759_v2 }
0x464a   :  { %6559 = vtanh.f32 %v8972_v51 }
0x464b   :  { %6561 = vtanh.f32 %v8978_v40 }
0x4650   :  { %v6560_v1 = vpop.eup %6559 }
0x4651   :  { %v6562_v2 = vpop.eup %6561 }
0x4661   :  { %v8952_v46 = vpop.xlane.xlu2 %4573  ;;  %4935 = vrot.lane.b32.xlu2 %v4925_v27, %s6612_s22 }
0x4669   :  { %v4742_v45 = vpop.permute.xlu2 %4741  ;;  %5123 = vrot.lane.b32.xlu2 %v5114_v38, %s6612_s22 }
0x466a   :  { %v4753_v31 = vsel %vm320_vm0, %v4742_v45, 0.0  ;;  %v5480_v45 = vpop.permute.xlu1 %5479 }
0x466b   :  { %4754 = vadd.xlane.f32.xlu0 %v4753_v31  ;;  %v5490_v37 = vmul.f32 %v5480_v45, %v8911_v3 }
0x4671   :  { %5311 = vrot.lane.b32.xlu2 %v5303_v50, %s6612_s22  ;;  %v4748_v26 = vpop.permute.xlu2 %4747 }
0x4672   :  { %v4762_v19 = vsel %vm320_vm0, %v4748_v26, 0.0 }
0x4679   :  { %5317 = vrot.lane.b32.xlu2 %v5306_v29, %s6612_s22 }
0x467f   :  { %5477 = vrot.lane.b32.xlu0 %v6558_v47, %s6611_s1  ;;  %v4756_v47 = vsel %vm320_vm0, %v4744_v13, 0.0  ;;  %v4926_v13 = vmul.f32 %v8548_v44, %v8233_v8  ;;  %v5304_v44 = vmul.f32 %v8809_v4, %v8233_v8 }
0x4687   :  { %5481 = vrot.lane.b32.xlu0 %v6560_v1, %s6611_s1  ;;  %v4923_v1 = vmul.f32 %v8536_v20, %v8233_v8  ;;  %v5115_v20 = vmul.f32 %v8688_v60, %v8233_v8  ;;  %v5494_v60 = vmul.f32 %v5490_v37, %v8233_v8 }
0x468f   :  { %5483 = vrot.lane.b32.xlu0 %v6562_v2, %s6611_s1  ;;  %v4924_v2 = vmul.f32 %v8540_v58, %v8233_v8  ;;  %v5116_v58 = vmul.f32 %v8695_v9, %v8233_v8 }
0x46bc   :  { %v8993_v29 = vpop.xlane.xlu2 %4760 }
0x46de   :  { %v8983_v7 = vpop.xlane.xlu0 %4754 }
0x46f1   :  { %v5478_v27 = vpop.permute.xlu0 %5477 }
0x46f2   :  { %v5489_v38 = vmul.f32 %v5478_v27, %v8907_v55  ;;  %v4936_v55 = vpop.permute.xlu2 %4935 }
0x46f3   :  { %v4949_v3 = vsel %vm320_vm0, %v4936_v55, 0.0 }
0x46f4   :  { %5558 = vrot.lane.b32.xlu0 %v5489_v38, %s6612_s22  ;;  %v5493_v27 = vmul.f32 %v5489_v38, %v8233_v8 }
0x46f9   :  { %v5482_v22 = vpop.permute.xlu0 %5481 }
0x46fa   :  { %v5491_v31 = vmul.f32 %v5482_v22, %v8919_v54  ;;  %v5124_v55 = vpop.permute.xlu2 %5123 }
0x46fc   :  { %v5495_v50 = vmul.f32 %v5491_v31, %v8233_v8  ;;  %5560 = vrot.lane.b32.xlu0 %v5490_v37, %s6612_s22  ;;  %5562 = vrot.lane.b32.xlu1 %v5491_v31, %s6612_s22 }
0x46fe   :  { %5505 = vrot.lane.b32.xlu2 %v5495_v50, %s6612_s22 }
0x4701   :  { %v5484_v54 = vpop.permute.xlu0 %5483 }
0x4702   :  { %v5492_v24 = vmul.f32 %v5484_v54, %v8925_v59  ;;  %v5113_v59 = vmul.f32 %v8670_v56, %v8233_v8  ;;  %v5305_v56 = vmul.f32 %v8858_v61, %v8233_v8  ;;  %v5136_v54 = vsel %vm320_vm0, %v5124_v55, 0.0 }
0x4726   :  { %4763 = vadd.xlane.f32.xlu0 %v4762_v19  ;;  %4757 = vadd.xlane.f32.xlu1 %v4756_v47 }
0x4727   :  { %4950 = vadd.xlane.f32.xlu2 %v4949_v3 }
0x473a   :  { %5564 = vrot.lane.b32.xlu0 %v5492_v24, %s6612_s22 }
0x473f   :  { %4931 = vrot.lane.b32.xlu1 %v4923_v1, %s6612_s22 }
0x4742   :  { %4933 = vrot.lane.b32.xlu0 %v4924_v2, %s6612_s22 }
0x4747   :  { %4937 = vrot.lane.b32.xlu1 %v4926_v13, %s6612_s22  ;;  %v5312_v13 = vpop.permute.xlu2 %5311 }
0x474a   :  { %5121 = vrot.lane.b32.xlu0 %v5113_v59, %s6612_s22 }
0x474f   :  { %5125 = vrot.lane.b32.xlu1 %v5115_v20, %s6612_s22 }
0x4752   :  { %5127 = vrot.lane.b32.xlu0 %v5116_v58, %s6612_s22  ;;  %v5323_v58 = vsel %vm320_vm0, %v5312_v13, 0.0 }
0x4757   :  { %5313 = vrot.lane.b32.xlu1 %v5304_v44, %s6612_s22 }
0x475a   :  { %5315 = vrot.lane.b32.xlu0 %v5305_v56, %s6612_s22 }
0x475f   :  { %5501 = vrot.lane.b32.xlu1 %v5493_v27, %s6612_s22 }
0x4762   :  { %5503 = vrot.lane.b32.xlu0 %v5494_v60, %s6612_s22 }
0x4766   :  { %v5559_v9 = vpop.permute.xlu0 %5558 }
0x4767   :  { %6063 = vmatmul.msk.f32.vlgmr.msrb.gmra.mxu2 %vm320_vm0, %v5559_v9 }
0x476e   :  { %v5561_v45 = vpop.permute.xlu0 %5560  ;;  %v5563_v4 = vpop.permute.xlu1 %5562 }
0x476f   :  { %6064 = vmatmul.msk.f32.gmra.mxu2 %vm320_vm0, %v5561_v45  ;;  %v5496_v45 = vmul.f32 %v5492_v24, %v8233_v8 }
0x4777   :  { %6065 = vmatmul.msk.f32.gmra.mxu2 %vm320_vm0, %v5563_v4 }
0x4799   :  { %v9031_v61 = vpop.xlane.xlu0 %4763  ;;  %v9033_v22 = vpop.xlane.xlu1 %4757 }
0x47ac   :  { %v5565_v38 = vpop.permute.xlu0 %5564 }
0x47ad   :  { %6066 = vmatmul.msk.f32.gmra.mxu2 %vm320_vm0, %v5565_v38 }
0x47b1   :  { %v4932_v31 = vpop.permute.xlu1 %4931 }
0x47b2   :  { %v4943_v37 = vsel %vm320_vm0, %v4932_v31, 0.0 }
0x47b3   :  { %4944 = vadd.xlane.f32.xlu1 %v4943_v37 }
0x47b4   :  { %v4934_v50 = vpop.permute.xlu0 %4933 }
0x47b5   :  { %v4946_v26 = vsel %vm320_vm0, %v4934_v50, 0.0 }
0x47b6   :  { %4947 = vadd.xlane.f32.xlu0 %v4946_v26 }
0x47b9   :  { %v4938_v19 = vpop.permute.xlu1 %4937 }
0x47ba   :  { %v4952_v47 = vsel %vm320_vm0, %v4938_v19, 0.0 }
0x47bb   :  { %4953 = vadd.xlane.f32.xlu1 %v4952_v47  ;;  %v5318_v47 = vpop.permute.xlu2 %5317 }
0x47bc   :  { %v5122_v3 = vpop.permute.xlu0 %5121 }
0x47bd   :  { %v5133_v1 = vsel %vm320_vm0, %v5122_v3, 0.0  ;;  %v5332_v3 = vsel %vm320_vm0, %v5318_v47, 0.0 }
0x47be   :  { %5137 = vadd.xlane.f32.xlu0 %v5136_v54  ;;  %5134 = vadd.xlane.f32.xlu2 %v5133_v1 }
0x47c1   :  { %v5126_v2 = vpop.permute.xlu1 %5125 }
0x47c2   :  { %v5139_v59 = vsel %vm320_vm0, %v5126_v2, 0.0 }
0x47c3   :  { %5140 = vadd.xlane.f32.xlu1 %v5139_v59 }
0x47c4   :  { %v5128_v20 = vpop.permute.xlu0 %5127 }
0x47c5   :  { %v5142_v44 = vsel %vm320_vm0, %v5128_v20, 0.0 }
0x47c6   :  { %5324 = vadd.xlane.f32.xlu0 %v5323_v58  ;;  %5143 = vadd.xlane.f32.xlu2 %v5142_v44  ;;  %v5506_v44 = vpop.permute.xlu2 %5505 }
0x47c9   :  { %v5314_v56 = vpop.permute.xlu1 %5313 }
0x47ca   :  { %v5326_v27 = vsel %vm320_vm0, %v5314_v56, 0.0 }
0x47cb   :  { %5327 = vadd.xlane.f32.xlu1 %v5326_v27 }
0x47cc   :  { %v5316_v60 = vpop.permute.xlu0 %5315 }
0x47cd   :  { %v5329_v9 = vsel %vm320_vm0, %v5316_v60, 0.0 }
0x47ce   :  { %5330 = vadd.xlane.f32.xlu2 %v5329_v9  ;;  %v9059_v56 = vpop.xlane.xlu2 %4950 }
0x47d1   :  { %v5502_v2 = vpop.permute.xlu1 %5501 }
0x47d2   :  { %v5513_v13 = vsel %vm320_vm0, %v5502_v2, 0.0 }
0x47d4   :  { %v5504_v54 = vpop.permute.xlu0 %5503 }
0x47d5   :  { %v5516_v1 = vsel %vm320_vm0, %v5504_v54, 0.0 }
0x47e4   :  { %5507 = vrot.lane.b32.xlu1 %v5496_v45, %s6612_s22 }
0x47ea   :  { %v5591_v4 = vpop.f32.mrf.mxu2 }
0x47eb   :  { %v5592_v38 = vadd.f32 %v8899_v30, %v5591_v4 }
0x47ed   :  { %6563 = vtanh.f32 %v5592_v38 }
0x47f2   :  { %v5594_v31 = vpop.f32.mrf.mxu2 }
0x47f3   :  { %v6564_v37 = vpop.eup %6563  ;;  %v5595_v50 = vadd.f32 %v8899_v30, %v5594_v31 }
0x47f4   :  { %5623 = vrot.lane.b32.xlu0 %v6564_v37, %s6611_s1 }
0x47f5   :  { %6565 = vtanh.f32 %v5595_v50 }
0x47fa   :  { %v5597_v26 = vpop.f32.mrf.mxu2 }
0x47fb   :  { %v6566_v55 = vpop.eup %6565  ;;  %v5598_v19 = vadd.f32 %v8899_v30, %v5597_v26  ;;  %v5607_v26 = vmul.f32 0.5, %v6564_v37 }
0x47fc   :  { %5625 = vrot.lane.b32.xlu2 %v6566_v55, %s6611_s1  ;;  %v5608_v2 = vmul.f32 0.5, %v6566_v55 }
0x47fd   :  { %6567 = vtanh.f32 %v5598_v19  ;;  %v9079_v47 = vadd.f32 0.5, %v5607_v26 }
0x4803   :  { %v6568_v24 = vpop.eup %6567 }
0x4804   :  { %5627 = vrot.lane.b32.xlu1 %v6568_v24, %s6611_s1  ;;  %v5609_v37 = vmul.f32 0.5, %v6568_v24 }
0x481e   :  { %5333 = vadd.xlane.f32.xlu0 %v5332_v3 }
0x4825   :  { %5517 = vadd.xlane.f32.xlu2 %v5516_v1 }
0x4826   :  { %v9061_v27 = vpop.xlane.xlu1 %4944 }
0x4829   :  { %v9063_v60 = vpop.xlane.xlu0 %4947 }
0x482e   :  { %5514 = vadd.xlane.f32.xlu1 %v5513_v13  ;;  %v9067_v45 = vpop.xlane.xlu1 %4953 }
0x482f   :  { %9854 = vst [vmem:[#allocation22_spill] sm:$0xff] %v9067_v45  ;;  %v5613_v45 = vadd.f32 0.5, %v5609_v37 }
0x4830   :  { %v5600_v59 = vpop.f32.mrf.mxu2 }
0x4831   :  { %v5601_v20 = vadd.f32 %v8899_v30, %v5600_v59  ;;  %v9065_v9 = vpop.xlane.xlu2 %5134  ;;  %v9069_v4 = vpop.xlane.xlu0 %5137  ;;  %v5612_v59 = vadd.f32 0.5, %v5608_v2 }
0x4832   :  { %9855 = vst [vmem:[#allocation23_spill] sm:$0xff] %v9069_v4 }
0x4833   :  { %6569 = vtanh.f32 %v5601_v20 }
0x4836   :  { %v9073_v31 = vpop.xlane.xlu1 %5140 }
0x4837   :  { %9856 = vst [vmem:[#allocation43_spill] sm:$0xff] %v9073_v31 }
0x4839   :  { %v6570_v58 = vpop.eup %6569  ;;  %v9071_v38 = vpop.xlane.xlu2 %5143 }
0x483a   :  { %5629 = vrot.lane.b32.xlu0 %v6570_v58, %s6611_s1  ;;  %v9075_v50 = vpop.xlane.xlu0 %5324  ;;  %v5610_v55 = vmul.f32 0.5, %v6570_v58 }
0x483b   :  { %9857 = vst [vmem:[#allocation44_spill] sm:$0xff] %v9075_v50 }
0x483c   :  { %v5614_v2 = vadd.f32 0.5, %v5610_v55 }
0x483e   :  { %v9081_v3 = vpop.xlane.xlu1 %5327 }
0x483f   :  { %9858 = vst [vmem:[#allocation45_spill] sm:$0xff] %v9081_v3  ;;  %v5519_v3 = vsel %vm320_vm0, %v5506_v44, 0.0 }
0x4841   :  { %v9077_v19 = vpop.xlane.xlu2 %5330 }
0x4856   :  { %v5626_v13 = vpop.permute.xlu2 %5625  ;;  %v9085_v20 = vpop.permute.xlu1 %5507 }
0x4857   :  { %v5636_v31 = vmul.f32 %v5626_v13, %v5612_v59 }
0x4866   :  { %v5624_v54 = vpop.permute.xlu0 %5623 }
0x4867   :  { %v5635_v1 = vmul.f32 %v5624_v54, %v9079_v47 }
0x4869   :  { %5643 = vrot.lane.b32.xlu0 %v5635_v1, %s6612_s22  ;;  %v9092_v1 = vld [vmem:[#allocation2] ss:$0 sm:$0xff] }
0x486a   :  { %v1537_v13 = vadd.f32 %v9092_v1, %v8287_v48  ;;  %v1726_v24 = vadd.f32 %v9092_v1, %v8317_v43  ;;  %v1917_v44 = vadd.f32 %v9092_v1, %v8346_v0  ;;  %v2106_v58 = vadd.f32 %v9092_v1, %v8434_v28 }
0x486b   :  { %v5615_v48 = vmul.f32 %v9079_v47, %v8964_v16  ;;  %v5617_v43 = vmul.f32 %v5613_v45, %v8972_v51  ;;  %v5616_v0 = vmul.f32 %v5612_v59, %v8934_v6  ;;  %v5618_v6 = vmul.f32 %v5614_v2, %v8978_v40 }
0x4871   :  { %5645 = vrot.lane.b32.xlu0 %v5636_v31, %s6612_s22 }
0x4876   :  { %v5628_v50 = vpop.permute.xlu1 %5627 }
0x4877   :  { %v5637_v26 = vmul.f32 %v5628_v50, %v5613_v45 }
0x4879   :  { %5647 = vrot.lane.b32.xlu2 %v5637_v26, %s6612_s22 }
0x4891   :  { %v9090_v54 = vpop.xlane.xlu0 %5333 }
0x4898   :  { %v9103_v50 = vpop.xlane.xlu2 %5517 }
0x489b   :  { %5520 = vadd.xlane.f32.xlu0 %v5519_v3 }
0x48a1   :  { %v9121_v51 = vpop.xlane.xlu1 %5514 }
0x48a2   :  { %9859 = vst [vmem:[#allocation46_spill] sm:$0xff] %v9121_v51 }
0x48ac   :  { %v5630_v4 = vpop.permute.xlu0 %5629 }
0x48ad   :  { %v5638_v31 = vmul.f32 %v5630_v4, %v5614_v2 }
0x48af   :  { %1552 = vperm.xlu0 %6075, %v1537_v13   ;;  %5649 = vrot.lane.b32.xlu1 %v5638_v31, %s6612_s22 }
0x48b7   :  { %1737 = vperm.xlu0 %6075, %v1726_v24  }
0x48bf   :  { %1932 = vperm.xlu0 %6075, %v1917_v44  }
0x48c7   :  { %2117 = vperm.xlu0 %6075, %v2106_v58  }
0x48d3   :  { %v5648_v37 = vpop.permute.xlu2 %5647 }
0x48d4   :  { %v9111_v26 = vadd.f32 %v5648_v37, %v5617_v43 }
0x48db   :  { %v5644_v4 = vpop.permute.xlu0 %5643 }
0x48dc   :  { %v9107_v3 = vadd.f32 %v5644_v4, %v5615_v48 }
0x48de   :  { %6571 = vtanh.f32 %v9107_v3 }
0x48df   :  { %6573 = vtanh.f32 %v9111_v26 }
0x48e3   :  { %v5646_v55 = vpop.permute.xlu0 %5645 }
0x48e4   :  { %v6572_v28 = vpop.eup %6571  ;;  %v9114_v13 = vadd.f32 %v5646_v55, %v5616_v0 }
0x48e5   :  { %5667 = vrot.lane.b32.xlu1 %v6572_v28, %s6611_s1  ;;  %v6574_v16 = vpop.eup %6573 }
0x48e6   :  { %6575 = vtanh.f32 %v9114_v13 }
0x48ec   :  { %v6576_v31 = vpop.eup %6575 }
0x48ed   :  { %5671 = vrot.lane.b32.xlu1 %v6574_v16, %s6611_s1  ;;  %5669 = vrot.lane.b32.xlu2 %v6576_v31, %s6611_s1 }
0x4921   :  { %v5650_v24 = vpop.permute.xlu1 %5649 }
0x4922   :  { %v9124_v44 = vadd.f32 %v5650_v24, %v5618_v6  ;;  %v9142_v24 = vpop.xlane.xlu0 %5520 }
0x4923   :  { %9860 = vst [vmem:[#allocation47_spill] sm:$0xff] %v9142_v24 }
0x4924   :  { %6577 = vtanh.f32 %v9124_v44 }
0x492a   :  { %v6578_v58 = vpop.eup %6577 }
0x492b   :  { %5673 = vrot.lane.b32.xlu1 %v6578_v58, %s6611_s1  ;;  %v9147_v58 = vpop.permute.xlu0 %1552 }
0x4947   :  { %v5670_v48 = vpop.permute.xlu2 %5669 }
0x4948   :  { %v5680_v4 = vmul.f32 %v5670_v48, %v5612_v59  ;;  %v2108_v59 = vadd.f32 %v9092_v1, %v8425_v25  ;;  %v2298_v25 = vadd.f32 %v9092_v1, %v8477_v17  ;;  %v9151_v48 = vpop.permute.xlu0 %1737 }
0x494a   :  { %v5684_v37 = vmul.f32 %v5680_v4, %v8233_v8 }
0x494c   :  { %5693 = vrot.lane.b32.xlu2 %v5684_v37, %s6612_s22 }
0x4957   :  { %v5668_v43 = vpop.permute.xlu1 %5667 }
0x4958   :  { %v5679_v0 = vmul.f32 %v5668_v43, %v9079_v47  ;;  %v5522_v47 = vsel %vm320_vm0, %v9085_v20, 0.0  ;;  %v2486_v20 = vadd.f32 %v9092_v1, %v8472_v15  ;;  %v2678_v43 = vadd.f32 %v9092_v1, %v8560_v18 }
0x4959   :  { %v2867_v18 = vadd.f32 %v9092_v1, %v8580_v52 }
0x495a   :  { %v5683_v55 = vmul.f32 %v5679_v0, %v8233_v8  ;;  %5748 = vrot.lane.b32.xlu1 %v5679_v0, %s6612_s22 }
0x495c   :  { %5691 = vrot.lane.b32.xlu0 %v5683_v55, %s6612_s22 }
0x495f   :  { %v5672_v40 = vpop.permute.xlu1 %5671 }
0x4960   :  { %v5681_v28 = vmul.f32 %v5672_v40, %v5613_v45  ;;  %v2295_v45 = vadd.f32 %v9092_v1, %v8475_v10  ;;  %v2675_v10 = vadd.f32 %v9092_v1, %v8533_v23  ;;  %v2866_v23 = vadd.f32 %v9092_v1, %v8568_v63  ;;  %v9861_v63 = vld [vmem:[#allocation16_spill] sm:$0xff] }
0x4962   :  { %v5685_v16 = vmul.f32 %v5681_v28, %v8233_v8  ;;  %5752 = vrot.lane.b32.xlu2 %v5681_v28, %s6612_s22 }
0x4964   :  { %5695 = vrot.lane.b32.xlu1 %v5685_v16, %s6612_s22  ;;  %5750 = vrot.lane.b32.xlu0 %v5680_v4, %s6612_s22  ;;  %v2488_v4 = vadd.f32 %v9092_v1, %v8481_v35  ;;  %v2865_v35 = vadd.f32 %v9092_v1, %v8605_v49  ;;  %v3057_v16 = vadd.f32 %v9092_v1, %v8611_v14 }
0x4965   :  { %v3246_v49 = vadd.f32 %v9092_v1, %v8636_v57 }
0x496c   :  { %2127 = vperm.xlu0 %6075, %v2108_v59   ;;  %v3626_v59 = vadd.f32 %v9092_v1, %v8731_v41 }
0x498e   :  { %5523 = vadd.xlane.f32.xlu1 %v5522_v47  ;;  %v3816_v47 = vadd.f32 %v9092_v1, %v9861_v63 }
0x499d   :  { %v5674_v31 = vpop.permute.xlu1 %5673 }
0x499e   :  { %v5682_v6 = vmul.f32 %v5674_v31, %v5614_v2  ;;  %v9155_v2 = vpop.permute.xlu0 %1932 }
0x49a0   :  { %5754 = vrot.lane.b32.xlu0 %v5682_v6, %s6612_s22  ;;  %v5686_v52 = vmul.f32 %v5682_v6, %v8233_v8 }
0x49a6   :  { %v9161_v37 = vpop.permute.xlu0 %2117  ;;  %v5694_v55 = vpop.permute.xlu2 %5693 }
0x49a7   :  { %v5706_v57 = vsel %vm320_vm0, %v5694_v55, 0.0 }
0x49a8   :  { %2302 = vperm.xlu0 %6075, %v2295_v45  }
0x49b0   :  { %2317 = vperm.xlu0 %6075, %v2298_v25  }
0x49b8   :  { %2497 = vperm.xlu0 %6075, %v2486_v20  }
0x49bc   :  { %v5753_v28 = vpop.permute.xlu2 %5752 }
0x49c0   :  { %2507 = vperm.xlu0 %6075, %v2488_v4  }
0x49c8   :  { %2682 = vperm.xlu0 %6075, %v2675_v10  }
0x49cc   :  { %v5749_v17 = vpop.permute.xlu1 %5748 }
0x49cd   :  { %6067 = vmatmul.msk.f32.vlgmr.msrb.gmra.mxu3 %vm320_vm0, %v5749_v17 }
0x49ce   :  { %v5692_v15 = vpop.permute.xlu0 %5691 }
0x49cf   :  { %v5703_v0 = vsel %vm320_vm0, %v5692_v15, 0.0 }
0x49d0   :  { %2697 = vperm.xlu0 %6075, %v2678_v43   ;;  %5704 = vadd.xlane.f32.xlu2 %v5703_v0 }
0x49d6   :  { %v5751_v40 = vpop.permute.xlu0 %5750 }
0x49d7   :  { %6068 = vmatmul.msk.f32.gmra.mxu3 %vm320_vm0, %v5751_v40 }
0x49d8   :  { %2872 = vperm.xlu0 %6075, %v2865_v35   ;;  %v5696_v35 = vpop.permute.xlu1 %5695 }
0x49d9   :  { %v5709_v55 = vsel %vm320_vm0, %v5696_v35, 0.0  ;;  %v9866_v35 = vld [vmem:[#allocation33_spill] sm:$0xff] }
0x49de   :  { %v9183_v31 = vpop.permute.xlu0 %2127 }
0x49df   :  { %6069 = vmatmul.msk.f32.gmra.mxu3 %vm320_vm0, %v5753_v28 }
0x49e0   :  { %2877 = vperm.xlu0 %6075, %v2866_v23  }
0x49e8   :  { %2882 = vperm.xlu0 %6075, %v2867_v18  }
0x49f0   :  { %3072 = vperm.xlu0 %6075, %v3057_v16  }
0x49f8   :  { %3257 = vperm.xlu0 %6075, %v3246_v49  }
0x4a00   :  { %3637 = vperm.xlu0 %6075, %v3626_v59   ;;  %v9862_v59 = vld [vmem:[#allocation26_spill] sm:$0xff] }
0x4a01   :  { %v1535_v63 = vadd.f32 %v9092_v1, %v9862_v59 }
0x4a08   :  { %3827 = vperm.xlu0 %6075, %v3816_v47   ;;  %v3818_v47 = vadd.f32 %v9092_v1, %v8765_v11 }
0x4a10   :  { %5697 = vrot.lane.b32.xlu0 %v5686_v52, %s6612_s22  ;;  %v9863_v52 = vld [vmem:[#allocation27_spill] sm:$0xff] }
0x4a12   :  { %v5755_v14 = vpop.permute.xlu0 %5754 }
0x4a13   :  { %6070 = vmatmul.msk.f32.gmra.mxu3 %vm320_vm0, %v5755_v14  ;;  %v4008_v14 = vadd.f32 %v9092_v1, %v8839_v42  ;;  %v4386_v42 = vadd.f32 %v9092_v1, %v8904_v12  ;;  %v4576_v12 = vadd.f32 %v9092_v1, %v8945_v36  ;;  %v9870_v36 = vld [vmem:[#allocation36_spill] sm:$0xff] }
0x4a1a   :  { %v9201_v15 = vpop.permute.xlu0 %2302 }
0x4a22   :  { %v9203_v0 = vpop.permute.xlu0 %2317 }
0x4a2a   :  { %v9206_v40 = vpop.permute.xlu0 %2497 }
0x4a32   :  { %v9209_v18 = vpop.permute.xlu0 %2507 }
0x4a3a   :  { %5707 = vadd.xlane.f32.xlu0 %v5706_v57  ;;  %v9215_v49 = vpop.permute.xlu0 %2682 }
0x4a42   :  { %v9225_v57 = vpop.permute.xlu0 %2697 }
0x4a4a   :  { %v9231_v11 = vpop.permute.xlu0 %2872 }
0x4a50   :  { %v5781_v45 = vpop.f32.mrf.mxu3 }
0x4a51   :  { %v5782_v41 = vadd.f32 %v8899_v30, %v5781_v45  ;;  %v9864_v45 = vld [vmem:[#allocation30_spill] sm:$0xff] }
0x4a53   :  { %6579 = vtanh.f32 %v5782_v41  ;;  %v1727_v41 = vadd.f32 %v9092_v1, %v9864_v45 }
0x4a59   :  { %v9190_v25 = vpop.eup %6579 }
0x4a5a   :  { %5813 = vrot.lane.b32.xlu0 %v9190_v25, %s6611_s1  ;;  %v5784_v20 = vpop.f32.mrf.mxu3 }
0x4a5b   :  { %v5785_v6 = vadd.f32 %v8899_v30, %v5784_v20  ;;  %v4385_v20 = vadd.f32 %v9092_v1, %v8888_v39  ;;  %v4387_v39 = vadd.f32 %v9092_v1, %v8886_v21  ;;  %v4765_v21 = vadd.f32 %v9092_v1, %v8983_v7  ;;  %v9871_v7 = vld [vmem:[#allocation39_spill] sm:$0xff] }
0x4a5d   :  { %6581 = vtanh.f32 %v5785_v6  ;;  %v9865_v6 = vld [vmem:[#allocation31_spill] sm:$0xff] }
0x4a62   :  { %v5787_v4 = vpop.f32.mrf.mxu3 }
0x4a63   :  { %v6582_v10 = vpop.eup %6581  ;;  %v5788_v17 = vadd.f32 %v8899_v30, %v5787_v4  ;;  %v1915_v4 = vadd.f32 %v9092_v1, %v9865_v6  ;;  %v4767_v6 = vadd.f32 %v9092_v1, %v8993_v29  ;;  %v9873_v29 = vld [vmem:[#allocation3_spill] sm:$0xff] }
0x4a64   :  { %5815 = vrot.lane.b32.xlu1 %v6582_v10, %s6611_s1 }
0x4a65   :  { %6583 = vtanh.f32 %v5788_v17  ;;  %v9237_v17 = vpop.permute.xlu0 %2877 }
0x4a6b   :  { %v9197_v43 = vpop.eup %6583 }
0x4a6c   :  { %5817 = vrot.lane.b32.xlu2 %v9197_v43, %s6611_s1 }
0x4a8e   :  { %5710 = vadd.xlane.f32.xlu1 %v5709_v55  ;;  %v1918_v55 = vadd.f32 %v9092_v1, %v9866_v35  ;;  %v4957_v35 = vadd.f32 %v9092_v1, %v9059_v56 }
0x4a96   :  { %v5790_v23 = vpop.f32.mrf.mxu3 }
0x4a97   :  { %v5791_v28 = vadd.f32 %v8899_v30, %v5790_v23  ;;  %v1538_v30 = vadd.f32 %v9092_v1, %v9863_v52  ;;  %v9243_v23 = vpop.permute.xlu0 %2882  ;;  %v9869_v52 = vld [vmem:[#allocation37_spill] sm:$0xff] }
0x4a99   :  { %6585 = vtanh.f32 %v5791_v28  ;;  %v9867_v28 = vld [vmem:[#allocation35_spill] sm:$0xff] }
0x4a9a   :  { %v2105_v59 = vadd.f32 %v9092_v1, %v9867_v28 }
0x4a9f   :  { %v9211_v16 = vpop.eup %6585  ;;  %v9257_v45 = vpop.permute.xlu0 %3072 }
0x4aa0   :  { %5819 = vrot.lane.b32.xlu0 %v9211_v16, %s6611_s1 }
0x4aa7   :  { %1542 = vperm.xlu1 %6076, %v1535_v63   ;;  %v9249_v63 = vpop.xlane.xlu1 %5523 }
0x4aa8   :  { %3837 = vperm.xlu0 %6075, %v3818_v47   ;;  %9868 = vst [vmem:[#allocation16_spill] sm:$0xff] %v9249_v63  ;;  %v5798_v47 = vmul.f32 0.5, %v6582_v10  ;;  %v2297_v10 = vadd.f32 %v9092_v1, %v9870_v36 }
0x4aaf   :  { %1557 = vperm.xlu1 %6076, %v1538_v30   ;;  %v2296_v30 = vadd.f32 %v9092_v1, %v9869_v52 }
0x4ab0   :  { %4027 = vperm.xlu0 %6075, %v4008_v14   ;;  %v9253_v14 = vadd.f32 0.5, %v5798_v47  ;;  %v9874_v47 = vld [vmem:[#allocation9_spill] sm:$0xff] }
0x4ab1   :  { %v3247_v52 = vadd.f32 %v9092_v1, %v9874_v47  ;;  %v9881_v47 = vld [vmem:[#allocation28_spill] sm:$0xff] }
0x4ab7   :  { %1742 = vperm.xlu1 %6076, %v1727_v41  }
0x4ab8   :  { %4392 = vperm.xlu0 %6075, %v4385_v20  }
0x4abf   :  { %1922 = vperm.xlu1 %6076, %v1915_v4   ;;  %v9265_v4 = vpop.permute.xlu0 %3257 }
0x4ac0   :  { %4397 = vperm.xlu0 %6075, %v4386_v42   ;;  %v2487_v42 = vadd.f32 %v9092_v1, %v9871_v7 }
0x4ac7   :  { %1937 = vperm.xlu1 %6076, %v1918_v55   ;;  %v9271_v55 = vpop.permute.xlu0 %3637 }
0x4ac8   :  { %4402 = vperm.xlu0 %6075, %v4387_v39   ;;  %v9872_v39 = vld [vmem:[#allocation41_spill] sm:$0xff] }
0x4ac9   :  { %v2677_v28 = vadd.f32 %v9092_v1, %v9872_v39 }
0x4acf   :  { %2112 = vperm.xlu1 %6076, %v2105_v59   ;;  %v9275_v59 = vpop.permute.xlu0 %3827 }
0x4ad0   :  { %4587 = vperm.xlu0 %6075, %v4576_v12   ;;  %v3056_v12 = vadd.f32 %v9092_v1, %v9873_v29 }
0x4ad6   :  { %v5816_v41 = vpop.permute.xlu1 %5815 }
0x4ad7   :  { %v5826_v20 = vmul.f32 %v5816_v41, %v9253_v14  ;;  %2307 = vperm.xlu1 %6076, %v2296_v30   ;;  %v5698_v30 = vpop.permute.xlu0 %5697 }
0x4ad8   :  { %4772 = vperm.xlu0 %6075, %v4765_v21   ;;  %v5712_v56 = vsel %vm320_vm0, %v5698_v30, 0.0  ;;  %v9875_v21 = vld [vmem:[#allocation42_spill] sm:$0xff] }
0x4ad9   :  { %5835 = vrot.lane.b32.xlu2 %v5826_v20, %s6612_s22  ;;  %v3435_v41 = vadd.f32 %v9092_v1, %v9875_v21  ;;  %v9876_v20 = vld [vmem:[#allocation10_spill] sm:$0xff]  ;;  %v9882_v21 = vld [vmem:[#allocation15_spill] sm:$0xff] }
0x4ada   :  { %v3436_v36 = vadd.f32 %v9092_v1, %v9876_v20  ;;  %v9883_v20 = vld [vmem:[#allocation29_spill] sm:$0xff] }
0x4adf   :  { %2312 = vperm.xlu1 %6076, %v2297_v10  }
0x4ae0   :  { %4782 = vperm.xlu0 %6075, %v4767_v6   ;;  %v9878_v6 = vld [vmem:[#allocation12_spill] sm:$0xff] }
0x4ae1   :  { %v3437_v7 = vadd.f32 %v9092_v1, %v9878_v6 }
0x4ae7   :  { %2502 = vperm.xlu1 %6076, %v2487_v42   ;;  %v9879_v42 = vld [vmem:[#allocation25_spill] sm:$0xff] }
0x4ae8   :  { %4972 = vperm.xlu0 %6075, %v4957_v35   ;;  %v1536_v35 = vadd.f32 %v9092_v1, %v9879_v42  ;;  %v9311_v42 = vpop.xlane.xlu0 %5707 }
0x4ae9   :  { %9884 = vst [vmem:[#allocation27_spill] sm:$0xff] %v9311_v42 }
0x4aef   :  { %2692 = vperm.xlu1 %6076, %v2677_v28   ;;  %v9880_v28 = vld [vmem:[#allocation11_spill] sm:$0xff] }
0x4af0   :  { %v3627_v29 = vadd.f32 %v9092_v1, %v9880_v28  ;;  %v4007_v28 = vadd.f32 %v9092_v1, %v8835_v5  ;;  %v9887_v5 = vld [vmem:[#allocation34_spill] sm:$0xff] }
0x4af7   :  { %3067 = vperm.xlu1 %6076, %v3056_v12   ;;  %v1361_v12 = vlaneseq }
0x4aff   :  { %3262 = vperm.xlu1 %6076, %v3247_v52   ;;  %v1725_v52 = vadd.f32 %v9092_v1, %v9881_v47 }
0x4b01   :  { %v9286_v10 = vpop.xlane.xlu1 %5710 }
0x4b02   :  { %5713 = vadd.xlane.f32.xlu2 %v5712_v56  ;;  %9877 = vst [vmem:[#allocation26_spill] sm:$0xff] %v9286_v10  ;;  %v9300_v56 = vand.u32 127, %v1361_v12  ;;  %v9885_v12 = vld [vmem:[#allocation32_spill] sm:$0xff] }
0x4b03   :  { %v1916_v47 = vadd.f32 %v9092_v1, %v9885_v12 }
0x4b04   :  { %vm1539_vm1 = vcmp.eq.s32.totalorder %v9300_v56, 0  ;;  %vm1729_vm2 = vcmp.eq.s32.totalorder %v9300_v56, 1  ;;  %vm2109_vm3 = vcmp.eq.s32.totalorder %v9300_v56, 3  ;;  %vm1919_vm4 = vcmp.eq.s32.totalorder %v9300_v56, 2 }
0x4b05   :  { %v1562_v6 = vsel %vm1539_vm1, %v9147_v58, 0.0  ;;  %v5814_v58 = vpop.permute.xlu0 %5813  ;;  %vm2489_vm5 = vcmp.eq.s32.totalorder %v9300_v56, 5  ;;  %vm2299_vm6 = vcmp.eq.s32.totalorder %v9300_v56, 4  ;;  %vm2679_vm7 = vcmp.eq.s32.totalorder %v9300_v56, 6 }
0x4b06   :  { %vm2869_vm8 = vcmp.eq.s32.totalorder %v9300_v56, 7  ;;  %vm3059_vm9 = vcmp.eq.s32.totalorder %v9300_v56, 8  ;;  %vm3249_vm10 = vcmp.eq.s32.totalorder %v9300_v56, 9  ;;  %vm3439_vm11 = vcmp.eq.s32.totalorder %v9300_v56, 10 }
0x4b07   :  { %3442 = vperm.xlu1 %6076, %v3435_v41   ;;  %v3815_v41 = vadd.f32 %v9092_v1, %v9882_v21  ;;  %v9322_v21 = vpop.xlane.xlu2 %5704  ;;  %vm3629_vm12 = vcmp.eq.s32.totalorder %v9300_v56, 11  ;;  %vm4009_vm13 = vcmp.eq.s32.totalorder %v9300_v56, 13  ;;  %vm3819_vm14 = vcmp.eq.s32.totalorder %v9300_v56, 12 }
0x4b08   :  { %9886 = vst [vmem:[#allocation30_spill] sm:$0xff] %v9322_v21  ;;  %vm4199_vm15 = vcmp.eq.s32.totalorder %v9300_v56, 14 }
0x4b0f   :  { %3447 = vperm.xlu1 %6076, %v3436_v36   ;;  %v1728_v36 = vadd.f32 %v9092_v1, %v9883_v20 }
0x4b17   :  { %3452 = vperm.xlu1 %6076, %v3437_v7  }
0x4b19   :  { %v9292_v39 = vpop.permute.xlu1 %1542 }
0x4b1a   :  { %1547 = vperm.xlu2 %6077, %v1536_v35  }
0x4b1f   :  { %3642 = vperm.xlu1 %6076, %v3627_v29   ;;  %v5797_v29 = vmul.f32 0.5, %v9190_v25  ;;  %v2107_v25 = vadd.f32 %v9092_v1, %v9887_v5 }
0x4b21   :  { %v9298_v30 = vpop.permute.xlu1 %1557 }
0x4b22   :  { %1732 = vperm.xlu2 %6077, %v1725_v52  }
0x4b27   :  { %3822 = vperm.xlu1 %6076, %v3815_v41   ;;  %v9324_v41 = vadd.f32 0.5, %v5797_v29  ;;  %v9888_v29 = vld [vmem:[#allocation38_spill] sm:$0xff] }
0x4b29   :  { %v1743_v7 = vpop.permute.xlu1 %1742  ;;  %v5825_v20 = vmul.f32 %v5814_v58, %v9324_v41 }
0x4b2a   :  { %v9315_v35 = vsel %vm1729_vm2, %v1743_v7, %v1562_v6  ;;  %1747 = vperm.xlu2 %6077, %v1728_v36   ;;  %v5799_v36 = vmul.f32 0.5, %v9197_v43  ;;  %v5818_v7 = vpop.permute.xlu2 %5817  ;;  %v4195_v43 = vadd.f32 %v9092_v1, %v8881_v62  ;;  %v4575_v62 = vadd.f32 %v9092_v1, %v8948_v33  ;;  %v9893_v33 = vld [vmem:[#allocation8_spill] sm:$0xff] }
0x4b2f   :  { %4022 = vperm.xlu1 %6076, %v4007_v28   ;;  %v9331_v28 = vadd.f32 0.5, %v5799_v36  ;;  %v4388_v36 = vadd.f32 %v9092_v1, %v8893_v34  ;;  %v4578_v34 = vadd.f32 %v9092_v1, %v8952_v46 }
0x4b31   :  { %v1923_v52 = vpop.permute.xlu1 %1922  ;;  %v5827_v12 = vmul.f32 %v5818_v7, %v9331_v28 }
0x4b32   :  { %1927 = vperm.xlu2 %6077, %v1916_v47   ;;  %v2485_v47 = vadd.f32 %v9092_v1, %v9888_v29  ;;  %v9891_v29 = vld [vmem:[#allocation4_spill] sm:$0xff] }
0x4b37   :  { %5833 = vrot.lane.b32.xlu1 %v5825_v20, %s6612_s22  ;;  %v9889_v20 = vld [vmem:[#allocation40_spill] sm:$0xff] }
0x4b38   :  { %v2676_v5 = vadd.f32 %v9092_v1, %v9889_v20  ;;  %v9892_v20 = vld [vmem:[#allocation6_spill] sm:$0xff] }
0x4b39   :  { %v1938_v6 = vpop.permute.xlu1 %1937 }
0x4b3a   :  { %2122 = vperm.xlu2 %6077, %v2107_v25   ;;  %v9890_v25 = vld [vmem:[#allocation5_spill] sm:$0xff] }
0x4b3b   :  { %v2868_v7 = vadd.f32 %v9092_v1, %v9890_v25  ;;  %v4766_v25 = vadd.f32 %v9092_v1, %v9033_v22 }
0x4b3f   :  { %5837 = vrot.lane.b32.xlu1 %v5827_v12, %s6612_s22 }
0x4b41   :  { %v2113_v58 = vpop.permute.xlu1 %2112 }
0x4b42   :  { %2492 = vperm.xlu2 %6077, %v2485_v47   ;;  %v3055_v47 = vadd.f32 %v9092_v1, %v9891_v29  ;;  %v9365_v29 = vpop.permute.xlu2 %5835 }
0x4b47   :  { %4202 = vperm.xlu1 %6076, %v4195_v43  }
0x4b49   :  { %v9341_v42 = vpop.permute.xlu1 %2307 }
0x4b4a   :  { %2687 = vperm.xlu2 %6077, %v2676_v5   ;;  %v3058_v5 = vadd.f32 %v9092_v1, %v9892_v20 }
0x4b4f   :  { %4407 = vperm.xlu1 %6076, %v4388_v36  }
0x4b51   :  { %v9347_v12 = vpop.permute.xlu1 %2312 }
0x4b52   :  { %2887 = vperm.xlu2 %6077, %v2868_v7   ;;  %v3245_v7 = vadd.f32 %v9092_v1, %v9893_v33  ;;  %v9897_v33 = vld [vmem:[#allocation14_spill] sm:$0xff] }
0x4b53   :  { %v3625_v10 = vadd.f32 %v9092_v1, %v9897_v33 }
0x4b57   :  { %4582 = vperm.xlu1 %6076, %v4575_v62  }
0x4b59   :  { %v9353_v43 = vpop.permute.xlu1 %2502 }
0x4b5a   :  { %3062 = vperm.xlu2 %6077, %v3055_v47   ;;  %v9894_v47 = vld [vmem:[#allocation7_spill] sm:$0xff] }
0x4b5b   :  { %v3248_v46 = vadd.f32 %v9092_v1, %v9894_v47  ;;  %v1560_v47 = vsel %vm1539_vm1, %v9292_v39, 0.0  ;;  %v1563_v39 = vsel %vm1539_vm1, %v9298_v30, 0.0 }
0x4b5f   :  { %4597 = vperm.xlu1 %6076, %v4578_v34  }
0x4b61   :  { %v2693_v36 = vpop.permute.xlu1 %2692 }
0x4b62   :  { %3077 = vperm.xlu2 %6077, %v3058_v5   ;;  %v9896_v5 = vld [vmem:[#allocation13_spill] sm:$0xff] }
0x4b63   :  { %v3438_v24 = vadd.f32 %v9092_v1, %v9896_v5 }
0x4b67   :  { %4777 = vperm.xlu1 %6076, %v4766_v25  }
0x4b69   :  { %v9363_v62 = vpop.permute.xlu1 %3067 }
0x4b6a   :  { %3252 = vperm.xlu2 %6077, %v3245_v7  }
0x4b71   :  { %v3263_v34 = vpop.permute.xlu1 %3262 }
0x4b72   :  { %3267 = vperm.xlu2 %6077, %v3248_v46  }
0x4b75   :  { %v9369_v20 = vpop.xlane.xlu2 %5713 }
0x4b76   :  { %9895 = vst [vmem:[#allocation31_spill] sm:$0xff] %v9369_v20  ;;  %v9898_v20 = vld [vmem:[#allocation17_spill] sm:$0xff] }
0x4b77   :  { %v3628_v33 = vadd.f32 %v9092_v1, %v9898_v20 }
0x4b79   :  { %v9373_v22 = vpop.permute.xlu1 %3442 }
0x4b7a   :  { %3457 = vperm.xlu2 %6077, %v3438_v24  }
0x4b7d   :  { %v1548_v25 = vpop.permute.xlu2 %1547 }
0x4b81   :  { %v9377_v7 = vpop.permute.xlu1 %3447 }
0x4b82   :  { %3632 = vperm.xlu2 %6077, %v3625_v10  }
0x4b85   :  { %v1733_v46 = vpop.permute.xlu2 %1732 }
0x4b86   :  { %v1750_v5 = vsel %vm1729_vm2, %v1733_v46, %v1560_v47  ;;  %v9899_v46 = vld [vmem:[#allocation18_spill] sm:$0xff] }
0x4b87   :  { %v1940_v24 = vsel %vm1919_vm4, %v1923_v52, %v1750_v5  ;;  %v3817_v52 = vadd.f32 %v9092_v1, %v8763_v53  ;;  %v4005_v5 = vadd.f32 %v9092_v1, %v9899_v46 }
0x4b88   :  { %v2130_v10 = vsel %vm2109_vm3, %v2113_v58, %v1940_v24  ;;  %v1942_v24 = vsel %vm1919_vm4, %v9155_v2, %v9315_v35 }
0x4b89   :  { %v3453_v21 = vpop.permute.xlu1 %3452 }
0x4b8a   :  { %3647 = vperm.xlu2 %6077, %v3628_v33  }
0x4b8d   :  { %v1748_v63 = vpop.permute.xlu2 %1747 }
0x4b8e   :  { %v1753_v51 = vsel %vm1729_vm2, %v1748_v63, %v1563_v39  ;;  %v9900_v39 = vld [vmem:[#allocation21_spill] sm:$0xff] }
0x4b8f   :  { %v1943_v47 = vsel %vm1919_vm4, %v1938_v6, %v1753_v51  ;;  %v1561_v51 = vsel %vm1539_vm1, %v1548_v25, 0.0  ;;  %vm4389_vm1 = vcmp.eq.s32.totalorder %v9300_v56, 15 }
0x4b90   :  { %v2133_v58 = vsel %vm2109_vm3, %v9183_v31, %v1943_v47  ;;  %v1751_v6 = vsel %vm1729_vm2, %v9151_v48, %v1561_v51  ;;  %v4006_v47 = vadd.f32 %v9092_v1, %v9900_v39  ;;  %vm4579_vm2 = vcmp.eq.s32.totalorder %v9300_v56, 16 }
0x4b91   :  { %v3643_v30 = vpop.permute.xlu1 %3642  ;;  %v2323_v63 = vsel %vm2299_vm6, %v9203_v0, %v2133_v58 }
0x4b92   :  { %3832 = vperm.xlu2 %6077, %v3817_v52   ;;  %v2513_v53 = vsel %vm2489_vm5, %v9209_v18, %v2323_v63  ;;  %v2320_v52 = vsel %vm2299_vm6, %v9201_v15, %v2130_v10  ;;  %v5800_v15 = vmul.f32 0.5, %v9211_v16  ;;  %v5807_v16 = vmul.f32 %v9331_v28, %v9111_v26 }
0x4b93   :  { %v2703_v31 = vsel %vm2679_vm7, %v9225_v57, %v2513_v53  ;;  %v9901_v53 = vld [vmem:[#allocation20_spill] sm:$0xff] }
0x4b95   :  { %v1928_v20 = vpop.permute.xlu2 %1927 }
0x4b96   :  { %v1941_v0 = vsel %vm1919_vm4, %v1928_v20, %v1751_v6  ;;  %vm4959_vm4 = vcmp.eq.s32.totalorder %v9300_v56, 18 }
0x4b97   :  { %v2131_v25 = vsel %vm2109_vm3, %v9161_v37, %v1941_v0  ;;  %v9483_v0 = vadd.f32 0.5, %v5800_v15  ;;  %v9904_v15 = vld [vmem:[#allocation23_spill] sm:$0xff] }
0x4b98   :  { %v2321_v18 = vsel %vm2299_vm6, %v9341_v42, %v2131_v25 }
0x4b99   :  { %v9431_v57 = vpop.permute.xlu1 %3822  ;;  %v2511_v48 = vsel %vm2489_vm5, %v9206_v40, %v2321_v18 }
0x4b9a   :  { %4012 = vperm.xlu2 %6077, %v4005_v5  }
0x4b9d   :  { %v2123_v37 = vpop.permute.xlu2 %2122 }
0x4b9e   :  { %v2132_v33 = vsel %vm2109_vm3, %v2123_v37, %v1942_v24  ;;  %v9902_v37 = vld [vmem:[#allocation19_spill] sm:$0xff]  ;;  %vm4769_vm3 = vcmp.eq.s32.totalorder %v9300_v56, 17 }
0x4b9f   :  { %v2322_v42 = vsel %vm2299_vm6, %v9347_v12, %v2132_v33  ;;  %v4955_v33 = vadd.f32 %v9092_v1, %v9061_v27  ;;  %vm5339_vm6 = vcmp.eq.s32.totalorder %v9300_v56, 20 }
0x4ba0   :  { %v2512_v40 = vsel %vm2489_vm5, %v9353_v43, %v2322_v42 }
0x4ba1   :  { %v2702_v2 = vsel %vm2679_vm7, %v2693_v36, %v2512_v40  ;;  %v9454_v35 = vpop.permute.xlu1 %4022  ;;  %v9903_v40 = vld [vmem:[#allocation24_spill] sm:$0xff] }
0x4ba2   :  { %v2892_v12 = vsel %vm2869_vm8, %v9243_v23, %v2702_v2  ;;  %4017 = vperm.xlu2 %6077, %v4006_v47   ;;  %v4198_v27 = vadd.f32 %v9092_v1, %v9903_v40  ;;  %v5145_v2 = vadd.f32 %v9092_v1, %v9065_v9  ;;  %v4768_v9 = vadd.f32 %v9092_v1, %v9031_v61 }
0x4ba3   :  { %v3082_v43 = vsel %vm3059_vm9, %v9257_v45, %v2892_v12  ;;  %v4196_v45 = vadd.f32 %v9092_v1, %v9901_v53  ;;  %v4956_v53 = vadd.f32 %v9092_v1, %v9063_v60  ;;  %v5526_v61 = vadd.f32 %v9092_v1, %v9103_v50 }
0x4ba4   :  { %v3272_v36 = vsel %vm3249_vm10, %v3263_v34, %v3082_v43  ;;  %v5805_v34 = vmul.f32 %v9324_v41, %v9107_v3  ;;  %v4577_v43 = vadd.f32 %v9092_v1, %v8921_v32  ;;  %v5806_v32 = vmul.f32 %v9253_v14, %v9114_v13 }
0x4ba5   :  { %v2493_v58 = vpop.permute.xlu2 %2492  ;;  %v3462_v23 = vsel %vm3439_vm11, %v3453_v21, %v3272_v36  ;;  %v5820_v21 = vpop.permute.xlu0 %5819 }
0x4ba6   :  { %v2510_v63 = vsel %vm2489_vm5, %v2493_v58, %v2320_v52  ;;  %v9476_v51 = vsel %vm3629_vm12, %v3643_v30, %v3462_v23  ;;  %v5828_v46 = vmul.f32 %v5820_v21, %v9483_v0  ;;  %v5337_v58 = vadd.f32 %v9092_v1, %v9077_v19 }
0x4ba7   :  { %v2700_v39 = vsel %vm2679_vm7, %v9215_v49, %v2510_v63  ;;  %v5846_v63 = vadd.f32 %v9365_v29, %v5806_v32  ;;  %vm5149_vm5 = vcmp.eq.s32.totalorder %v9300_v56, 19 }
0x4ba9   :  { %v5834_v6 = vpop.permute.xlu1 %5833 }
0x4baa   :  { %v5845_v10 = vadd.f32 %v5834_v6, %v5805_v34  ;;  %4207 = vperm.xlu2 %6077, %v4196_v45  }
0x4bac   :  { %6587 = vtanh.f32 %v5845_v10  ;;  %v5146_v10 = vadd.f32 %v9092_v1, %v9904_v15 }
0x4bad   :  { %v2688_v20 = vpop.permute.xlu2 %2687  ;;  %v3838_v19 = vpop.permute.xlu0 %3837 }
0x4bae   :  { %v2701_v30 = vsel %vm2679_vm7, %v2688_v20, %v2511_v48  ;;  %vm5529_vm7 = vcmp.eq.s32.totalorder %v9300_v56, 21 }
0x4baf   :  { %v2891_v25 = vsel %vm2869_vm8, %v9237_v17, %v2701_v30 }
0x4bb0   :  { %v3081_v3 = vsel %vm3059_vm9, %v9363_v62, %v2891_v25  ;;  %v9905_v25 = vld [vmem:[#allocation44_spill] sm:$0xff] }
0x4bb1   :  { %v3271_v5 = vsel %vm3249_vm10, %v9265_v4, %v3081_v3  ;;  %v5838_v18 = vpop.permute.xlu1 %5837  ;;  %v4197_v4 = vadd.f32 %v9092_v1, %v9902_v37 }
0x4bb2   :  { %v6588_v24 = vpop.eup %6587  ;;  %v5847_v48 = vadd.f32 %v5838_v18, %v5807_v16  ;;  %5839 = vrot.lane.b32.xlu2 %v5828_v46, %s6612_s22  ;;  %v9503_v17 = vsel %vm3439_vm11, %v9377_v7, %v3271_v5  ;;  %v2890_v7 = vsel %vm2869_vm8, %v9231_v11, %v2700_v39  ;;  %v5148_v11 = vadd.f32 %v9092_v1, %v9071_v38 }
0x4bb3   :  { %5857 = vrot.lane.b32.xlu1 %v6588_v24, %s6611_s1  ;;  %v5335_v46 = vadd.f32 %v9092_v1, %v9905_v25  ;;  %v9908_v25 = vld [vmem:[#allocation45_spill] sm:$0xff] }
0x4bb4   :  { %6589 = vtanh.f32 %v5847_v48 }
0x4bb5   :  { %v2888_v62 = vpop.permute.xlu2 %2887  ;;  %6591 = vtanh.f32 %v5846_v63  ;;  %v4028_v50 = vpop.permute.xlu0 %4027  ;;  %v9906_v63 = vld [vmem:[#allocation22_spill] sm:$0xff] }
0x4bb6   :  { %v2893_v26 = vsel %vm2869_vm8, %v2888_v62, %v2703_v31  ;;  %v5338_v62 = vadd.f32 %v9092_v1, %v9090_v54  ;;  %vm5719_vm8 = vcmp.eq.s32.totalorder %v9300_v56, 22 }
0x4bb9   :  { %v4203_v21 = vpop.permute.xlu1 %4202 }
0x4bba   :  { %v6590_v42 = vpop.eup %6589  ;;  %4212 = vperm.xlu2 %6077, %v4197_v4  }
0x4bbb   :  { %4962 = vperm.xlu1 %6076, %v4955_v33   ;;  %5861 = vrot.lane.b32.xlu0 %v6590_v42, %s6611_s1  ;;  %v6592_v34 = vpop.eup %6591 }
0x4bbd   :  { %v3063_v31 = vpop.permute.xlu2 %3062  ;;  %v4393_v16 = vpop.permute.xlu0 %4392 }
0x4bbe   :  { %v3080_v47 = vsel %vm3059_vm9, %v3063_v31, %v2890_v7 }
0x4bc1   :  { %v4408_v5 = vpop.permute.xlu1 %4407 }
0x4bc2   :  { %4217 = vperm.xlu2 %6077, %v4198_v27  }
0x4bc3   :  { %5152 = vperm.xlu1 %6076, %v5145_v2  }
0x4bc5   :  { %v3078_v49 = vpop.permute.xlu2 %3077 }
0x4bc6   :  { %v3083_v12 = vsel %vm3059_vm9, %v3078_v49, %v2893_v26  ;;  %v4398_v26 = vpop.permute.xlu0 %4397  ;;  %vm5934_vm9 = vcmask 195584  }
0x4bc9   :  { %v4583_v37 = vpop.permute.xlu1 %4582 }
0x4bca   :  { %4592 = vperm.xlu2 %6077, %v4577_v43  }
0x4bcb   :  { %5167 = vperm.xlu1 %6076, %v5148_v11  }
0x4bcd   :  { %v3253_v36 = vpop.permute.xlu2 %3252 }
0x4bce   :  { %v3270_v52 = vsel %vm3249_vm10, %v3253_v36, %v3080_v47  ;;  %v4403_v39 = vpop.permute.xlu0 %4402 }
0x4bcf   :  { %v3460_v29 = vsel %vm3439_vm11, %v9373_v22, %v3270_v52 }
0x4bd1   :  { %v4598_v47 = vpop.permute.xlu1 %4597 }
0x4bd2   :  { %4787 = vperm.xlu2 %6077, %v4768_v9  }
0x4bd3   :  { %5352 = vperm.xlu1 %6076, %v5337_v58  }
0x4bd5   :  { %v3268_v23 = vpop.permute.xlu2 %3267 }
0x4bd6   :  { %v3273_v38 = vsel %vm3249_vm10, %v3268_v23, %v3083_v12  ;;  %v4588_v49 = vpop.permute.xlu0 %4587 }
0x4bd9   :  { %v4778_v43 = vpop.permute.xlu1 %4777 }
0x4bda   :  { %4967 = vperm.xlu2 %6077, %v4956_v53   ;;  %v4958_v53 = vadd.f32 %v9092_v1, %v9906_v63 }
0x4bdb   :  { %5537 = vperm.xlu1 %6076, %v5526_v61  }
0x4bdd   :  { %v3458_v45 = vpop.permute.xlu2 %3457 }
0x4bde   :  { %v3463_v13 = vsel %vm3439_vm11, %v3458_v45, %v3273_v38  ;;  %v4773_v52 = vpop.permute.xlu0 %4772 }
0x4be2   :  { %5859 = vrot.lane.b32.xlu2 %v6592_v34, %s6611_s1 }
0x4be5   :  { %v3633_v6 = vpop.permute.xlu2 %3632 }
0x4be6   :  { %v3650_v60 = vsel %vm3629_vm12, %v3633_v6, %v3460_v29  ;;  %v4783_v38 = vpop.permute.xlu0 %4782  ;;  %v9907_v6 = vld [vmem:[#allocation43_spill] sm:$0xff] }
0x4be7   :  { %v3840_v4 = vsel %vm3819_vm14, %v9431_v57, %v3650_v60  ;;  %v3651_v57 = vsel %vm3629_vm12, %v9271_v55, %v9503_v17  ;;  %v5808_v17 = vmul.f32 %v9483_v0, %v9124_v44  ;;  %v5147_v60 = vadd.f32 %v9092_v1, %v9907_v6 }
0x4be8   :  { %v3841_v7 = vsel %vm3819_vm14, %v9275_v59, %v3651_v57 }
0x4bea   :  { %5157 = vperm.xlu2 %6077, %v5146_v10  }
0x4bed   :  { %v3648_v20 = vpop.permute.xlu2 %3647 }
0x4bee   :  { %v3653_v30 = vsel %vm3629_vm12, %v3648_v20, %v3463_v13  ;;  %v4973_v20 = vpop.permute.xlu0 %4972 }
0x4bef   :  { %v3843_v22 = vsel %vm3819_vm14, %v3838_v19, %v3653_v30 }
0x4bf0   :  { %v4033_v3 = vsel %vm4009_vm13, %v4028_v50, %v3843_v22 }
0x4bf2   :  { %5342 = vperm.xlu2 %6077, %v5335_v46   ;;  %v5336_v46 = vadd.f32 %v9092_v1, %v9908_v25 }
0x4bf5   :  { %v3833_v18 = vpop.permute.xlu2 %3832 }
0x4bf6   :  { %v3842_v24 = vsel %vm3819_vm14, %v3833_v18, %v9476_v51 }
0x4bf7   :  { %v4032_v48 = vsel %vm4009_vm13, %v9454_v35, %v3842_v24  ;;  %v9909_v24 = vld [vmem:[#allocation46_spill] sm:$0xff] }
0x4bfa   :  { %5357 = vperm.xlu2 %6077, %v5338_v62  }
0x4bfd   :  { %v4013_v33 = vpop.permute.xlu2 %4012 }
0x4bfe   :  { %v4030_v51 = vsel %vm4009_vm13, %v4013_v33, %v3840_v4 }
0x4bff   :  { %v4220_v54 = vsel %vm4199_vm15, %v4203_v21, %v4030_v51 }
0x4c00   :  { %v4410_v35 = vsel %vm4389_vm1, %v4393_v16, %v4220_v54 }
0x4c01   :  { %v4600_v42 = vsel %vm4579_vm2, %v4583_v37, %v4410_v35 }
0x4c02   :  { %v4790_v50 = vsel %vm4769_vm3, %v4773_v52, %v4600_v42  ;;  %v9910_v42 = vld [vmem:[#allocation16_spill] sm:$0xff] }
0x4c03   :  { %v5528_v57 = vadd.f32 %v9092_v1, %v9910_v42 }
0x4c05   :  { %v4018_v31 = vpop.permute.xlu2 %4017 }
0x4c06   :  { %v4031_v40 = vsel %vm4009_vm13, %v4018_v31, %v3841_v7 }
0x4c0d   :  { %v4208_v27 = vpop.permute.xlu2 %4207 }
0x4c0e   :  { %v4221_v2 = vsel %vm4199_vm15, %v4208_v27, %v4031_v40 }
0x4c0f   :  { %v4411_v12 = vsel %vm4389_vm1, %v4398_v26, %v4221_v2  ;;  %v9665_v2 = vld [vmem:[#allocation2] ss:$0 sm:$0xff] }
0x4c10   :  { %v4601_v55 = vsel %vm4579_vm2, %v4588_v49, %v4411_v12  ;;  %v9913_v49 = vld [vmem:[#allocation31_spill] sm:$0xff] }
0x4c11   :  { %v4791_v59 = vsel %vm4769_vm3, %v4778_v43, %v4601_v55  ;;  %v5718_v12 = vadd.f32 %v9665_v2, %v9913_v49 }
0x4c15   :  { %v5840_v11 = vpop.permute.xlu2 %5839 }
0x4c16   :  { %v5848_v36 = vadd.f32 %v5840_v11, %v5808_v17 }
0x4c18   :  { %6593 = vtanh.f32 %v5848_v36 }
0x4c1d   :  { %v4213_v9 = vpop.permute.xlu2 %4212 }
0x4c1e   :  { %v6594_v58 = vpop.eup %6593  ;;  %v4222_v32 = vsel %vm4199_vm15, %v4213_v9, %v4032_v48  ;;  %v5525_v48 = vadd.f32 %v9092_v1, %v9909_v24 }
0x4c1f   :  { %5863 = vrot.lane.b32.xlu0 %v6594_v58, %s6611_s1  ;;  %v4412_v23 = vsel %vm4389_vm1, %v4403_v39, %v4222_v32  ;;  %v9914_v32 = vld [vmem:[#allocation47_spill] sm:$0xff] }
0x4c25   :  { %v5858_v61 = vpop.permute.xlu1 %5857  ;;  %v4218_v44 = vpop.permute.xlu2 %4217 }
0x4c26   :  { %v5869_v19 = vmul.f32 %v5858_v61, %v9324_v41  ;;  %v4223_v45 = vsel %vm4199_vm15, %v4218_v44, %v4033_v3 }
0x4c27   :  { %v4413_v13 = vsel %vm4389_vm1, %v4408_v5, %v4223_v45  ;;  %4977 = vperm.xlu0 %6075, %v4958_v53   ;;  %v9915_v53 = vld [vmem:[#allocation27_spill] sm:$0xff] }
0x4c28   :  { %v5873_v34 = vmul.f32 %v5869_v19, %v8233_v8  ;;  %v4603_v29 = vsel %vm4579_vm2, %v4598_v47, %v4413_v13  ;;  %v5716_v61 = vadd.f32 %v9665_v2, %v9915_v53 }
0x4c2a   :  { %5881 = vrot.lane.b32.xlu2 %v5873_v34, %s6612_s22 }
0x4c2d   :  { %v4963_v41 = vpop.permute.xlu1 %4962  ;;  %v4593_v15 = vpop.permute.xlu2 %4592 }
0x4c2e   :  { %v4980_v10 = vsel %vm4959_vm4, %v4963_v41, %v4790_v50  ;;  %v4602_v21 = vsel %vm4579_vm2, %v4593_v15, %v4412_v23  ;;  %v5862_v26 = vpop.permute.xlu0 %5861  ;;  %v5527_v23 = vadd.f32 %v9665_v2, %v9914_v32 }
0x4c2f   :  { %v4792_v30 = vsel %vm4769_vm3, %v4783_v38, %v4602_v21  ;;  %5162 = vperm.xlu0 %6075, %v5147_v60   ;;  %v5871_v4 = vmul.f32 %v5862_v26, %v9331_v28  ;;  %v9911_v28 = vld [vmem:[#allocation30_spill] sm:$0xff] }
0x4c30   :  { %v4982_v22 = vsel %vm4959_vm4, %v4973_v20, %v4792_v30  ;;  %v5715_v31 = vadd.f32 %v9092_v1, %v9911_v28 }
0x4c31   :  { %v5875_v33 = vmul.f32 %v5871_v4, %v8233_v8 }
0x4c35   :  { %v5153_v3 = vpop.permute.xlu1 %5152  ;;  %v4788_v16 = vpop.permute.xlu2 %4787 }
0x4c36   :  { %v5170_v5 = vsel %vm5149_vm5, %v5153_v3, %v4980_v10  ;;  %v4793_v18 = vsel %vm4769_vm3, %v4788_v16, %v4603_v29 }
0x4c37   :  { %5347 = vperm.xlu0 %6075, %v5336_v46  }
0x4c3d   :  { %v4968_v62 = vpop.permute.xlu2 %4967  ;;  %v5168_v36 = vpop.permute.xlu1 %5167 }
0x4c3e   :  { %v4981_v37 = vsel %vm4959_vm4, %v4968_v62, %v4791_v59 }
0x4c3f   :  { %5532 = vperm.xlu0 %6075, %v5525_v48  }
0x4c45   :  { %v5860_v51 = vpop.permute.xlu2 %5859 }
0x4c46   :  { %v5870_v54 = vmul.f32 %v5860_v51, %v9253_v14  ;;  %v9912_v14 = vld [vmem:[#allocation26_spill] sm:$0xff] }
0x4c47   :  { %5885 = vrot.lane.b32.xlu0 %v5875_v33, %s6612_s22  ;;  %v5717_v47 = vadd.f32 %v9092_v1, %v9912_v14 }
0x4c48   :  { %v5874_v35 = vmul.f32 %v5870_v54, %v8233_v8 }
0x4c4a   :  { %5883 = vrot.lane.b32.xlu1 %v5874_v35, %s6612_s22 }
0x4c4d   :  { %v5158_v39 = vpop.permute.xlu2 %5157 }
0x4c4e   :  { %v5171_v7 = vsel %vm5149_vm5, %v5158_v39, %v4981_v37 }
0x4c4f   :  { %5547 = vperm.xlu0 %6075, %v5528_v57  }
0x4c52   :  { %5722 = vperm.xlu1 %6076, %v5715_v31  }
0x4c55   :  { %v5343_v40 = vpop.permute.xlu2 %5342 }
0x4c56   :  { %v5360_v27 = vsel %vm5339_vm6, %v5343_v40, %v5170_v5 }
0x4c57   :  { %5732 = vperm.xlu0 %6075, %v5717_v47  }
0x4c5a   :  { %5737 = vperm.xlu1 %6076, %v5718_v12  }
0x4c5d   :  { %v5358_v43 = vpop.permute.xlu2 %5357 }
0x4c84   :  { %v5882_v55 = vpop.permute.xlu2 %5881 }
0x4c85   :  { %v5893_v59 = vsel %vm320_vm0, %v5882_v55, 0.0 }
0x4c86   :  { %5894 = vadd.xlane.f32.xlu0 %v5893_v59 }
0x4c91   :  { %v5864_v17 = vpop.permute.xlu0 %5863 }
0x4c92   :  { %v5872_v11 = vmul.f32 %v5864_v17, %v9483_v0  ;;  %v5353_v0 = vpop.permute.xlu1 %5352 }
0x4c94   :  { %v5876_v1 = vmul.f32 %v5872_v11, %v8233_v8 }
0x4c96   :  { %5887 = vrot.lane.b32.xlu2 %v5876_v1, %s6612_s22 }
0x4c99   :  { %v4978_v52 = vpop.permute.xlu0 %4977 }
0x4c9a   :  { %v4983_v9 = vsel %vm4959_vm4, %v4978_v52, %v4793_v18  ;;  %v5538_v19 = vpop.permute.xlu1 %5537 }
0x4c9b   :  { %v5173_v58 = vsel %vm5149_vm5, %v5168_v36, %v4983_v9 }
0x4c9c   :  { %v5363_v38 = vsel %vm5339_vm6, %v5358_v43, %v5173_v58 }
0x4c9e   :  { %5542 = vperm.xlu2 %6077, %v5527_v23  }
0x4ca1   :  { %v5163_v63 = vpop.permute.xlu0 %5162 }
0x4ca2   :  { %v5172_v8 = vsel %vm5149_vm5, %v5163_v63, %v4982_v22 }
0x4ca3   :  { %v5362_v16 = vsel %vm5339_vm6, %v5353_v0, %v5172_v8 }
0x4ca6   :  { %5727 = vperm.xlu2 %6077, %v5716_v61  }
0x4ca9   :  { %v5348_v44 = vpop.permute.xlu0 %5347 }
0x4caa   :  { %v5361_v45 = vsel %vm5339_vm6, %v5348_v44, %v5171_v7 }
0x4cab   :  { %v5551_v13 = vsel %vm5529_vm7, %v5538_v19, %v5361_v45 }
0x4cb1   :  { %v5533_v34 = vpop.permute.xlu0 %5532 }
0x4cb2   :  { %v5550_v29 = vsel %vm5529_vm7, %v5533_v34, %v5360_v27 }
0x4cb9   :  { %v5886_v6 = vpop.permute.xlu0 %5885 }
0x4cba   :  { %v5899_v30 = vsel %vm320_vm0, %v5886_v6, 0.0 }
0x4cbc   :  { %v5884_v60 = vpop.permute.xlu1 %5883 }
0x4cbd   :  { %v5896_v41 = vsel %vm320_vm0, %v5884_v60, 0.0 }
0x4cbe   :  { %5897 = vadd.xlane.f32.xlu1 %v5896_v41 }
0x4cc1   :  { %v5548_v50 = vpop.permute.xlu0 %5547 }
0x4cc2   :  { %v5553_v15 = vsel %vm5529_vm7, %v5548_v50, %v5363_v38 }
0x4cc4   :  { %v5723_v10 = vpop.permute.xlu1 %5722 }
0x4cc5   :  { %v5740_v54 = vsel %vm5719_vm8, %v5723_v10, %v5550_v29 }
0x4cc9   :  { %v5733_v25 = vpop.permute.xlu0 %5732 }
0x4ccc   :  { %v5738_v21 = vpop.permute.xlu1 %5737 }
0x4ccd   :  { %v5743_v20 = vsel %vm5719_vm8, %v5738_v21, %v5553_v15 }
0x4ccf   :  { %5900 = vadd.xlane.f32.xlu2 %v5899_v30 }
0x4cf0   :  { %v5888_v22 = vpop.permute.xlu2 %5887 }
0x4cf1   :  { %v5902_v46 = vsel %vm320_vm0, %v5888_v22, 0.0  ;;  %vm5909_vm0 = vcmp.eq.s32.totalorder %v9300_v56, 23 }
0x4cf2   :  { %5903 = vadd.xlane.f32.xlu0 %v5902_v46 }
0x4cf8   :  { %v5543_v3 = vpop.permute.xlu2 %5542 }
0x4cf9   :  { %v5552_v5 = vsel %vm5529_vm7, %v5543_v3, %v5362_v16  ;;  %v5895_v18 = vpop.xlane.xlu0 %5894 }
0x4cfa   :  { %v5905_v24 = vadd.f32 %v9665_v2, %v5895_v18  ;;  %v5742_v48 = vsel %vm5719_vm8, %v5733_v25, %v5552_v5 }
0x4cfc   :  { %5912 = vperm.xlu2 %6077, %v5905_v24  }
0x4d00   :  { %v5728_v62 = vpop.permute.xlu2 %5727 }
0x4d01   :  { %v5741_v26 = vsel %vm5719_vm8, %v5728_v62, %v5551_v13 }
0x4d31   :  { %v5898_v37 = vpop.xlane.xlu1 %5897 }
0x4d32   :  { %v5906_v4 = vadd.f32 %v9665_v2, %v5898_v37 }
0x4d34   :  { %5917 = vperm.xlu0 %6075, %v5906_v4  }
0x4d42   :  { %v5901_v33 = vpop.xlane.xlu2 %5900 }
0x4d43   :  { %v5907_v51 = vadd.f32 %v9665_v2, %v5901_v33 }
0x4d45   :  { %5922 = vperm.xlu1 %6076, %v5907_v51  }
0x4d56   :  { %v5913_v35 = vpop.permute.xlu2 %5912 }
0x4d57   :  { %v5930_v42 = vsel %vm5909_vm0, %v5913_v35, %v5740_v54 }
0x4d58   :  { %5935 = vst.msk [vmem:[%s9749_s10] sm:$0xff] %vm5934_vm9, %v5930_v42 }
0x4d65   :  { %v5904_v57 = vpop.xlane.xlu0 %5903 }
0x4d66   :  { %v5908_v39 = vadd.f32 %v9665_v2, %v5904_v57 }
0x4d68   :  { %5927 = vperm.xlu2 %6077, %v5908_v39  }
0x4da6   :  { %v5918_v7 = vpop.permute.xlu0 %5917 }
0x4da7   :  { %v5931_v28 = vsel %vm5909_vm0, %v5918_v7, %v5741_v26 }
0x4da8   :  { %5936 = vst.msk [vmem:[%s9749_s10 + $0x8] sm:$0xff] %vm5934_vm9, %v5931_v28 }
0x4db7   :  { %v5923_v31 = vpop.permute.xlu1 %5922 }
0x4db8   :  { %v5932_v14 = vsel %vm5909_vm0, %v5923_v31, %v5742_v48 }
0x4db9   :  { %5937 = vst.msk [vmem:[%s9749_s10 + $0x10] sm:$0xff] %vm5934_vm9, %v5932_v14 }
0x4dc2   :  { %v5928_v47 = vpop.permute.xlu2 %5927 }
0x4dc3   :  { %v5933_v40 = vsel %vm5909_vm0, %v5928_v47, %v5743_v20 }
0x4dc4   :  { %5938 = vst.msk [vmem:[%s9749_s10 + $0x18] sm:$0xff] %vm5934_vm9, %v5933_v40 }

</bundles_post_ra>
